<compile_context>
chip_gen: v6e
topology: v6e:2x2x1
jax: 0.10.0
libtpu: 0.0.40
codegen_flags: <defaults>
</compile_context>

<pallas_src>
import functools

import jax
import jax.numpy as jnp
from jax.experimental import pallas as pl
from jax.experimental.pallas import tpu as pltpu

LAYER_SIZES = [5, 200, 200, 200, 400, 800, 800, 800, 400, 200, 30]
IN_PAD = 128           # lane-dense padded width of the input features (5 -> 128)
OUT_PAD = 128          # lane-dense padded width of the final layer (30 -> 128)
DEFAULT_BLOCK_M = 512  # batch tile cap (amortizes per-grid-step overhead)


def _round_up(x, m):
    return ((x + m - 1) // m) * m


def _device_kind():
    try:
        return jax.devices()[0].device_kind.lower()
    except Exception:
        return ""


def _default_min_steps():
    # v7x has 2 TensorCores/chip: need >= 2 grid steps so the "parallel"
    # batch axis can shard across both cores. v5e/v6e: 1 TC, no constraint.
    return 2 if "v7" in _device_kind() else 1


def _default_vmem_limit():
    # v7x: 64 MiB physical VMEM per TC -> stay well under it.
    # v5e/v6e: 128 MiB physical -> raise above the 16/32 MiB scoped default.
    return (48 << 20) if "v7" in _device_kind() else (64 << 20)


# --------------------------------------------------------------------------
# Kernel
# --------------------------------------------------------------------------
def decoder_kernel(x_ref, *refs):
    # refs = (w1, b1, w2, b2, ..., wN, bN, out_ref)
    out_ref = refs[-1]
    param_refs = refs[:-1]
    n_layers = len(param_refs) // 2

    h = x_ref[...]                        # bf16 (tm, IN_PAD), already lane-dense
    for i in range(n_layers):
        w = param_refs[2 * i][...]        # bf16, VMEM-resident across grid steps
        b = param_refs[2 * i + 1][...]    # f32 (1, out)
        h = jnp.dot(h.astype(jnp.bfloat16), w,
                    preferred_element_type=jnp.float32) + b
        if i < n_layers - 1:
            h = jnp.maximum(h, 0.0)       # ReLU in f32 on the accumulator
    out_ref[...] = h.astype(out_ref.dtype)


# --------------------------------------------------------------------------
# Parameters
# --------------------------------------------------------------------------
def init_params(key):
    """Deterministic PyTorch-style init. Weights stored as (in, out), f32."""
    params = []
    for i in range(len(LAYER_SIZES) - 1):
        fan_in, fan_out = LAYER_SIZES[i], LAYER_SIZES[i + 1]
        key, kw, kb = jax.random.split(key, 3)
        bound = 1.0 / jnp.sqrt(jnp.float32(fan_in))
        w = jax.random.uniform(kw, (fan_in, fan_out), jnp.float32, -bound, bound)
        b = jax.random.uniform(kb, (1, fan_out), jnp.float32, -bound, bound)
        params.append((w, b))
    return params


def prepare_kernel_params(params):
    """bf16 weights, f32 biases.

    First layer's input rows zero-padded 5 -> IN_PAD (matches the padded x),
    last layer's output cols zero-padded 30 -> OUT_PAD (lane-dense stores).
    """
    flat = []
    n = len(params)
    for i, (w, b) in enumerate(params):
        if i == 0:
            w = jnp.pad(w, ((0, IN_PAD - w.shape[0]), (0, 0)))
        if i == n - 1:
            w = jnp.pad(w, ((0, 0), (0, OUT_PAD - w.shape[1])))
            b = jnp.pad(b, ((0, 0), (0, OUT_PAD - b.shape[1])))
        flat.append(w.astype(jnp.bfloat16))
        flat.append(b.astype(jnp.float32))
    return flat


# --------------------------------------------------------------------------
# Forward
# --------------------------------------------------------------------------
@functools.partial(jax.jit, static_argnames=("block_m",))
def decoder_forward(x, flat_params, block_m=DEFAULT_BLOCK_M):
    batch = x.shape[0]
    out_dim = LAYER_SIZES[-1]

    # Resolved once at trace time (static per process).
    min_steps = _default_min_steps()
    vmem_limit = _default_vmem_limit()

    # Batch tiling: balance the tile over the natural number of grid steps
    # (so batch isn't padded up to a full block_m), keep tm a multiple of 8
    # (>= 8), and force >= min_steps steps so megacore chips use both cores.
    steps = max(pl.cdiv(batch, block_m), min_steps)
    tm = max(8, _round_up(pl.cdiv(batch, steps), 8))
    padded_b = tm * steps

    # Lane-dense bf16 input: features 5 -> IN_PAD, rows -> padded_b.
    x = x.astype(jnp.bfloat16)
    x = jnp.pad(x, ((0, padded_b - batch), (0, IN_PAD - x.shape[1])))

    grid = (steps,)

    in_specs = [pl.BlockSpec((tm, IN_PAD), lambda i: (i, 0))]
    for p in flat_params:
        # Weights / biases: full-array block, constant index map, single
        # buffered -> one DMA total, VMEM-resident across all grid steps.
        in_specs.append(
            pl.BlockSpec(p.shape, lambda i: (0, 0),
                         pipeline_mode=pl.Buffered(1)))
    out_specs = pl.BlockSpec((tm, OUT_PAD), lambda i: (i, 0))

    out_padded = pl.pallas_call(
        decoder_kernel,
        out_shape=jax.ShapeDtypeStruct((padded_b, OUT_PAD), jnp.float32),
        grid=grid,
        in_specs=in_specs,
        out_specs=out_specs,
        compiler_params=pltpu.CompilerParams(
            dimension_semantics=("parallel",),   # megacore sharding on v7x
            vmem_limit_bytes=vmem_limit,
        ),
    )(x, *flat_params)

    return out_padded[:batch, :out_dim]


# --------------------------------------------------------------------------
# Reference (mimics bf16 matmul inputs + f32 accumulation)
# --------------------------------------------------------------------------
def decoder_reference(x, params):
    h = x.astype(jnp.float32)
    n = len(params)
    for i, (w, b) in enumerate(params):
        h = jnp.dot(h.astype(jnp.bfloat16), w.astype(jnp.bfloat16),
                    preferred_element_type=jnp.float32) + b
        if i < n - 1:
            h = jnp.maximum(h, 0.0)
    return h


# --------------------------------------------------------------------------
if __name__ == "__main__":
    key = jax.random.PRNGKey(0)
    key, kx = jax.random.split(key)

    batch = 32
    x = jax.random.normal(kx, (batch, LAYER_SIZES[0]), jnp.float32)

    params = init_params(key)
    flat_params = prepare_kernel_params(params)

    # Default block_m: one M=32 step on v5e/v6e, two M=16 steps on v7x.
    out = decoder_forward(x, flat_params)
    out = jax.block_until_ready(out)

    ref = decoder_reference(x, params)
    assert out.shape == (batch, LAYER_SIZES[-1])
    assert jnp.allclose(out, ref, atol=1e-2, rtol=1e-2), "mismatch vs reference"

    print("KERNEL_OK")
</pallas_src>

<mosaic_0001>
module attributes {stable_mosaic.version = 11 : i64} {
  func.func @decoder_kernel(%arg0: i32, %arg1: memref<32x128xbf16, #tpu.memory_space<vmem>>, %arg2: memref<128x200xbf16, #tpu.memory_space<vmem>>, %arg3: memref<1x200xf32, #tpu.memory_space<vmem>>, %arg4: memref<200x200xbf16, #tpu.memory_space<vmem>>, %arg5: memref<1x200xf32, #tpu.memory_space<vmem>>, %arg6: memref<200x200xbf16, #tpu.memory_space<vmem>>, %arg7: memref<1x200xf32, #tpu.memory_space<vmem>>, %arg8: memref<200x400xbf16, #tpu.memory_space<vmem>>, %arg9: memref<1x400xf32, #tpu.memory_space<vmem>>, %arg10: memref<400x800xbf16, #tpu.memory_space<vmem>>, %arg11: memref<1x800xf32, #tpu.memory_space<vmem>>, %arg12: memref<800x800xbf16, #tpu.memory_space<vmem>>, %arg13: memref<1x800xf32, #tpu.memory_space<vmem>>, %arg14: memref<800x800xbf16, #tpu.memory_space<vmem>>, %arg15: memref<1x800xf32, #tpu.memory_space<vmem>>, %arg16: memref<800x400xbf16, #tpu.memory_space<vmem>>, %arg17: memref<1x400xf32, #tpu.memory_space<vmem>>, %arg18: memref<400x200xbf16, #tpu.memory_space<vmem>>, %arg19: memref<1x200xf32, #tpu.memory_space<vmem>>, %arg20: memref<200x128xbf16, #tpu.memory_space<vmem>>, %arg21: memref<1x128xf32, #tpu.memory_space<vmem>>, %arg22: memref<32x128xf32, #tpu.memory_space<vmem>>) attributes {dimension_semantics = [#tpu.dimension_semantics<parallel>], iteration_bounds = array<i64: 1>, scalar_prefetch = 0 : i64, scratch_operands = 0 : i64, tpu.core_type = #tpu.core_type<tc>, window_params = [{transform_indices = @transform_0, window_bounds = array<i64: 32, 128>}, {pipeline_mode = #tpu.pipeline_mode<synchronous>, transform_indices = @transform_1, window_bounds = array<i64: 128, 200>}, {pipeline_mode = #tpu.pipeline_mode<synchronous>, transform_indices = @transform_2, window_bounds = array<i64: 1, 200>}, {pipeline_mode = #tpu.pipeline_mode<synchronous>, transform_indices = @transform_3, window_bounds = array<i64: 200, 200>}, {pipeline_mode = #tpu.pipeline_mode<synchronous>, transform_indices = @transform_4, window_bounds = array<i64: 1, 200>}, {pipeline_mode = #tpu.pipeline_mode<synchronous>, transform_indices = @transform_5, window_bounds = array<i64: 200, 200>}, {pipeline_mode = #tpu.pipeline_mode<synchronous>, transform_indices = @transform_6, window_bounds = array<i64: 1, 200>}, {pipeline_mode = #tpu.pipeline_mode<synchronous>, transform_indices = @transform_7, window_bounds = array<i64: 200, 400>}, {pipeline_mode = #tpu.pipeline_mode<synchronous>, transform_indices = @transform_8, window_bounds = array<i64: 1, 400>}, {pipeline_mode = #tpu.pipeline_mode<synchronous>, transform_indices = @transform_9, window_bounds = array<i64: 400, 800>}, {pipeline_mode = #tpu.pipeline_mode<synchronous>, transform_indices = @transform_10, window_bounds = array<i64: 1, 800>}, {pipeline_mode = #tpu.pipeline_mode<synchronous>, transform_indices = @transform_11, window_bounds = array<i64: 800, 800>}, {pipeline_mode = #tpu.pipeline_mode<synchronous>, transform_indices = @transform_12, window_bounds = array<i64: 1, 800>}, {pipeline_mode = #tpu.pipeline_mode<synchronous>, transform_indices = @transform_13, window_bounds = array<i64: 800, 800>}, {pipeline_mode = #tpu.pipeline_mode<synchronous>, transform_indices = @transform_14, window_bounds = array<i64: 1, 800>}, {pipeline_mode = #tpu.pipeline_mode<synchronous>, transform_indices = @transform_15, window_bounds = array<i64: 800, 400>}, {pipeline_mode = #tpu.pipeline_mode<synchronous>, transform_indices = @transform_16, window_bounds = array<i64: 1, 400>}, {pipeline_mode = #tpu.pipeline_mode<synchronous>, transform_indices = @transform_17, window_bounds = array<i64: 400, 200>}, {pipeline_mode = #tpu.pipeline_mode<synchronous>, transform_indices = @transform_18, window_bounds = array<i64: 1, 200>}, {pipeline_mode = #tpu.pipeline_mode<synchronous>, transform_indices = @transform_19, window_bounds = array<i64: 200, 128>}, {pipeline_mode = #tpu.pipeline_mode<synchronous>, transform_indices = @transform_20, window_bounds = array<i64: 1, 128>}, {transform_indices = @transform_21, window_bounds = array<i64: 32, 128>}]} {
    %c0 = arith.constant 0 : index
    %c0_0 = arith.constant 0 : index
    %0 = vector.load %arg1[%c0, %c0_0] : memref<32x128xbf16, #tpu.memory_space<vmem>>, vector<32x128xbf16>
    %c0_1 = arith.constant 0 : index
    %c0_2 = arith.constant 0 : index
    %1 = vector.load %arg2[%c0_1, %c0_2] : memref<128x200xbf16, #tpu.memory_space<vmem>>, vector<128x200xbf16>
    %c0_3 = arith.constant 0 : index
    %c0_4 = arith.constant 0 : index
    %2 = vector.load %arg3[%c0_3, %c0_4] : memref<1x200xf32, #tpu.memory_space<vmem>>, vector<1x200xf32>
    %cst = arith.constant dense<0.000000e+00> : vector<32x200xf32>
    %3 = tpu.matmul %0, %1, %cst {dimension_numbers = #tpu.dot_dimension_numbers<[1], [0], [0], [1], [0, 0, 1, 1], [], []>} : vector<32x128xbf16>, vector<128x200xbf16>, vector<32x200xf32> -> vector<32x200xf32>
    %4 = vector.broadcast %2 : vector<1x200xf32> to vector<32x200xf32>
    %5 = arith.addf %3, %4 : vector<32x200xf32>
    %cst_5 = arith.constant 0.000000e+00 : f32
    %6 = vector.broadcast %cst_5 : f32 to vector<32x200xf32>
    %7 = arith.maximumf %5, %6 : vector<32x200xf32>
    %c0_6 = arith.constant 0 : index
    %c0_7 = arith.constant 0 : index
    %8 = vector.load %arg4[%c0_6, %c0_7] : memref<200x200xbf16, #tpu.memory_space<vmem>>, vector<200x200xbf16>
    %c0_8 = arith.constant 0 : index
    %c0_9 = arith.constant 0 : index
    %9 = vector.load %arg5[%c0_8, %c0_9] : memref<1x200xf32, #tpu.memory_space<vmem>>, vector<1x200xf32>
    %10 = arith.truncf %7 : vector<32x200xf32> to vector<32x200xbf16>
    %cst_10 = arith.constant dense<0.000000e+00> : vector<32x200xf32>
    %11 = tpu.matmul %10, %8, %cst_10 {dimension_numbers = #tpu.dot_dimension_numbers<[1], [0], [0], [1], [0, 0, 1, 1], [], []>} : vector<32x200xbf16>, vector<200x200xbf16>, vector<32x200xf32> -> vector<32x200xf32>
    %12 = vector.broadcast %9 : vector<1x200xf32> to vector<32x200xf32>
    %13 = arith.addf %11, %12 : vector<32x200xf32>
    %cst_11 = arith.constant 0.000000e+00 : f32
    %14 = vector.broadcast %cst_11 : f32 to vector<32x200xf32>
    %15 = arith.maximumf %13, %14 : vector<32x200xf32>
    %c0_12 = arith.constant 0 : index
    %c0_13 = arith.constant 0 : index
    %16 = vector.load %arg6[%c0_12, %c0_13] : memref<200x200xbf16, #tpu.memory_space<vmem>>, vector<200x200xbf16>
    %c0_14 = arith.constant 0 : index
    %c0_15 = arith.constant 0 : index
    %17 = vector.load %arg7[%c0_14, %c0_15] : memref<1x200xf32, #tpu.memory_space<vmem>>, vector<1x200xf32>
    %18 = arith.truncf %15 : vector<32x200xf32> to vector<32x200xbf16>
    %cst_16 = arith.constant dense<0.000000e+00> : vector<32x200xf32>
    %19 = tpu.matmul %18, %16, %cst_16 {dimension_numbers = #tpu.dot_dimension_numbers<[1], [0], [0], [1], [0, 0, 1, 1], [], []>} : vector<32x200xbf16>, vector<200x200xbf16>, vector<32x200xf32> -> vector<32x200xf32>
    %20 = vector.broadcast %17 : vector<1x200xf32> to vector<32x200xf32>
    %21 = arith.addf %19, %20 : vector<32x200xf32>
    %cst_17 = arith.constant 0.000000e+00 : f32
    %22 = vector.broadcast %cst_17 : f32 to vector<32x200xf32>
    %23 = arith.maximumf %21, %22 : vector<32x200xf32>
    %c0_18 = arith.constant 0 : index
    %c0_19 = arith.constant 0 : index
    %24 = vector.load %arg8[%c0_18, %c0_19] : memref<200x400xbf16, #tpu.memory_space<vmem>>, vector<200x400xbf16>
    %c0_20 = arith.constant 0 : index
    %c0_21 = arith.constant 0 : index
    %25 = vector.load %arg9[%c0_20, %c0_21] : memref<1x400xf32, #tpu.memory_space<vmem>>, vector<1x400xf32>
    %26 = arith.truncf %23 : vector<32x200xf32> to vector<32x200xbf16>
    %cst_22 = arith.constant dense<0.000000e+00> : vector<32x400xf32>
    %27 = tpu.matmul %26, %24, %cst_22 {dimension_numbers = #tpu.dot_dimension_numbers<[1], [0], [0], [1], [0, 0, 1, 1], [], []>} : vector<32x200xbf16>, vector<200x400xbf16>, vector<32x400xf32> -> vector<32x400xf32>
    %28 = vector.broadcast %25 : vector<1x400xf32> to vector<32x400xf32>
    %29 = arith.addf %27, %28 : vector<32x400xf32>
    %cst_23 = arith.constant 0.000000e+00 : f32
    %30 = vector.broadcast %cst_23 : f32 to vector<32x400xf32>
    %31 = arith.maximumf %29, %30 : vector<32x400xf32>
    %c0_24 = arith.constant 0 : index
    %c0_25 = arith.constant 0 : index
    %32 = vector.load %arg10[%c0_24, %c0_25] : memref<400x800xbf16, #tpu.memory_space<vmem>>, vector<400x800xbf16>
    %c0_26 = arith.constant 0 : index
    %c0_27 = arith.constant 0 : index
    %33 = vector.load %arg11[%c0_26, %c0_27] : memref<1x800xf32, #tpu.memory_space<vmem>>, vector<1x800xf32>
    %34 = arith.truncf %31 : vector<32x400xf32> to vector<32x400xbf16>
    %cst_28 = arith.constant dense<0.000000e+00> : vector<32x800xf32>
    %35 = tpu.matmul %34, %32, %cst_28 {dimension_numbers = #tpu.dot_dimension_numbers<[1], [0], [0], [1], [0, 0, 1, 1], [], []>} : vector<32x400xbf16>, vector<400x800xbf16>, vector<32x800xf32> -> vector<32x800xf32>
    %36 = vector.broadcast %33 : vector<1x800xf32> to vector<32x800xf32>
    %37 = arith.addf %35, %36 : vector<32x800xf32>
    %cst_29 = arith.constant 0.000000e+00 : f32
    %38 = vector.broadcast %cst_29 : f32 to vector<32x800xf32>
    %39 = arith.maximumf %37, %38 : vector<32x800xf32>
    %c0_30 = arith.constant 0 : index
    %c0_31 = arith.constant 0 : index
    %40 = vector.load %arg12[%c0_30, %c0_31] : memref<800x800xbf16, #tpu.memory_space<vmem>>, vector<800x800xbf16>
    %c0_32 = arith.constant 0 : index
    %c0_33 = arith.constant 0 : index
    %41 = vector.load %arg13[%c0_32, %c0_33] : memref<1x800xf32, #tpu.memory_space<vmem>>, vector<1x800xf32>
    %42 = arith.truncf %39 : vector<32x800xf32> to vector<32x800xbf16>
    %cst_34 = arith.constant dense<0.000000e+00> : vector<32x800xf32>
    %43 = tpu.matmul %42, %40, %cst_34 {dimension_numbers = #tpu.dot_dimension_numbers<[1], [0], [0], [1], [0, 0, 1, 1], [], []>} : vector<32x800xbf16>, vector<800x800xbf16>, vector<32x800xf32> -> vector<32x800xf32>
    %44 = vector.broadcast %41 : vector<1x800xf32> to vector<32x800xf32>
    %45 = arith.addf %43, %44 : vector<32x800xf32>
    %cst_35 = arith.constant 0.000000e+00 : f32
    %46 = vector.broadcast %cst_35 : f32 to vector<32x800xf32>
    %47 = arith.maximumf %45, %46 : vector<32x800xf32>
    %c0_36 = arith.constant 0 : index
    %c0_37 = arith.constant 0 : index
    %48 = vector.load %arg14[%c0_36, %c0_37] : memref<800x800xbf16, #tpu.memory_space<vmem>>, vector<800x800xbf16>
    %c0_38 = arith.constant 0 : index
    %c0_39 = arith.constant 0 : index
    %49 = vector.load %arg15[%c0_38, %c0_39] : memref<1x800xf32, #tpu.memory_space<vmem>>, vector<1x800xf32>
    %50 = arith.truncf %47 : vector<32x800xf32> to vector<32x800xbf16>
    %cst_40 = arith.constant dense<0.000000e+00> : vector<32x800xf32>
    %51 = tpu.matmul %50, %48, %cst_40 {dimension_numbers = #tpu.dot_dimension_numbers<[1], [0], [0], [1], [0, 0, 1, 1], [], []>} : vector<32x800xbf16>, vector<800x800xbf16>, vector<32x800xf32> -> vector<32x800xf32>
    %52 = vector.broadcast %49 : vector<1x800xf32> to vector<32x800xf32>
    %53 = arith.addf %51, %52 : vector<32x800xf32>
    %cst_41 = arith.constant 0.000000e+00 : f32
    %54 = vector.broadcast %cst_41 : f32 to vector<32x800xf32>
    %55 = arith.maximumf %53, %54 : vector<32x800xf32>
    %c0_42 = arith.constant 0 : index
    %c0_43 = arith.constant 0 : index
    %56 = vector.load %arg16[%c0_42, %c0_43] : memref<800x400xbf16, #tpu.memory_space<vmem>>, vector<800x400xbf16>
    %c0_44 = arith.constant 0 : index
    %c0_45 = arith.constant 0 : index
    %57 = vector.load %arg17[%c0_44, %c0_45] : memref<1x400xf32, #tpu.memory_space<vmem>>, vector<1x400xf32>
    %58 = arith.truncf %55 : vector<32x800xf32> to vector<32x800xbf16>
    %cst_46 = arith.constant dense<0.000000e+00> : vector<32x400xf32>
    %59 = tpu.matmul %58, %56, %cst_46 {dimension_numbers = #tpu.dot_dimension_numbers<[1], [0], [0], [1], [0, 0, 1, 1], [], []>} : vector<32x800xbf16>, vector<800x400xbf16>, vector<32x400xf32> -> vector<32x400xf32>
    %60 = vector.broadcast %57 : vector<1x400xf32> to vector<32x400xf32>
    %61 = arith.addf %59, %60 : vector<32x400xf32>
    %cst_47 = arith.constant 0.000000e+00 : f32
    %62 = vector.broadcast %cst_47 : f32 to vector<32x400xf32>
    %63 = arith.maximumf %61, %62 : vector<32x400xf32>
    %c0_48 = arith.constant 0 : index
    %c0_49 = arith.constant 0 : index
    %64 = vector.load %arg18[%c0_48, %c0_49] : memref<400x200xbf16, #tpu.memory_space<vmem>>, vector<400x200xbf16>
    %c0_50 = arith.constant 0 : index
    %c0_51 = arith.constant 0 : index
    %65 = vector.load %arg19[%c0_50, %c0_51] : memref<1x200xf32, #tpu.memory_space<vmem>>, vector<1x200xf32>
    %66 = arith.truncf %63 : vector<32x400xf32> to vector<32x400xbf16>
    %cst_52 = arith.constant dense<0.000000e+00> : vector<32x200xf32>
    %67 = tpu.matmul %66, %64, %cst_52 {dimension_numbers = #tpu.dot_dimension_numbers<[1], [0], [0], [1], [0, 0, 1, 1], [], []>} : vector<32x400xbf16>, vector<400x200xbf16>, vector<32x200xf32> -> vector<32x200xf32>
    %68 = vector.broadcast %65 : vector<1x200xf32> to vector<32x200xf32>
    %69 = arith.addf %67, %68 : vector<32x200xf32>
    %cst_53 = arith.constant 0.000000e+00 : f32
    %70 = vector.broadcast %cst_53 : f32 to vector<32x200xf32>
    %71 = arith.maximumf %69, %70 : vector<32x200xf32>
    %c0_54 = arith.constant 0 : index
    %c0_55 = arith.constant 0 : index
    %72 = vector.load %arg20[%c0_54, %c0_55] : memref<200x128xbf16, #tpu.memory_space<vmem>>, vector<200x128xbf16>
    %c0_56 = arith.constant 0 : index
    %c0_57 = arith.constant 0 : index
    %73 = vector.load %arg21[%c0_56, %c0_57] : memref<1x128xf32, #tpu.memory_space<vmem>>, vector<1x128xf32>
    %74 = arith.truncf %71 : vector<32x200xf32> to vector<32x200xbf16>
    %cst_58 = arith.constant dense<0.000000e+00> : vector<32x128xf32>
    %75 = tpu.matmul %74, %72, %cst_58 {dimension_numbers = #tpu.dot_dimension_numbers<[1], [0], [0], [1], [0, 0, 1, 1], [], []>} : vector<32x200xbf16>, vector<200x128xbf16>, vector<32x128xf32> -> vector<32x128xf32>
    %76 = vector.broadcast %73 : vector<1x128xf32> to vector<32x128xf32>
    %77 = arith.addf %75, %76 : vector<32x128xf32>
    %c0_59 = arith.constant 0 : index
    %c0_60 = arith.constant 0 : index
    %78 = vector.load %arg22[%c0_59, %c0_60] : memref<32x128xf32, #tpu.memory_space<vmem>>, vector<32x128xf32>
    tpu.vector_store %arg22[%c0_59, %c0_60], %77 {strides = array<i32>} : memref<32x128xf32, #tpu.memory_space<vmem>>, vector<32x128xf32>,
    return
  }
  func.func @transform_0(%arg0: i32) -> (i32, i32) {
    %c0_i32 = arith.constant 0 : i32
    %c0_i32_0 = arith.constant 0 : i32
    return %arg0, %c0_i32 : i32, i32
  }
  func.func @transform_1(%arg0: i32) -> (i32, i32) {
    %c0_i32 = arith.constant 0 : i32
    %c0_i32_0 = arith.constant 0 : i32
    %c0_i32_1 = arith.constant 0 : i32
    return %c0_i32, %c0_i32_0 : i32, i32
  }
  func.func @transform_2(%arg0: i32) -> (i32, i32) {
    %c0_i32 = arith.constant 0 : i32
    %c0_i32_0 = arith.constant 0 : i32
    %c0_i32_1 = arith.constant 0 : i32
    return %c0_i32, %c0_i32_0 : i32, i32
  }
  func.func @transform_3(%arg0: i32) -> (i32, i32) {
    %c0_i32 = arith.constant 0 : i32
    %c0_i32_0 = arith.constant 0 : i32
    %c0_i32_1 = arith.constant 0 : i32
    return %c0_i32, %c0_i32_0 : i32, i32
  }
  func.func @transform_4(%arg0: i32) -> (i32, i32) {
    %c0_i32 = arith.constant 0 : i32
    %c0_i32_0 = arith.constant 0 : i32
    %c0_i32_1 = arith.constant 0 : i32
    return %c0_i32, %c0_i32_0 : i32, i32
  }
  func.func @transform_5(%arg0: i32) -> (i32, i32) {
    %c0_i32 = arith.constant 0 : i32
    %c0_i32_0 = arith.constant 0 : i32
    %c0_i32_1 = arith.constant 0 : i32
    return %c0_i32, %c0_i32_0 : i32, i32
  }
  func.func @transform_6(%arg0: i32) -> (i32, i32) {
    %c0_i32 = arith.constant 0 : i32
    %c0_i32_0 = arith.constant 0 : i32
    %c0_i32_1 = arith.constant 0 : i32
    return %c0_i32, %c0_i32_0 : i32, i32
  }
  func.func @transform_7(%arg0: i32) -> (i32, i32) {
    %c0_i32 = arith.constant 0 : i32
    %c0_i32_0 = arith.constant 0 : i32
    %c0_i32_1 = arith.constant 0 : i32
    return %c0_i32, %c0_i32_0 : i32, i32
  }
  func.func @transform_8(%arg0: i32) -> (i32, i32) {
    %c0_i32 = arith.constant 0 : i32
    %c0_i32_0 = arith.constant 0 : i32
    %c0_i32_1 = arith.constant 0 : i32
    return %c0_i32, %c0_i32_0 : i32, i32
  }
  func.func @transform_9(%arg0: i32) -> (i32, i32) {
    %c0_i32 = arith.constant 0 : i32
    %c0_i32_0 = arith.constant 0 : i32
    %c0_i32_1 = arith.constant 0 : i32
    return %c0_i32, %c0_i32_0 : i32, i32
  }
  func.func @transform_10(%arg0: i32) -> (i32, i32) {
    %c0_i32 = arith.constant 0 : i32
    %c0_i32_0 = arith.constant 0 : i32
    %c0_i32_1 = arith.constant 0 : i32
    return %c0_i32, %c0_i32_0 : i32, i32
  }
  func.func @transform_11(%arg0: i32) -> (i32, i32) {
    %c0_i32 = arith.constant 0 : i32
    %c0_i32_0 = arith.constant 0 : i32
    %c0_i32_1 = arith.constant 0 : i32
    return %c0_i32, %c0_i32_0 : i32, i32
  }
  func.func @transform_12(%arg0: i32) -> (i32, i32) {
    %c0_i32 = arith.constant 0 : i32
    %c0_i32_0 = arith.constant 0 : i32
    %c0_i32_1 = arith.constant 0 : i32
    return %c0_i32, %c0_i32_0 : i32, i32
  }
  func.func @transform_13(%arg0: i32) -> (i32, i32) {
    %c0_i32 = arith.constant 0 : i32
    %c0_i32_0 = arith.constant 0 : i32
    %c0_i32_1 = arith.constant 0 : i32
    return %c0_i32, %c0_i32_0 : i32, i32
  }
  func.func @transform_14(%arg0: i32) -> (i32, i32) {
    %c0_i32 = arith.constant 0 : i32
    %c0_i32_0 = arith.constant 0 : i32
    %c0_i32_1 = arith.constant 0 : i32
    return %c0_i32, %c0_i32_0 : i32, i32
  }
  func.func @transform_15(%arg0: i32) -> (i32, i32) {
    %c0_i32 = arith.constant 0 : i32
    %c0_i32_0 = arith.constant 0 : i32
    %c0_i32_1 = arith.constant 0 : i32
    return %c0_i32, %c0_i32_0 : i32, i32
  }
  func.func @transform_16(%arg0: i32) -> (i32, i32) {
    %c0_i32 = arith.constant 0 : i32
    %c0_i32_0 = arith.constant 0 : i32
    %c0_i32_1 = arith.constant 0 : i32
    return %c0_i32, %c0_i32_0 : i32, i32
  }
  func.func @transform_17(%arg0: i32) -> (i32, i32) {
    %c0_i32 = arith.constant 0 : i32
    %c0_i32_0 = arith.constant 0 : i32
    %c0_i32_1 = arith.constant 0 : i32
    return %c0_i32, %c0_i32_0 : i32, i32
  }
  func.func @transform_18(%arg0: i32) -> (i32, i32) {
    %c0_i32 = arith.constant 0 : i32
    %c0_i32_0 = arith.constant 0 : i32
    %c0_i32_1 = arith.constant 0 : i32
    return %c0_i32, %c0_i32_0 : i32, i32
  }
  func.func @transform_19(%arg0: i32) -> (i32, i32) {
    %c0_i32 = arith.constant 0 : i32
    %c0_i32_0 = arith.constant 0 : i32
    %c0_i32_1 = arith.constant 0 : i32
    return %c0_i32, %c0_i32_0 : i32, i32
  }
  func.func @transform_20(%arg0: i32) -> (i32, i32) {
    %c0_i32 = arith.constant 0 : i32
    %c0_i32_0 = arith.constant 0 : i32
    %c0_i32_1 = arith.constant 0 : i32
    return %c0_i32, %c0_i32_0 : i32, i32
  }
  func.func @transform_21(%arg0: i32) -> (i32, i32) {
    %c0_i32 = arith.constant 0 : i32
    %c0_i32_0 = arith.constant 0 : i32
    return %arg0, %c0_i32 : i32, i32
  }
}

</mosaic_0001>

<bundles_post_ra>
// kernel: decoder_forward.1
= control target key start
LH: loop header
LB: loop body
LE: loop exit
PB: predicated region body
PF: predicated region fallthrough
CT: control target
= control target key end

     0   :  { %s17862_s0 = inlined_call_operand.vmem [shape: bf16[32,128], index: 0, kind: input, shape index: {}]   ;;  %s17863_s1 = inlined_call_operand.vmem [shape: bf16[128,200], index: 1, kind: input, shape index: {}]   ;;  %s17864_s2 = inlined_call_operand.vmem [shape: f32[1,200], index: 2, kind: input, shape index: {}]   ;;  %s17865_s3 = inlined_call_operand.hbm [shape: bf16[200,200], index: 3, kind: input, shape index: {}]   ;;  %s17866_s4 = inlined_call_operand.hbm [shape: f32[1,200], index: 4, kind: input, shape index: {}]   ;;  %s17867_s5 = inlined_call_operand.hbm [shape: bf16[200,200], index: 5, kind: input, shape index: {}]   ;;  %s17868_s6 = inlined_call_operand.hbm [shape: f32[1,200], index: 6, kind: input, shape index: {}]   ;;  %s17869_s7 = inlined_call_operand.vmem [shape: bf16[200,400], index: 7, kind: input, shape index: {}]   ;;  %s17870_s8 = inlined_call_operand.vmem [shape: f32[1,400], index: 8, kind: input, shape index: {}]   ;;  %s17871_s9 = inlined_call_operand.hbm [shape: bf16[400,800], index: 9, kind: input, shape index: {}]   ;;  %s17872_s10 = inlined_call_operand.vmem [shape: f32[1,800], index: 10, kind: input, shape index: {}]   ;;  %s17873_s11 = inlined_call_operand.vmem [shape: bf16[800,800], index: 11, kind: input, shape index: {}]   ;;  %s17874_s12 = inlined_call_operand.vmem [shape: f32[1,800], index: 12, kind: input, shape index: {}]   ;;  %s17875_s13 = inlined_call_operand.hbm [shape: bf16[800,800], index: 13, kind: input, shape index: {}]   ;;  %s17876_s14 = inlined_call_operand.vmem [shape: f32[1,800], index: 14, kind: input, shape index: {}]   ;;  %s17877_s15 = inlined_call_operand.vmem [shape: bf16[800,400], index: 15, kind: input, shape index: {}]   ;;  %s17878_s16 = inlined_call_operand.hbm [shape: f32[1,400], index: 16, kind: input, shape index: {}]   ;;  %s17879_s17 = inlined_call_operand.hbm [shape: bf16[400,200], index: 17, kind: input, shape index: {}]   ;;  %s17880_s18 = inlined_call_operand.hbm [shape: f32[1,200], index: 18, kind: input, shape index: {}]   ;;  %s17881_s19 = inlined_call_operand.vmem [shape: bf16[200,128], index: 19, kind: input, shape index: {}]   ;;  %s17882_s20 = inlined_call_operand.vmem [shape: f32[1,128], index: 20, kind: input, shape index: {}]   ;;  %s17883_s21 = inlined_call_operand.hbm [shape: f32[32,128], index: 21, kind: output, shape index: {}]  }
   0x1   :  { %17892 = sst [smem:[#allocation27_spill]] %s17862_s0 }
   0x2   :  { %17893 = sst [smem:[#allocation28_spill]] %s17863_s1 }
   0x3   :  { %17894 = sst [smem:[#allocation29_spill]] %s17864_s2 }
   0x4   :  { %17895 = sst [smem:[#allocation30_spill]] %s17865_s3 }
   0x5   :  { %17896 = sst [smem:[#allocation31_spill]] %s17866_s4 }
   0x6   :  { %17897 = sst [smem:[#allocation32_spill]] %s17867_s5 }
   0x7   :  { %26 = vsyncpa [#allocation3], 0 }
   0x8   :  { %27 = vsyncpa [#allocation6], 0 }
   0x9   :  { %28 = vsyncpa [#allocation9], 0 }
   0xa   :  { %29 = vsyncpa [#allocation12], 0 }
   0xb   :  { %30 = vsyncpa [#allocation15], 0 }
   0xc   :  { %31 = vsyncpa [#allocation4], 0  ;;  %s15032_s2 = smov [#allocation5]   ;;  %s15033_s26 = smov [#allocation8]  }
   0xd   :  { %s56_s25 = sshll.u32 %s15032_s2, 4  ;;  %s78_s27 = sshll.u32 %s15033_s26, 4  ;;  %s57_s25 = int_to_ptr.vmem [resolvable:$true] %s56_s25  ;;  %s79_s27 = int_to_ptr.vmem [resolvable:$true] %s78_s27 }
   0xe   :  { %s14828_s3 = scalar_lea.vmem %s57_s25, 32  ;;  %p14833_p1 = scmp.lt.s32.totalorder %s57_s25, %s57_s25 }
   0xf   :  { %p14829_p0 = scmp.ne.s32.totalorder %s57_s25, %s14828_s3  ;;  %p14834_p2 = scmp.lt.s32.totalorder %s14828_s3, %s14828_s3 }
  0x11   :  { %p14835_p3 = por %p14834_p2, %p14833_p1 }
  0x13   :  { %p14836_p4 = pnand %p14835_p3, %p14829_p0 }
  0x15   :  { %14839 = shalt.err (!%p14836_p4)
}
  0x16   :  { %s17898_s0 = sld [smem:[#allocation31_spill]]  ;;  %s14848_s4 = scalar_lea.vmem %s79_s27, 32 }
  0x17   :  { %p14849_p5 = scmp.ne.s32.totalorder %s79_s27, %s14848_s4  ;;  %p14853_p6 = scmp.lt.s32.totalorder %s79_s27, %s79_s27 }
  0x18   :  { %p14854_p7 = scmp.lt.s32.totalorder %s14848_s4, %s14848_s4 }
  0x1a   :  { %p14855_p8 = por %p14854_p7, %p14853_p6 }
  0x1c   :  { %59 = dma.hbm_to_vmem [thread:$0]  %s17898_s0, 32, %s57_s25, [#allocation6]  }
  0x1d   :  { %p14856_p9 = pnand %p14855_p8, %p14849_p5 }
  0x1f   :  { %14859 = shalt.err (!%p14856_p9)
}
  0x20   :  { %81 = dma.hbm_to_vmem [thread:$0]  %s17868_s6, 32, %s79_s27, [#allocation9]  }
  0x21   :  { %s15034_s22 = smov [#allocation11]  }
  0x22   :  { %s109_s23 = sshll.u32 %s15034_s22, 4  ;;  %s110_s23 = int_to_ptr.vmem [resolvable:$true] %s109_s23 }
  0x23   :  { %s14868_s1 = scalar_lea.vmem %s110_s23, 44800  ;;  %p14873_p11 = scmp.lt.s32.totalorder %s110_s23, %s110_s23 }
  0x24   :  { %p14869_p10 = scmp.ne.s32.totalorder %s110_s23, %s14868_s1  ;;  %p14874_p12 = scmp.lt.s32.totalorder %s14868_s1, %s14868_s1 }
  0x26   :  { %p14875_p13 = por %p14874_p12, %p14873_p11 }
  0x28   :  { %p14876_p0 = pnand %p14875_p13, %p14869_p10 }
  0x2a   :  { %14879 = shalt.err (!%p14876_p0)
}
  0x2b   :  { %s15035_s24 = smov 448   ;;  %s15036_s2 = smov 28  }
  0x2c   :  { %115 = dma.hbm_to_vmem [thread:$0]  %s17875_s13, 44800, %s110_s23, [#allocation12], %s15035_s24, %s15035_s24, %s15036_s2  }
  0x2d   :  { %s15037_s6 = smov [#allocation14]   ;;  %s15038_s3 = smov [#allocation2]  }
  0x2e   :  { %s135_s27 = sshll.u32 %s15037_s6, 4  ;;  %s43_s28 = sshll.u32 %s15038_s3, 4  ;;  %s136_s27 = int_to_ptr.vmem [resolvable:$true] %s135_s27  ;;  %s44_s28 = int_to_ptr.vmem [resolvable:$true] %s43_s28 }
  0x2f   :  { %s14888_s29 = scalar_lea.vmem %s136_s27, 6400  ;;  %p14893_p2 = scmp.lt.s32.totalorder %s136_s27, %s136_s27 }
  0x30   :  { %p14889_p1 = scmp.ne.s32.totalorder %s136_s27, %s14888_s29  ;;  %p14894_p3 = scmp.lt.s32.totalorder %s14888_s29, %s14888_s29 }
  0x32   :  { %p14895_p4 = por %p14894_p3, %p14893_p2 }
  0x34   :  { %p14896_p5 = pnand %p14895_p4, %p14889_p1 }
  0x36   :  { %14899 = shalt.err (!%p14896_p5)
}
  0x37   :  { %s15039_s0 = smov 128   ;;  %s15040_s4 = smov 8  }
  0x38   :  { %141 = dma.hbm_to_vmem [thread:$0]  %s17879_s17, 6400, %s136_s27, [#allocation15], %s15039_s0, %s15039_s0, %s15040_s4  }
  0x39   :  { %s14908_s13 = scalar_lea.vmem %s44_s28, 3200  ;;  %p14913_p7 = scmp.lt.s32.totalorder %s44_s28, %s44_s28 }
  0x3a   :  { %p14909_p6 = scmp.ne.s32.totalorder %s44_s28, %s14908_s13  ;;  %p14914_p8 = scmp.lt.s32.totalorder %s14908_s13, %s14908_s13 }
  0x3c   :  { %p14915_p9 = por %p14914_p8, %p14913_p7 }
  0x3e   :  { %p14916_p10 = pnand %p14915_p9, %p14909_p6 }
  0x40   :  { %14919 = shalt.err (!%p14916_p10)
}
  0x41   :  { %s17899_s1 = sld [smem:[#allocation30_spill]]  ;;  %s15041_s25 = smov [#allocation7]  }
  0x42   :  { %s65_s26 = sshll.u32 %s15041_s25, 4  ;;  %s15042_s6 = smov [#allocation10]   ;;  %s66_s26 = int_to_ptr.vmem [resolvable:$true] %s65_s26 }
  0x43   :  { %s91_s17 = sshll.u32 %s15042_s6, 4  ;;  %s14928_s27 = scalar_lea.vmem %s66_s26, 3200  ;;  %s92_s17 = int_to_ptr.vmem [resolvable:$true] %s91_s17 }
  0x44   :  { %p14929_p11 = scmp.ne.s32.totalorder %s66_s26, %s14928_s27  ;;  %p14933_p12 = scmp.lt.s32.totalorder %s66_s26, %s66_s26 }
  0x45   :  { %p14934_p13 = scmp.lt.s32.totalorder %s14928_s27, %s14928_s27 }
  0x47   :  { %49 = dma.hbm_to_vmem [thread:$0]  %s17899_s1, 3200, %s44_s28, [#allocation3], %s15039_s0, %s15039_s0, %s15040_s4  }
  0x48   :  { %p14935_p0 = por %p14934_p13, %p14933_p12 }
  0x4a   :  { %p14936_p1 = pnand %p14935_p0, %p14929_p11 }
  0x4c   :  { %14939 = shalt.err (!%p14936_p1)
}
  0x4d   :  { %s17900_s30 = sld [smem:[#allocation32_spill]]  ;;  %s14948_s28 = scalar_lea.vmem %s92_s17, 22400 }
  0x4e   :  { %p14949_p2 = scmp.ne.s32.totalorder %s92_s17, %s14948_s28  ;;  %p14953_p3 = scmp.lt.s32.totalorder %s92_s17, %s92_s17 }
  0x4f   :  { %p14954_p4 = scmp.lt.s32.totalorder %s14948_s28, %s14948_s28 }
  0x51   :  { %p14955_p5 = por %p14954_p4, %p14953_p3 }
  0x53   :  { %71 = dma.hbm_to_vmem [thread:$0]  %s17900_s30, 3200, %s66_s26, [#allocation6], %s15039_s0, %s15039_s0, %s15040_s4  }
  0x54   :  { %p14956_p6 = pnand %p14955_p5, %p14949_p2 }
  0x56   :  { %14959 = shalt.err (!%p14956_p6)
}
  0x57   :  { %97 = dma.hbm_to_vmem [thread:$0]  %s17871_s9, 22400, %s92_s17, [#allocation9], %s15035_s24, %s15035_s24, %s15036_s2  }
  0x58   :  { %s15043_s22 = smov [#allocation13]   ;;  %s15044_s1 = smov [#allocation16]  }
  0x59   :  { %s126_s23 = sshll.u32 %s15043_s22, 4  ;;  %s148_s25 = sshll.u32 %s15044_s1, 4  ;;  %s127_s23 = int_to_ptr.vmem [resolvable:$true] %s126_s23  ;;  %s149_s25 = int_to_ptr.vmem [resolvable:$true] %s148_s25 }
  0x5a   :  { %s14968_s26 = scalar_lea.vmem %s127_s23, 64  ;;  %p14973_p8 = scmp.lt.s32.totalorder %s127_s23, %s127_s23 }
  0x5b   :  { %p14969_p7 = scmp.ne.s32.totalorder %s127_s23, %s14968_s26  ;;  %p14974_p9 = scmp.lt.s32.totalorder %s14968_s26, %s14968_s26 }
  0x5d   :  { %p14975_p10 = por %p14974_p9, %p14973_p8 }
  0x5f   :  { %p14976_p11 = pnand %p14975_p10, %p14969_p7 }
  0x61   :  { %14979 = shalt.err (!%p14976_p11)
}
  0x62   :  { %129 = dma.hbm_to_vmem [thread:$0]  %s17878_s16, 64, %s127_s23, [#allocation12]  }
  0x63   :  { %s14988_s3 = scalar_lea.vmem %s149_s25, 32  ;;  %p14993_p13 = scmp.lt.s32.totalorder %s149_s25, %s149_s25 }
  0x64   :  { %p14989_p12 = scmp.ne.s32.totalorder %s149_s25, %s14988_s3  ;;  %p14994_p0 = scmp.lt.s32.totalorder %s14988_s3, %s14988_s3 }
  0x66   :  { %p14995_p1 = por %p14994_p0, %p14993_p13 }
  0x68   :  { %p14996_p2 = pnand %p14995_p1, %p14989_p12 }
  0x6a   :  { %14999 = shalt.err (!%p14996_p2)
}
  0x6b   :  { %151 = dma.hbm_to_vmem [thread:$0]  %s17880_s18, 32, %s149_s25, [#allocation15]  }
  0x6c   :  { %15020 = dma.done.wait [#allocation3], 3200  }
  0x6d   :  { %15021 = vsyncadd [#allocation3], 4294964096 }
  0x6e   :  { %15022 = dma.done.wait [#allocation6], 3232  }
  0x6f   :  { %15023 = vsyncadd [#allocation6], 4294964064 }
  0x70   :  { %15024 = dma.done.wait [#allocation9], 22432  }
  0x71   :  { %15025 = vsyncadd [#allocation9], 4294944864 }
  0x72   :  { %15026 = dma.done.wait [#allocation12], 44864  }
  0x73   :  { %15027 = vsyncadd [#allocation12], 4294922432 }
  0x74   :  { %15028 = dma.done.wait [#allocation15], 6432  }
  0x75   :  { %15029 = vsyncadd [#allocation15], 4294960864  ;;  %v17886_v0 = vmov 0   ;;  %s17901_s17 = sld [smem:[#allocation28_spill]]  ;;  %v13028_v10 = vld [vmem:[#allocation2 + $0x74] ss:$8 sps:$4 sm:$0xff]  }
  0x76   :  { %340 = vmatprep.mubr.bf16.mxu0 %v17886_v0  ;;  %v13030_v11 = vld [vmem:[#allocation2 + $0x70] ss:$8 sps:$4 sm:$0xff]   ;;  %v13031_v12 = vld [vmem:[#allocation2 + $0x64] ss:$8 sps:$4 sm:$0xff]   ;;  %549 = vmatprep.subr.bf16.mxu1 %v13028_v10  ;;  %v13033_v15 = vld [vmem:[#allocation2 + $0x60] ss:$8 sps:$4 sm:$0xff]  }
  0x77   :  { %550 = vmatpush1.bf16.msra.mxu1 %v13030_v11  ;;  %v13034_v16 = vld [vmem:[#allocation2 + $0x54] ss:$8 sps:$4 sm:$0xff]   ;;  %v13036_v19 = vld [vmem:[#allocation2 + $0x50] ss:$8 sps:$4 sm:$0xff]   ;;  %v13037_v20 = vld [vmem:[#allocation2 + $0x44] ss:$8 sps:$4 sm:$0xff]  }
  0x78   :  { %551 = vmatprep.subr.bf16.mxu1 %v13031_v12  ;;  %v13039_v23 = vld [vmem:[#allocation2 + $0x40] ss:$8 sps:$4 sm:$0xff]   ;;  %v13040_v25 = vld [vmem:[#allocation2 + $0x34] ss:$8 sps:$4 sm:$0xff]   ;;  %v13042_v26 = vld [vmem:[#allocation2 + $0x30] ss:$8 sps:$4 sm:$0xff]  }
  0x79   :  { %v13043_v27 = vld [vmem:[#allocation2 + $0x24] ss:$8 sps:$4 sm:$0xff]   ;;  %s17902_s9 = sld [smem:[#allocation27_spill]]  ;;  %v13045_v29 = vld [vmem:[#allocation2 + $0x20] ss:$8 sps:$4 sm:$0xff]   ;;  %vm542_vm0 = vcmask 1043456  }
  0x7a   :  { %v13046_v30 = vld [vmem:[#allocation2 + $0x14] ss:$8 sps:$4 sm:$0xff]   ;;  %v13048_v31 = vld [vmem:[#allocation2 + $0x10] ss:$8 sps:$4 sm:$0xff]   ;;  %v13049_v32 = vld [vmem:[#allocation2 + $0x4] ss:$8 sps:$4 sm:$0xff]  }
  0x7b   :  { %v13002_v1 = vld [vmem:[%s17901_s17 + $0x74] ss:$8 sps:$4 sm:$0xff]   ;;  %v13004_v2 = vld [vmem:[%s17901_s17 + $0x70] ss:$8 sps:$4 sm:$0xff]   ;;  %v13005_v3 = vld [vmem:[%s17901_s17 + $0x64] ss:$8 sps:$4 sm:$0xff]   ;;  %552 = vmatpush1.bf16.msra.mxu1 %v13033_v15 }
  0x7c   :  { %308 = vmatprep.subr.bf16.mxu0 %v13002_v1  ;;  %v13007_v4 = vld [vmem:[%s17901_s17 + $0x60] ss:$8 sps:$4 sm:$0xff]   ;;  %v13008_v5 = vld [vmem:[%s17901_s17 + $0x54] ss:$8 sps:$4 sm:$0xff]   ;;  %v13010_v6 = vld [vmem:[%s17901_s17 + $0x50] ss:$8 sps:$4 sm:$0xff]   ;;  %553 = vmatprep.subr.bf16.mxu1 %v13034_v16 }
  0x7d   :  { %309 = vmatpush1.bf16.msra.mxu0 %v13004_v2  ;;  %v13011_v7 = vld [vmem:[%s17901_s17 + $0x44] ss:$8 sps:$4 sm:$0xff]   ;;  %v13013_v8 = vld [vmem:[%s17901_s17 + $0x40] ss:$8 sps:$4 sm:$0xff]   ;;  %v13014_v9 = vld [vmem:[%s17901_s17 + $0x34] ss:$8 sps:$4 sm:$0xff]  }
  0x7e   :  { %310 = vmatprep.subr.bf16.mxu0 %v13005_v3  ;;  %v13016_v13 = vld [vmem:[%s17901_s17 + $0x30] ss:$8 sps:$4 sm:$0xff]   ;;  %v13017_v14 = vld [vmem:[%s17901_s17 + $0x24] ss:$8 sps:$4 sm:$0xff]   ;;  %v13019_v17 = vld [vmem:[%s17901_s17 + $0x20] ss:$8 sps:$4 sm:$0xff]  }
  0x7f   :  { %v13020_v18 = vld [vmem:[%s17901_s17 + $0x14] ss:$8 sps:$4 sm:$0xff]   ;;  %v13022_v21 = vld [vmem:[%s17901_s17 + $0x10] ss:$8 sps:$4 sm:$0xff]   ;;  %v13023_v22 = vld [vmem:[%s17901_s17 + $0x4] ss:$8 sps:$4 sm:$0xff]   ;;  %554 = vmatpush1.bf16.msra.mxu1 %v13036_v19 }
  0x80   :  { %v13025_v24 = vld [vmem:[%s17901_s17] ss:$8 sps:$4 sm:$0xff]   ;;  %555 = vmatprep.subr.bf16.mxu1 %v13037_v20  ;;  %v393_v34 = vld [vmem:[#allocation2 + $0xc0] sm:$0xff]  ;;  %v13054_v38 = vld [vmem:[#allocation2 + $0xb4] ss:$8 sps:$4 sm:$0xff]   ;;  %s17903_s29 = sld [smem:[#allocation29_spill]] }
  0x81   :  { %311 = vmatpush1.bf16.msra.mxu0 %v13007_v4  ;;  %v13026_v28 = vld [vmem:[%s17902_s9] sm:$0xff]   ;;  %v13027_v33 = vld [vmem:[%s17902_s9 + $0x8] sm:$0xff]   ;;  %v11505_v36 = vcombine.high %v393_v34, %v393_v34  ;;  %v11504_v37 = vcombine.low %v393_v34, %v393_v34  ;;  %v13066_v47 = vld [vmem:[#allocation7 + $0x70] ss:$8 sps:$4 sm:$0xff]   ;;  %vm535_vm1 = vcmask 588800   ;;  %vm2460_vm2 = vcmask 130048  }
  0x82   :  { %312 = vmatprep.subr.bf16.mxu0 %v13008_v5  ;;  %v13051_v35 = vld [vmem:[#allocation2] ss:$8 sps:$4 sm:$0xff]   ;;  %v13056_v40 = vld [vmem:[#allocation2 + $0xb0] ss:$8 sps:$4 sm:$0xff]   ;;  %v13057_v41 = vld [vmem:[#allocation2 + $0xa4] ss:$8 sps:$4 sm:$0xff]  }
  0x83   :  { %556 = vmatpush1.bf16.msra.mxu1 %v13039_v23  ;;  %v544_v39 = vsel %vm542_vm0, %v11504_v37, 0  ;;  %v13059_v42 = vld [vmem:[#allocation2 + $0xa0] ss:$8 sps:$4 sm:$0xff]   ;;  %v13060_v43 = vld [vmem:[#allocation2 + $0x94] ss:$8 sps:$4 sm:$0xff]   ;;  %vm5162_vm3 = vcmask 261120  }
  0x84   :  { %557 = vmatprep.subr.bf16.mxu1 %v13040_v25  ;;  %v13062_v44 = vld [vmem:[#allocation2 + $0x90] ss:$8 sps:$4 sm:$0xff]   ;;  %v13063_v45 = vld [vmem:[#allocation2 + $0x84] ss:$8 sps:$4 sm:$0xff]   ;;  %v13065_v46 = vld [vmem:[#allocation2 + $0x80] ss:$8 sps:$4 sm:$0xff]  }
  0x85   :  { %313 = vmatpush1.bf16.msra.mxu0 %v13010_v6  ;;  %v13068_v48 = vld [vmem:[#allocation7 + $0x74] ss:$8 sps:$4 sm:$0xff]   ;;  %v13071_v49 = vld [vmem:[#allocation7 + $0x64] ss:$8 sps:$4 sm:$0xff]   ;;  %v13069_v50 = vld [vmem:[#allocation7 + $0x60] ss:$8 sps:$4 sm:$0xff]   ;;  %v206_v6 = vlaneseq }
  0x86   :  { %314 = vmatprep.subr.bf16.mxu0 %v13011_v7  ;;  %v13074_v51 = vld [vmem:[#allocation7 + $0x54] ss:$8 sps:$4 sm:$0xff]   ;;  %v13072_v52 = vld [vmem:[#allocation7 + $0x50] ss:$8 sps:$4 sm:$0xff]   ;;  %v13077_v53 = vld [vmem:[#allocation7 + $0x44] ss:$8 sps:$4 sm:$0xff]  }
  0x87   :  { %558 = vmatpush1.bf16.msra.mxu1 %v13042_v26  ;;  %v13075_v54 = vld [vmem:[#allocation7 + $0x40] ss:$8 sps:$4 sm:$0xff]   ;;  %v13080_v55 = vld [vmem:[#allocation7 + $0x34] ss:$8 sps:$4 sm:$0xff]   ;;  %v13078_v56 = vld [vmem:[#allocation7 + $0x30] ss:$8 sps:$4 sm:$0xff]  }
  0x88   :  { %559 = vmatprep.subr.bf16.mxu1 %v13043_v27  ;;  %v13083_v57 = vld [vmem:[#allocation7 + $0x24] ss:$8 sps:$4 sm:$0xff]   ;;  %v13081_v58 = vld [vmem:[#allocation7 + $0x20] ss:$8 sps:$4 sm:$0xff]   ;;  %v13086_v59 = vld [vmem:[#allocation7 + $0x14] ss:$8 sps:$4 sm:$0xff]  }
  0x89   :  { %315 = vmatpush1.bf16.msra.mxu0 %v13013_v8  ;;  %v13084_v60 = vld [vmem:[#allocation7 + $0x10] ss:$8 sps:$4 sm:$0xff]   ;;  %v13089_v61 = vld [vmem:[#allocation7 + $0x4] ss:$8 sps:$4 sm:$0xff]   ;;  %v13087_v63 = vld [vmem:[#allocation7] ss:$8 sps:$4 sm:$0xff]  }
  0x8a   :  { %316 = vmatprep.subr.bf16.mxu0 %v13014_v9  ;;  %v634_v62 = vld [vmem:[#allocation7 + $0xc0] sm:$0xff]  ;;  %v13094_v3 = vld [vmem:[#allocation7 + $0xb4] ss:$8 sps:$4 sm:$0xff]   ;;  %v13092_v5 = vld [vmem:[#allocation7 + $0xb0] ss:$8 sps:$4 sm:$0xff]   ;;  %v15259_v7 = vshrl.u32 %v206_v6, 7 }
  0x8b   :  { %560 = vmatpush1.bf16.msra.mxu1 %v13045_v29  ;;  %v11534_v1 = vcombine.high %v634_v62, %v634_v62  ;;  %v11533_v2 = vcombine.low %v634_v62, %v634_v62  ;;  %v204_v9 = vld [vmem:[%s17903_s29] sm:$0x3]  ;;  %v13148_v62 = vld [vmem:[%s17869_s7 + $0x4] ss:$16 sps:$4 sm:$0xff]   ;;  %s15046_s30 = smov [#allocation17]  }
  0x8c   :  { %561 = vmatprep.subr.bf16.mxu1 %v13046_v30  ;;  %v15262_v8 = vsub.s32 1, %v15259_v7  ;;  %v15268_v10 = vsub.s32 0, %v15259_v7  ;;  %v13156_v6 = vld [vmem:[%s17869_s7 + $0x160] ss:$16 sps:$4 sm:$0xff]   ;;  %s11446_s18 = sshll.u32 %s15046_s30, 4  ;;  %s11447_s18 = int_to_ptr.vmem [resolvable:$true] %s11446_s18 }
  0x8d   :  { %317 = vmatpush1.bf16.msra.mxu0 %v13016_v13  ;;  %v783_v4 = vsel %vm542_vm0, %v11533_v2, 0  ;;  %p15005_p4 = scmp.lt.s32.totalorder %s11447_s18, %s11447_s18 }
  0x8e   :  { %318 = vmatprep.subr.bf16.mxu0 %v13017_v14  ;;  %v213_v11 = vrot.slane %v204_v9, %v15262_v8  ;;  %v209_v13 = vrot.slane %v204_v9, %v15268_v10  ;;  %v394_v9 = vld [vmem:[#allocation5] sm:$0x3] }
  0x8f   :  { %562 = vmatpush1.bf16.msra.mxu1 %v13048_v31 }
  0x90   :  { %563 = vmatprep.subr.bf16.mxu1 %v13049_v32 }
  0x91   :  { %319 = vmatpush1.bf16.msra.mxu0 %v13019_v17 }
  0x92   :  { %320 = vmatprep.subr.bf16.mxu0 %v13020_v18 }
  0x93   :  { %564 = vmatpush1.bf16.msra.mxu1 %v13051_v35 }
  0x94   :  { %11506 = vmatprep.subr.msk.bf16.mxu1 %vm542_vm0, %v11505_v36 }
  0x95   :  { %321 = vmatpush1.bf16.msra.mxu0 %v13022_v21 }
  0x96   :  { %322 = vmatprep.subr.bf16.mxu0 %v13023_v22 }
  0x97   :  { %572 = vmatpush2.bf16.msra.mxu1 %v544_v39 }
  0x98   :  { %573 = vmatprep.subr.bf16.mxu1 %v13054_v38 }
  0x99   :  { %323 = vmatpush1.bf16.msra.mxu0 %v13025_v24 }
  0x9a   :  { %788 = vmatprep.subr.bf16.mxu0 %v13068_v48  ;;  %v13106_v48 = vld [vmem:[%s17869_s7 + $0xe4] ss:$16 sps:$4 sm:$0xff]  }
  0x9b   :  { %574 = vmatpush2.bf16.msra.mxu1 %v13056_v40 }
  0x9c   :  { %341 = vmatmul.mubr.bf16.vlgmr.msra.gmra.mxu0 %v13026_v28  ;;  %575 = vmatprep.subr.bf16.mxu1 %v13057_v41  ;;  %v13097_v41 = vld [vmem:[#allocation7 + $0xa4] ss:$8 sps:$4 sm:$0xff]  }
  0x9d   :  { %350 = vmatprep.mubr.bf16.mxu0 %v17886_v0  ;;  %789 = vmatpush1.bf16.msra.mxu0 %v13066_v47  ;;  %v13104_v47 = vld [vmem:[%s17869_s7 + $0xe0] ss:$16 sps:$4 sm:$0xff]  }
  0x9e   :  { %790 = vmatprep.subr.bf16.mxu0 %v13071_v49  ;;  %v13109_v49 = vld [vmem:[%s17869_s7 + $0xec] ss:$16 sps:$4 sm:$0xff]  }
  0x9f   :  { %576 = vmatpush2.bf16.msra.mxu1 %v13059_v42  ;;  %v13095_v42 = vld [vmem:[#allocation7 + $0xa0] ss:$8 sps:$4 sm:$0xff]  }
  0xa0   :  { %577 = vmatprep.subr.bf16.mxu1 %v13060_v43  ;;  %v13100_v43 = vld [vmem:[#allocation7 + $0x94] ss:$8 sps:$4 sm:$0xff]  }
  0xa1   :  { %791 = vmatpush1.bf16.msra.mxu0 %v13069_v50  ;;  %v13112_v50 = vld [vmem:[%s17869_s7 + $0xc4] ss:$16 sps:$4 sm:$0xff]  }
  0xa2   :  { %792 = vmatprep.subr.bf16.mxu0 %v13074_v51  ;;  %v13110_v51 = vld [vmem:[%s17869_s7 + $0xc0] ss:$16 sps:$4 sm:$0xff]  }
  0xa3   :  { %578 = vmatpush2.bf16.msra.mxu1 %v13062_v44  ;;  %v13098_v44 = vld [vmem:[#allocation7 + $0x90] ss:$8 sps:$4 sm:$0xff]  }
  0xa4   :  { %351 = vmatmul.mubr.bf16.gmra.mxu0 %v13027_v33  ;;  %579 = vmatprep.subr.bf16.mxu1 %v13063_v45  ;;  %v13103_v45 = vld [vmem:[#allocation7 + $0x84] ss:$8 sps:$4 sm:$0xff]  }
  0xa5   :  { %793 = vmatpush1.bf16.msra.mxu0 %v13072_v52  ;;  %v13118_v52 = vld [vmem:[%s17869_s7 + $0xa4] ss:$16 sps:$4 sm:$0xff]  }
  0xa6   :  { %794 = vmatprep.subr.bf16.mxu0 %v13077_v53  ;;  %v13116_v53 = vld [vmem:[%s17869_s7 + $0xa0] ss:$16 sps:$4 sm:$0xff]  }
  0xa7   :  { %580 = vmatpush2.bf16.msra.mxu1 %v13065_v46  ;;  %v13101_v46 = vld [vmem:[#allocation7 + $0x80] ss:$8 sps:$4 sm:$0xff]  }
  0xa8   :  { %1193 = vmatprep.subr.bf16.mxu1 %v13106_v48  ;;  %v13133_v48 = vld [vmem:[%s17869_s7 + $0x6c] ss:$16 sps:$4 sm:$0xff]  }
  0xa9   :  { %795 = vmatpush1.bf16.msra.mxu0 %v13075_v54  ;;  %v13124_v54 = vld [vmem:[%s17869_s7 + $0x84] ss:$16 sps:$4 sm:$0xff]  }
  0xaa   :  { %796 = vmatprep.subr.bf16.mxu0 %v13080_v55  ;;  %v13122_v55 = vld [vmem:[%s17869_s7 + $0x80] ss:$16 sps:$4 sm:$0xff]  }
  0xad   :  { %797 = vmatpush1.bf16.msra.mxu0 %v13078_v56  ;;  %v13130_v56 = vld [vmem:[%s17869_s7 + $0x64] ss:$16 sps:$4 sm:$0xff]  }
  0xae   :  { %798 = vmatprep.subr.bf16.mxu0 %v13083_v57  ;;  %v13128_v57 = vld [vmem:[%s17869_s7 + $0x60] ss:$16 sps:$4 sm:$0xff]  }
  0xb1   :  { %799 = vmatpush1.bf16.msra.mxu0 %v13081_v58  ;;  %v13136_v58 = vld [vmem:[%s17869_s7 + $0x44] ss:$16 sps:$4 sm:$0xff]  }
  0xb2   :  { %800 = vmatprep.subr.bf16.mxu0 %v13086_v59  ;;  %v13134_v59 = vld [vmem:[%s17869_s7 + $0x40] ss:$16 sps:$4 sm:$0xff]  }
  0xb5   :  { %801 = vmatpush1.bf16.msra.mxu0 %v13084_v60  ;;  %v13142_v60 = vld [vmem:[%s17869_s7 + $0x24] ss:$16 sps:$4 sm:$0xff]  }
  0xb6   :  { %802 = vmatprep.subr.bf16.mxu0 %v13089_v61  ;;  %v13140_v61 = vld [vmem:[%s17869_s7 + $0x20] ss:$16 sps:$4 sm:$0xff]  }
  0xb9   :  { %803 = vmatpush1.bf16.msra.mxu0 %v13087_v63  ;;  %v897_v63 = vld [vmem:[%s17869_s7 + $0x180] sm:$0xff] }
  0xba   :  { %11535 = vmatprep.subr.msk.bf16.mxu0 %vm542_vm0, %v11534_v1  ;;  %v13146_v1 = vld [vmem:[%s17869_s7] ss:$16 sps:$4 sm:$0xff]   ;;  %v11587_v2 = vcombine.high %v897_v63, %v897_v63 }
  0xbd   :  { %811 = vmatpush2.bf16.msra.mxu0 %v783_v4  ;;  %v13158_v4 = vld [vmem:[%s17869_s7 + $0x164] ss:$16 sps:$4 sm:$0xff]  }
  0xbe   :  { %812 = vmatprep.subr.bf16.mxu0 %v13094_v3  ;;  %v11586_v3 = vcombine.low %v897_v63, %v897_v63  ;;  %v13167_v63 = vld [vmem:[%s17869_s7 + $0x14c] ss:$16 sps:$4 sm:$0xff]  }
  0xc1   :  { %813 = vmatpush2.bf16.msra.mxu0 %v13092_v5  ;;  %v1182_v5 = vsel %vm542_vm0, %v11586_v3, 0  ;;  %v13170_v3 = vld [vmem:[%s17869_s7 + $0x124] ss:$16 sps:$4 sm:$0xff]  }
  0xc2   :  { %814 = vmatprep.subr.bf16.mxu0 %v13097_v41 }
  0xc5   :  { %815 = vmatpush2.bf16.msra.mxu0 %v13095_v42 }
  0xc6   :  { %816 = vmatprep.subr.bf16.mxu0 %v13100_v43  ;;  %v13119_v43 = vld [vmem:[%s17869_s7 + $0xa8] ss:$16 sps:$4 sm:$0xff]  }
  0xc9   :  { %817 = vmatpush2.bf16.msra.mxu0 %v13098_v44 }
  0xca   :  { %818 = vmatprep.subr.bf16.mxu0 %v13103_v45  ;;  %v13127_v45 = vld [vmem:[%s17869_s7 + $0x8c] ss:$16 sps:$4 sm:$0xff]  }
  0xcd   :  { %819 = vmatpush2.bf16.msra.mxu0 %v13101_v46 }
  0xce   :  { %1246 = vmatprep.subr.bf16.mxu0 %v13109_v49  ;;  %v13131_v49 = vld [vmem:[%s17869_s7 + $0x68] ss:$16 sps:$4 sm:$0xff]  }
 0x15c   :  { %v342_v12 = vpop.f32.mrf.mxu0 }
 0x15d   :  { %v343_v18 = vadd.f32 %v342_v12, %v209_v13  ;;  %v407_v12 = vrot.slane %v394_v9, %v15262_v8 }
 0x15e   :  { %v344_v14 = vpop.f32.mrf.mxu0 }
 0x15f   :  { %v345_v15 = vadd.f32 %v344_v14, %v213_v11  ;;  %v361_v26 = vmax.f32 %v343_v18, 0.0 }
 0x160   :  { %v346_v16 = vpop.f32.mrf.mxu0 }
 0x161   :  { %v347_v17 = vadd.f32 %v346_v16, %v209_v13  ;;  %v362_v20 = vmax.f32 %v345_v15, 0.0 }
 0x162   :  { %v348_v19 = vpop.f32.mrf.mxu0 }
 0x163   :  { %v349_v21 = vadd.f32 %v348_v19, %v213_v11  ;;  %v363_v22 = vmax.f32 %v347_v17, 0.0 }
 0x164   :  { %v352_v23 = vpop.f32.mrf.mxu0 }
 0x165   :  { %v364_v24 = vmax.f32 %v349_v21, 0.0  ;;  %v353_v25 = vadd.f32 %v352_v23, %v209_v13  ;;  %v395_v30 = vpack.c.bf16 %v363_v22, %v361_v26 }
 0x166   :  { %v354_v27 = vpop.f32.mrf.mxu0 }
 0x167   :  { %v355_v28 = vadd.f32 %v354_v27, %v213_v11  ;;  %v396_v29 = vpack.c.bf16 %v364_v24, %v362_v20  ;;  %v365_v32 = vmax.f32 %v353_v25, 0.0  ;;  %v13107_v25 = vld [vmem:[%s17869_s7 + $0xe8] ss:$16 sps:$4 sm:$0xff]  }
 0x168   :  { %v356_v31 = vpop.f32.mrf.mxu0 }
 0x169   :  { %v357_v33 = vadd.f32 %v356_v31, %v209_v13  ;;  %11507 = vmatprep.mubr.msk.bf16.mxu1 %vm535_vm1, %v396_v29  ;;  %v366_v34 = vmax.f32 %v355_v28, 0.0  ;;  %v403_v13 = vrot.slane %v394_v9, %v15268_v10  ;;  %v13115_v29 = vld [vmem:[%s17869_s7 + $0xcc] ss:$16 sps:$4 sm:$0xff]   ;;  %v13176_v9 = vld [vmem:[%s17869_s7 + $0x104] ss:$16 sps:$4 sm:$0xff]  }
 0x16a   :  { %v358_v35 = vpop.f32.mrf.mxu0  ;;  %582 = vmatmul.mubr.bf16.vlgmr.msra.gmra.mxu1 %v395_v30 }
 0x16b   :  { %v367_v36 = vmax.f32 %v357_v33, 0.0  ;;  %v359_v37 = vadd.f32 %v358_v35, %v213_v11  ;;  %1194 = vmatpush1.bf16.msra.mxu1 %v13104_v47  ;;  %v13113_v35 = vld [vmem:[%s17869_s7 + $0xc8] ss:$16 sps:$4 sm:$0xff]  }
 0x16c   :  { %1195 = vmatprep.subr.bf16.mxu1 %v13112_v50  ;;  %v13125_v47 = vld [vmem:[%s17869_s7 + $0x88] ss:$16 sps:$4 sm:$0xff]   ;;  %v13139_v50 = vld [vmem:[%s17869_s7 + $0x4c] ss:$16 sps:$4 sm:$0xff]  }
 0x16d   :  { %v368_v38 = vmax.f32 %v359_v37, 0.0  ;;  %v397_v39 = vpack.c.bf16 %v367_v36, %v365_v32 }
 0x16f   :  { %v398_v40 = vpack.c.bf16 %v368_v38, %v366_v34  ;;  %1196 = vmatpush1.bf16.msra.mxu1 %v13110_v51  ;;  %v13121_v38 = vld [vmem:[%s17869_s7 + $0xac] ss:$16 sps:$4 sm:$0xff]   ;;  %v13137_v51 = vld [vmem:[%s17869_s7 + $0x48] ss:$16 sps:$4 sm:$0xff]  }
 0x170   :  { %1197 = vmatprep.subr.bf16.mxu1 %v13118_v52  ;;  %v13145_v52 = vld [vmem:[%s17869_s7 + $0x2c] ss:$16 sps:$4 sm:$0xff]  }
 0x171   :  { %11508 = vmatprep.mubr.msk.bf16.mxu1 %vm535_vm1, %v398_v40 }
 0x172   :  { %592 = vmatmul.mubr.bf16.gmra.mxu1 %v397_v39 }
 0x173   :  { %1198 = vmatpush1.bf16.msra.mxu1 %v13116_v53  ;;  %v13143_v53 = vld [vmem:[%s17869_s7 + $0x28] ss:$16 sps:$4 sm:$0xff]  }
 0x174   :  { %1199 = vmatprep.subr.bf16.mxu1 %v13124_v54  ;;  %v13151_v54 = vld [vmem:[%s17869_s7 + $0xc] ss:$16 sps:$4 sm:$0xff]  }
 0x177   :  { %1200 = vmatpush1.bf16.msra.mxu1 %v13122_v55  ;;  %v898_v55 = vld [vmem:[%s17869_s7 + $0x188] sm:$0xff] }
 0x178   :  { %1201 = vmatprep.subr.bf16.mxu1 %v13130_v56  ;;  %v13149_v56 = vld [vmem:[%s17869_s7 + $0x8] ss:$16 sps:$4 sm:$0xff]  }
 0x17b   :  { %1202 = vmatpush1.bf16.msra.mxu1 %v13128_v57  ;;  %v11589_v57 = vcombine.high %v898_v55, %v898_v55 }
 0x17c   :  { %1203 = vmatprep.subr.bf16.mxu1 %v13136_v58  ;;  %v11588_v58 = vcombine.low %v898_v55, %v898_v55  ;;  %v13186_v55 = vld [vmem:[#allocation10 + $0x118] ss:$28 sps:$4 sm:$0xff]  }
 0x17f   :  { %1204 = vmatpush1.bf16.msra.mxu1 %v13134_v59  ;;  %v13161_v59 = vld [vmem:[%s17869_s7 + $0x16c] ss:$16 sps:$4 sm:$0xff]  }
 0x180   :  { %1205 = vmatprep.subr.bf16.mxu1 %v13142_v60  ;;  %v1188_v60 = vsel %vm542_vm0, %v11588_v58, 0  ;;  %v13224_v58 = vld [vmem:[#allocation10 + $0x464] ss:$28 sps:$4 sm:$0xff]  }
 0x183   :  { %1206 = vmatpush1.bf16.msra.mxu1 %v13140_v61  ;;  %v13159_v61 = vld [vmem:[%s17869_s7 + $0x168] ss:$16 sps:$4 sm:$0xff]  }
 0x184   :  { %1207 = vmatprep.subr.bf16.mxu1 %v13148_v62  ;;  %v13164_v62 = vld [vmem:[%s17869_s7 + $0x144] ss:$16 sps:$4 sm:$0xff]  }
 0x187   :  { %1208 = vmatpush1.bf16.msra.mxu1 %v13146_v1  ;;  %v13162_v1 = vld [vmem:[%s17869_s7 + $0x140] ss:$16 sps:$4 sm:$0xff]  }
 0x188   :  { %11590 = vmatprep.subr.msk.bf16.mxu1 %vm542_vm0, %v11587_v2  ;;  %v13165_v2 = vld [vmem:[%s17869_s7 + $0x148] ss:$16 sps:$4 sm:$0xff]  }
 0x18b   :  { %1216 = vmatpush2.bf16.msra.mxu1 %v1182_v5  ;;  %v13168_v5 = vld [vmem:[%s17869_s7 + $0x120] ss:$16 sps:$4 sm:$0xff]  }
 0x18c   :  { %1217 = vmatprep.subr.bf16.mxu1 %v13158_v4  ;;  %v13173_v4 = vld [vmem:[%s17869_s7 + $0x12c] ss:$16 sps:$4 sm:$0xff]  }
 0x18f   :  { %1218 = vmatpush2.bf16.msra.mxu1 %v13156_v6  ;;  %v13171_v6 = vld [vmem:[%s17869_s7 + $0x128] ss:$16 sps:$4 sm:$0xff]  }
 0x190   :  { %1219 = vmatprep.subr.bf16.mxu1 %v13164_v62  ;;  %v13230_v62 = vld [vmem:[#allocation10 + $0x42c] ss:$28 sps:$4 sm:$0xff]  }
 0x193   :  { %1220 = vmatpush2.bf16.msra.mxu1 %v13162_v1  ;;  %v13228_v1 = vld [vmem:[#allocation10 + $0x428] ss:$28 sps:$4 sm:$0xff]  }
 0x194   :  { %1221 = vmatprep.subr.bf16.mxu1 %v13170_v3  ;;  %v13236_v3 = vld [vmem:[#allocation10 + $0x3f4] ss:$28 sps:$4 sm:$0xff]  }
 0x197   :  { %1222 = vmatpush2.bf16.msra.mxu1 %v13168_v5  ;;  %v13234_v5 = vld [vmem:[#allocation10 + $0x3f0] ss:$28 sps:$4 sm:$0xff]  }
 0x198   :  { %1223 = vmatprep.subr.bf16.mxu1 %v13176_v9  ;;  %v13198_v9 = vld [vmem:[#allocation10 + $0x38] ss:$28 sps:$4 sm:$0xff]  }
 0x22a   :  { %v583_v11 = vpop.f32.mrf.mxu1 }
 0x22b   :  { %v584_v18 = vadd.f32 %v583_v11, %v403_v13  ;;  %v13179_v11 = vld [vmem:[%s17869_s7 + $0x10c] ss:$16 sps:$4 sm:$0xff]  }
 0x22c   :  { %v585_v14 = vpop.f32.mrf.mxu1 }
 0x22d   :  { %v586_v16 = vadd.f32 %v585_v14, %v407_v12  ;;  %v602_v26 = vmax.f32 %v584_v18, 0.0  ;;  %v13182_v14 = vld [vmem:[#allocation10 + $0x18c] ss:$28 sps:$4 sm:$0xff]  }
 0x22e   :  { %v587_v15 = vpop.f32.mrf.mxu1 }
 0x22f   :  { %v588_v17 = vadd.f32 %v587_v15, %v403_v13  ;;  %v603_v23 = vmax.f32 %v586_v16, 0.0  ;;  %v13206_v15 = vld [vmem:[#allocation10 + $0x50c] ss:$28 sps:$4 sm:$0xff]   ;;  %v635_v16 = vld [vmem:[#allocation8] sm:$0x3] }
 0x230   :  { %v589_v19 = vpop.f32.mrf.mxu1  ;;  %v648_v18 = vrot.slane %v635_v16, %v15262_v8 }
 0x231   :  { %v590_v20 = vadd.f32 %v589_v19, %v407_v12  ;;  %v604_v21 = vmax.f32 %v588_v17, 0.0  ;;  %v644_v19 = vrot.slane %v635_v16, %v15268_v10  ;;  %v13213_v16 = vld [vmem:[#allocation10 + $0x310] ss:$28 sps:$4 sm:$0xff]  }
 0x232   :  { %v593_v22 = vpop.f32.mrf.mxu1 }
 0x233   :  { %v605_v24 = vmax.f32 %v590_v20, 0.0  ;;  %v594_v27 = vadd.f32 %v593_v22, %v403_v13  ;;  %v636_v32 = vpack.c.bf16 %v604_v21, %v602_v26 }
 0x234   :  { %v595_v28 = vpop.f32.mrf.mxu1 }
 0x235   :  { %v637_v30 = vpack.c.bf16 %v605_v24, %v603_v23  ;;  %v596_v31 = vadd.f32 %v595_v28, %v407_v12  ;;  %v606_v36 = vmax.f32 %v594_v27, 0.0 }
 0x236   :  { %v597_v33 = vpop.f32.mrf.mxu1 }
 0x237   :  { %v598_v34 = vadd.f32 %v597_v33, %v403_v13  ;;  %11536 = vmatprep.mubr.msk.bf16.mxu0 %vm535_vm1, %v637_v30  ;;  %v607_v39 = vmax.f32 %v596_v31, 0.0  ;;  %v13177_v13 = vld [vmem:[%s17869_s7 + $0x108] ss:$16 sps:$4 sm:$0xff]  }
 0x238   :  { %v599_v37 = vpop.f32.mrf.mxu1  ;;  %821 = vmatmul.mubr.bf16.vlgmr.msra.gmra.mxu0 %v636_v32 }
 0x239   :  { %v608_v40 = vmax.f32 %v598_v34, 0.0  ;;  %v600_v41 = vadd.f32 %v599_v37, %v407_v12  ;;  %1247 = vmatpush1.bf16.msra.mxu0 %v13107_v25  ;;  %v13174_v12 = vld [vmem:[%s17869_s7 + $0x100] ss:$16 sps:$4 sm:$0xff]  }
 0x23a   :  { %1248 = vmatprep.subr.bf16.mxu0 %v13115_v29  ;;  %1224 = vmatpush2.bf16.msra.mxu1 %v13174_v12  ;;  %v13204_v37 = vld [vmem:[#allocation10 + $0x508] ss:$28 sps:$4 sm:$0xff]   ;;  %v13201_v12 = vld [vmem:[#allocation10] ss:$28 sps:$4 sm:$0xff]  }
 0x23b   :  { %v609_v42 = vmax.f32 %v600_v41, 0.0  ;;  %v638_v44 = vpack.c.bf16 %v608_v40, %v606_v36  ;;  %2467 = vmatprep.subr.bf16.mxu1 %v13182_v14  ;;  %v13180_v36 = vld [vmem:[#allocation10 + $0x188] ss:$28 sps:$4 sm:$0xff]   ;;  %v13185_v40 = vld [vmem:[#allocation10 + $0x154] ss:$28 sps:$4 sm:$0xff]  }
 0x23c   :  { %v13212_v41 = vld [vmem:[#allocation10 + $0x4d4] ss:$28 sps:$4 sm:$0xff]   ;;  %v13207_v14 = vld [vmem:[#allocation10 + $0x348] ss:$28 sps:$4 sm:$0xff]  }
 0x23d   :  { %v639_v46 = vpack.c.bf16 %v609_v42, %v607_v39  ;;  %1249 = vmatpush1.bf16.msra.mxu0 %v13113_v35 }
 0x23e   :  { %1250 = vmatprep.subr.bf16.mxu0 %v13121_v38 }
 0x23f   :  { %11537 = vmatprep.mubr.msk.bf16.mxu0 %vm535_vm1, %v639_v46 }
 0x240   :  { %831 = vmatmul.mubr.bf16.gmra.mxu0 %v638_v44 }
 0x241   :  { %1251 = vmatpush1.bf16.msra.mxu0 %v13119_v43 }
 0x242   :  { %1252 = vmatprep.subr.bf16.mxu0 %v13127_v45 }
 0x245   :  { %1253 = vmatpush1.bf16.msra.mxu0 %v13125_v47 }
 0x246   :  { %1254 = vmatprep.subr.bf16.mxu0 %v13133_v48  ;;  %v13183_v48 = vld [vmem:[#allocation10 + $0x150] ss:$28 sps:$4 sm:$0xff]  }
 0x249   :  { %1255 = vmatpush1.bf16.msra.mxu0 %v13131_v49  ;;  %v13210_v49 = vld [vmem:[#allocation10 + $0x4d0] ss:$28 sps:$4 sm:$0xff]  }
 0x24a   :  { %1256 = vmatprep.subr.bf16.mxu0 %v13139_v50  ;;  %v13188_v50 = vld [vmem:[#allocation10 + $0x11c] ss:$28 sps:$4 sm:$0xff]  }
 0x24d   :  { %1257 = vmatpush1.bf16.msra.mxu0 %v13137_v51  ;;  %v13218_v51 = vld [vmem:[#allocation10 + $0x49c] ss:$28 sps:$4 sm:$0xff]  }
 0x24e   :  { %1258 = vmatprep.subr.bf16.mxu0 %v13145_v52 }
 0x251   :  { %1259 = vmatpush1.bf16.msra.mxu0 %v13143_v53 }
 0x252   :  { %1260 = vmatprep.subr.bf16.mxu0 %v13151_v54 }
 0x255   :  { %1261 = vmatpush1.bf16.msra.mxu0 %v13149_v56  ;;  %v13216_v56 = vld [vmem:[#allocation10 + $0x498] ss:$28 sps:$4 sm:$0xff]  }
 0x256   :  { %11593 = vmatprep.subr.msk.bf16.mxu0 %vm542_vm0, %v11589_v57  ;;  %v13191_v57 = vld [vmem:[#allocation10 + $0xe4] ss:$28 sps:$4 sm:$0xff]  }
 0x259   :  { %1269 = vmatpush2.bf16.msra.mxu0 %v1188_v60  ;;  %v13222_v60 = vld [vmem:[#allocation10 + $0x460] ss:$28 sps:$4 sm:$0xff]  }
 0x25a   :  { %1270 = vmatprep.subr.bf16.mxu0 %v13161_v59  ;;  %v13189_v59 = vld [vmem:[#allocation10 + $0xe0] ss:$28 sps:$4 sm:$0xff]  }
 0x25d   :  { %1271 = vmatpush2.bf16.msra.mxu0 %v13159_v61  ;;  %v13194_v61 = vld [vmem:[#allocation10 + $0xac] ss:$28 sps:$4 sm:$0xff]  }
 0x25e   :  { %1272 = vmatprep.subr.bf16.mxu0 %v13167_v63  ;;  %v13192_v63 = vld [vmem:[#allocation10 + $0xa8] ss:$28 sps:$4 sm:$0xff]  }
 0x261   :  { %1273 = vmatpush2.bf16.msra.mxu0 %v13165_v2  ;;  %v13197_v2 = vld [vmem:[#allocation10 + $0x74] ss:$28 sps:$4 sm:$0xff]  }
 0x262   :  { %1274 = vmatprep.subr.bf16.mxu0 %v13173_v4  ;;  %v13195_v4 = vld [vmem:[#allocation10 + $0x70] ss:$28 sps:$4 sm:$0xff]  }
 0x265   :  { %1275 = vmatpush2.bf16.msra.mxu0 %v13171_v6  ;;  %v13200_v6 = vld [vmem:[#allocation10 + $0x3c] ss:$28 sps:$4 sm:$0xff]  }
 0x266   :  { %1276 = vmatprep.subr.bf16.mxu0 %v13179_v11  ;;  %v13203_v11 = vld [vmem:[#allocation10 + $0x4] ss:$28 sps:$4 sm:$0xff]  }
 0x269   :  { %1277 = vmatpush2.bf16.msra.mxu0 %v13177_v13  ;;  %v13209_v13 = vld [vmem:[#allocation10 + $0x34c] ss:$28 sps:$4 sm:$0xff]  }
 0x26a   :  { %2520 = vmatprep.subr.bf16.mxu0 %v13206_v15  ;;  %v13215_v15 = vld [vmem:[#allocation10 + $0x314] ss:$28 sps:$4 sm:$0xff]  }
 0x2f8   :  { %v822_v17 = vpop.f32.mrf.mxu0 }
 0x2f9   :  { %v823_v24 = vadd.f32 %v822_v17, %v644_v19  ;;  %v13221_v17 = vld [vmem:[#allocation10 + $0x2dc] ss:$28 sps:$4 sm:$0xff]  }
 0x2fa   :  { %v824_v20 = vpop.f32.mrf.mxu0 }
 0x2fb   :  { %v825_v22 = vadd.f32 %v824_v20, %v648_v18  ;;  %v841_v31 = vmax.f32 %v823_v24, 0.0  ;;  %v13225_v20 = vld [vmem:[#allocation10 + $0x2a0] ss:$28 sps:$4 sm:$0xff]  }
 0x2fc   :  { %v826_v21 = vpop.f32.mrf.mxu0  ;;  %v13242_v24 = vld [vmem:[#allocation10 + $0x3bc] ss:$28 sps:$4 sm:$0xff]  }
 0x2fd   :  { %v827_v23 = vadd.f32 %v826_v21, %v644_v19  ;;  %v842_v29 = vmax.f32 %v825_v22, 0.0  ;;  %v13233_v21 = vld [vmem:[#allocation10 + $0x26c] ss:$28 sps:$4 sm:$0xff]  }
 0x2fe   :  { %v828_v25 = vpop.f32.mrf.mxu0  ;;  %v13231_v22 = vld [vmem:[#allocation10 + $0x268] ss:$28 sps:$4 sm:$0xff]  }
 0x2ff   :  { %v829_v26 = vadd.f32 %v828_v25, %v648_v18  ;;  %v843_v27 = vmax.f32 %v827_v23, 0.0  ;;  %v13239_v23 = vld [vmem:[#allocation10 + $0x234] ss:$28 sps:$4 sm:$0xff]  }
 0x300   :  { %v832_v28 = vpop.f32.mrf.mxu0  ;;  %v13237_v25 = vld [vmem:[#allocation10 + $0x230] ss:$28 sps:$4 sm:$0xff]  }
 0x301   :  { %v844_v30 = vmax.f32 %v829_v26, 0.0  ;;  %v833_v32 = vadd.f32 %v832_v28, %v644_v19  ;;  %v900_v38 = vpack.c.bf16 %v843_v27, %v841_v31  ;;  %v13240_v26 = vld [vmem:[#allocation10 + $0x3b8] ss:$28 sps:$4 sm:$0xff]   ;;  %v13248_v28 = vld [vmem:[#allocation10 + $0x384] ss:$28 sps:$4 sm:$0xff]  }
 0x302   :  { %v834_v33 = vpop.f32.mrf.mxu0  ;;  %v13245_v27 = vld [vmem:[#allocation10 + $0x1fc] ss:$28 sps:$4 sm:$0xff]   ;;  %v13251_v31 = vld [vmem:[#allocation10 + $0x1c4] ss:$28 sps:$4 sm:$0xff]  }
 0x303   :  { %v901_v34 = vpack.c.bf16 %v844_v30, %v842_v29  ;;  %v835_v35 = vadd.f32 %v834_v33, %v648_v18  ;;  %v845_v43 = vmax.f32 %v833_v32, 0.0  ;;  %v13243_v29 = vld [vmem:[#allocation10 + $0x1f8] ss:$28 sps:$4 sm:$0xff]   ;;  %v13246_v30 = vld [vmem:[#allocation10 + $0x380] ss:$28 sps:$4 sm:$0xff]  }
 0x304   :  { %v836_v39 = vpop.f32.mrf.mxu0  ;;  %v13254_v32 = vld [vmem:[#allocation10 + $0x544] ss:$28 sps:$4 sm:$0xff]  }
 0x305   :  { %v837_v42 = vadd.f32 %v836_v39, %v644_v19  ;;  %11591 = vmatprep.mubr.msk.bf16.mxu1 %vm535_vm1, %v901_v34  ;;  %11594 = vmatprep.mubr.msk.bf16.mxu0 %vm535_vm1, %v901_v34  ;;  %v846_v45 = vmax.f32 %v835_v35, 0.0  ;;  %v13227_v19 = vld [vmem:[#allocation10 + $0x2a4] ss:$28 sps:$4 sm:$0xff]   ;;  %v13257_v35 = vld [vmem:[#allocation10 + $0x194] ss:$28 sps:$4 sm:$0xff]  }
 0x306   :  { %v838_v44 = vpop.f32.mrf.mxu0  ;;  %1226 = vmatmul.mubr.bf16.vlgmr.msra.gmra.mxu1 %v900_v38  ;;  %1279 = vmatmul.mubr.bf16.vlgmr.msra.gmra.mxu0 %v900_v38  ;;  %v13249_v33 = vld [vmem:[#allocation10 + $0x1c0] ss:$28 sps:$4 sm:$0xff]   ;;  %v15442_v38 = vsub.s32 2, %v15259_v7  ;;  %v899_v39 = vld [vmem:[%s17870_s8] sm:$0xf] }
 0x307   :  { %v847_v46 = vmax.f32 %v837_v42, 0.0  ;;  %v839_v47 = vadd.f32 %v838_v44, %v648_v18  ;;  %2468 = vmatpush1.bf16.msra.mxu1 %v13180_v36  ;;  %2521 = vmatpush1.bf16.msra.mxu0 %v13204_v37  ;;  %v13219_v18 = vld [vmem:[#allocation10 + $0x2d8] ss:$28 sps:$4 sm:$0xff]   ;;  %v13252_v34 = vld [vmem:[#allocation10 + $0x540] ss:$28 sps:$4 sm:$0xff]   ;;  %v15439_v37 = vsub.s32 3, %v15259_v7  ;;  %v912_v42 = vrot.slane %v899_v39, %v15262_v8 }
 0x308   :  { %2469 = vmatprep.subr.bf16.mxu1 %v13185_v40  ;;  %2522 = vmatprep.subr.bf16.mxu0 %v13212_v41  ;;  %v13260_v36 = vld [vmem:[#allocation10 + $0x514] ss:$28 sps:$4 sm:$0xff]   ;;  %17904 = vst [vmem:[#allocation24_spill] sm:$0xff] %v15442_v38  ;;  %v908_v44 = vrot.slane %v899_v39, %v15268_v10 }
 0x309   :  { %v848_v52 = vmax.f32 %v839_v47, 0.0  ;;  %v902_v53 = vpack.c.bf16 %v847_v46, %v845_v43  ;;  %v920_v43 = vrot.slane %v899_v39, %v15439_v37 }
 0x30b   :  { %v903_v54 = vpack.c.bf16 %v848_v52, %v846_v45  ;;  %2470 = vmatpush1.bf16.msra.mxu1 %v13183_v48  ;;  %2523 = vmatpush1.bf16.msra.mxu0 %v13210_v49  ;;  %v916_v45 = vrot.slane %v899_v39, %v15442_v38  ;;  %v13272_v39 = vld [vmem:[#allocation10 + $0x4a4] ss:$28 sps:$4 sm:$0xff]  }
 0x30c   :  { %2471 = vmatprep.subr.bf16.mxu1 %v13188_v50  ;;  %2524 = vmatprep.subr.bf16.mxu0 %v13218_v51 }
 0x30d   :  { %11592 = vmatprep.mubr.msk.bf16.mxu1 %vm535_vm1, %v903_v54  ;;  %11595 = vmatprep.mubr.msk.bf16.mxu0 %vm535_vm1, %v903_v54 }
 0x30e   :  { %1236 = vmatmul.mubr.bf16.gmra.mxu1 %v902_v53  ;;  %1289 = vmatmul.mubr.bf16.gmra.mxu0 %v902_v53 }
 0x30f   :  { %2472 = vmatpush1.bf16.msra.mxu1 %v13186_v55  ;;  %2525 = vmatpush1.bf16.msra.mxu0 %v13216_v56 }
 0x310   :  { %2473 = vmatprep.subr.bf16.mxu1 %v13191_v57  ;;  %2526 = vmatprep.subr.bf16.mxu0 %v13224_v58 }
 0x313   :  { %2474 = vmatpush1.bf16.msra.mxu1 %v13189_v59  ;;  %2527 = vmatpush1.bf16.msra.mxu0 %v13222_v60 }
 0x314   :  { %2475 = vmatprep.subr.bf16.mxu1 %v13194_v61  ;;  %2528 = vmatprep.subr.bf16.mxu0 %v13230_v62 }
 0x317   :  { %2476 = vmatpush1.bf16.msra.mxu1 %v13192_v63  ;;  %2529 = vmatpush1.bf16.msra.mxu0 %v13228_v1 }
 0x318   :  { %2477 = vmatprep.subr.bf16.mxu1 %v13197_v2  ;;  %2530 = vmatprep.subr.bf16.mxu0 %v13236_v3 }
 0x31b   :  { %2478 = vmatpush1.bf16.msra.mxu1 %v13195_v4  ;;  %2531 = vmatpush1.bf16.msra.mxu0 %v13234_v5 }
 0x31c   :  { %2479 = vmatprep.subr.bf16.mxu1 %v13200_v6  ;;  %2532 = vmatprep.subr.bf16.mxu0 %v13242_v24 }
 0x31f   :  { %2480 = vmatpush1.bf16.msra.mxu1 %v13198_v9  ;;  %2533 = vmatpush1.bf16.msra.mxu0 %v13240_v26 }
 0x320   :  { %2481 = vmatprep.subr.bf16.mxu1 %v13203_v11  ;;  %2534 = vmatprep.subr.bf16.mxu0 %v13248_v28 }
 0x323   :  { %2482 = vmatpush1.bf16.msra.mxu1 %v13201_v12  ;;  %2535 = vmatpush1.bf16.msra.mxu0 %v13246_v30 }
 0x324   :  { %2483 = vmatprep.subr.bf16.mxu1 %v13209_v13  ;;  %2550 = vmatprep.subr.bf16.mxu0 %v13254_v32  ;;  %v13261_v32 = vld [vmem:[#allocation10 + $0x158] ss:$28 sps:$4 sm:$0xff]  }
 0x327   :  { %2484 = vmatpush2.bf16.msra.mxu1 %v13207_v14  ;;  %2551 = vmatpush2.bf16.msra.mxu0 %v13252_v34  ;;  %v13255_v14 = vld [vmem:[#allocation10 + $0x190] ss:$28 sps:$4 sm:$0xff]  }
 0x328   :  { %2485 = vmatprep.subr.bf16.mxu1 %v13215_v15  ;;  %2626 = vmatprep.subr.bf16.mxu0 %v13260_v36  ;;  %v13258_v15 = vld [vmem:[#allocation10 + $0x510] ss:$28 sps:$4 sm:$0xff]   ;;  %v13269_v36 = vld [vmem:[#allocation10 + $0x124] ss:$28 sps:$4 sm:$0xff]  }
 0x32b   :  { %2486 = vmatpush2.bf16.msra.mxu1 %v13213_v16 }
 0x32c   :  { %2487 = vmatprep.subr.bf16.mxu1 %v13221_v17 }
 0x32f   :  { %2488 = vmatpush2.bf16.msra.mxu1 %v13219_v18 }
 0x330   :  { %2489 = vmatprep.subr.bf16.mxu1 %v13227_v19 }
 0x333   :  { %2490 = vmatpush2.bf16.msra.mxu1 %v13225_v20 }
 0x334   :  { %2491 = vmatprep.subr.bf16.mxu1 %v13233_v21  ;;  %v13263_v21 = vld [vmem:[#allocation10 + $0x15c] ss:$28 sps:$4 sm:$0xff]  }
 0x337   :  { %2492 = vmatpush2.bf16.msra.mxu1 %v13231_v22  ;;  %v13266_v22 = vld [vmem:[#allocation10 + $0x4dc] ss:$28 sps:$4 sm:$0xff]  }
 0x338   :  { %2493 = vmatprep.subr.bf16.mxu1 %v13239_v23 }
 0x33b   :  { %2494 = vmatpush2.bf16.msra.mxu1 %v13237_v25 }
 0x33c   :  { %2495 = vmatprep.subr.bf16.mxu1 %v13245_v27 }
 0x33f   :  { %2496 = vmatpush2.bf16.msra.mxu1 %v13243_v29 }
 0x340   :  { %2497 = vmatprep.subr.bf16.mxu1 %v13251_v31 }
 0x343   :  { %2498 = vmatpush2.bf16.msra.mxu1 %v13249_v33  ;;  %v13264_v33 = vld [vmem:[#allocation10 + $0x4d8] ss:$28 sps:$4 sm:$0xff]  }
 0x344   :  { %2573 = vmatprep.subr.bf16.mxu1 %v13257_v35 }
 0x3c6   :  { %v1227_v40 = vpop.f32.mrf.mxu1  ;;  %v1280_v41 = vpop.f32.mrf.mxu0 }
 0x3c7   :  { %v1228_v54 = vadd.f32 %v1227_v40, %v908_v44  ;;  %v1281_v55 = vadd.f32 %v1280_v41, %v916_v45 }
 0x3c8   :  { %v1229_v46 = vpop.f32.mrf.mxu1  ;;  %v1282_v47 = vpop.f32.mrf.mxu0 }
 0x3c9   :  { %v1230_v50 = vadd.f32 %v1229_v46, %v912_v42  ;;  %v1283_v51 = vadd.f32 %v1282_v47, %v920_v43  ;;  %v1299_v5 = vmax.f32 %v1228_v54, 0.0  ;;  %v1301_v6 = vmax.f32 %v1281_v55, 0.0  ;;  %v13273_v54 = vld [vmem:[#allocation10 + $0xe8] ss:$28 sps:$4 sm:$0xff]  }
 0x3ca   :  { %v1231_v48 = vpop.f32.mrf.mxu1  ;;  %v1284_v49 = vpop.f32.mrf.mxu0  ;;  %v13276_v55 = vld [vmem:[#allocation10 + $0x468] ss:$28 sps:$4 sm:$0xff]  }
 0x3cb   :  { %v1232_v52 = vadd.f32 %v1231_v48, %v908_v44  ;;  %v1285_v53 = vadd.f32 %v1284_v49, %v916_v45  ;;  %v1300_v1 = vmax.f32 %v1230_v50, 0.0  ;;  %v1302_v2 = vmax.f32 %v1283_v51, 0.0  ;;  %v13270_v49 = vld [vmem:[#allocation10 + $0x4a0] ss:$28 sps:$4 sm:$0xff]  }
 0x3cc   :  { %v1233_v56 = vpop.f32.mrf.mxu1  ;;  %v1286_v57 = vpop.f32.mrf.mxu0 }
 0x3cd   :  { %v1234_v58 = vadd.f32 %v1233_v56, %v912_v42  ;;  %v1287_v59 = vadd.f32 %v1286_v57, %v920_v43  ;;  %v1303_v60 = vmax.f32 %v1232_v52, 0.0  ;;  %v1305_v61 = vmax.f32 %v1285_v53, 0.0  ;;  %v13275_v52 = vld [vmem:[#allocation10 + $0xec] ss:$28 sps:$4 sm:$0xff]   ;;  %v13281_v56 = vld [vmem:[#allocation10 + $0xb4] ss:$28 sps:$4 sm:$0xff]  }
 0x3ce   :  { %v1237_v62 = vpop.f32.mrf.mxu1  ;;  %v1290_v63 = vpop.f32.mrf.mxu0  ;;  %v13278_v53 = vld [vmem:[#allocation10 + $0x46c] ss:$28 sps:$4 sm:$0xff]   ;;  %v13284_v57 = vld [vmem:[#allocation10 + $0x434] ss:$28 sps:$4 sm:$0xff]  }
 0x3cf   :  { %v1304_v3 = vmax.f32 %v1234_v58, 0.0  ;;  %v1306_v4 = vmax.f32 %v1287_v59, 0.0  ;;  %v15455_v16 = vpack.c.bf16 %v1303_v60, %v1299_v5  ;;  %v15457_v17 = vpack.c.bf16 %v1305_v61, %v1301_v6  ;;  %v13279_v58 = vld [vmem:[#allocation10 + $0xb0] ss:$28 sps:$4 sm:$0xff]   ;;  %v13287_v60 = vld [vmem:[#allocation10 + $0x7c] ss:$28 sps:$4 sm:$0xff]  }
 0x3d0   :  { %v1239_v9 = vpop.f32.mrf.mxu1  ;;  %v1292_v11 = vpop.f32.mrf.mxu0  ;;  %v1238_v26 = vadd.f32 %v1237_v62, %v908_v44  ;;  %v1291_v27 = vadd.f32 %v1290_v63, %v916_v45  ;;  %v13282_v59 = vld [vmem:[#allocation10 + $0x430] ss:$28 sps:$4 sm:$0xff]   ;;  %v13290_v61 = vld [vmem:[#allocation10 + $0x3fc] ss:$28 sps:$4 sm:$0xff]  }
 0x3d1   :  { %v15451_v12 = vpack.c.bf16 %v1304_v3, %v1300_v1  ;;  %v15453_v13 = vpack.c.bf16 %v1306_v4, %v1302_v2  ;;  %v1240_v18 = vadd.f32 %v1239_v9, %v912_v42  ;;  %v1293_v23 = vadd.f32 %v1292_v11, %v920_v43  ;;  %v13285_v62 = vld [vmem:[#allocation10 + $0x78] ss:$28 sps:$4 sm:$0xff]   ;;  %v13293_v1 = vld [vmem:[#allocation10 + $0x44] ss:$28 sps:$4 sm:$0xff]   ;;  %v13299_v5 = vld [vmem:[#allocation10 + $0xc] ss:$28 sps:$4 sm:$0xff]  }
 0x3d2   :  { %v1241_v19 = vpop.f32.mrf.mxu1  ;;  %v1294_v20 = vpop.f32.mrf.mxu0  ;;  %v1307_v46 = vmax.f32 %v1238_v26, 0.0  ;;  %v1309_v47 = vmax.f32 %v1291_v27, 0.0  ;;  %v13288_v63 = vld [vmem:[#allocation10 + $0x3f8] ss:$28 sps:$4 sm:$0xff]   ;;  %v13296_v2 = vld [vmem:[#allocation10 + $0x3c4] ss:$28 sps:$4 sm:$0xff]  }
 0x3d3   :  { %v1242_v24 = vadd.f32 %v1241_v19, %v908_v44  ;;  %v1295_v25 = vadd.f32 %v1294_v20, %v916_v45  ;;  %2499 = vmatprep.mubr.bf16.mxu1 %v15451_v12  ;;  %11771 = vmatprep.mubr.msk.bf16.mxu0 %vm2460_vm2, %v15453_v13  ;;  %v1308_v40 = vmax.f32 %v1240_v18, 0.0  ;;  %v1310_v41 = vmax.f32 %v1293_v23, 0.0  ;;  %v13291_v3 = vld [vmem:[#allocation10 + $0x40] ss:$28 sps:$4 sm:$0xff]   ;;  %v13302_v6 = vld [vmem:[#allocation10 + $0x38c] ss:$28 sps:$4 sm:$0xff]  }
 0x3d4   :  { %v1243_v28 = vpop.f32.mrf.mxu1  ;;  %v1296_v29 = vpop.f32.mrf.mxu0  ;;  %2500 = vmatmul.mubr.bf16.vlgmr.msra.gmra.mxu1 %v15455_v16  ;;  %2553 = vmatmul.mubr.bf16.vlgmr.msra.gmra.mxu0 %v15457_v17  ;;  %v13294_v4 = vld [vmem:[#allocation10 + $0x3c0] ss:$28 sps:$4 sm:$0xff]   ;;  %v13297_v9 = vld [vmem:[#allocation10 + $0x8] ss:$28 sps:$4 sm:$0xff]   ;;  %v13303_v18 = vld [vmem:[#allocation10 + $0x350] ss:$28 sps:$4 sm:$0xff]  }
 0x3d5   :  { %v1244_v30 = vadd.f32 %v1243_v28, %v912_v42  ;;  %v1297_v31 = vadd.f32 %v1296_v29, %v920_v43  ;;  %2574 = vmatpush1.bf16.msra.mxu1 %v13255_v14  ;;  %2627 = vmatpush1.bf16.msra.mxu0 %v13258_v15  ;;  %v1311_v34 = vmax.f32 %v1242_v24, 0.0  ;;  %v1313_v35 = vmax.f32 %v1295_v25, 0.0  ;;  %v13267_v43 = vld [vmem:[#allocation10 + $0x120] ss:$28 sps:$4 sm:$0xff]   ;;  %v13300_v11 = vld [vmem:[#allocation10 + $0x388] ss:$28 sps:$4 sm:$0xff]  }
 0x3d6   :  { %2575 = vmatprep.subr.bf16.mxu1 %v13263_v21  ;;  %2628 = vmatprep.subr.bf16.mxu0 %v13266_v22  ;;  %v13305_v14 = vld [vmem:[#allocation10 + $0x354] ss:$28 sps:$4 sm:$0xff]   ;;  %v13308_v15 = vld [vmem:[#allocation10 + $0x54c] ss:$28 sps:$4 sm:$0xff]   ;;  %v13311_v20 = vld [vmem:[#allocation10 + $0x31c] ss:$28 sps:$4 sm:$0xff]  }
 0x3d7   :  { %v1312_v44 = vmax.f32 %v1244_v30, 0.0  ;;  %v1314_v45 = vmax.f32 %v1297_v31, 0.0  ;;  %v15468_v50 = vpack.c.bf16 %v1311_v34, %v1307_v46  ;;  %v15470_v51 = vpack.c.bf16 %v1313_v35, %v1309_v47  ;;  %v13306_v19 = vld [vmem:[#allocation10 + $0x548] ss:$28 sps:$4 sm:$0xff]   ;;  %v13314_v21 = vld [vmem:[#allocation10 + $0x19c] ss:$28 sps:$4 sm:$0xff]  }
 0x3d8   :  { %v13309_v22 = vld [vmem:[#allocation10 + $0x318] ss:$28 sps:$4 sm:$0xff]   ;;  %v13317_v24 = vld [vmem:[#allocation10 + $0x2e4] ss:$28 sps:$4 sm:$0xff]   ;;  %v13323_v28 = vld [vmem:[#allocation10 + $0x2ac] ss:$28 sps:$4 sm:$0xff]  }
 0x3d9   :  { %v15464_v48 = vpack.c.bf16 %v1312_v44, %v1308_v40  ;;  %v15466_v42 = vpack.c.bf16 %v1314_v45, %v1310_v41  ;;  %2576 = vmatpush1.bf16.msra.mxu1 %v13261_v32  ;;  %2629 = vmatpush1.bf16.msra.mxu0 %v13264_v33  ;;  %v13312_v23 = vld [vmem:[#allocation10 + $0x198] ss:$28 sps:$4 sm:$0xff]   ;;  %v13320_v25 = vld [vmem:[#allocation10 + $0x164] ss:$28 sps:$4 sm:$0xff]   ;;  %v13326_v29 = vld [vmem:[#allocation10 + $0x12c] ss:$28 sps:$4 sm:$0xff]  }
 0x3da   :  { %2577 = vmatprep.subr.bf16.mxu1 %v13269_v36  ;;  %2630 = vmatprep.subr.bf16.mxu0 %v13272_v39  ;;  %v13315_v26 = vld [vmem:[#allocation10 + $0x2e0] ss:$28 sps:$4 sm:$0xff]   ;;  %v13321_v30 = vld [vmem:[#allocation10 + $0x2a8] ss:$28 sps:$4 sm:$0xff]   ;;  %v13329_v32 = vld [vmem:[#allocation10 + $0x274] ss:$28 sps:$4 sm:$0xff]  }
 0x3db   :  { %2509 = vmatprep.mubr.bf16.mxu1 %v15464_v48  ;;  %11772 = vmatprep.mubr.msk.bf16.mxu0 %vm2460_vm2, %v15466_v42  ;;  %v13318_v27 = vld [vmem:[#allocation10 + $0x160] ss:$28 sps:$4 sm:$0xff]   ;;  %v13324_v31 = vld [vmem:[#allocation10 + $0x128] ss:$28 sps:$4 sm:$0xff]   ;;  %v13332_v33 = vld [vmem:[#allocation10 + $0xf4] ss:$28 sps:$4 sm:$0xff]  }
 0x3dc   :  { %2510 = vmatmul.mubr.bf16.gmra.mxu1 %v15468_v50  ;;  %2563 = vmatmul.mubr.bf16.gmra.mxu0 %v15470_v51  ;;  %v13327_v34 = vld [vmem:[#allocation10 + $0x270] ss:$28 sps:$4 sm:$0xff]   ;;  %v13335_v36 = vld [vmem:[#allocation10 + $0x23c] ss:$28 sps:$4 sm:$0xff]   ;;  %v13341_v44 = vld [vmem:[#allocation10 + $0x204] ss:$28 sps:$4 sm:$0xff]  }
 0x3dd   :  { %2578 = vmatpush1.bf16.msra.mxu1 %v13267_v43  ;;  %2631 = vmatpush1.bf16.msra.mxu0 %v13270_v49  ;;  %v13330_v35 = vld [vmem:[#allocation10 + $0xf0] ss:$28 sps:$4 sm:$0xff]   ;;  %v13338_v39 = vld [vmem:[#allocation10 + $0xbc] ss:$28 sps:$4 sm:$0xff]   ;;  %v13344_v45 = vld [vmem:[#allocation10 + $0x84] ss:$28 sps:$4 sm:$0xff]  }
 0x3de   :  { %2605 = vmatprep.mubr.bf16.mxu1 %v15451_v12  ;;  %11773 = vmatprep.mubr.msk.bf16.mxu0 %vm2460_vm2, %v15453_v13  ;;  %v13333_v40 = vld [vmem:[#allocation10 + $0x238] ss:$28 sps:$4 sm:$0xff]   ;;  %v13339_v46 = vld [vmem:[#allocation10 + $0x200] ss:$28 sps:$4 sm:$0xff]   ;;  %v13347_v43 = vld [vmem:[#allocation10 + $0x1cc] ss:$28 sps:$4 sm:$0xff]  }
 0x3df   :  { %2579 = vmatprep.subr.bf16.mxu1 %v13275_v52  ;;  %2632 = vmatprep.subr.bf16.mxu0 %v13278_v53  ;;  %v13336_v41 = vld [vmem:[#allocation10 + $0xb8] ss:$28 sps:$4 sm:$0xff]   ;;  %v13342_v47 = vld [vmem:[#allocation10 + $0x80] ss:$28 sps:$4 sm:$0xff]   ;;  %v13350_v49 = vld [vmem:[#allocation10 + $0x4c] ss:$28 sps:$4 sm:$0xff]  }
 0x3e0   :  { %v13345_v52 = vld [vmem:[#allocation10 + $0x1c8] ss:$28 sps:$4 sm:$0xff]  }
 0x3e1   :  { %2580 = vmatpush1.bf16.msra.mxu1 %v13273_v54  ;;  %2633 = vmatpush1.bf16.msra.mxu0 %v13276_v55  ;;  %v13348_v53 = vld [vmem:[#allocation10 + $0x48] ss:$28 sps:$4 sm:$0xff]   ;;  %v13356_v54 = vld [vmem:[#allocation10 + $0x51c] ss:$28 sps:$4 sm:$0xff]   ;;  %v13353_v55 = vld [vmem:[#allocation10 + $0x14] ss:$28 sps:$4 sm:$0xff]  }
 0x3e2   :  { %2581 = vmatprep.subr.bf16.mxu1 %v13281_v56  ;;  %2634 = vmatprep.subr.bf16.mxu0 %v13284_v57  ;;  %v13354_v56 = vld [vmem:[#allocation10 + $0x518] ss:$28 sps:$4 sm:$0xff]   ;;  %v13351_v57 = vld [vmem:[#allocation10 + $0x10] ss:$28 sps:$4 sm:$0xff]  }
 0x3e5   :  { %2582 = vmatpush1.bf16.msra.mxu1 %v13279_v58  ;;  %2635 = vmatpush1.bf16.msra.mxu0 %v13282_v59  ;;  %v13362_v58 = vld [vmem:[#allocation10 + $0x4e4] ss:$28 sps:$4 sm:$0xff]   ;;  %v13359_v59 = vld [vmem:[#allocation10 + $0x35c] ss:$28 sps:$4 sm:$0xff]  }
 0x3e6   :  { %2583 = vmatprep.subr.bf16.mxu1 %v13287_v60  ;;  %2636 = vmatprep.subr.bf16.mxu0 %v13290_v61  ;;  %v13360_v60 = vld [vmem:[#allocation10 + $0x4e0] ss:$28 sps:$4 sm:$0xff]   ;;  %v13357_v61 = vld [vmem:[#allocation10 + $0x358] ss:$28 sps:$4 sm:$0xff]  }
 0x3e9   :  { %2584 = vmatpush1.bf16.msra.mxu1 %v13285_v62  ;;  %2637 = vmatpush1.bf16.msra.mxu0 %v13288_v63  ;;  %v13368_v62 = vld [vmem:[#allocation10 + $0x4ac] ss:$28 sps:$4 sm:$0xff]   ;;  %v13365_v63 = vld [vmem:[#allocation10 + $0x324] ss:$28 sps:$4 sm:$0xff]  }
 0x3ea   :  { %2585 = vmatprep.subr.bf16.mxu1 %v13293_v1  ;;  %2638 = vmatprep.subr.bf16.mxu0 %v13296_v2  ;;  %v13366_v1 = vld [vmem:[#allocation10 + $0x4a8] ss:$28 sps:$4 sm:$0xff]   ;;  %v13363_v2 = vld [vmem:[#allocation10 + $0x320] ss:$28 sps:$4 sm:$0xff]  }
 0x3ed   :  { %2586 = vmatpush1.bf16.msra.mxu1 %v13291_v3  ;;  %2639 = vmatpush1.bf16.msra.mxu0 %v13294_v4  ;;  %v13374_v3 = vld [vmem:[#allocation10 + $0x474] ss:$28 sps:$4 sm:$0xff]   ;;  %v13371_v4 = vld [vmem:[#allocation10 + $0x2ec] ss:$28 sps:$4 sm:$0xff]  }
 0x3ee   :  { %2587 = vmatprep.subr.bf16.mxu1 %v13299_v5  ;;  %2640 = vmatprep.subr.bf16.mxu0 %v13302_v6  ;;  %v13372_v5 = vld [vmem:[#allocation10 + $0x470] ss:$28 sps:$4 sm:$0xff]   ;;  %v13369_v6 = vld [vmem:[#allocation10 + $0x2e8] ss:$28 sps:$4 sm:$0xff]  }
 0x3f1   :  { %2588 = vmatpush1.bf16.msra.mxu1 %v13297_v9  ;;  %2641 = vmatpush1.bf16.msra.mxu0 %v13300_v11  ;;  %v13380_v9 = vld [vmem:[#allocation10 + $0x43c] ss:$28 sps:$4 sm:$0xff]   ;;  %v13377_v11 = vld [vmem:[#allocation10 + $0x2b4] ss:$28 sps:$4 sm:$0xff]  }
 0x3f2   :  { %2589 = vmatprep.subr.bf16.mxu1 %v13305_v14  ;;  %2656 = vmatprep.subr.bf16.mxu0 %v13308_v15  ;;  %v13378_v14 = vld [vmem:[#allocation10 + $0x438] ss:$28 sps:$4 sm:$0xff]   ;;  %v13375_v15 = vld [vmem:[#allocation10 + $0x2b0] ss:$28 sps:$4 sm:$0xff]  }
 0x3f5   :  { %2590 = vmatpush2.bf16.msra.mxu1 %v13303_v18  ;;  %2657 = vmatpush2.bf16.msra.mxu0 %v13306_v19  ;;  %v13386_v18 = vld [vmem:[#allocation10 + $0x404] ss:$28 sps:$4 sm:$0xff]   ;;  %v13383_v19 = vld [vmem:[#allocation10 + $0x27c] ss:$28 sps:$4 sm:$0xff]  }
 0x3f6   :  { %2591 = vmatprep.subr.bf16.mxu1 %v13311_v20  ;;  %2679 = vmatprep.subr.bf16.mxu0 %v13314_v21  ;;  %v13384_v20 = vld [vmem:[#allocation10 + $0x400] ss:$28 sps:$4 sm:$0xff]   ;;  %v13381_v21 = vld [vmem:[#allocation10 + $0x278] ss:$28 sps:$4 sm:$0xff]  }
 0x3f8   :  { %2659 = vmatmul.mubr.bf16.vlgmr.msra.gmra.mxu0 %v15457_v17 }
 0x3f9   :  { %2592 = vmatpush2.bf16.msra.mxu1 %v13309_v22  ;;  %11774 = vmatprep.mubr.msk.bf16.mxu0 %vm2460_vm2, %v15466_v42  ;;  %v13392_v22 = vld [vmem:[#allocation10 + $0x3cc] ss:$28 sps:$4 sm:$0xff]  }
 0x3fa   :  { %2680 = vmatpush1.bf16.msra.mxu0 %v13312_v23  ;;  %2593 = vmatprep.subr.bf16.mxu1 %v13317_v24  ;;  %v13389_v23 = vld [vmem:[#allocation10 + $0x244] ss:$28 sps:$4 sm:$0xff]  }
 0x3fb   :  { %2681 = vmatprep.subr.bf16.mxu0 %v13320_v25  ;;  %v13390_v24 = vld [vmem:[#allocation10 + $0x3c8] ss:$28 sps:$4 sm:$0xff]   ;;  %v13387_v25 = vld [vmem:[#allocation10 + $0x240] ss:$28 sps:$4 sm:$0xff]  }
 0x3fd   :  { %2594 = vmatpush2.bf16.msra.mxu1 %v13315_v26  ;;  %v13398_v26 = vld [vmem:[#allocation10 + $0x394] ss:$28 sps:$4 sm:$0xff]  }
 0x3fe   :  { %2682 = vmatpush1.bf16.msra.mxu0 %v13318_v27  ;;  %2595 = vmatprep.subr.bf16.mxu1 %v13323_v28  ;;  %v13395_v27 = vld [vmem:[#allocation10 + $0x20c] ss:$28 sps:$4 sm:$0xff]  }
 0x3ff   :  { %2683 = vmatprep.subr.bf16.mxu0 %v13326_v29  ;;  %v13396_v28 = vld [vmem:[#allocation10 + $0x390] ss:$28 sps:$4 sm:$0xff]   ;;  %v13393_v29 = vld [vmem:[#allocation10 + $0x208] ss:$28 sps:$4 sm:$0xff]  }
 0x400   :  { %2669 = vmatmul.mubr.bf16.gmra.mxu0 %v15470_v51 }
 0x401   :  { %2596 = vmatpush2.bf16.msra.mxu1 %v13321_v30  ;;  %2711 = vmatprep.mubr.bf16.mxu0 %v15451_v12  ;;  %v13404_v30 = vld [vmem:[#allocation10 + $0x554] ss:$28 sps:$4 sm:$0xff]  }
 0x402   :  { %2684 = vmatpush1.bf16.msra.mxu0 %v13324_v31  ;;  %2597 = vmatprep.subr.bf16.mxu1 %v13329_v32  ;;  %v13401_v31 = vld [vmem:[#allocation10 + $0x1d4] ss:$28 sps:$4 sm:$0xff]  }
 0x403   :  { %2685 = vmatprep.subr.bf16.mxu0 %v13332_v33  ;;  %v13402_v32 = vld [vmem:[#allocation10 + $0x550] ss:$28 sps:$4 sm:$0xff]  }
 0x404   :  { %v13399_v33 = vld [vmem:[#allocation10 + $0x1d0] ss:$28 sps:$4 sm:$0xff]  }
 0x405   :  { %2598 = vmatpush2.bf16.msra.mxu1 %v13327_v34  ;;  %v13405_v34 = vld [vmem:[#allocation10 + $0x360] ss:$28 sps:$4 sm:$0xff]  }
 0x406   :  { %2686 = vmatpush1.bf16.msra.mxu0 %v13330_v35  ;;  %2599 = vmatprep.subr.bf16.mxu1 %v13335_v36  ;;  %v13406_v35 = vld [vmem:[#allocation10 + $0x1a0] ss:$28 sps:$4 sm:$0xff]  }
 0x407   :  { %2687 = vmatprep.subr.bf16.mxu0 %v13338_v39  ;;  %v13407_v36 = vld [vmem:[#allocation10 + $0x520] ss:$28 sps:$4 sm:$0xff]   ;;  %v13408_v39 = vld [vmem:[#allocation10 + $0x328] ss:$28 sps:$4 sm:$0xff]  }
 0x409   :  { %2600 = vmatpush2.bf16.msra.mxu1 %v13333_v40  ;;  %v13409_v40 = vld [vmem:[#allocation10 + $0x168] ss:$28 sps:$4 sm:$0xff]  }
 0x40a   :  { %2688 = vmatpush1.bf16.msra.mxu0 %v13336_v41  ;;  %2601 = vmatprep.subr.bf16.mxu1 %v13341_v44  ;;  %v13410_v41 = vld [vmem:[#allocation10 + $0x4e8] ss:$28 sps:$4 sm:$0xff]   ;;  %v13411_v44 = vld [vmem:[#allocation10 + $0x2f0] ss:$28 sps:$4 sm:$0xff]  }
 0x40b   :  { %2689 = vmatprep.subr.bf16.mxu0 %v13344_v45  ;;  %v13412_v45 = vld [vmem:[#allocation10 + $0x130] ss:$28 sps:$4 sm:$0xff]  }
 0x40d   :  { %2602 = vmatpush2.bf16.msra.mxu1 %v13339_v46  ;;  %v13413_v46 = vld [vmem:[#allocation10 + $0x4b0] ss:$28 sps:$4 sm:$0xff]  }
 0x40e   :  { %2690 = vmatpush1.bf16.msra.mxu0 %v13342_v47  ;;  %2603 = vmatprep.subr.bf16.mxu1 %v13347_v43  ;;  %v13414_v47 = vld [vmem:[#allocation10 + $0x2b8] ss:$28 sps:$4 sm:$0xff]  }
 0x40f   :  { %2691 = vmatprep.subr.bf16.mxu0 %v13350_v49  ;;  %v13415_v43 = vld [vmem:[#allocation10 + $0xf8] ss:$28 sps:$4 sm:$0xff]  }
 0x410   :  { %v13416_v49 = vld [vmem:[#allocation10 + $0x478] ss:$28 sps:$4 sm:$0xff]  }
 0x411   :  { %2604 = vmatpush2.bf16.msra.mxu1 %v13345_v52  ;;  %v13417_v52 = vld [vmem:[#allocation10 + $0x280] ss:$28 sps:$4 sm:$0xff]  }
 0x412   :  { %2692 = vmatpush1.bf16.msra.mxu0 %v13348_v53  ;;  %2732 = vmatprep.subr.bf16.mxu1 %v13356_v54  ;;  %v13418_v53 = vld [vmem:[#allocation10 + $0xc0] ss:$28 sps:$4 sm:$0xff]  }
 0x413   :  { %2693 = vmatprep.subr.bf16.mxu0 %v13353_v55  ;;  %v13419_v54 = vld [vmem:[#allocation10 + $0x440] ss:$28 sps:$4 sm:$0xff]   ;;  %v13420_v55 = vld [vmem:[#allocation10 + $0x248] ss:$28 sps:$4 sm:$0xff]  }
 0x414   :  { %2606 = vmatmul.mubr.bf16.vlgmr.msra.gmra.mxu1 %v15455_v16 }
 0x415   :  { %2615 = vmatprep.mubr.bf16.mxu1 %v15464_v48  ;;  %2733 = vmatpush1.bf16.msra.mxu1 %v13354_v56  ;;  %v13423_v56 = vld [vmem:[#allocation10 + $0x210] ss:$28 sps:$4 sm:$0xff]  }
 0x416   :  { %2694 = vmatpush1.bf16.msra.mxu0 %v13351_v57  ;;  %2734 = vmatprep.subr.bf16.mxu1 %v13362_v58  ;;  %v13424_v57 = vld [vmem:[#allocation10 + $0x50] ss:$28 sps:$4 sm:$0xff]  }
 0x417   :  { %2695 = vmatprep.subr.bf16.mxu0 %v13359_v59  ;;  %v13425_v58 = vld [vmem:[#allocation10 + $0x3d0] ss:$28 sps:$4 sm:$0xff]   ;;  %v13426_v59 = vld [vmem:[#allocation10 + $0x1d8] ss:$28 sps:$4 sm:$0xff]  }
 0x419   :  { %2735 = vmatpush1.bf16.msra.mxu1 %v13360_v60  ;;  %v13427_v60 = vld [vmem:[#allocation10 + $0x18] ss:$28 sps:$4 sm:$0xff]  }
 0x41a   :  { %2696 = vmatpush2.bf16.msra.mxu0 %v13357_v61  ;;  %2736 = vmatprep.subr.bf16.mxu1 %v13368_v62  ;;  %v13428_v61 = vld [vmem:[#allocation10 + $0x398] ss:$28 sps:$4 sm:$0xff]   ;;  %v13432_v62 = vld [vmem:[%s17873_s11 + $0x18c] ss:$28 sps:$4 sm:$0xff]  }
 0x41b   :  { %2697 = vmatprep.subr.bf16.mxu0 %v13365_v63  ;;  %v13430_v63 = vld [vmem:[%s17873_s11 + $0x188] ss:$28 sps:$4 sm:$0xff]  }
 0x41c   :  { %2616 = vmatmul.mubr.bf16.gmra.mxu1 %v15468_v50 }
 0x41d   :  { %2737 = vmatpush1.bf16.msra.mxu1 %v13366_v1  ;;  %11775 = vmatprep.mubr.msk.bf16.mxu1 %vm2460_vm2, %v15453_v13  ;;  %v13429_v1 = vld [vmem:[#allocation10 + $0x558] ss:$28 sps:$4 sm:$0xff]  }
 0x41e   :  { %2698 = vmatpush2.bf16.msra.mxu0 %v13363_v2  ;;  %2738 = vmatprep.subr.bf16.mxu1 %v13374_v3  ;;  %v13435_v2 = vld [vmem:[%s17873_s11 + $0x154] ss:$28 sps:$4 sm:$0xff]   ;;  %v13480_v3 = vld [vmem:[%s17873_s11 + $0x50c] ss:$28 sps:$4 sm:$0xff]  }
 0x41f   :  { %2699 = vmatprep.subr.bf16.mxu0 %v13371_v4  ;;  %v13433_v4 = vld [vmem:[%s17873_s11 + $0x150] ss:$28 sps:$4 sm:$0xff]  }
 0x421   :  { %2739 = vmatpush1.bf16.msra.mxu1 %v13372_v5  ;;  %v13438_v5 = vld [vmem:[%s17873_s11 + $0x11c] ss:$28 sps:$4 sm:$0xff]  }
 0x422   :  { %2700 = vmatpush2.bf16.msra.mxu0 %v13369_v6  ;;  %2740 = vmatprep.subr.bf16.mxu1 %v13380_v9  ;;  %v13478_v6 = vld [vmem:[%s17873_s11 + $0x508] ss:$28 sps:$4 sm:$0xff]  }
 0x423   :  { %2701 = vmatprep.subr.bf16.mxu0 %v13377_v11  ;;  %v13441_v9 = vld [vmem:[%s17873_s11 + $0xe4] ss:$28 sps:$4 sm:$0xff]   ;;  %v13481_v11 = vld [vmem:[%s17873_s11 + $0x4d0] ss:$28 sps:$4 sm:$0xff]  }
 0x425   :  { %2741 = vmatpush1.bf16.msra.mxu1 %v13378_v14  ;;  %v13444_v14 = vld [vmem:[%s17873_s11 + $0xac] ss:$28 sps:$4 sm:$0xff]  }
 0x426   :  { %2702 = vmatpush2.bf16.msra.mxu0 %v13375_v15  ;;  %2742 = vmatprep.subr.bf16.mxu1 %v13386_v18  ;;  %v13489_v15 = vld [vmem:[%s17873_s11 + $0x464] ss:$28 sps:$4 sm:$0xff]  }
 0x427   :  { %2703 = vmatprep.subr.bf16.mxu0 %v13383_v19  ;;  %v13442_v18 = vld [vmem:[%s17873_s11 + $0xa8] ss:$28 sps:$4 sm:$0xff]   ;;  %v13447_v19 = vld [vmem:[%s17873_s11 + $0x74] ss:$28 sps:$4 sm:$0xff]  }
 0x429   :  { %2743 = vmatpush1.bf16.msra.mxu1 %v13384_v20  ;;  %v13487_v20 = vld [vmem:[%s17873_s11 + $0x460] ss:$28 sps:$4 sm:$0xff]  }
 0x42a   :  { %2704 = vmatpush2.bf16.msra.mxu0 %v13381_v21  ;;  %2744 = vmatprep.subr.bf16.mxu1 %v13392_v22  ;;  %v13445_v21 = vld [vmem:[%s17873_s11 + $0x70] ss:$28 sps:$4 sm:$0xff]   ;;  %v13450_v22 = vld [vmem:[%s17873_s11 + $0x3c] ss:$28 sps:$4 sm:$0xff]  }
 0x42b   :  { %2705 = vmatprep.subr.bf16.mxu0 %v13389_v23  ;;  %v13490_v23 = vld [vmem:[%s17873_s11 + $0x428] ss:$28 sps:$4 sm:$0xff]  }
 0x42d   :  { %2745 = vmatpush1.bf16.msra.mxu1 %v13390_v24  ;;  %v13495_v24 = vld [vmem:[%s17873_s11 + $0x3f4] ss:$28 sps:$4 sm:$0xff]  }
 0x42e   :  { %2706 = vmatpush2.bf16.msra.mxu0 %v13387_v25  ;;  %2746 = vmatprep.subr.bf16.mxu1 %v13398_v26  ;;  %v13448_v25 = vld [vmem:[%s17873_s11 + $0x38] ss:$28 sps:$4 sm:$0xff]   ;;  %v13453_v26 = vld [vmem:[%s17873_s11 + $0x4] ss:$28 sps:$4 sm:$0xff]  }
 0x42f   :  { %2707 = vmatprep.subr.bf16.mxu0 %v13395_v27  ;;  %v13493_v27 = vld [vmem:[%s17873_s11 + $0x3f0] ss:$28 sps:$4 sm:$0xff]  }
 0x431   :  { %2747 = vmatpush1.bf16.msra.mxu1 %v13396_v28  ;;  %v13498_v28 = vld [vmem:[%s17873_s11 + $0x3bc] ss:$28 sps:$4 sm:$0xff]  }
 0x432   :  { %2708 = vmatpush2.bf16.msra.mxu0 %v13393_v29  ;;  %2762 = vmatprep.subr.bf16.mxu1 %v13404_v30  ;;  %v13451_v29 = vld [vmem:[%s17873_s11] ss:$28 sps:$4 sm:$0xff]   ;;  %v13456_v30 = vld [vmem:[%s17873_s11 + $0x34c] ss:$28 sps:$4 sm:$0xff]  }
 0x433   :  { %2709 = vmatprep.subr.bf16.mxu0 %v13401_v31  ;;  %v13496_v31 = vld [vmem:[%s17873_s11 + $0x3b8] ss:$28 sps:$4 sm:$0xff]  }
 0x435   :  { %2763 = vmatpush2.bf16.msra.mxu1 %v13402_v32  ;;  %v13501_v32 = vld [vmem:[%s17873_s11 + $0x384] ss:$28 sps:$4 sm:$0xff]  }
 0x436   :  { %2710 = vmatpush2.bf16.msra.mxu0 %v13399_v33  ;;  %12767 = vmatprep.subr.bf16.mxu1 %v13405_v34  ;;  %v13454_v33 = vld [vmem:[%s17873_s11 + $0x348] ss:$28 sps:$4 sm:$0xff]   ;;  %v13459_v34 = vld [vmem:[%s17873_s11 + $0x314] ss:$28 sps:$4 sm:$0xff]  }
 0x437   :  { %2834 = vmatprep.subr.bf16.mxu0 %v17886_v0 }
 0x438   :  { %2765 = vmatmul.mubr.bf16.vlgmr.msra.gmra.mxu1 %v15457_v17 }
 0x439   :  { %2712 = vmatmul.mubr.bf16.vlgmr.msra.gmra.mxu0 %v15455_v16  ;;  %11776 = vmatprep.mubr.msk.bf16.mxu1 %vm2460_vm2, %v15466_v42 }
 0x43a   :  { %2721 = vmatprep.mubr.bf16.mxu0 %v15464_v48  ;;  %12768 = vmatpush3.bf16.msra.mxu1 %v13406_v35  ;;  %v13499_v35 = vld [vmem:[%s17873_s11 + $0x380] ss:$28 sps:$4 sm:$0xff]  }
 0x43b   :  { %2835 = vmatpush1.bf16.msra.mxu0 %v13407_v36  ;;  %12769 = vmatprep.subr.bf16.mxu1 %v13408_v39  ;;  %v13504_v36 = vld [vmem:[%s17873_s11 + $0x6cc] ss:$28 sps:$4 sm:$0xff]  }
 0x43c   :  { %2836 = vmatprep.subr.bf16.mxu0 %v17886_v0  ;;  %v13457_v39 = vld [vmem:[%s17873_s11 + $0x310] ss:$28 sps:$4 sm:$0xff]  }
 0x43e   :  { %12770 = vmatpush3.bf16.msra.mxu1 %v13409_v40  ;;  %v13462_v40 = vld [vmem:[%s17873_s11 + $0x2dc] ss:$28 sps:$4 sm:$0xff]  }
 0x43f   :  { %2837 = vmatpush1.bf16.msra.mxu0 %v13410_v41  ;;  %12771 = vmatprep.subr.bf16.mxu1 %v13411_v44  ;;  %v13502_v41 = vld [vmem:[%s17873_s11 + $0x6c8] ss:$28 sps:$4 sm:$0xff]   ;;  %v13507_v44 = vld [vmem:[%s17873_s11 + $0x694] ss:$28 sps:$4 sm:$0xff]  }
 0x440   :  { %2775 = vmatmul.mubr.bf16.gmra.mxu1 %v15470_v51  ;;  %2838 = vmatprep.subr.bf16.mxu0 %v17886_v0 }
 0x441   :  { %2722 = vmatmul.mubr.bf16.gmra.mxu0 %v15468_v50  ;;  %2817 = vmatprep.mubr.bf16.mxu1 %v15451_v12  ;;  %v13421_v12 = vld [vmem:[#allocation10 + $0x88] ss:$28 sps:$4 sm:$0xff]  }
 0x442   :  { %12772 = vmatpush3.bf16.msra.mxu1 %v13412_v45  ;;  %11777 = vmatprep.mubr.msk.bf16.mxu0 %vm2460_vm2, %v15453_v13  ;;  %v13422_v13 = vld [vmem:[#allocation10 + $0x408] ss:$28 sps:$4 sm:$0xff]  }
 0x443   :  { %2839 = vmatpush1.bf16.msra.mxu0 %v13413_v46  ;;  %12773 = vmatprep.subr.bf16.mxu1 %v13414_v47  ;;  %v13460_v45 = vld [vmem:[%s17873_s11 + $0x2d8] ss:$28 sps:$4 sm:$0xff]   ;;  %v13465_v46 = vld [vmem:[%s17873_s11 + $0x2a4] ss:$28 sps:$4 sm:$0xff]   ;;  %v13505_v47 = vld [vmem:[%s17873_s11 + $0x690] ss:$28 sps:$4 sm:$0xff]  }
 0x444   :  { %2840 = vmatprep.subr.bf16.mxu0 %v17886_v0 }
 0x446   :  { %12774 = vmatpush3.bf16.msra.mxu1 %v13415_v43  ;;  %v13513_v43 = vld [vmem:[%s17873_s11 + $0x65c] ss:$28 sps:$4 sm:$0xff]  }
 0x447   :  { %2841 = vmatpush1.bf16.msra.mxu0 %v13416_v49  ;;  %12775 = vmatprep.subr.bf16.mxu1 %v13417_v52  ;;  %v13463_v49 = vld [vmem:[%s17873_s11 + $0x2a0] ss:$28 sps:$4 sm:$0xff]   ;;  %v13468_v52 = vld [vmem:[%s17873_s11 + $0x26c] ss:$28 sps:$4 sm:$0xff]  }
 0x448   :  { %2842 = vmatprep.subr.bf16.mxu0 %v17886_v0 }
 0x44a   :  { %12776 = vmatpush3.bf16.msra.mxu1 %v13418_v53  ;;  %v13511_v53 = vld [vmem:[%s17873_s11 + $0x658] ss:$28 sps:$4 sm:$0xff]  }
 0x44b   :  { %2843 = vmatpush1.bf16.msra.mxu0 %v13419_v54  ;;  %12777 = vmatprep.subr.bf16.mxu1 %v13420_v55  ;;  %v13519_v54 = vld [vmem:[%s17873_s11 + $0x624] ss:$28 sps:$4 sm:$0xff]  }
 0x44c   :  { %2844 = vmatprep.subr.bf16.mxu0 %v17886_v0  ;;  %v13466_v55 = vld [vmem:[%s17873_s11 + $0x268] ss:$28 sps:$4 sm:$0xff]  }
 0x44e   :  { %12778 = vmatpush3.bf16.msra.mxu1 %v13421_v12  ;;  %v13471_v12 = vld [vmem:[%s17873_s11 + $0x234] ss:$28 sps:$4 sm:$0xff]  }
 0x44f   :  { %2845 = vmatpush1.bf16.msra.mxu0 %v13422_v13  ;;  %12779 = vmatprep.subr.bf16.mxu1 %v13423_v56  ;;  %v13517_v13 = vld [vmem:[%s17873_s11 + $0x620] ss:$28 sps:$4 sm:$0xff]   ;;  %v13525_v56 = vld [vmem:[%s17873_s11 + $0x5ec] ss:$28 sps:$4 sm:$0xff]  }
 0x450   :  { %2846 = vmatprep.subr.bf16.mxu0 %v17886_v0 }
 0x452   :  { %12780 = vmatpush3.bf16.msra.mxu1 %v13424_v57  ;;  %v13469_v57 = vld [vmem:[%s17873_s11 + $0x230] ss:$28 sps:$4 sm:$0xff]  }
 0x453   :  { %2847 = vmatpush1.bf16.msra.mxu0 %v13425_v58  ;;  %12781 = vmatprep.subr.bf16.mxu1 %v13426_v59  ;;  %v13474_v58 = vld [vmem:[%s17873_s11 + $0x1fc] ss:$28 sps:$4 sm:$0xff]   ;;  %v13523_v59 = vld [vmem:[%s17873_s11 + $0x5e8] ss:$28 sps:$4 sm:$0xff]  }
 0x454   :  { %2848 = vmatprep.subr.bf16.mxu0 %v17886_v0 }
 0x456   :  { %12782 = vmatpush3.bf16.msra.mxu1 %v13427_v60  ;;  %v13531_v60 = vld [vmem:[%s17873_s11 + $0x5b4] ss:$28 sps:$4 sm:$0xff]  }
 0x457   :  { %2849 = vmatpush1.bf16.msra.mxu0 %v13428_v61  ;;  %5169 = vmatprep.subr.bf16.mxu1 %v13432_v62  ;;  %v13472_v61 = vld [vmem:[%s17873_s11 + $0x1f8] ss:$28 sps:$4 sm:$0xff]   ;;  %v13477_v62 = vld [vmem:[%s17873_s11 + $0x1c4] ss:$28 sps:$4 sm:$0xff]  }
 0x458   :  { %2864 = vmatprep.subr.bf16.mxu0 %v17886_v0 }
 0x459   :  { %2818 = vmatmul.mubr.bf16.vlgmr.msra.gmra.mxu1 %v15455_v16  ;;  %v13483_v16 = vld [vmem:[%s17873_s11 + $0x4d4] ss:$28 sps:$4 sm:$0xff]  }
 0x45a   :  { %2825 = vmatprep.mubr.bf16.mxu1 %v15464_v48  ;;  %5170 = vmatpush1.bf16.msra.mxu1 %v13430_v63  ;;  %v13436_v48 = vld [vmem:[%s17873_s11 + $0x118] ss:$28 sps:$4 sm:$0xff]   ;;  %v13529_v63 = vld [vmem:[%s17873_s11 + $0x5b0] ss:$28 sps:$4 sm:$0xff]  }
 0x45b   :  { %2865 = vmatpush2.bf16.msra.mxu0 %v13429_v1  ;;  %5171 = vmatprep.subr.bf16.mxu1 %v13435_v2  ;;  %v15696_v1 = vld [vmem:[%s17872_s10] sm:$0x7f]  ;;  %v13537_v2 = vld [vmem:[%s17873_s11 + $0x57c] ss:$28 sps:$4 sm:$0xff]  }
 0x45c   :  { %5222 = vmatprep.subr.bf16.mxu0 %v13480_v3  ;;  %v13475_v3 = vld [vmem:[%s17873_s11 + $0x1c0] ss:$28 sps:$4 sm:$0xff]  }
 0x45e   :  { %2867 = vmatmul.mubr.bf16.vlgmr.msra.gmra.mxu0 %v15457_v17  ;;  %5172 = vmatpush1.bf16.msra.mxu1 %v13433_v4  ;;  %v13486_v17 = vld [vmem:[%s17873_s11 + $0x49c] ss:$28 sps:$4 sm:$0xff]   ;;  %v1532_v4 = vrot.slane %v15696_v1, %v15262_v8 }
 0x45f   :  { %11778 = vmatprep.mubr.msk.bf16.mxu0 %vm2460_vm2, %v15466_v42  ;;  %5173 = vmatprep.subr.bf16.mxu1 %v13438_v5  ;;  %v13439_v42 = vld [vmem:[%s17873_s11 + $0xe0] ss:$28 sps:$4 sm:$0xff]   ;;  %v13510_v5 = vld [vmem:[%s17873_s11 + $0x88c] ss:$28 sps:$4 sm:$0xff]  }
 0x460   :  { %5223 = vmatpush1.bf16.msra.mxu0 %v13478_v6  ;;  %v1528_v6 = vrot.slane %v15696_v1, %v15268_v10 }
 0x461   :  { %2826 = vmatmul.mubr.bf16.gmra.mxu1 %v15468_v50  ;;  %5224 = vmatprep.subr.bf16.mxu0 %v13483_v16  ;;  %v13484_v50 = vld [vmem:[%s17873_s11 + $0x498] ss:$28 sps:$4 sm:$0xff]  }
 0x462   :  { %5174 = vmatpush1.bf16.msra.mxu1 %v13436_v48 }
 0x463   :  { %5175 = vmatprep.subr.bf16.mxu1 %v13441_v9  ;;  %v13535_v9 = vld [vmem:[%s17873_s11 + $0x578] ss:$28 sps:$4 sm:$0xff]  }
 0x464   :  { %5225 = vmatpush1.bf16.msra.mxu0 %v13481_v11  ;;  %v13543_v11 = vld [vmem:[%s17873_s11 + $0x544] ss:$28 sps:$4 sm:$0xff]  }
 0x465   :  { %5226 = vmatprep.subr.bf16.mxu0 %v13486_v17 }
 0x466   :  { %2875 = vmatmul.mubr.bf16.gmra.mxu0 %v15470_v51  ;;  %5176 = vmatpush1.bf16.msra.mxu1 %v13439_v42  ;;  %v13492_v51 = vld [vmem:[%s17873_s11 + $0x42c] ss:$28 sps:$4 sm:$0xff]  }
 0x467   :  { %5177 = vmatprep.subr.bf16.mxu1 %v13444_v14 }
 0x468   :  { %5227 = vmatpush1.bf16.msra.mxu0 %v13484_v50 }
 0x469   :  { %5228 = vmatprep.subr.bf16.mxu0 %v13489_v15 }
 0x46a   :  { %5178 = vmatpush1.bf16.msra.mxu1 %v13442_v18 }
 0x46b   :  { %5179 = vmatprep.subr.bf16.mxu1 %v13447_v19  ;;  %v13541_v19 = vld [vmem:[%s17873_s11 + $0x540] ss:$28 sps:$4 sm:$0xff]  }
 0x46c   :  { %5229 = vmatpush1.bf16.msra.mxu0 %v13487_v20 }
 0x46d   :  { %5230 = vmatprep.subr.bf16.mxu0 %v13492_v51  ;;  %v13549_v51 = vld [vmem:[%s17873_s11 + $0x194] ss:$28 sps:$4 sm:$0xff]  }
 0x46e   :  { %5180 = vmatpush1.bf16.msra.mxu1 %v13445_v21 }
 0x46f   :  { %5181 = vmatprep.subr.bf16.mxu1 %v13450_v22 }
 0x470   :  { %5231 = vmatpush1.bf16.msra.mxu0 %v13490_v23 }
 0x471   :  { %5232 = vmatprep.subr.bf16.mxu0 %v13495_v24 }
 0x472   :  { %5182 = vmatpush1.bf16.msra.mxu1 %v13448_v25 }
 0x473   :  { %5183 = vmatprep.subr.bf16.mxu1 %v13453_v26 }
 0x474   :  { %5233 = vmatpush1.bf16.msra.mxu0 %v13493_v27 }
 0x475   :  { %5234 = vmatprep.subr.bf16.mxu0 %v13498_v28 }
 0x476   :  { %5184 = vmatpush1.bf16.msra.mxu1 %v13451_v29 }
 0x477   :  { %5185 = vmatprep.subr.bf16.mxu1 %v13456_v30 }
 0x478   :  { %5235 = vmatpush1.bf16.msra.mxu0 %v13496_v31 }
 0x479   :  { %5236 = vmatprep.subr.bf16.mxu0 %v13501_v32 }
 0x47a   :  { %5186 = vmatpush2.bf16.msra.mxu1 %v13454_v33 }
 0x47b   :  { %5187 = vmatprep.subr.bf16.mxu1 %v13459_v34 }
 0x47c   :  { %5237 = vmatpush1.bf16.msra.mxu0 %v13499_v35 }
 0x47d   :  { %5238 = vmatprep.subr.bf16.mxu0 %v13504_v36 }
 0x47e   :  { %5188 = vmatpush2.bf16.msra.mxu1 %v13457_v39 }
 0x47f   :  { %5189 = vmatprep.subr.bf16.mxu1 %v13462_v40 }
 0x480   :  { %5239 = vmatpush2.bf16.msra.mxu0 %v13502_v41 }
 0x481   :  { %5240 = vmatprep.subr.bf16.mxu0 %v13507_v44 }
 0x482   :  { %5190 = vmatpush2.bf16.msra.mxu1 %v13460_v45 }
 0x483   :  { %5191 = vmatprep.subr.bf16.mxu1 %v13465_v46  ;;  %v13508_v46 = vld [vmem:[%s17873_s11 + $0x888] ss:$28 sps:$4 sm:$0xff]  }
 0x484   :  { %5241 = vmatpush2.bf16.msra.mxu0 %v13505_v47 }
 0x485   :  { %5242 = vmatprep.subr.bf16.mxu0 %v13513_v43 }
 0x486   :  { %5192 = vmatpush2.bf16.msra.mxu1 %v13463_v49  ;;  %v13516_v49 = vld [vmem:[%s17873_s11 + $0x854] ss:$28 sps:$4 sm:$0xff]  }
 0x487   :  { %5193 = vmatprep.subr.bf16.mxu1 %v13468_v52 }
 0x488   :  { %5243 = vmatpush2.bf16.msra.mxu0 %v13511_v53 }
 0x489   :  { %5244 = vmatprep.subr.bf16.mxu0 %v13519_v54 }
 0x48a   :  { %5194 = vmatpush2.bf16.msra.mxu1 %v13466_v55 }
 0x48b   :  { %5195 = vmatprep.subr.bf16.mxu1 %v13471_v12 }
 0x48c   :  { %5245 = vmatpush2.bf16.msra.mxu0 %v13517_v13 }
 0x48d   :  { %5246 = vmatprep.subr.bf16.mxu0 %v13525_v56  ;;  %v13514_v56 = vld [vmem:[%s17873_s11 + $0x850] ss:$28 sps:$4 sm:$0xff]  }
 0x48e   :  { %5196 = vmatpush2.bf16.msra.mxu1 %v13469_v57 }
 0x48f   :  { %5197 = vmatprep.subr.bf16.mxu1 %v13474_v58  ;;  %v13522_v58 = vld [vmem:[%s17873_s11 + $0x81c] ss:$28 sps:$4 sm:$0xff]  }
 0x490   :  { %5247 = vmatpush2.bf16.msra.mxu0 %v13523_v59 }
 0x491   :  { %5248 = vmatprep.subr.bf16.mxu0 %v13531_v60 }
 0x492   :  { %5198 = vmatpush2.bf16.msra.mxu1 %v13472_v61 }
 0x493   :  { %5199 = vmatprep.subr.bf16.mxu1 %v13477_v62 }
 0x494   :  { %v2501_v16 = vpop.f32.mrf.mxu1  ;;  %v2554_v48 = vpop.f32.mrf.mxu0  ;;  %5249 = vmatpush2.bf16.msra.mxu0 %v13529_v63  ;;  %v13520_v63 = vld [vmem:[%s17873_s11 + $0x818] ss:$28 sps:$4 sm:$0xff]  }
 0x495   :  { %5250 = vmatprep.subr.bf16.mxu0 %v13537_v2  ;;  %v2502_v50 = vadd.f32 %v2501_v16, %v1528_v6  ;;  %v13540_v16 = vld [vmem:[%s17873_s11 + $0x774] ss:$28 sps:$4 sm:$0xff]  }
 0x496   :  { %v2503_v17 = vpop.f32.mrf.mxu1  ;;  %v2556_v42 = vpop.f32.mrf.mxu0  ;;  %5200 = vmatpush2.bf16.msra.mxu1 %v13475_v3  ;;  %v13528_v3 = vld [vmem:[%s17873_s11 + $0x7e4] ss:$28 sps:$4 sm:$0xff]  }
 0x497   :  { %v2504_v14 = vadd.f32 %v2503_v17, %v1532_v4  ;;  %5275 = vmatprep.subr.bf16.mxu1 %v13510_v5  ;;  %v2555_v26 = vadd.f32 %v2554_v48, %v2502_v50  ;;  %v13534_v5 = vld [vmem:[%s17873_s11 + $0x7ac] ss:$28 sps:$4 sm:$0xff]   ;;  %v13552_v17 = vld [vmem:[%s17873_s11 + $0x704] ss:$28 sps:$4 sm:$0xff]  }
 0x498   :  { %v2505_v15 = vpop.f32.mrf.mxu1  ;;  %v2558_v18 = vpop.f32.mrf.mxu0  ;;  %5251 = vmatpush2.bf16.msra.mxu0 %v13535_v9  ;;  %v13538_v48 = vld [vmem:[%s17873_s11 + $0x770] ss:$28 sps:$4 sm:$0xff]   ;;  %v13546_v9 = vld [vmem:[%s17873_s11 + $0x73c] ss:$28 sps:$4 sm:$0xff]   ;;  %v13556_v50 = vld [vmem:[%s17873_s11 + $0xa48] ss:$28 sps:$4 sm:$0xff]  }
 0x499   :  { %v2506_v20 = vadd.f32 %v2505_v15, %v1528_v6  ;;  %5252 = vmatprep.subr.bf16.mxu0 %v13543_v11  ;;  %v2557_v23 = vadd.f32 %v2556_v42, %v2504_v14  ;;  %v2883_v36 = vmax.f32 %v2555_v26, 0.0  ;;  %v13544_v11 = vld [vmem:[%s17873_s11 + $0x738] ss:$28 sps:$4 sm:$0xff]   ;;  %v13550_v42 = vld [vmem:[%s17873_s11 + $0x700] ss:$28 sps:$4 sm:$0xff]  }
 0x49a   :  { %v2507_v21 = vpop.f32.mrf.mxu1  ;;  %v2560_v22 = vpop.f32.mrf.mxu0  ;;  %v13558_v14 = vld [vmem:[%s17873_s11 + $0xa4c] ss:$28 sps:$4 sm:$0xff]   ;;  %v13564_v15 = vld [vmem:[%s17873_s11 + $0xa14] ss:$28 sps:$4 sm:$0xff]  }
 0x49b   :  { %v2559_v24 = vadd.f32 %v2558_v18, %v2506_v20  ;;  %v2508_v25 = vadd.f32 %v2507_v21, %v1532_v4  ;;  %v2884_v33 = vmax.f32 %v2557_v23, 0.0  ;;  %v13562_v18 = vld [vmem:[%s17873_s11 + $0xa10] ss:$28 sps:$4 sm:$0xff]   ;;  %v13576_v21 = vld [vmem:[%s17873_s11 + $0x9a4] ss:$28 sps:$4 sm:$0xff]  }
 0x49c   :  { %v2511_v27 = vpop.f32.mrf.mxu1  ;;  %v2564_v28 = vpop.f32.mrf.mxu0  ;;  %5253 = vmatpush2.bf16.msra.mxu0 %v13541_v19  ;;  %v13570_v19 = vld [vmem:[%s17873_s11 + $0x9dc] ss:$28 sps:$4 sm:$0xff]   ;;  %v13580_v26 = vld [vmem:[%s17873_s11 + $0x968] ss:$28 sps:$4 sm:$0xff]  }
 0x49d   :  { %v2561_v29 = vadd.f32 %v2560_v22, %v2508_v25  ;;  %5381 = vmatprep.subr.bf16.mxu0 %v13549_v51  ;;  %v2890_v30 = vmax.f32 %v2559_v24, 0.0  ;;  %v2512_v39 = vadd.f32 %v2511_v27, %v1528_v6  ;;  %v13568_v51 = vld [vmem:[%s17873_s11 + $0x9d8] ss:$28 sps:$4 sm:$0xff]   ;;  %v13574_v23 = vld [vmem:[%s17873_s11 + $0x9a0] ss:$28 sps:$4 sm:$0xff]  }
 0x49e   :  { %v2513_v31 = vpop.f32.mrf.mxu1  ;;  %v2566_v32 = vpop.f32.mrf.mxu0  ;;  %v13582_v24 = vld [vmem:[%s17873_s11 + $0x96c] ss:$28 sps:$4 sm:$0xff]   ;;  %v13588_v27 = vld [vmem:[%s17873_s11 + $0x934] ss:$28 sps:$4 sm:$0xff]  }
 0x49f   :  { %v2891_v34 = vmax.f32 %v2561_v29, 0.0  ;;  %v2514_v35 = vadd.f32 %v2513_v31, %v1532_v4  ;;  %v15728_v47 = vpack.c.bf16 %v2890_v30, %v2883_v36  ;;  %v2565_v55 = vadd.f32 %v2564_v28, %v2512_v39 }
 0x4a0   :  { %v2515_v40 = vpop.f32.mrf.mxu1  ;;  %v2568_v41 = vpop.f32.mrf.mxu0  ;;  %v1540_v28 = vrot.slane %v15696_v1, %v15439_v37  ;;  %v1536_v30 = vrot.slane %v15696_v1, %v15442_v38 }
 0x4a1   :  { %v15723_v44 = vpack.c.bf16 %v2891_v34, %v2884_v33  ;;  %v2516_v45 = vadd.f32 %v2515_v40, %v1528_v6  ;;  %v2567_v52 = vadd.f32 %v2566_v32, %v2514_v35  ;;  %v2897_v61 = vmax.f32 %v2565_v55, 0.0  ;;  %v13532_v6 = vld [vmem:[%s17873_s11 + $0x7a8] ss:$28 sps:$4 sm:$0xff]   ;;  %v13586_v32 = vld [vmem:[%s17873_s11 + $0x930] ss:$28 sps:$4 sm:$0xff]  }
 0x4a2   :  { %v2517_v43 = vpop.f32.mrf.mxu1  ;;  %v2570_v12 = vpop.f32.mrf.mxu0  ;;  %v13594_v34 = vld [vmem:[%s17873_s11 + $0x8fc] ss:$28 sps:$4 sm:$0xff]  }
 0x4a3   :  { %v2569_v53 = vadd.f32 %v2568_v41, %v2516_v45  ;;  %v2518_v54 = vadd.f32 %v2517_v43, %v1532_v4  ;;  %5201 = vmatprep.mubr.bf16.mxu1 %v15723_v44  ;;  %v2898_v59 = vmax.f32 %v2567_v52, 0.0  ;;  %v13526_v4 = vld [vmem:[%s17873_s11 + $0x7e0] ss:$28 sps:$4 sm:$0xff]   ;;  %v13592_v45 = vld [vmem:[%s17873_s11 + $0x8f8] ss:$28 sps:$4 sm:$0xff]  }
 0x4a4   :  { %5202 = vmatmul.mubr.bf16.vlgmr.msra.gmra.mxu1 %v15728_v47  ;;  %v13600_v43 = vld [vmem:[%s17873_s11 + $0x8c4] ss:$28 sps:$4 sm:$0xff]  }
 0x4a5   :  { %v2571_v13 = vadd.f32 %v2570_v12, %v2518_v54  ;;  %5276 = vmatpush1.bf16.msra.mxu1 %v13508_v46  ;;  %v2904_v57 = vmax.f32 %v2569_v53, 0.0 }
 0x4a6   :  { %5277 = vmatprep.subr.bf16.mxu1 %v13516_v49 }
 0x4a7   :  { %v2905_v60 = vmax.f32 %v2571_v13, 0.0  ;;  %v15746_v2 = vpack.c.bf16 %v2904_v57, %v2897_v61 }
 0x4a9   :  { %v15741_v62 = vpack.c.bf16 %v2905_v60, %v2898_v59  ;;  %5278 = vmatpush1.bf16.msra.mxu1 %v13514_v56  ;;  %v13598_v56 = vld [vmem:[%s17873_s11 + $0x8c0] ss:$28 sps:$4 sm:$0xff]  }
 0x4aa   :  { %5279 = vmatprep.subr.bf16.mxu1 %v13522_v58  ;;  %v13618_v59 = vld [vmem:[%s17873_s11 + $0xabc] ss:$28 sps:$4 sm:$0xff]  }
 0x4ab   :  { %5211 = vmatprep.mubr.bf16.mxu1 %v15741_v62 }
 0x4ac   :  { %5212 = vmatmul.mubr.bf16.gmra.mxu1 %v15746_v2 }
 0x4ad   :  { %5280 = vmatpush1.bf16.msra.mxu1 %v13520_v63 }
 0x4ae   :  { %5281 = vmatprep.subr.bf16.mxu1 %v13528_v3 }
 0x4b1   :  { %5282 = vmatpush1.bf16.msra.mxu1 %v13526_v4 }
 0x4b2   :  { %5283 = vmatprep.subr.bf16.mxu1 %v13534_v5 }
 0x4b5   :  { %5284 = vmatpush1.bf16.msra.mxu1 %v13532_v6 }
 0x4b6   :  { %5285 = vmatprep.subr.bf16.mxu1 %v13540_v16 }
 0x4b8   :  { %v2660_v20 = vpop.f32.mrf.mxu0 }
 0x4b9   :  { %5286 = vmatpush1.bf16.msra.mxu1 %v13538_v48 }
 0x4ba   :  { %5287 = vmatprep.subr.bf16.mxu1 %v13546_v9  ;;  %v2662_v22 = vpop.f32.mrf.mxu0  ;;  %v13547_v9 = vld [vmem:[%s17873_s11 + $0x190] ss:$28 sps:$4 sm:$0xff]  }
 0x4bc   :  { %v2664_v25 = vpop.f32.mrf.mxu0 }
 0x4bd   :  { %5288 = vmatpush1.bf16.msra.mxu1 %v13544_v11 }
 0x4be   :  { %5289 = vmatprep.subr.bf16.mxu1 %v13552_v17  ;;  %v2666_v29 = vpop.f32.mrf.mxu0 }
 0x4c0   :  { %v2670_v36 = vpop.f32.mrf.mxu0 }
 0x4c1   :  { %5290 = vmatpush1.bf16.msra.mxu1 %v13550_v42  ;;  %v13555_v42 = vld [vmem:[%s17873_s11 + $0x15c] ss:$28 sps:$4 sm:$0xff]  }
 0x4c2   :  { %5291 = vmatprep.subr.bf16.mxu1 %v13558_v14  ;;  %v2672_v54 = vpop.f32.mrf.mxu0 }
 0x4c4   :  { %v2674_v3 = vpop.f32.mrf.mxu0 }
 0x4c5   :  { %5292 = vmatpush2.bf16.msra.mxu1 %v13556_v50 }
 0x4c6   :  { %5293 = vmatprep.subr.bf16.mxu1 %v13564_v15 }
 0x4c9   :  { %5294 = vmatpush2.bf16.msra.mxu1 %v13562_v18  ;;  %v2676_v18 = vpop.f32.mrf.mxu0 }
 0x4ca   :  { %5295 = vmatprep.subr.bf16.mxu1 %v13570_v19 }
 0x4cd   :  { %5296 = vmatpush2.bf16.msra.mxu1 %v13568_v51  ;;  %v13553_v51 = vld [vmem:[%s17873_s11 + $0x158] ss:$28 sps:$4 sm:$0xff]  }
 0x4ce   :  { %5297 = vmatprep.subr.bf16.mxu1 %v13576_v21 }
 0x4d1   :  { %5298 = vmatpush2.bf16.msra.mxu1 %v13574_v23 }
 0x4d2   :  { %5299 = vmatprep.subr.bf16.mxu1 %v13582_v24 }
 0x4d4   :  { %v2607_v31 = vpop.f32.mrf.mxu1 }
 0x4d5   :  { %5300 = vmatpush2.bf16.msra.mxu1 %v13580_v26  ;;  %v2608_v39 = vadd.f32 %v2607_v31, %v1536_v30  ;;  %v13573_v31 = vld [vmem:[%s17873_s11 + $0xb4] ss:$28 sps:$4 sm:$0xff]  }
 0x4d6   :  { %v2609_v33 = vpop.f32.mrf.mxu1  ;;  %5301 = vmatprep.subr.bf16.mxu1 %v13588_v27  ;;  %v13559_v27 = vld [vmem:[%s17873_s11 + $0x120] ss:$28 sps:$4 sm:$0xff]  }
 0x4d7   :  { %v2610_v35 = vadd.f32 %v2609_v33, %v1540_v28  ;;  %v2661_v55 = vadd.f32 %v2660_v20, %v2608_v39  ;;  %v13579_v33 = vld [vmem:[%s17873_s11 + $0x7c] ss:$28 sps:$4 sm:$0xff]   ;;  %v13585_v39 = vld [vmem:[%s17873_s11 + $0x44] ss:$28 sps:$4 sm:$0xff]  }
 0x4d8   :  { %v2611_v40 = vpop.f32.mrf.mxu1 }
 0x4d9   :  { %v2612_v41 = vadd.f32 %v2611_v40, %v1536_v30  ;;  %5302 = vmatpush2.bf16.msra.mxu1 %v13586_v32  ;;  %v2663_v49 = vadd.f32 %v2662_v22, %v2610_v35  ;;  %v2885_v4 = vmax.f32 %v2661_v55, 0.0  ;;  %v13561_v22 = vld [vmem:[%s17873_s11 + $0x124] ss:$28 sps:$4 sm:$0xff]   ;;  %v13571_v32 = vld [vmem:[%s17873_s11 + $0xb0] ss:$28 sps:$4 sm:$0xff]  }
 0x4da   :  { %v2613_v46 = vpop.f32.mrf.mxu1  ;;  %5303 = vmatprep.subr.bf16.mxu1 %v13594_v34  ;;  %v15879_v34 = vsub.s32 5, %v15259_v7  ;;  %v13577_v35 = vld [vmem:[%s17873_s11 + $0x78] ss:$28 sps:$4 sm:$0xff]  }
 0x4db   :  { %v2665_v52 = vadd.f32 %v2664_v25, %v2612_v41  ;;  %v2614_v53 = vadd.f32 %v2613_v46, %v1540_v28  ;;  %v2886_v60 = vmax.f32 %v2663_v49, 0.0 }
 0x4dc   :  { %v2617_v12 = vpop.f32.mrf.mxu1  ;;  %17905 = vst [vmem:[#allocation25_spill] sm:$0xff] %v15879_v34  ;;  %v1548_v41 = vrot.slane %v15696_v1, %v15879_v34 }
 0x4dd   :  { %v2667_v13 = vadd.f32 %v2666_v29, %v2614_v53  ;;  %5304 = vmatpush2.bf16.msra.mxu1 %v13592_v45  ;;  %v2892_v57 = vmax.f32 %v2665_v52, 0.0  ;;  %v2618_v5 = vadd.f32 %v2617_v12, %v1536_v30  ;;  %v13567_v29 = vld [vmem:[%s17873_s11 + $0xec] ss:$28 sps:$4 sm:$0xff]  }
 0x4de   :  { %v2619_v58 = vpop.f32.mrf.mxu1  ;;  %5305 = vmatprep.subr.bf16.mxu1 %v13600_v43  ;;  %v13583_v43 = vld [vmem:[%s17873_s11 + $0x40] ss:$28 sps:$4 sm:$0xff]   ;;  %v13591_v52 = vld [vmem:[%s17873_s11 + $0xc] ss:$28 sps:$4 sm:$0xff]  }
 0x4df   :  { %v2893_v61 = vmax.f32 %v2667_v13, 0.0  ;;  %v2620_v63 = vadd.f32 %v2619_v58, %v1540_v28  ;;  %v15840_v11 = vpack.c.bf16 %v2892_v57, %v2885_v4  ;;  %v2671_v19 = vadd.f32 %v2670_v36, %v2618_v5 }
 0x4e0   :  { %v2621_v6 = vpop.f32.mrf.mxu1  ;;  %v15885_v36 = vsub.s32 4, %v15259_v7 }
 0x4e1   :  { %v15835_v16 = vpack.c.bf16 %v2893_v61, %v2886_v60  ;;  %v2622_v48 = vadd.f32 %v2621_v6, %v1536_v30  ;;  %5306 = vmatpush2.bf16.msra.mxu1 %v13598_v56  ;;  %v2673_v14 = vadd.f32 %v2672_v54, %v2620_v63  ;;  %v2899_v25 = vmax.f32 %v2671_v19, 0.0  ;;  %v13565_v30 = vld [vmem:[%s17873_s11 + $0xe8] ss:$28 sps:$4 sm:$0xff]  }
 0x4e2   :  { %v2623_v17 = vpop.f32.mrf.mxu1  ;;  %5340 = vmatprep.subr.bf16.mxu1 %v13618_v59  ;;  %17906 = vst [vmem:[#allocation26_spill] sm:$0xff] %v15885_v36  ;;  %v1544_v45 = vrot.slane %v15696_v1, %v15885_v36  ;;  %v13589_v56 = vld [vmem:[%s17873_s11 + $0x8] ss:$28 sps:$4 sm:$0xff]   ;;  %v13597_v59 = vld [vmem:[%s17873_s11 + $0x354] ss:$28 sps:$4 sm:$0xff]  }
 0x4e3   :  { %v2675_v50 = vadd.f32 %v2674_v3, %v2622_v48  ;;  %v2624_v15 = vadd.f32 %v2623_v17, %v1540_v28  ;;  %5254 = vmatprep.mubr.bf16.mxu0 %v15835_v16  ;;  %v2900_v23 = vmax.f32 %v2673_v14, 0.0  ;;  %v13595_v48 = vld [vmem:[%s17873_s11 + $0x350] ss:$28 sps:$4 sm:$0xff]  }
 0x4e4   :  { %5255 = vmatmul.mubr.bf16.vlgmr.msra.gmra.mxu0 %v15840_v11 }
 0x4e5   :  { %v2677_v20 = vadd.f32 %v2676_v18, %v2624_v15  ;;  %5382 = vmatpush1.bf16.msra.mxu0 %v13547_v9  ;;  %v2906_v21 = vmax.f32 %v2675_v50, 0.0 }
 0x4e6   :  { %5383 = vmatprep.subr.bf16.mxu0 %v13555_v42  ;;  %v13603_v42 = vld [vmem:[%s17873_s11 + $0x31c] ss:$28 sps:$4 sm:$0xff]  }
 0x4e7   :  { %v2907_v24 = vmax.f32 %v2677_v20, 0.0  ;;  %v15858_v28 = vpack.c.bf16 %v2906_v21, %v2899_v25 }
 0x4e9   :  { %v15853_v26 = vpack.c.bf16 %v2907_v24, %v2900_v23  ;;  %5384 = vmatpush1.bf16.msra.mxu0 %v13553_v51  ;;  %v13601_v23 = vld [vmem:[%s17873_s11 + $0x318] ss:$28 sps:$4 sm:$0xff]  }
 0x4ea   :  { %5385 = vmatprep.subr.bf16.mxu0 %v13561_v22 }
 0x4eb   :  { %5264 = vmatprep.mubr.bf16.mxu0 %v15853_v26 }
 0x4ec   :  { %5265 = vmatmul.mubr.bf16.gmra.mxu0 %v15858_v28 }
 0x4ed   :  { %5386 = vmatpush1.bf16.msra.mxu0 %v13559_v27  ;;  %5413 = vmatprep.mubr.bf16.mxu0 %v15723_v44  ;;  %v13606_v27 = vld [vmem:[%s17873_s11 + $0x2e4] ss:$28 sps:$4 sm:$0xff]  }
 0x4ee   :  { %5387 = vmatprep.subr.bf16.mxu0 %v13567_v29  ;;  %v13616_v29 = vld [vmem:[%s17873_s11 + $0xab8] ss:$28 sps:$4 sm:$0xff]  }
 0x4f1   :  { %5388 = vmatpush1.bf16.msra.mxu0 %v13565_v30 }
 0x4f2   :  { %5389 = vmatprep.subr.bf16.mxu0 %v13573_v31 }
 0x4f5   :  { %5390 = vmatpush1.bf16.msra.mxu0 %v13571_v32  ;;  %v13627_v32 = vld [vmem:[%s17873_s11 + $0xa84] ss:$28 sps:$4 sm:$0xff]  }
 0x4f6   :  { %5391 = vmatprep.subr.bf16.mxu0 %v13579_v33 }
 0x4f8   :  { %v2766_v40 = vpop.f32.mrf.mxu1 }
 0x4f9   :  { %v2713_v46 = vpop.f32.mrf.mxu0  ;;  %5392 = vmatpush1.bf16.msra.mxu0 %v13577_v35 }
 0x4fa   :  { %v2768_v49 = vpop.f32.mrf.mxu1  ;;  %5393 = vmatprep.subr.bf16.mxu0 %v13585_v39  ;;  %v2714_v12 = vadd.f32 %v2713_v46, %v1544_v45  ;;  %v13604_v46 = vld [vmem:[%s17873_s11 + $0x2e0] ss:$28 sps:$4 sm:$0xff]  }
 0x4fb   :  { %v2715_v53 = vpop.f32.mrf.mxu0 }
 0x4fc   :  { %v2716_v54 = vadd.f32 %v2715_v53, %v1548_v41  ;;  %v2770_v55 = vpop.f32.mrf.mxu1  ;;  %v2767_v5 = vadd.f32 %v2766_v40, %v2714_v12  ;;  %v13636_v53 = vld [vmem:[%s17873_s11 + $0x514] ss:$28 sps:$4 sm:$0xff]  }
 0x4fd   :  { %v2717_v13 = vpop.f32.mrf.mxu0  ;;  %5394 = vmatpush1.bf16.msra.mxu0 %v13583_v43 }
 0x4fe   :  { %v2718_v57 = vadd.f32 %v2717_v13, %v1544_v45  ;;  %v2772_v58 = vpop.f32.mrf.mxu1  ;;  %5395 = vmatprep.subr.bf16.mxu0 %v13591_v52  ;;  %v2769_v61 = vadd.f32 %v2768_v49, %v2716_v54  ;;  %v2887_v20 = vmax.f32 %v2767_v5, 0.0  ;;  %v13609_v49 = vld [vmem:[%s17873_s11 + $0x2ac] ss:$28 sps:$4 sm:$0xff]   ;;  %v13619_v5 = vld [vmem:[%s17873_s11 + $0x200] ss:$28 sps:$4 sm:$0xff]  }
 0x4ff   :  { %v2719_v60 = vpop.f32.mrf.mxu0  ;;  %v13607_v13 = vld [vmem:[%s17873_s11 + $0x2a8] ss:$28 sps:$4 sm:$0xff]  }
 0x500   :  { %v2771_v63 = vadd.f32 %v2770_v55, %v2718_v57  ;;  %v2720_v3 = vadd.f32 %v2719_v60, %v1548_v41  ;;  %v2776_v4 = vpop.f32.mrf.mxu1  ;;  %v2888_v15 = vmax.f32 %v2769_v61, 0.0  ;;  %v13612_v57 = vld [vmem:[%s17873_s11 + $0x274] ss:$28 sps:$4 sm:$0xff]   ;;  %v13615_v60 = vld [vmem:[%s17873_s11 + $0x23c] ss:$28 sps:$4 sm:$0xff]  }
 0x501   :  { %v2723_v6 = vpop.f32.mrf.mxu0  ;;  %5396 = vmatpush1.bf16.msra.mxu0 %v13589_v56  ;;  %v13613_v61 = vld [vmem:[%s17873_s11 + $0x238] ss:$28 sps:$4 sm:$0xff]  }
 0x502   :  { %v2773_v9 = vadd.f32 %v2772_v58, %v2720_v3  ;;  %v2778_v17 = vpop.f32.mrf.mxu1  ;;  %5397 = vmatprep.subr.bf16.mxu0 %v13597_v59  ;;  %v2894_v14 = vmax.f32 %v2771_v63, 0.0  ;;  %v2724_v51 = vadd.f32 %v2723_v6, %v1544_v45  ;;  %v13610_v59 = vld [vmem:[%s17873_s11 + $0x270] ss:$28 sps:$4 sm:$0xff]   ;;  %v13621_v63 = vld [vmem:[%s17873_s11 + $0x204] ss:$28 sps:$4 sm:$0xff]   ;;  %v15968_v3 = vsub.s32 6, %v15259_v7 }
 0x503   :  { %v2725_v50 = vpop.f32.mrf.mxu0  ;;  %v13622_v7 = vld [vmem:[%s17873_s11 + $0x1c8] ss:$28 sps:$4 sm:$0xff]  }
 0x504   :  { %v2895_v18 = vmax.f32 %v2773_v9, 0.0  ;;  %v2726_v19 = vadd.f32 %v2725_v50, %v1548_v41  ;;  %v2780_v22 = vpop.f32.mrf.mxu1  ;;  %v15923_v30 = vpack.c.bf16 %v2894_v14, %v2887_v20  ;;  %v2777_v40 = vadd.f32 %v2776_v4, %v2724_v51  ;;  %v13628_v51 = vld [vmem:[%s17873_s11 + $0x890] ss:$28 sps:$4 sm:$0xff]  }
 0x505   :  { %v2727_v21 = vpop.f32.mrf.mxu0  ;;  %5398 = vmatpush2.bf16.msra.mxu0 %v13595_v48  ;;  %v1552_v6 = vrot.slane %v15696_v1, %v15968_v3  ;;  %v13624_v48 = vld [vmem:[%s17873_s11 + $0x1cc] ss:$28 sps:$4 sm:$0xff]  }
 0x506   :  { %v15915_v24 = vpack.c.bf16 %v2895_v18, %v2888_v15  ;;  %v2728_v25 = vadd.f32 %v2727_v21, %v1544_v45  ;;  %5399 = vmatprep.subr.bf16.mxu0 %v13603_v42  ;;  %v2779_v33 = vadd.f32 %v2778_v17, %v2726_v19  ;;  %v2782_v45 = vpop.f32.mrf.mxu1  ;;  %v2901_v12 = vmax.f32 %v2777_v40, 0.0  ;;  %v13630_v15 = vld [vmem:[%s17873_s11 + $0x894] ss:$28 sps:$4 sm:$0xff]  }
 0x507   :  { %v2729_v31 = vpop.f32.mrf.mxu0 }
 0x508   :  { %v2781_v35 = vadd.f32 %v2780_v22, %v2728_v25  ;;  %v2730_v39 = vadd.f32 %v2729_v31, %v1548_v41  ;;  %5307 = vmatprep.mubr.bf16.mxu1 %v15915_v24  ;;  %v13625_v41 = vld [vmem:[%s17873_s11 + $0xa80] ss:$28 sps:$4 sm:$0xff]   ;;  %v2902_v54 = vmax.f32 %v2779_v33, 0.0 }
 0x509   :  { %5308 = vmatmul.mubr.bf16.vlgmr.msra.gmra.mxu1 %v15923_v30  ;;  %5400 = vmatpush2.bf16.msra.mxu0 %v13601_v23  ;;  %v13633_v25 = vld [vmem:[%s17873_s11 + $0x85c] ss:$28 sps:$4 sm:$0xff]  }
 0x50a   :  { %v2783_v43 = vadd.f32 %v2782_v45, %v2730_v39  ;;  %5401 = vmatprep.subr.bf16.mxu0 %v13606_v27  ;;  %5341 = vmatpush1.bf16.msra.mxu1 %v13616_v29  ;;  %v2908_v52 = vmax.f32 %v2781_v35, 0.0  ;;  %v13631_v35 = vld [vmem:[%s17873_s11 + $0x858] ss:$28 sps:$4 sm:$0xff]  }
 0x50b   :  { %5342 = vmatprep.subr.bf16.mxu1 %v13627_v32 }
 0x50c   :  { %v2909_v55 = vmax.f32 %v2783_v43, 0.0  ;;  %v15950_v58 = vpack.c.bf16 %v2908_v52, %v2901_v12  ;;  %v13639_v43 = vld [vmem:[%s17873_s11 + $0x824] ss:$28 sps:$4 sm:$0xff]  }
 0x50d   :  { %5402 = vmatpush2.bf16.msra.mxu0 %v13604_v46  ;;  %v13637_v12 = vld [vmem:[%s17873_s11 + $0x820] ss:$28 sps:$4 sm:$0xff]  }
 0x50e   :  { %v15945_v56 = vpack.c.bf16 %v2909_v55, %v2902_v54  ;;  %5403 = vmatprep.subr.bf16.mxu0 %v13609_v49  ;;  %5343 = vmatpush1.bf16.msra.mxu1 %v13625_v41  ;;  %v13634_v41 = vld [vmem:[%s17873_s11 + $0x510] ss:$28 sps:$4 sm:$0xff]   ;;  %v13642_v55 = vld [vmem:[%s17873_s11 + $0x4dc] ss:$28 sps:$4 sm:$0xff]  }
 0x50f   :  { %5434 = vmatprep.subr.bf16.mxu1 %v13636_v53 }
 0x510   :  { %5317 = vmatprep.mubr.bf16.mxu1 %v15945_v56 }
 0x511   :  { %5318 = vmatmul.mubr.bf16.gmra.mxu1 %v15950_v58  ;;  %5404 = vmatpush2.bf16.msra.mxu0 %v13607_v13 }
 0x512   :  { %5405 = vmatprep.subr.bf16.mxu0 %v13612_v57  ;;  %5360 = vmatprep.mubr.bf16.mxu1 %v17886_v0 }
 0x515   :  { %5406 = vmatpush2.bf16.msra.mxu0 %v13610_v59 }
 0x516   :  { %5407 = vmatprep.subr.bf16.mxu0 %v13615_v60  ;;  %v13645_v60 = vld [vmem:[%s17873_s11 + $0x7ec] ss:$28 sps:$4 sm:$0xff]  }
 0x519   :  { %v12783_v4 = vpop.f32.mrf.mxu1  ;;  %5408 = vmatpush2.bf16.msra.mxu0 %v13613_v61  ;;  %v13640_v61 = vld [vmem:[%s17873_s11 + $0x4d8] ss:$28 sps:$4 sm:$0xff]  }
 0x51a   :  { %5409 = vmatprep.subr.bf16.mxu0 %v13621_v63 }
 0x51b   :  { %v12784_v9 = vpop.f32.mrf.mxu1 }
 0x51c   :  { %v12785_v17 = vadd.f32 %v12784_v9, %v12783_v4 }
 0x51d   :  { %v12786_v42 = vpop.f32.mrf.mxu1  ;;  %5410 = vmatpush2.bf16.msra.mxu0 %v13619_v5  ;;  %v13648_v5 = vld [vmem:[%s17873_s11 + $0x4a4] ss:$28 sps:$4 sm:$0xff]  }
 0x51e   :  { %v2820_v14 = vadd.f32 %v12785_v17, %v1552_v6  ;;  %v2868_v50 = vpop.f32.mrf.mxu0  ;;  %5411 = vmatprep.subr.bf16.mxu0 %v13624_v48  ;;  %v13651_v17 = vld [vmem:[%s17873_s11 + $0x7b4] ss:$28 sps:$4 sm:$0xff]  }
 0x51f   :  { %v12787_v1 = vpop.f32.mrf.mxu1 }
 0x520   :  { %v12788_v18 = vadd.f32 %v12787_v1, %v12786_v42  ;;  %v2870_v19 = vpop.f32.mrf.mxu0  ;;  %v2869_v21 = vadd.f32 %v2868_v50, %v2820_v14  ;;  %v13646_v42 = vld [vmem:[%s17873_s11 + $0x4a0] ss:$28 sps:$4 sm:$0xff]   ;;  %v13654_v14 = vld [vmem:[%s17873_s11 + $0x46c] ss:$28 sps:$4 sm:$0xff]  }
 0x521   :  { %v12789_v20 = vpop.f32.mrf.mxu1  ;;  %5412 = vmatpush2.bf16.msra.mxu0 %v13622_v7  ;;  %v13649_v50 = vld [vmem:[%s17873_s11 + $0x7b0] ss:$28 sps:$4 sm:$0xff]   ;;  %v13652_v1 = vld [vmem:[%s17873_s11 + $0x468] ss:$28 sps:$4 sm:$0xff]   ;;  %v13655_v19 = vld [vmem:[%s17873_s11 + $0x778] ss:$28 sps:$4 sm:$0xff]  }
 0x522   :  { %v2823_v22 = vadd.f32 %v12788_v18, %v1552_v6  ;;  %v2871_v23 = vpop.f32.mrf.mxu0  ;;  %5487 = vmatprep.subr.bf16.mxu0 %v13630_v15  ;;  %v2889_v39 = vmax.f32 %v2869_v21, 0.0  ;;  %v13657_v15 = vld [vmem:[%s17873_s11 + $0x77c] ss:$28 sps:$4 sm:$0xff]   ;;  %v13660_v18 = vld [vmem:[%s17873_s11 + $0x434] ss:$28 sps:$4 sm:$0xff]  }
 0x523   :  { %v12790_v27 = vpop.f32.mrf.mxu1  ;;  %v13666_v21 = vld [vmem:[%s17873_s11 + $0x3fc] ss:$28 sps:$4 sm:$0xff]  }
 0x524   :  { %v2872_v29 = vadd.f32 %v2871_v23, %v2823_v22  ;;  %v12791_v31 = vadd.f32 %v12790_v27, %v12789_v20  ;;  %v2873_v32 = vpop.f32.mrf.mxu0  ;;  %5414 = vmatmul.mubr.bf16.vlgmr.msra.gmra.mxu0 %v15728_v47  ;;  %v13663_v20 = vld [vmem:[%s17873_s11 + $0x744] ss:$28 sps:$4 sm:$0xff]   ;;  %v13669_v23 = vld [vmem:[%s17873_s11 + $0x70c] ss:$28 sps:$4 sm:$0xff]  }
 0x525   :  { %v12792_v33 = vpop.f32.mrf.mxu1  ;;  %5423 = vmatprep.mubr.bf16.mxu0 %v15741_v62  ;;  %5488 = vmatpush1.bf16.msra.mxu0 %v13628_v51  ;;  %v13658_v51 = vld [vmem:[%s17873_s11 + $0x430] ss:$28 sps:$4 sm:$0xff]   ;;  %v13661_v22 = vld [vmem:[%s17873_s11 + $0x740] ss:$28 sps:$4 sm:$0xff]  }
 0x526   :  { %v2896_v40 = vmax.f32 %v2872_v29, 0.0  ;;  %v2828_v45 = vadd.f32 %v12791_v31, %v1552_v6  ;;  %v2876_v46 = vpop.f32.mrf.mxu0  ;;  %5489 = vmatprep.subr.bf16.mxu0 %v13633_v25  ;;  %v13664_v25 = vld [vmem:[%s17873_s11 + $0x3f8] ss:$28 sps:$4 sm:$0xff]   ;;  %v13672_v27 = vld [vmem:[%s17873_s11 + $0x3c4] ss:$28 sps:$4 sm:$0xff]  }
 0x527   :  { %v12793_v49 = vpop.f32.mrf.mxu1  ;;  %v13667_v29 = vld [vmem:[%s17873_s11 + $0x708] ss:$28 sps:$4 sm:$0xff]   ;;  %v13675_v31 = vld [vmem:[%s17873_s11 + $0xa54] ss:$28 sps:$4 sm:$0xff]   ;;  %v13670_v32 = vld [vmem:[%s17873_s11 + $0x3c0] ss:$28 sps:$4 sm:$0xff]  }
 0x528   :  { %v16001_v52 = vpack.c.bf16 %v2896_v40, %v2889_v39  ;;  %v12794_v53 = vadd.f32 %v12793_v49, %v12792_v33  ;;  %v2878_v54 = vpop.f32.mrf.mxu0  ;;  %v2877_v13 = vadd.f32 %v2876_v46, %v2828_v45  ;;  %v13678_v33 = vld [vmem:[%s17873_s11 + $0x38c] ss:$28 sps:$4 sm:$0xff]   ;;  %v13681_v39 = vld [vmem:[%s17873_s11 + $0xa1c] ss:$28 sps:$4 sm:$0xff]   ;;  %v13684_v45 = vld [vmem:[%s17873_s11 + $0x6d4] ss:$28 sps:$4 sm:$0xff]  }
 0x529   :  { %5490 = vmatpush1.bf16.msra.mxu0 %v13631_v35  ;;  %v13673_v35 = vld [vmem:[%s17873_s11 + $0xa50] ss:$28 sps:$4 sm:$0xff]   ;;  %v13676_v40 = vld [vmem:[%s17873_s11 + $0x388] ss:$28 sps:$4 sm:$0xff]   ;;  %v13679_v46 = vld [vmem:[%s17873_s11 + $0xa18] ss:$28 sps:$4 sm:$0xff]  }
 0x52a   :  { %v2831_v57 = vadd.f32 %v12794_v53, %v1552_v6  ;;  %v2879_v59 = vpop.f32.mrf.mxu0  ;;  %12129 = vmatmul.mubr.msk.bf16.vlgmr.msra.gmra.mxu1 %vm5162_vm3, %v16001_v52  ;;  %5491 = vmatprep.subr.bf16.mxu0 %v13639_v43  ;;  %v13643_v6 = vld [vmem:[%s17873_s11 + $0x7e8] ss:$28 sps:$4 sm:$0xff]   ;;  %v2903_v48 = vmax.f32 %v2877_v13, 0.0  ;;  %v13682_v49 = vld [vmem:[%s17873_s11 + $0x6d0] ss:$28 sps:$4 sm:$0xff]  }
 0x52b   :  { %5435 = vmatpush1.bf16.msra.mxu1 %v13634_v41  ;;  %5370 = vmatprep.mubr.bf16.mxu1 %v17886_v0  ;;  %v13687_v43 = vld [vmem:[%s17873_s11 + $0x9e4] ss:$28 sps:$4 sm:$0xff]   ;;  %v13690_v41 = vld [vmem:[%s17873_s11 + $0x69c] ss:$28 sps:$4 sm:$0xff]   ;;  %v13693_v54 = vld [vmem:[%s17873_s11 + $0x9ac] ss:$28 sps:$4 sm:$0xff]  }
 0x52c   :  { %v2880_v63 = vadd.f32 %v2879_v59, %v2831_v57  ;;  %v2881_v4 = vpop.f32.mrf.mxu0  ;;  %5424 = vmatmul.mubr.bf16.gmra.mxu0 %v15746_v2  ;;  %5436 = vmatprep.subr.bf16.mxu1 %v13642_v55  ;;  %v13685_v53 = vld [vmem:[%s17873_s11 + $0x9e0] ss:$28 sps:$4 sm:$0xff]   ;;  %v13688_v55 = vld [vmem:[%s17873_s11 + $0x698] ss:$28 sps:$4 sm:$0xff]   ;;  %v13691_v13 = vld [vmem:[%s17873_s11 + $0x9a8] ss:$28 sps:$4 sm:$0xff]  }
 0x52d   :  { %5492 = vmatpush1.bf16.msra.mxu0 %v13637_v12  ;;  %5519 = vmatprep.mubr.bf16.mxu0 %v15915_v24  ;;  %v13696_v12 = vld [vmem:[%s17873_s11 + $0x664] ss:$28 sps:$4 sm:$0xff]   ;;  %v13699_v57 = vld [vmem:[%s17873_s11 + $0x974] ss:$28 sps:$4 sm:$0xff]  }
 0x52e   :  { %v2910_v9 = vmax.f32 %v2880_v63, 0.0  ;;  %5493 = vmatprep.subr.bf16.mxu0 %v13645_v60  ;;  %v13694_v59 = vld [vmem:[%s17873_s11 + $0x660] ss:$28 sps:$4 sm:$0xff]   ;;  %v13702_v60 = vld [vmem:[%s17873_s11 + $0x62c] ss:$28 sps:$4 sm:$0xff]  }
 0x52f   :  { %5437 = vmatpush1.bf16.msra.mxu1 %v13640_v61  ;;  %v13697_v61 = vld [vmem:[%s17873_s11 + $0x970] ss:$28 sps:$4 sm:$0xff]   ;;  %v13705_v63 = vld [vmem:[%s17873_s11 + $0x93c] ss:$28 sps:$4 sm:$0xff]   ;;  %v13700_v4 = vld [vmem:[%s17873_s11 + $0x628] ss:$28 sps:$4 sm:$0xff]  }
 0x530   :  { %v16032_v7 = vpack.c.bf16 %v2910_v9, %v2903_v48  ;;  %5438 = vmatprep.subr.bf16.mxu1 %v13648_v5  ;;  %v13708_v5 = vld [vmem:[%s17873_s11 + $0x5f4] ss:$28 sps:$4 sm:$0xff]   ;;  %v13711_v48 = vld [vmem:[%s17873_s11 + $0x904] ss:$28 sps:$4 sm:$0xff]  }
 0x531   :  { %5494 = vmatpush1.bf16.msra.mxu0 %v13643_v6  ;;  %v13703_v6 = vld [vmem:[%s17873_s11 + $0x938] ss:$28 sps:$4 sm:$0xff]   ;;  %v13706_v9 = vld [vmem:[%s17873_s11 + $0x5f0] ss:$28 sps:$4 sm:$0xff]  }
 0x532   :  { %12130 = vmatmul.mubr.msk.bf16.gmra.mxu1 %vm5162_vm3, %v16032_v7  ;;  %5495 = vmatprep.subr.bf16.mxu0 %v13651_v17  ;;  %v13714_v17 = vld [vmem:[%s17873_s11 + $0x5bc] ss:$28 sps:$4 sm:$0xff]  }
 0x533   :  { %5439 = vmatpush1.bf16.msra.mxu1 %v13646_v42  ;;  %5466 = vmatprep.mubr.bf16.mxu1 %v15835_v16  ;;  %v13709_v42 = vld [vmem:[%s17873_s11 + $0x900] ss:$28 sps:$4 sm:$0xff]  }
 0x534   :  { %5440 = vmatprep.subr.bf16.mxu1 %v13654_v14  ;;  %v13717_v14 = vld [vmem:[%s17873_s11 + $0x8cc] ss:$28 sps:$4 sm:$0xff]  }
 0x535   :  { %5496 = vmatpush1.bf16.msra.mxu0 %v13649_v50  ;;  %v13712_v50 = vld [vmem:[%s17873_s11 + $0x5b8] ss:$28 sps:$4 sm:$0xff]  }
 0x536   :  { %5497 = vmatprep.subr.bf16.mxu0 %v13657_v15  ;;  %v13720_v15 = vld [vmem:[%s17873_s11 + $0x584] ss:$28 sps:$4 sm:$0xff]  }
 0x537   :  { %5441 = vmatpush1.bf16.msra.mxu1 %v13652_v1  ;;  %v13715_v1 = vld [vmem:[%s17873_s11 + $0x8c8] ss:$28 sps:$4 sm:$0xff]  }
 0x538   :  { %5442 = vmatprep.subr.bf16.mxu1 %v13660_v18  ;;  %v13723_v18 = vld [vmem:[%s17873_s11 + $0x51c] ss:$28 sps:$4 sm:$0xff]  }
 0x539   :  { %5498 = vmatpush1.bf16.msra.mxu0 %v13655_v19  ;;  %v13718_v19 = vld [vmem:[%s17873_s11 + $0x580] ss:$28 sps:$4 sm:$0xff]  }
 0x53a   :  { %5499 = vmatprep.subr.bf16.mxu0 %v13663_v20  ;;  %v13726_v20 = vld [vmem:[%s17873_s11 + $0x54c] ss:$28 sps:$4 sm:$0xff]  }
 0x53b   :  { %5443 = vmatpush1.bf16.msra.mxu1 %v13658_v51  ;;  %v13721_v51 = vld [vmem:[%s17873_s11 + $0x518] ss:$28 sps:$4 sm:$0xff]  }
 0x53c   :  { %5444 = vmatprep.subr.bf16.mxu1 %v13666_v21  ;;  %v13729_v21 = vld [vmem:[%s17873_s11 + $0x4e4] ss:$28 sps:$4 sm:$0xff]  }
 0x53d   :  { %5500 = vmatpush1.bf16.msra.mxu0 %v13661_v22  ;;  %v13724_v22 = vld [vmem:[%s17873_s11 + $0x548] ss:$28 sps:$4 sm:$0xff]  }
 0x53e   :  { %5501 = vmatprep.subr.bf16.mxu0 %v13669_v23  ;;  %v13732_v23 = vld [vmem:[%s17873_s11 + $0xac4] ss:$28 sps:$4 sm:$0xff]  }
 0x53f   :  { %5445 = vmatpush1.bf16.msra.mxu1 %v13664_v25  ;;  %v13727_v25 = vld [vmem:[%s17873_s11 + $0x4e0] ss:$28 sps:$4 sm:$0xff]  }
 0x540   :  { %5446 = vmatprep.subr.bf16.mxu1 %v13672_v27  ;;  %v13735_v27 = vld [vmem:[%s17873_s11 + $0x4ac] ss:$28 sps:$4 sm:$0xff]  }
 0x541   :  { %5502 = vmatpush1.bf16.msra.mxu0 %v13667_v29  ;;  %v13730_v29 = vld [vmem:[%s17873_s11 + $0xac0] ss:$28 sps:$4 sm:$0xff]  }
 0x542   :  { %5503 = vmatprep.subr.bf16.mxu0 %v13675_v31  ;;  %v13741_v31 = vld [vmem:[%s17873_s11 + $0xa8c] ss:$28 sps:$4 sm:$0xff]  }
 0x543   :  { %5447 = vmatpush1.bf16.msra.mxu1 %v13670_v32  ;;  %v13733_v32 = vld [vmem:[%s17873_s11 + $0x4a8] ss:$28 sps:$4 sm:$0xff]  }
 0x544   :  { %5448 = vmatprep.subr.bf16.mxu1 %v13678_v33  ;;  %v13738_v33 = vld [vmem:[%s17873_s11 + $0x474] ss:$28 sps:$4 sm:$0xff]  }
 0x545   :  { %5504 = vmatpush2.bf16.msra.mxu0 %v13673_v35  ;;  %v13739_v35 = vld [vmem:[%s17873_s11 + $0xa88] ss:$28 sps:$4 sm:$0xff]  }
 0x546   :  { %5505 = vmatprep.subr.bf16.mxu0 %v13681_v39  ;;  %v13747_v39 = vld [vmem:[%s17873_s11 + $0x19c] ss:$28 sps:$4 sm:$0xff]  }
 0x547   :  { %5449 = vmatpush1.bf16.msra.mxu1 %v13676_v40  ;;  %v13736_v40 = vld [vmem:[%s17873_s11 + $0x470] ss:$28 sps:$4 sm:$0xff]  }
 0x548   :  { %5450 = vmatprep.subr.bf16.mxu1 %v13684_v45  ;;  %v13744_v45 = vld [vmem:[%s17873_s11 + $0x43c] ss:$28 sps:$4 sm:$0xff]  }
 0x549   :  { %5506 = vmatpush2.bf16.msra.mxu0 %v13679_v46  ;;  %v13742_v46 = vld [vmem:[%s17873_s11 + $0x438] ss:$28 sps:$4 sm:$0xff]  }
 0x54a   :  { %5507 = vmatprep.subr.bf16.mxu0 %v13687_v43  ;;  %v13750_v43 = vld [vmem:[%s17873_s11 + $0x404] ss:$28 sps:$4 sm:$0xff]  }
 0x54b   :  { %5451 = vmatpush2.bf16.msra.mxu1 %v13682_v49  ;;  %v13748_v49 = vld [vmem:[%s17873_s11 + $0x400] ss:$28 sps:$4 sm:$0xff]  }
 0x54c   :  { %5452 = vmatprep.subr.bf16.mxu1 %v13690_v41  ;;  %v13756_v41 = vld [vmem:[%s17873_s11 + $0x3cc] ss:$28 sps:$4 sm:$0xff]  }
 0x54d   :  { %5508 = vmatpush2.bf16.msra.mxu0 %v13685_v53  ;;  %v13745_v53 = vld [vmem:[%s17873_s11 + $0x198] ss:$28 sps:$4 sm:$0xff]  }
 0x54e   :  { %5509 = vmatprep.subr.bf16.mxu0 %v13693_v54  ;;  %v13753_v54 = vld [vmem:[%s17873_s11 + $0x164] ss:$28 sps:$4 sm:$0xff]  }
 0x54f   :  { %5453 = vmatpush2.bf16.msra.mxu1 %v13688_v55  ;;  %v13754_v55 = vld [vmem:[%s17873_s11 + $0x3c8] ss:$28 sps:$4 sm:$0xff]  }
 0x550   :  { %5454 = vmatprep.subr.bf16.mxu1 %v13696_v12  ;;  %v13762_v12 = vld [vmem:[%s17873_s11 + $0x394] ss:$28 sps:$4 sm:$0xff]  }
 0x551   :  { %5510 = vmatpush2.bf16.msra.mxu0 %v13691_v13  ;;  %v13751_v13 = vld [vmem:[%s17873_s11 + $0x160] ss:$28 sps:$4 sm:$0xff]  }
 0x552   :  { %5511 = vmatprep.subr.bf16.mxu0 %v13699_v57  ;;  %v13759_v57 = vld [vmem:[%s17873_s11 + $0x12c] ss:$28 sps:$4 sm:$0xff]  }
 0x553   :  { %5455 = vmatpush2.bf16.msra.mxu1 %v13694_v59  ;;  %v13760_v59 = vld [vmem:[%s17873_s11 + $0x390] ss:$28 sps:$4 sm:$0xff]  }
 0x554   :  { %5456 = vmatprep.subr.bf16.mxu1 %v13702_v60  ;;  %v13768_v60 = vld [vmem:[%s17873_s11 + $0x6dc] ss:$28 sps:$4 sm:$0xff]  }
 0x555   :  { %5512 = vmatpush2.bf16.msra.mxu0 %v13697_v61  ;;  %v13757_v61 = vld [vmem:[%s17873_s11 + $0x128] ss:$28 sps:$4 sm:$0xff]  }
 0x556   :  { %5513 = vmatprep.subr.bf16.mxu0 %v13705_v63  ;;  %v13765_v63 = vld [vmem:[%s17873_s11 + $0xf4] ss:$28 sps:$4 sm:$0xff]  }
 0x557   :  { %5457 = vmatpush2.bf16.msra.mxu1 %v13700_v4  ;;  %v13766_v4 = vld [vmem:[%s17873_s11 + $0x6d8] ss:$28 sps:$4 sm:$0xff]  }
 0x558   :  { %5458 = vmatprep.subr.bf16.mxu1 %v13708_v5  ;;  %v13774_v5 = vld [vmem:[%s17873_s11 + $0x6a4] ss:$28 sps:$4 sm:$0xff]  }
 0x559   :  { %5514 = vmatpush2.bf16.msra.mxu0 %v13703_v6  ;;  %v13763_v6 = vld [vmem:[%s17873_s11 + $0xf0] ss:$28 sps:$4 sm:$0xff]  }
 0x55a   :  { %5515 = vmatprep.subr.bf16.mxu0 %v13711_v48  ;;  %v13771_v48 = vld [vmem:[%s17873_s11 + $0xbc] ss:$28 sps:$4 sm:$0xff]  }
 0x55b   :  { %5459 = vmatpush2.bf16.msra.mxu1 %v13706_v9  ;;  %v13772_v9 = vld [vmem:[%s17873_s11 + $0x6a0] ss:$28 sps:$4 sm:$0xff]  }
 0x55c   :  { %5460 = vmatprep.subr.bf16.mxu1 %v13714_v17  ;;  %v13780_v17 = vld [vmem:[%s17873_s11 + $0x66c] ss:$28 sps:$4 sm:$0xff]  }
 0x55d   :  { %5516 = vmatpush2.bf16.msra.mxu0 %v13709_v42  ;;  %v13769_v42 = vld [vmem:[%s17873_s11 + $0xb8] ss:$28 sps:$4 sm:$0xff]  }
 0x55e   :  { %5517 = vmatprep.subr.bf16.mxu0 %v13717_v14  ;;  %v13777_v14 = vld [vmem:[%s17873_s11 + $0x84] ss:$28 sps:$4 sm:$0xff]  }
 0x55f   :  { %5461 = vmatpush2.bf16.msra.mxu1 %v13712_v50  ;;  %v13778_v50 = vld [vmem:[%s17873_s11 + $0x668] ss:$28 sps:$4 sm:$0xff]  }
 0x560   :  { %5462 = vmatprep.subr.bf16.mxu1 %v13720_v15  ;;  %v13786_v15 = vld [vmem:[%s17873_s11 + $0x634] ss:$28 sps:$4 sm:$0xff]  }
 0x561   :  { %5518 = vmatpush2.bf16.msra.mxu0 %v13715_v1  ;;  %v13775_v1 = vld [vmem:[%s17873_s11 + $0x80] ss:$28 sps:$4 sm:$0xff]  }
 0x562   :  { %5646 = vmatprep.subr.bf16.mxu0 %v13723_v18  ;;  %v13783_v18 = vld [vmem:[%s17873_s11 + $0x4c] ss:$28 sps:$4 sm:$0xff]  }
 0x563   :  { %5463 = vmatpush2.bf16.msra.mxu1 %v13718_v19  ;;  %v13784_v19 = vld [vmem:[%s17873_s11 + $0x630] ss:$28 sps:$4 sm:$0xff]  }
 0x564   :  { %5520 = vmatmul.mubr.bf16.vlgmr.msra.gmra.mxu0 %v15923_v30  ;;  %5464 = vmatprep.subr.bf16.mxu1 %v13726_v20  ;;  %v13792_v20 = vld [vmem:[%s17873_s11 + $0x5fc] ss:$28 sps:$4 sm:$0xff]  }
 0x565   :  { %5529 = vmatprep.mubr.bf16.mxu0 %v15945_v56  ;;  %5647 = vmatpush1.bf16.msra.mxu0 %v13721_v51  ;;  %v13781_v51 = vld [vmem:[%s17873_s11 + $0x48] ss:$28 sps:$4 sm:$0xff]  }
 0x566   :  { %5648 = vmatprep.subr.bf16.mxu0 %v13729_v21  ;;  %v13789_v21 = vld [vmem:[%s17873_s11 + $0x14] ss:$28 sps:$4 sm:$0xff]  }
 0x567   :  { %5465 = vmatpush2.bf16.msra.mxu1 %v13724_v22  ;;  %v13790_v22 = vld [vmem:[%s17873_s11 + $0x5f8] ss:$28 sps:$4 sm:$0xff]  }
 0x568   :  { %5552 = vmatprep.subr.bf16.mxu1 %v13732_v23  ;;  %v13798_v23 = vld [vmem:[%s17873_s11 + $0x5c4] ss:$28 sps:$4 sm:$0xff]  }
 0x569   :  { %5649 = vmatpush1.bf16.msra.mxu0 %v13727_v25  ;;  %v13787_v25 = vld [vmem:[%s17873_s11 + $0x10] ss:$28 sps:$4 sm:$0xff]  }
 0x56a   :  { %5467 = vmatmul.mubr.bf16.vlgmr.msra.gmra.mxu1 %v15840_v11  ;;  %5650 = vmatprep.subr.bf16.mxu0 %v13735_v27  ;;  %v13795_v27 = vld [vmem:[%s17873_s11 + $0x35c] ss:$28 sps:$4 sm:$0xff]  }
 0x56b   :  { %5476 = vmatprep.mubr.bf16.mxu1 %v15853_v26  ;;  %5553 = vmatpush1.bf16.msra.mxu1 %v13730_v29  ;;  %v13796_v29 = vld [vmem:[%s17873_s11 + $0x5c0] ss:$28 sps:$4 sm:$0xff]  }
 0x56c   :  { %5530 = vmatmul.mubr.bf16.gmra.mxu0 %v15950_v58  ;;  %5554 = vmatprep.subr.bf16.mxu1 %v13741_v31  ;;  %v13804_v31 = vld [vmem:[%s17873_s11 + $0x58c] ss:$28 sps:$4 sm:$0xff]  }
 0x56d   :  { %5651 = vmatpush1.bf16.msra.mxu0 %v13733_v32  ;;  %5678 = vmatprep.mubr.bf16.mxu0 %v15835_v16  ;;  %v13793_v32 = vld [vmem:[%s17873_s11 + $0x358] ss:$28 sps:$4 sm:$0xff]  }
 0x56e   :  { %5652 = vmatprep.subr.bf16.mxu0 %v13738_v33  ;;  %v13801_v33 = vld [vmem:[%s17873_s11 + $0x324] ss:$28 sps:$4 sm:$0xff]  }
 0x56f   :  { %5555 = vmatpush1.bf16.msra.mxu1 %v13739_v35  ;;  %v13802_v35 = vld [vmem:[%s17873_s11 + $0x588] ss:$28 sps:$4 sm:$0xff]  }
 0x570   :  { %5593 = vmatprep.subr.bf16.mxu1 %v13747_v39  ;;  %v13810_v39 = vld [vmem:[%s17873_s11 + $0x554] ss:$28 sps:$4 sm:$0xff]  }
 0x571   :  { %5653 = vmatpush1.bf16.msra.mxu0 %v13736_v40  ;;  %v13799_v40 = vld [vmem:[%s17873_s11 + $0x320] ss:$28 sps:$4 sm:$0xff]  }
 0x572   :  { %5477 = vmatmul.mubr.bf16.gmra.mxu1 %v15858_v28  ;;  %5654 = vmatprep.subr.bf16.mxu0 %v13744_v45  ;;  %v13807_v45 = vld [vmem:[%s17873_s11 + $0x2ec] ss:$28 sps:$4 sm:$0xff]  }
 0x573   :  { %5572 = vmatprep.mubr.bf16.mxu1 %v17886_v0 }
 0x575   :  { %5655 = vmatpush1.bf16.msra.mxu0 %v13742_v46  ;;  %v13808_v46 = vld [vmem:[%s17873_s11 + $0x550] ss:$28 sps:$4 sm:$0xff]  }
 0x576   :  { %5656 = vmatprep.subr.bf16.mxu0 %v13750_v43  ;;  %v13819_v43 = vld [vmem:[%s17873_s11 + $0xacc] ss:$28 sps:$4 sm:$0xff]  }
 0x579   :  { %5657 = vmatpush1.bf16.msra.mxu0 %v13748_v49  ;;  %v13805_v49 = vld [vmem:[%s17873_s11 + $0x2e8] ss:$28 sps:$4 sm:$0xff]  }
 0x57a   :  { %12131 = vmatmul.mubr.msk.bf16.vlgmr.msra.gmra.mxu1 %vm5162_vm3, %v16001_v52  ;;  %5658 = vmatprep.subr.bf16.mxu0 %v13756_v41  ;;  %v13813_v41 = vld [vmem:[%s17873_s11 + $0x2b4] ss:$28 sps:$4 sm:$0xff]  }
 0x57b   :  { %5594 = vmatpush1.bf16.msra.mxu1 %v13745_v53  ;;  %5582 = vmatprep.mubr.bf16.mxu1 %v17886_v0  ;;  %v13817_v53 = vld [vmem:[%s17873_s11 + $0xac8] ss:$28 sps:$4 sm:$0xff]  }
 0x57c   :  { %5595 = vmatprep.subr.bf16.mxu1 %v13753_v54  ;;  %v13825_v54 = vld [vmem:[%s17873_s11 + $0xa94] ss:$28 sps:$4 sm:$0xff]  }
 0x57d   :  { %5659 = vmatpush1.bf16.msra.mxu0 %v13754_v55  ;;  %v13811_v55 = vld [vmem:[%s17873_s11 + $0x2b0] ss:$28 sps:$4 sm:$0xff]  }
 0x57e   :  { %5660 = vmatprep.subr.bf16.mxu0 %v13762_v12  ;;  %v13816_v12 = vld [vmem:[%s17873_s11 + $0x27c] ss:$28 sps:$4 sm:$0xff]  }
 0x57f   :  { %5596 = vmatpush1.bf16.msra.mxu1 %v13751_v13  ;;  %v13823_v13 = vld [vmem:[%s17873_s11 + $0xa90] ss:$28 sps:$4 sm:$0xff]  }
 0x580   :  { %5597 = vmatprep.subr.bf16.mxu1 %v13759_v57  ;;  %v13829_v57 = vld [vmem:[%s17873_s11 + $0x360] ss:$28 sps:$4 sm:$0xff]  }
 0x581   :  { %5661 = vmatpush1.bf16.msra.mxu0 %v13760_v59  ;;  %v13814_v59 = vld [vmem:[%s17873_s11 + $0x278] ss:$28 sps:$4 sm:$0xff]  }
 0x582   :  { %12132 = vmatmul.mubr.msk.bf16.gmra.mxu1 %vm5162_vm3, %v16032_v7  ;;  %5662 = vmatprep.subr.bf16.mxu0 %v13768_v60  ;;  %v13822_v60 = vld [vmem:[%s17873_s11 + $0x244] ss:$28 sps:$4 sm:$0xff]  }
 0x583   :  { %5598 = vmatpush1.bf16.msra.mxu1 %v13757_v61  ;;  %5625 = vmatprep.mubr.bf16.mxu1 %v15723_v44  ;;  %v16404_v61 = vpop.f32.mrf.mxu1 }
 0x584   :  { %5599 = vmatprep.subr.bf16.mxu1 %v13765_v63  ;;  %v13820_v63 = vld [vmem:[%s17873_s11 + $0x240] ss:$28 sps:$4 sm:$0xff]  }
 0x585   :  { %5663 = vmatpush2.bf16.msra.mxu0 %v13766_v4  ;;  %v13828_v4 = vld [vmem:[%s17873_s11 + $0x20c] ss:$28 sps:$4 sm:$0xff]  }
 0x586   :  { %5664 = vmatprep.subr.bf16.mxu0 %v13774_v5  ;;  %v16414_v5 = vpop.f32.mrf.mxu1 }
 0x587   :  { %5600 = vmatpush1.bf16.msra.mxu1 %v13763_v6  ;;  %v13826_v6 = vld [vmem:[%s17873_s11 + $0x208] ss:$28 sps:$4 sm:$0xff]  }
 0x588   :  { %5601 = vmatprep.subr.bf16.mxu1 %v13771_v48  ;;  %v13832_v48 = vld [vmem:[%s17873_s11 + $0x1d4] ss:$28 sps:$4 sm:$0xff]  }
 0x589   :  { %5665 = vmatpush2.bf16.msra.mxu0 %v13772_v9  ;;  %v13833_v9 = vld [vmem:[%s17873_s11 + $0x1a0] ss:$28 sps:$4 sm:$0xff]  }
 0x58a   :  { %5666 = vmatprep.subr.bf16.mxu0 %v13780_v17  ;;  %v13834_v17 = vld [vmem:[%s17873_s11 + $0x328] ss:$28 sps:$4 sm:$0xff]  }
 0x58b   :  { %5602 = vmatpush1.bf16.msra.mxu1 %v13769_v42  ;;  %v16428_v42 = vpop.f32.mrf.mxu1 }
 0x58c   :  { %5603 = vmatprep.subr.bf16.mxu1 %v13777_v14  ;;  %v13830_v14 = vld [vmem:[%s17873_s11 + $0x1d0] ss:$28 sps:$4 sm:$0xff]  }
 0x58d   :  { %5667 = vmatpush2.bf16.msra.mxu0 %v13778_v50  ;;  %v13837_v50 = vld [vmem:[%s17873_s11 + $0x89c] ss:$28 sps:$4 sm:$0xff]  }
 0x58e   :  { %5668 = vmatprep.subr.bf16.mxu0 %v13786_v15  ;;  %v13838_v15 = vld [vmem:[%s17873_s11 + $0x168] ss:$28 sps:$4 sm:$0xff]  }
 0x58f   :  { %5604 = vmatpush1.bf16.msra.mxu1 %v13775_v1  ;;  %v13839_v1 = vld [vmem:[%s17873_s11 + $0x2f0] ss:$28 sps:$4 sm:$0xff]  }
 0x590   :  { %5605 = vmatprep.subr.bf16.mxu1 %v13783_v18  ;;  %v16445_v18 = vpop.f32.mrf.mxu1 }
 0x591   :  { %5669 = vmatpush2.bf16.msra.mxu0 %v13784_v19  ;;  %v13835_v19 = vld [vmem:[%s17873_s11 + $0x898] ss:$28 sps:$4 sm:$0xff]  }
 0x592   :  { %5670 = vmatprep.subr.bf16.mxu0 %v13792_v20  ;;  %v13842_v20 = vld [vmem:[%s17873_s11 + $0x864] ss:$28 sps:$4 sm:$0xff]  }
 0x593   :  { %5606 = vmatpush1.bf16.msra.mxu1 %v13781_v51 }
 0x594   :  { %5607 = vmatprep.subr.bf16.mxu1 %v13789_v21  ;;  %v13843_v21 = vld [vmem:[%s17873_s11 + $0x130] ss:$28 sps:$4 sm:$0xff]  }
 0x595   :  { %5671 = vmatpush2.bf16.msra.mxu0 %v13790_v22  ;;  %v13844_v22 = vld [vmem:[%s17873_s11 + $0x2b8] ss:$28 sps:$4 sm:$0xff]  }
 0x596   :  { %5672 = vmatprep.subr.bf16.mxu0 %v13798_v23  ;;  %v16460_v23 = vpop.f32.mrf.mxu1 }
 0x597   :  { %5608 = vmatpush1.bf16.msra.mxu1 %v13787_v25  ;;  %v13840_v25 = vld [vmem:[%s17873_s11 + $0x860] ss:$28 sps:$4 sm:$0xff]  }
 0x598   :  { %5609 = vmatprep.subr.bf16.mxu1 %v13795_v27  ;;  %v13847_v27 = vld [vmem:[%s17873_s11 + $0x82c] ss:$28 sps:$4 sm:$0xff]  }
 0x599   :  { %5673 = vmatpush2.bf16.msra.mxu0 %v13796_v29 }
 0x59a   :  { %5674 = vmatprep.subr.bf16.mxu0 %v13804_v31  ;;  %v13848_v31 = vld [vmem:[%s17873_s11 + $0xf8] ss:$28 sps:$4 sm:$0xff]  }
 0x59b   :  { %5610 = vmatpush2.bf16.msra.mxu1 %v13793_v32  ;;  %v13849_v32 = vld [vmem:[%s17873_s11 + $0x280] ss:$28 sps:$4 sm:$0xff]  }
 0x59c   :  { %5611 = vmatprep.subr.bf16.mxu1 %v13801_v33  ;;  %v16483_v33 = vld [vmem:[%s17874_s12] sm:$0x7f] }
 0x59d   :  { %5675 = vmatpush2.bf16.msra.mxu0 %v13802_v35  ;;  %v5215_v35 = vpop.f32.mrf.mxu1 }
 0x59e   :  { %5676 = vmatprep.subr.bf16.mxu0 %v13810_v39  ;;  %v13852_v39 = vld [vmem:[%s17873_s11 + $0x7f4] ss:$28 sps:$4 sm:$0xff]  }
 0x59f   :  { %5612 = vmatpush2.bf16.msra.mxu1 %v13799_v40 }
 0x5a0   :  { %5613 = vmatprep.subr.bf16.mxu1 %v13807_v45  ;;  %v13853_v45 = vld [vmem:[%s17873_s11 + $0xc0] ss:$28 sps:$4 sm:$0xff]  }
 0x5a1   :  { %5677 = vmatpush2.bf16.msra.mxu0 %v13808_v46  ;;  %v3330_v46 = vrot.slane %v16483_v33, %v15268_v10 }
 0x5a2   :  { %5764 = vmatprep.subr.bf16.mxu0 %v13819_v43  ;;  %v13854_v43 = vld [vmem:[%s17873_s11 + $0x248] ss:$28 sps:$4 sm:$0xff]  }
 0x5a3   :  { %5614 = vmatpush2.bf16.msra.mxu1 %v13805_v49  ;;  %v5217_v49 = vpop.f32.mrf.mxu1 }
 0x5a4   :  { %5615 = vmatprep.subr.bf16.mxu1 %v13813_v41  ;;  %5679 = vmatmul.mubr.bf16.vlgmr.msra.gmra.mxu0 %v15840_v11  ;;  %v5256_v51 = vpop.f32.mrf.mxu0  ;;  %v13850_v41 = vld [vmem:[%s17873_s11 + $0x7f0] ss:$28 sps:$4 sm:$0xff]  }
 0x5a5   :  { %5688 = vmatprep.mubr.bf16.mxu0 %v15853_v26  ;;  %5765 = vmatpush1.bf16.msra.mxu0 %v13817_v53  ;;  %v13857_v53 = vld [vmem:[%s17873_s11 + $0x7bc] ss:$28 sps:$4 sm:$0xff]  }
 0x5a6   :  { %5766 = vmatprep.subr.bf16.mxu0 %v13825_v54  ;;  %v16471_v29 = vpop.f32.mrf.mxu0 }
 0x5a7   :  { %5616 = vmatpush2.bf16.msra.mxu1 %v13811_v55  ;;  %v13858_v55 = vld [vmem:[%s17873_s11 + $0x88] ss:$28 sps:$4 sm:$0xff]  }
 0x5a8   :  { %5617 = vmatprep.subr.bf16.mxu1 %v13816_v12  ;;  %v5260_v40 = vpop.f32.mrf.mxu0  ;;  %v5204_v12 = vadd.f32 %v16404_v61, %v3330_v46 }
 0x5a9   :  { %5767 = vmatpush1.bf16.msra.mxu0 %v13823_v13  ;;  %v13859_v13 = vld [vmem:[%s17873_s11 + $0x210] ss:$28 sps:$4 sm:$0xff]  }
 0x5aa   :  { %12795 = vmatprep.subr.bf16.mxu0 %v13829_v57  ;;  %v16507_v54 = vpop.f32.mrf.mxu0  ;;  %v16516_v57 = vpop.f32.mrf.mxu1 }
 0x5ab   :  { %5618 = vmatpush2.bf16.msra.mxu1 %v13814_v59  ;;  %v13855_v59 = vld [vmem:[%s17873_s11 + $0x7b8] ss:$28 sps:$4 sm:$0xff]  }
 0x5ac   :  { %5619 = vmatprep.subr.bf16.mxu1 %v13822_v60  ;;  %5689 = vmatmul.mubr.bf16.gmra.mxu0 %v15858_v28  ;;  %v5257_v60 = vadd.f32 %v5256_v51, %v5204_v12  ;;  %v16546_v51 = vrot.slane %v16483_v33, %v15262_v8  ;;  %v13870_v12 = vld [vmem:[%s17873_s11 + $0x710] ss:$28 sps:$4 sm:$0xff]  }
 0x5ad   :  { %5784 = vmatprep.mubr.bf16.mxu0 %v17886_v0 }
 0x5af   :  { %5620 = vmatpush2.bf16.msra.mxu1 %v13820_v63  ;;  %v13862_v63 = vld [vmem:[%s17873_s11 + $0x784] ss:$28 sps:$4 sm:$0xff]  }
 0x5b0   :  { %5621 = vmatprep.subr.bf16.mxu1 %v13828_v4  ;;  %v5266_v4 = vpop.f32.mrf.mxu0 }
 0x5b3   :  { %5622 = vmatpush2.bf16.msra.mxu1 %v13826_v6  ;;  %v13863_v6 = vld [vmem:[%s17873_s11 + $0x50] ss:$28 sps:$4 sm:$0xff]  }
 0x5b4   :  { %5623 = vmatprep.subr.bf16.mxu1 %v13832_v48  ;;  %12133 = vmatmul.mubr.msk.bf16.vlgmr.msra.gmra.mxu0 %vm5162_vm3, %v16001_v52  ;;  %v5208_v48 = vadd.f32 %v16428_v42, %v3330_v46  ;;  %v13867_v42 = vld [vmem:[%s17873_s11 + $0x74c] ss:$28 sps:$4 sm:$0xff]  }
 0x5b5   :  { %12796 = vmatpush3.bf16.msra.mxu0 %v13833_v9  ;;  %5794 = vmatprep.mubr.bf16.mxu0 %v17886_v0 }
 0x5b6   :  { %12797 = vmatprep.subr.bf16.mxu0 %v13834_v17  ;;  %v13864_v17 = vld [vmem:[%s17873_s11 + $0x1d8] ss:$28 sps:$4 sm:$0xff]  }
 0x5b7   :  { %5624 = vmatpush2.bf16.msra.mxu1 %v13830_v14 }
 0x5b8   :  { %5699 = vmatprep.subr.bf16.mxu1 %v13837_v50  ;;  %v13860_v50 = vld [vmem:[%s17873_s11 + $0x780] ss:$28 sps:$4 sm:$0xff]  }
 0x5b9   :  { %12798 = vmatpush3.bf16.msra.mxu0 %v13838_v15  ;;  %v5261_v15 = vadd.f32 %v5260_v40, %v5208_v48  ;;  %v13880_v48 = vld [vmem:[%s17873_s11 + $0xa20] ss:$28 sps:$4 sm:$0xff]  }
 0x5ba   :  { %5626 = vmatmul.mubr.bf16.vlgmr.msra.gmra.mxu1 %v15728_v47  ;;  %12799 = vmatprep.subr.bf16.mxu0 %v13839_v1  ;;  %v5268_v1 = vpop.f32.mrf.mxu0 }
 0x5bb   :  { %5635 = vmatprep.mubr.bf16.mxu1 %v15741_v62  ;;  %5700 = vmatpush1.bf16.msra.mxu1 %v13835_v19 }
 0x5bc   :  { %5701 = vmatprep.subr.bf16.mxu1 %v13842_v20  ;;  %12134 = vmatmul.mubr.msk.bf16.gmra.mxu0 %vm5162_vm3, %v16032_v7  ;;  %v13868_v20 = vld [vmem:[%s17873_s11 + $0x18] ss:$28 sps:$4 sm:$0xff]  }
 0x5bd   :  { %12800 = vmatpush3.bf16.msra.mxu0 %v13843_v21  ;;  %5837 = vmatprep.mubr.bf16.mxu0 %v15723_v44  ;;  %v13845_v44 = vld [vmem:[%s17873_s11 + $0x828] ss:$28 sps:$4 sm:$0xff]   ;;  %v5214_v21 = vadd.f32 %v16460_v23, %v3330_v46  ;;  %v13872_v23 = vld [vmem:[%s17873_s11 + $0x714] ss:$28 sps:$4 sm:$0xff]  }
 0x5be   :  { %12801 = vmatprep.subr.bf16.mxu0 %v13844_v22 }
 0x5bf   :  { %5702 = vmatpush1.bf16.msra.mxu1 %v13840_v25  ;;  %v13869_v25 = vld [vmem:[%s17873_s11 + $0x6e0] ss:$28 sps:$4 sm:$0xff]  }
 0x5c0   :  { %5703 = vmatprep.subr.bf16.mxu1 %v13847_v27 }
 0x5c1   :  { %12802 = vmatpush3.bf16.msra.mxu0 %v13848_v31  ;;  %v13865_v31 = vld [vmem:[%s17873_s11 + $0x748] ss:$28 sps:$4 sm:$0xff]  }
 0x5c2   :  { %5636 = vmatmul.mubr.bf16.gmra.mxu1 %v15746_v2  ;;  %12803 = vmatprep.subr.bf16.mxu0 %v13849_v32  ;;  %v5216_v32 = vadd.f32 %v5215_v35, %v16546_v51  ;;  %v13874_v35 = vld [vmem:[%s17873_s11 + $0x6a8] ss:$28 sps:$4 sm:$0xff]  }
 0x5c3   :  { %5704 = vmatpush1.bf16.msra.mxu1 %v13845_v44  ;;  %5731 = vmatprep.mubr.bf16.mxu1 %v15915_v24  ;;  %v5267_v44 = vadd.f32 %v5266_v4, %v5214_v21  ;;  %v13875_v4 = vld [vmem:[%s17873_s11 + $0xa58] ss:$28 sps:$4 sm:$0xff]   ;;  %v13898_v21 = vld [vmem:[%s17873_s11 + $0x408] ss:$28 sps:$4 sm:$0xff]  }
 0x5c4   :  { %5705 = vmatprep.subr.bf16.mxu1 %v13852_v39  ;;  %v5270_v39 = vpop.f32.mrf.mxu0 }
 0x5c5   :  { %12804 = vmatpush3.bf16.msra.mxu0 %v13853_v45  ;;  %v13873_v45 = vld [vmem:[%s17873_s11 + $0x520] ss:$28 sps:$4 sm:$0xff]  }
 0x5c6   :  { %12805 = vmatprep.subr.bf16.mxu0 %v13854_v43  ;;  %v5218_v43 = vadd.f32 %v5217_v49, %v3330_v46  ;;  %v13877_v46 = vld [vmem:[%s17873_s11 + $0xa5c] ss:$28 sps:$4 sm:$0xff]  }
 0x5c7   :  { %5706 = vmatpush1.bf16.msra.mxu1 %v13850_v41  ;;  %v5269_v41 = vadd.f32 %v5268_v1, %v5216_v32  ;;  %v13894_v1 = vld [vmem:[%s17873_s11 + $0x5c8] ss:$28 sps:$4 sm:$0xff]  }
 0x5c8   :  { %5707 = vmatprep.subr.bf16.mxu1 %v13857_v53 }
 0x5c9   :  { %12806 = vmatpush3.bf16.msra.mxu0 %v13858_v55  ;;  %v5309_v61 = vpop.f32.mrf.mxu1 }
 0x5ca   :  { %v16528_v9 = vadd.f32 %v5309_v61, %v5257_v60  ;;  %12807 = vmatprep.subr.bf16.mxu0 %v13859_v13  ;;  %v5271_v13 = vadd.f32 %v5270_v39, %v5218_v43  ;;  %v13878_v60 = vld [vmem:[%s17873_s11 + $0x4e8] ss:$28 sps:$4 sm:$0xff]   ;;  %v13883_v61 = vld [vmem:[%s17873_s11 + $0x4b0] ss:$28 sps:$4 sm:$0xff]  }
 0x5cb   :  { %5708 = vmatpush1.bf16.msra.mxu1 %v13855_v59  ;;  %v16533_v14 = vpop.f32.mrf.mxu1 }
 0x5cc   :  { %5709 = vmatprep.subr.bf16.mxu1 %v13862_v63 }
 0x5cd   :  { %12808 = vmatpush3.bf16.msra.mxu0 %v13863_v6  ;;  %v5313_v19 = vpop.f32.mrf.mxu1  ;;  %v13884_v6 = vld [vmem:[%s17873_s11 + $0x638] ss:$28 sps:$4 sm:$0xff]  }
 0x5ce   :  { %v16549_v22 = vadd.f32 %v5313_v19, %v5261_v15  ;;  %12809 = vmatprep.subr.bf16.mxu0 %v13864_v17  ;;  %v13887_v17 = vld [vmem:[%s17873_s11 + $0x9ec] ss:$28 sps:$4 sm:$0xff]   ;;  %v13889_v15 = vld [vmem:[%s17873_s11 + $0x600] ss:$28 sps:$4 sm:$0xff]  }
 0x5cf   :  { %5710 = vmatpush1.bf16.msra.mxu1 %v13860_v50  ;;  %v16554_v27 = vpop.f32.mrf.mxu1  ;;  %v13888_v50 = vld [vmem:[%s17873_s11 + $0x478] ss:$28 sps:$4 sm:$0xff]   ;;  %v13890_v19 = vld [vmem:[%s17873_s11 + $0x9b0] ss:$28 sps:$4 sm:$0xff]  }
 0x5d0   :  { %5711 = vmatprep.subr.bf16.mxu1 %v13867_v42  ;;  %v13892_v42 = vld [vmem:[%s17873_s11 + $0x9b4] ss:$28 sps:$4 sm:$0xff]  }
 0x5d1   :  { %12810 = vmatpush3.bf16.msra.mxu0 %v13868_v20  ;;  %v5319_v40 = vpop.f32.mrf.mxu1  ;;  %v13897_v20 = vld [vmem:[%s17873_s11 + $0x97c] ss:$28 sps:$4 sm:$0xff]  }
 0x5d2   :  { %v16566_v53 = vadd.f32 %v5319_v40, %v5267_v44  ;;  %12823 = vmatprep.subr.bf16.mxu0 %v13869_v25  ;;  %v13899_v25 = vld [vmem:[%s17873_s11 + $0x590] ss:$28 sps:$4 sm:$0xff]   ;;  %v13902_v44 = vld [vmem:[%s17873_s11 + $0x944] ss:$28 sps:$4 sm:$0xff]   ;;  %v13904_v40 = vld [vmem:[%s17873_s11 + $0x558] ss:$28 sps:$4 sm:$0xff]  }
 0x5d3   :  { %5712 = vmatpush1.bf16.msra.mxu1 %v13865_v31  ;;  %v5321_v55 = vpop.f32.mrf.mxu1  ;;  %v13895_v31 = vld [vmem:[%s17873_s11 + $0x978] ss:$28 sps:$4 sm:$0xff]  }
 0x5d4   :  { %v16574_v59 = vadd.f32 %v5321_v55, %v5269_v41  ;;  %5838 = vmatmul.mubr.bf16.vlgmr.msra.gmra.mxu0 %v15728_v47  ;;  %5713 = vmatprep.subr.bf16.mxu1 %v13872_v23  ;;  %v13879_v47 = vld [vmem:[%s17873_s11 + $0x670] ss:$28 sps:$4 sm:$0xff]   ;;  %v13908_v55 = vld [vmem:[%s17873_s11 + $0x398] ss:$28 sps:$4 sm:$0xff]  }
 0x5d5   :  { %5845 = vmatprep.mubr.bf16.mxu0 %v15741_v62  ;;  %12824 = vmatpush3.bf16.msra.mxu0 %v13873_v45  ;;  %v5323_v49 = vpop.f32.mrf.mxu1  ;;  %v13882_v62 = vld [vmem:[%s17873_s11 + $0xa24] ss:$28 sps:$4 sm:$0xff]   ;;  %v13903_v23 = vld [vmem:[%s17873_s11 + $0x3d0] ss:$28 sps:$4 sm:$0xff]  }
 0x5d6   :  { %v16584_v63 = vadd.f32 %v5323_v49, %v5271_v13  ;;  %12825 = vmatprep.subr.bf16.mxu0 %v13874_v35  ;;  %v13900_v45 = vld [vmem:[%s17873_s11 + $0x940] ss:$28 sps:$4 sm:$0xff]   ;;  %v13907_v41 = vld [vmem:[%s17873_s11 + $0x90c] ss:$28 sps:$4 sm:$0xff]  }
 0x5d7   :  { %5714 = vmatpush1.bf16.msra.mxu1 %v13870_v12  ;;  %v16642_v32 = vpop.f32.mrf.mxu1  ;;  %v13914_v13 = vld [vmem:[%s17873_s11 + $0xad0] ss:$28 sps:$4 sm:$0xff]   ;;  %v13905_v49 = vld [vmem:[%s17873_s11 + $0x908] ss:$28 sps:$4 sm:$0xff]  }
 0x5d8   :  { %5715 = vmatprep.subr.bf16.mxu1 %v13877_v46 }
 0x5d9   :  { %12826 = vmatpush3.bf16.msra.mxu0 %v13878_v60 }
 0x5da   :  { %12827 = vmatprep.subr.bf16.mxu0 %v13879_v47 }
 0x5db   :  { %5716 = vmatpush2.bf16.msra.mxu1 %v13875_v4 }
 0x5dc   :  { %5846 = vmatmul.mubr.bf16.gmra.mxu0 %v15746_v2  ;;  %5717 = vmatprep.subr.bf16.mxu1 %v13882_v62  ;;  %v13885_v2 = vld [vmem:[%s17873_s11 + $0x9e8] ss:$28 sps:$4 sm:$0xff]  }
 0x5dd   :  { %12828 = vmatpush3.bf16.msra.mxu0 %v13883_v61  ;;  %5886 = vmatprep.mubr.bf16.mxu0 %v15835_v16  ;;  %v13893_v16 = vld [vmem:[%s17873_s11 + $0x440] ss:$28 sps:$4 sm:$0xff]  }
 0x5de   :  { %12829 = vmatprep.subr.bf16.mxu0 %v13884_v6  ;;  %v13909_v6 = vld [vmem:[%s17873_s11 + $0x8d0] ss:$28 sps:$4 sm:$0xff]  }
 0x5df   :  { %5718 = vmatpush2.bf16.msra.mxu1 %v13880_v48 }
 0x5e0   :  { %5719 = vmatprep.subr.bf16.mxu1 %v13887_v17  ;;  %v13912_v17 = vld [vmem:[%s17873_s11 + $0xa60] ss:$28 sps:$4 sm:$0xff]  }
 0x5e1   :  { %12830 = vmatpush3.bf16.msra.mxu0 %v13888_v50 }
 0x5e2   :  { %12831 = vmatprep.subr.bf16.mxu0 %v13889_v15 }
 0x5e3   :  { %5720 = vmatpush2.bf16.msra.mxu1 %v13885_v2  ;;  %v13924_v2 = vld [vmem:[#allocation11 + $0x50c] ss:$28 sps:$4 sm:$0xff]  }
 0x5e4   :  { %5721 = vmatprep.subr.bf16.mxu1 %v13892_v42 }
 0x5e5   :  { %12832 = vmatpush3.bf16.msra.mxu0 %v13893_v16  ;;  %v13915_v16 = vld [vmem:[%s17873_s11 + $0xa28] ss:$28 sps:$4 sm:$0xff]  }
 0x5e6   :  { %12833 = vmatprep.subr.bf16.mxu0 %v13894_v1 }
 0x5e7   :  { %5722 = vmatpush2.bf16.msra.mxu1 %v13890_v19  ;;  %v13918_v19 = vld [vmem:[%s17873_s11 + $0x9f0] ss:$28 sps:$4 sm:$0xff]  }
 0x5e8   :  { %5723 = vmatprep.subr.bf16.mxu1 %v13897_v20  ;;  %v13919_v20 = vld [vmem:[%s17873_s11 + $0x830] ss:$28 sps:$4 sm:$0xff]  }
 0x5e9   :  { %12834 = vmatpush3.bf16.msra.mxu0 %v13898_v21  ;;  %v13920_v21 = vld [vmem:[%s17873_s11 + $0x9b8] ss:$28 sps:$4 sm:$0xff]  }
 0x5ea   :  { %v5362_v39 = vpop.f32.mrf.mxu1  ;;  %12835 = vmatprep.subr.bf16.mxu0 %v13899_v25  ;;  %v13922_v25 = vld [vmem:[#allocation11 + $0x508] ss:$28 sps:$4 sm:$0xff]  }
 0x5eb   :  { %5724 = vmatpush2.bf16.msra.mxu1 %v13895_v31  ;;  %v5363_v35 = vadd.f32 %v5362_v39, %v16528_v9  ;;  %v13911_v9 = vld [vmem:[%s17873_s11 + $0x8d4] ss:$28 sps:$4 sm:$0xff]   ;;  %v13925_v31 = vld [vmem:[%s17873_s11 + $0x980] ss:$28 sps:$4 sm:$0xff]   ;;  %v13930_v39 = vld [vmem:[%s17873_s11 + $0x948] ss:$28 sps:$4 sm:$0xff]  }
 0x5ec   :  { %v16656_v43 = vpop.f32.mrf.mxu1  ;;  %5725 = vmatprep.subr.bf16.mxu1 %v13902_v44  ;;  %v13927_v44 = vld [vmem:[#allocation11 + $0x4d0] ss:$28 sps:$4 sm:$0xff]  }
 0x5ed   :  { %12836 = vmatpush3.bf16.msra.mxu0 %v13903_v23  ;;  %v6001_v47 = vmax.f32 %v5363_v35, 0.0  ;;  %v13934_v23 = vld [vmem:[#allocation11 + $0x49c] ss:$28 sps:$4 sm:$0xff]  }
 0x5ee   :  { %v5366_v12 = vpop.f32.mrf.mxu1  ;;  %12837 = vmatprep.subr.bf16.mxu0 %v13904_v40  ;;  %v16735_v40 = vpop.f32.mrf.mxu0 }
 0x5ef   :  { %5726 = vmatpush2.bf16.msra.mxu1 %v13900_v45  ;;  %v5367_v46 = vadd.f32 %v5366_v12, %v16549_v22  ;;  %v13917_v22 = vld [vmem:[%s17873_s11 + $0xa98] ss:$28 sps:$4 sm:$0xff]   ;;  %v13939_v45 = vld [vmem:[#allocation11 + $0x464] ss:$28 sps:$4 sm:$0xff]  }
 0x5f0   :  { %v16672_v60 = vpop.f32.mrf.mxu1  ;;  %5727 = vmatprep.subr.bf16.mxu1 %v13907_v41  ;;  %v13931_v41 = vld [vmem:[%s17873_s11 + $0x788] ss:$28 sps:$4 sm:$0xff]   ;;  %v16740_v35 = vpop.f32.mrf.mxu0 }
 0x5f1   :  { %v6008_v4 = vmax.f32 %v5367_v46, 0.0  ;;  %12838 = vmatpush3.bf16.msra.mxu0 %v13908_v55  ;;  %v13935_v55 = vld [vmem:[%s17873_s11 + $0x910] ss:$28 sps:$4 sm:$0xff]   ;;  %v13937_v12 = vld [vmem:[#allocation11 + $0x460] ss:$28 sps:$4 sm:$0xff]  }
 0x5f2   :  { %v5372_v62 = vpop.f32.mrf.mxu1  ;;  %12971 = vmatprep.subr.bf16.mxu0 %v13914_v13  ;;  %v13936_v46 = vld [vmem:[%s17873_s11 + $0x750] ss:$28 sps:$4 sm:$0xff]  }
 0x5f3   :  { %v16680_v61 = vpack.c.bf16 %v6008_v4, %v6001_v47  ;;  %5728 = vmatpush2.bf16.msra.mxu1 %v13905_v49  ;;  %v5373_v50 = vadd.f32 %v5372_v62, %v16566_v53  ;;  %v16748_v49 = vpop.f32.mrf.mxu0  ;;  %v13942_v47 = vld [vmem:[#allocation11 + $0x428] ss:$28 sps:$4 sm:$0xff]   ;;  %v13950_v4 = vld [vmem:[#allocation11 + $0x3f4] ss:$28 sps:$4 sm:$0xff]   ;;  %v5210_v62 = vadd.f32 %v16445_v18, %v16546_v51 }
 0x5f4   :  { %5887 = vmatmul.mubr.bf16.vlgmr.msra.gmra.mxu0 %v15840_v11  ;;  %v16686_v48 = vpop.f32.mrf.mxu1  ;;  %5729 = vmatprep.subr.bf16.mxu1 %v13911_v9  ;;  %v13913_v11 = vld [vmem:[%s17873_s11 + $0x8a0] ss:$28 sps:$4 sm:$0xff]   ;;  %v13940_v9 = vld [vmem:[%s17873_s11 + $0x8d8] ss:$28 sps:$4 sm:$0xff]  }
 0x5f5   :  { %5894 = vmatprep.mubr.bf16.mxu0 %v15853_v26  ;;  %12972 = vmatpush3.bf16.msra.mxu0 %v13914_v13  ;;  %v6015_v1 = vmax.f32 %v5373_v50, 0.0  ;;  %v13944_v13 = vld [vmem:[#allocation11 + $0x42c] ss:$28 sps:$4 sm:$0xff]   ;;  %v5206_v50 = vadd.f32 %v16414_v5, %v16546_v51 }
 0x5f6   :  { %v5376_v15 = vpop.f32.mrf.mxu1  ;;  %12973 = vmatprep.subr.bf16.mxu0 %v13917_v22 }
 0x5f7   :  { %5730 = vmatpush2.bf16.msra.mxu1 %v13909_v6  ;;  %v5377_v42 = vadd.f32 %v5376_v15, %v16584_v63  ;;  %v13916_v63 = vld [vmem:[%s17873_s11 + $0x868] ss:$28 sps:$4 sm:$0xff]   ;;  %v16758_v6 = vpop.f32.mrf.mxu0  ;;  %v5263_v15 = vadd.f32 %v16507_v54, %v5210_v62  ;;  %v5259_v18 = vadd.f32 %v16471_v29, %v5206_v50  ;;  %v13954_v54 = vld [vmem:[#allocation11 + $0x3b8] ss:$28 sps:$4 sm:$0xff]  }
 0x5f8   :  { %12851 = vmatprep.subr.bf16.mxu1 %v13912_v17  ;;  %v13947_v17 = vld [vmem:[#allocation11 + $0x18c] ss:$28 sps:$4 sm:$0xff]  }
 0x5f9   :  { %v6022_v53 = vmax.f32 %v5377_v42, 0.0  ;;  %12974 = vmatpush3.bf16.msra.mxu0 %v13917_v22  ;;  %v13941_v22 = vld [vmem:[%s17873_s11 + $0x718] ss:$28 sps:$4 sm:$0xff]   ;;  %v13956_v42 = vld [vmem:[#allocation11 + $0x3bc] ss:$28 sps:$4 sm:$0xff]  }
 0x5fa   :  { %5732 = vmatmul.mubr.bf16.vlgmr.msra.gmra.mxu1 %v15923_v30  ;;  %8339 = vmatprep.subr.bf16.mxu0 %v13924_v2  ;;  %v13948_v2 = vld [vmem:[#allocation11 + $0x3f0] ss:$28 sps:$4 sm:$0xff]  }
 0x5fb   :  { %v16701_v26 = vpack.c.bf16 %v6022_v53, %v6015_v1  ;;  %5741 = vmatprep.mubr.bf16.mxu1 %v15945_v56  ;;  %12852 = vmatpush3.bf16.msra.mxu1 %v13913_v11  ;;  %v5316_v11 = vadd.f32 %v16554_v27, %v5263_v15  ;;  %v16765_v1 = vpop.f32.mrf.mxu0  ;;  %v13953_v53 = vld [vmem:[#allocation11 + $0x154] ss:$28 sps:$4 sm:$0xff]  }
 0x5fc   :  { %5895 = vmatmul.mubr.bf16.gmra.mxu0 %v15858_v28  ;;  %12853 = vmatprep.subr.bf16.mxu1 %v13915_v16  ;;  %v13929_v28 = vld [vmem:[#allocation11 + $0x4d4] ss:$28 sps:$4 sm:$0xff]   ;;  %v13945_v16 = vld [vmem:[#allocation11 + $0x188] ss:$28 sps:$4 sm:$0xff]  }
 0x5fd   :  { %12975 = vmatprep.mubr.msk.bf16.mxu0 %vm5162_vm3, %v16001_v52  ;;  %v13921_v52 = vld [vmem:[%s17873_s11 + $0x7f8] ss:$28 sps:$4 sm:$0xff]   ;;  %v5369_v5 = vadd.f32 %v16672_v60, %v5316_v11  ;;  %v13968_v60 = vld [vmem:[#allocation11 + $0x6cc] ss:$28 sps:$4 sm:$0xff]   ;;  %v13989_v11 = vld [vmem:[#allocation11 + $0x4] ss:$28 sps:$4 sm:$0xff]  }
 0x5fe   :  { %v13951_v27 = vld [vmem:[#allocation11 + $0x150] ss:$28 sps:$4 sm:$0xff]  }
 0x5ff   :  { %12854 = vmatpush3.bf16.msra.mxu1 %v13916_v63  ;;  %v5312_v63 = vadd.f32 %v16533_v14, %v5259_v18  ;;  %v13960_v14 = vld [vmem:[#allocation11 + $0x380] ss:$28 sps:$4 sm:$0xff]  }
 0x600   :  { %12855 = vmatprep.subr.bf16.mxu1 %v13918_v19  ;;  %v13962_v19 = vld [vmem:[#allocation11 + $0x384] ss:$28 sps:$4 sm:$0xff]  }
 0x601   :  { %v5365_v29 = vadd.f32 %v16656_v43, %v5312_v63  ;;  %v13965_v43 = vld [vmem:[#allocation11 + $0xe4] ss:$28 sps:$4 sm:$0xff]  }
 0x602   :  { %5742 = vmatmul.mubr.bf16.gmra.mxu1 %v15950_v58 }
 0x603   :  { %12856 = vmatpush3.bf16.msra.mxu1 %v13919_v20  ;;  %5935 = vmatprep.mubr.bf16.mxu1 %v15915_v24  ;;  %v13926_v24 = vld [vmem:[%s17873_s11 + $0x7c0] ss:$28 sps:$4 sm:$0xff]   ;;  %v16772_v20 = vpop.f32.mrf.mxu0 }
 0x604   :  { %12976 = vmatmul.mubr.msk.bf16.vlgmr.msra.gmra.mxu0 %vm5162_vm3, %v16032_v7  ;;  %12857 = vmatprep.subr.bf16.mxu1 %v13920_v21  ;;  %v13932_v7 = vld [vmem:[#allocation11 + $0x498] ss:$28 sps:$4 sm:$0xff]  }
 0x605   :  { %8340 = vmatpush1.bf16.msra.mxu0 %v13922_v25  ;;  %v13959_v21 = vld [vmem:[#allocation11 + $0x11c] ss:$28 sps:$4 sm:$0xff]   ;;  %v6009_v25 = vmax.f32 %v5369_v5, 0.0  ;;  %v13998_v5 = vld [vmem:[#allocation11 + $0x5b4] ss:$28 sps:$4 sm:$0xff]  }
 0x606   :  { %8341 = vmatprep.subr.bf16.mxu0 %v13929_v28  ;;  %v6002_v28 = vmax.f32 %v5365_v29, 0.0  ;;  %v3338_v29 = vrot.slane %v16483_v33, %v15442_v38 }
 0x607   :  { %12858 = vmatpush3.bf16.msra.mxu1 %v13921_v52  ;;  %v16774_v52 = vpop.f32.mrf.mxu0 }
 0x608   :  { %12859 = vmatprep.subr.bf16.mxu1 %v13925_v31  ;;  %v16776_v31 = vpack.c.bf16 %v6009_v25, %v6002_v28  ;;  %v13996_v25 = vld [vmem:[#allocation11 + $0x5b0] ss:$28 sps:$4 sm:$0xff]   ;;  %v14004_v28 = vld [vmem:[#allocation11 + $0x57c] ss:$28 sps:$4 sm:$0xff]  }
 0x609   :  { %8342 = vmatpush1.bf16.msra.mxu0 %v13927_v44  ;;  %v13974_v44 = vld [vmem:[#allocation11 + $0x694] ss:$28 sps:$4 sm:$0xff]  }
 0x60a   :  { %8343 = vmatprep.subr.bf16.mxu0 %v13934_v23  ;;  %v13963_v23 = vld [vmem:[#allocation11 + $0xe0] ss:$28 sps:$4 sm:$0xff]  }
 0x60b   :  { %12860 = vmatpush3.bf16.msra.mxu1 %v13926_v24  ;;  %v16780_v24 = vpop.f32.mrf.mxu0 }
 0x60c   :  { %12861 = vmatprep.subr.bf16.mxu1 %v13930_v39  ;;  %v13971_v39 = vld [vmem:[#allocation11 + $0xac] ss:$28 sps:$4 sm:$0xff]  }
 0x60d   :  { %8344 = vmatpush1.bf16.msra.mxu0 %v13932_v7  ;;  %v13972_v7 = vld [vmem:[#allocation11 + $0x690] ss:$28 sps:$4 sm:$0xff]  }
 0x60e   :  { %8345 = vmatprep.subr.bf16.mxu0 %v13939_v45  ;;  %v13980_v45 = vld [vmem:[#allocation11 + $0x65c] ss:$28 sps:$4 sm:$0xff]  }
 0x60f   :  { %12862 = vmatpush3.bf16.msra.mxu1 %v13931_v41  ;;  %v13969_v41 = vld [vmem:[#allocation11 + $0xa8] ss:$28 sps:$4 sm:$0xff]  }
 0x610   :  { %12863 = vmatprep.subr.bf16.mxu1 %v13935_v55  ;;  %v16782_v55 = vpop.f32.mrf.mxu0 }
 0x611   :  { %8346 = vmatpush1.bf16.msra.mxu0 %v13937_v12  ;;  %v16784_v12 = vpop.f32.mrf.mxu1 }
 0x612   :  { %8347 = vmatprep.subr.bf16.mxu0 %v13944_v13  ;;  %v13978_v13 = vld [vmem:[#allocation11 + $0x658] ss:$28 sps:$4 sm:$0xff]  }
 0x613   :  { %12864 = vmatpush3.bf16.msra.mxu1 %v13936_v46 }
 0x614   :  { %12865 = vmatprep.subr.bf16.mxu1 %v13940_v9 }
 0x615   :  { %8348 = vmatpush1.bf16.msra.mxu0 %v13942_v47  ;;  %v13986_v47 = vld [vmem:[#allocation11 + $0x624] ss:$28 sps:$4 sm:$0xff]  }
 0x616   :  { %8349 = vmatprep.subr.bf16.mxu0 %v13950_v4  ;;  %v13975_v4 = vld [vmem:[#allocation11 + $0x70] ss:$28 sps:$4 sm:$0xff]  }
 0x617   :  { %12866 = vmatpush3.bf16.msra.mxu1 %v13941_v22  ;;  %v13983_v22 = vld [vmem:[#allocation11 + $0x3c] ss:$28 sps:$4 sm:$0xff]  }
 0x618   :  { %8286 = vmatprep.subr.bf16.mxu1 %v13947_v17  ;;  %v13984_v17 = vld [vmem:[#allocation11 + $0x620] ss:$28 sps:$4 sm:$0xff]  }
 0x619   :  { %8350 = vmatpush1.bf16.msra.mxu0 %v13948_v2  ;;  %v13992_v2 = vld [vmem:[#allocation11 + $0x5ec] ss:$28 sps:$4 sm:$0xff]  }
 0x61a   :  { %5936 = vmatmul.mubr.bf16.vlgmr.msra.gmra.mxu1 %v15923_v30  ;;  %8351 = vmatprep.subr.bf16.mxu0 %v13956_v42  ;;  %v13957_v30 = vld [vmem:[#allocation11 + $0x118] ss:$28 sps:$4 sm:$0xff]  }
 0x61b   :  { %5943 = vmatprep.mubr.bf16.mxu1 %v15945_v56  ;;  %8287 = vmatpush1.bf16.msra.mxu1 %v13945_v16  ;;  %v13966_v56 = vld [vmem:[#allocation11 + $0x6c8] ss:$28 sps:$4 sm:$0xff]   ;;  %v13981_v42 = vld [vmem:[#allocation11 + $0x38] ss:$28 sps:$4 sm:$0xff]  }
 0x61c   :  { %8288 = vmatprep.subr.bf16.mxu1 %v13953_v53  ;;  %v13990_v16 = vld [vmem:[#allocation11 + $0x5e8] ss:$28 sps:$4 sm:$0xff]  }
 0x61d   :  { %8352 = vmatpush1.bf16.msra.mxu0 %v13954_v54  ;;  %v3342_v54 = vrot.slane %v16483_v33, %v15439_v37  ;;  %v14001_v33 = vld [vmem:[#allocation11 + $0x314] ss:$28 sps:$4 sm:$0xff]  }
 0x61e   :  { %8353 = vmatprep.subr.bf16.mxu0 %v13962_v19  ;;  %v13987_v19 = vld [vmem:[#allocation11] ss:$28 sps:$4 sm:$0xff]  }
 0x61f   :  { %8289 = vmatpush1.bf16.msra.mxu1 %v13951_v27 }
 0x620   :  { %8290 = vmatprep.subr.bf16.mxu1 %v13959_v21  ;;  %v13995_v21 = vld [vmem:[#allocation11 + $0x34c] ss:$28 sps:$4 sm:$0xff]  }
 0x621   :  { %8354 = vmatpush1.bf16.msra.mxu0 %v13960_v14 }
 0x622   :  { %5944 = vmatmul.mubr.bf16.gmra.mxu1 %v15950_v58  ;;  %8355 = vmatprep.subr.bf16.mxu0 %v13968_v60  ;;  %v13977_v58 = vld [vmem:[#allocation11 + $0x74] ss:$28 sps:$4 sm:$0xff]  }
 0x623   :  { %8291 = vmatpush1.bf16.msra.mxu1 %v13957_v30  ;;  %8318 = vmatprep.mubr.bf16.mxu1 %v16776_v31  ;;  %v5418_v30 = vadd.f32 %v16748_v49, %v3342_v54  ;;  %v14010_v49 = vld [vmem:[#allocation11 + $0x544] ss:$28 sps:$4 sm:$0xff]  }
 0x624   :  { %8292 = vmatprep.subr.bf16.mxu1 %v13965_v43  ;;  %v16786_v46 = vpop.f32.mrf.mxu0  ;;  %v5420_v43 = vadd.f32 %v16758_v6, %v3338_v29  ;;  %v13999_v6 = vld [vmem:[#allocation11 + $0x310] ss:$28 sps:$4 sm:$0xff]  }
 0x625   :  { %8356 = vmatpush2.bf16.msra.mxu0 %v13966_v56  ;;  %v13993_v56 = vld [vmem:[#allocation11 + $0x348] ss:$28 sps:$4 sm:$0xff]  }
 0x626   :  { %8357 = vmatprep.subr.bf16.mxu0 %v13974_v44  ;;  %v5523_v50 = vpop.f32.mrf.mxu0  ;;  %v5416_v44 = vadd.f32 %v16740_v35, %v3338_v29  ;;  %v14007_v35 = vld [vmem:[#allocation11 + $0x2dc] ss:$28 sps:$4 sm:$0xff]  }
 0x627   :  { %8293 = vmatpush1.bf16.msra.mxu1 %v13963_v23 }
 0x628   :  { %8294 = vmatprep.subr.bf16.mxu1 %v13971_v39  ;;  %v5525_v53 = vpop.f32.mrf.mxu0  ;;  %v5422_v39 = vadd.f32 %v16765_v1, %v3342_v54  ;;  %v5428_v1 = vadd.f32 %v16774_v52, %v3342_v54  ;;  %v5432_v52 = vadd.f32 %v16782_v55, %v3342_v54 }
 0x629   :  { %8358 = vmatpush2.bf16.msra.mxu0 %v13972_v7 }
 0x62a   :  { %v5468_v9 = vpop.f32.mrf.mxu1  ;;  %8359 = vmatprep.subr.bf16.mxu0 %v13980_v45  ;;  %v5527_v14 = vpop.f32.mrf.mxu0 }
 0x62b   :  { %8295 = vmatpush1.bf16.msra.mxu1 %v13969_v41  ;;  %v14002_v41 = vld [vmem:[#allocation11 + $0x578] ss:$28 sps:$4 sm:$0xff]  }
 0x62c   :  { %v5470_v62 = vpop.f32.mrf.mxu1  ;;  %8296 = vmatprep.subr.bf16.mxu1 %v13977_v58  ;;  %v5469_v58 = vadd.f32 %v5468_v9, %v5416_v44 }
 0x62d   :  { %8360 = vmatpush2.bf16.msra.mxu0 %v13978_v13  ;;  %v5471_v7 = vadd.f32 %v5470_v62, %v5418_v30  ;;  %v5531_v13 = vpop.f32.mrf.mxu0 }
 0x62e   :  { %v5472_v15 = vpop.f32.mrf.mxu1  ;;  %8361 = vmatprep.subr.bf16.mxu0 %v13986_v47 }
 0x62f   :  { %8297 = vmatpush1.bf16.msra.mxu1 %v13975_v4  ;;  %v5473_v45 = vadd.f32 %v5472_v15, %v5420_v43  ;;  %v5533_v62 = vpop.f32.mrf.mxu0  ;;  %v5522_v15 = vadd.f32 %v16786_v46, %v5469_v58 }
 0x630   :  { %v5474_v18 = vpop.f32.mrf.mxu1  ;;  %8298 = vmatprep.subr.bf16.mxu1 %v13983_v22 }
 0x631   :  { %8362 = vmatpush2.bf16.msra.mxu0 %v13984_v17  ;;  %v5475_v4 = vadd.f32 %v5474_v18, %v5422_v39  ;;  %v5524_v17 = vadd.f32 %v5523_v50, %v5471_v7  ;;  %v5535_v43 = vpop.f32.mrf.mxu0 }
 0x632   :  { %v16788_v63 = vpop.f32.mrf.mxu1  ;;  %8363 = vmatprep.subr.bf16.mxu0 %v13992_v2  ;;  %v5526_v2 = vadd.f32 %v5525_v53, %v5473_v45  ;;  %v14016_v45 = vld [vmem:[#allocation11 + $0x26c] ss:$28 sps:$4 sm:$0xff]  }
 0x633   :  { %8299 = vmatpush1.bf16.msra.mxu1 %v13981_v42  ;;  %v14008_v42 = vld [vmem:[#allocation11 + $0x540] ss:$28 sps:$4 sm:$0xff]  }
 0x634   :  { %v5480_v27 = vpop.f32.mrf.mxu1  ;;  %8300 = vmatprep.subr.bf16.mxu1 %v13989_v11  ;;  %v5430_v11 = vadd.f32 %v16780_v24, %v3338_v29 }
 0x635   :  { %8364 = vmatpush2.bf16.msra.mxu0 %v13990_v16 }
 0x636   :  { %v5482_v60 = vpop.f32.mrf.mxu1  ;;  %8365 = vmatprep.subr.bf16.mxu0 %v13998_v5  ;;  %v5528_v5 = vadd.f32 %v5527_v14, %v5475_v4  ;;  %v14014_v4 = vld [vmem:[#allocation11 + $0x268] ss:$28 sps:$4 sm:$0xff]  }
 0x637   :  { %8301 = vmatpush1.bf16.msra.mxu1 %v13987_v19  ;;  %v14005_v19 = vld [vmem:[#allocation11 + $0x2d8] ss:$28 sps:$4 sm:$0xff]   ;;  %v5483_v30 = vadd.f32 %v5482_v60, %v5430_v11 }
 0x638   :  { %v5484_v23 = vpop.f32.mrf.mxu1  ;;  %8302 = vmatprep.subr.bf16.mxu1 %v13995_v21  ;;  %v5426_v21 = vadd.f32 %v16772_v20, %v3338_v29  ;;  %v14011_v20 = vld [vmem:[#allocation11 + $0x2a0] ss:$28 sps:$4 sm:$0xff]  }
 0x639   :  { %8366 = vmatpush2.bf16.msra.mxu0 %v13996_v25  ;;  %v14013_v25 = vld [vmem:[#allocation11 + $0x2a4] ss:$28 sps:$4 sm:$0xff]   ;;  %v5536_v54 = vadd.f32 %v5535_v43, %v5483_v30  ;;  %v14089_v30 = vld [vmem:[#allocation11 + $0xab8] ss:$28 sps:$4 sm:$0xff]  }
 0x63a   :  { %v5574_v47 = vpop.f32.mrf.mxu1  ;;  %8367 = vmatprep.subr.bf16.mxu0 %v14004_v28  ;;  %v5481_v28 = vadd.f32 %v5480_v27, %v5428_v1  ;;  %v5479_v24 = vadd.f32 %v16788_v63, %v5426_v21  ;;  %v5537_v27 = vpop.f32.mrf.mxu0  ;;  %v14023_v21 = vld [vmem:[#allocation11 + $0x1c0] ss:$28 sps:$4 sm:$0xff]  }
 0x63b   :  { %8303 = vmatpush2.bf16.msra.mxu1 %v13993_v56  ;;  %v5575_v50 = vadd.f32 %v5574_v47, %v5522_v15  ;;  %v14037_v43 = vld [vmem:[#allocation11 + $0x7e4] ss:$28 sps:$4 sm:$0xff]  }
 0x63c   :  { %v5576_v22 = vpop.f32.mrf.mxu1  ;;  %8304 = vmatprep.subr.bf16.mxu1 %v14001_v33  ;;  %v5485_v33 = vadd.f32 %v5484_v23, %v5432_v52  ;;  %v5534_v55 = vadd.f32 %v5533_v62, %v5481_v28  ;;  %v5532_v58 = vadd.f32 %v5531_v13, %v5479_v24  ;;  %v14017_v62 = vld [vmem:[#allocation11 + $0x230] ss:$28 sps:$4 sm:$0xff]   ;;  %v14035_v24 = vld [vmem:[#allocation11 + $0x7e0] ss:$28 sps:$4 sm:$0xff]  }
 0x63d   :  { %8368 = vmatpush2.bf16.msra.mxu0 %v14002_v41  ;;  %v5577_v16 = vadd.f32 %v5576_v22, %v5524_v17  ;;  %v6003_v29 = vmax.f32 %v5575_v50, 0.0  ;;  %v14028_v50 = vld [vmem:[#allocation11 + $0x88c] ss:$28 sps:$4 sm:$0xff]   ;;  %v14031_v52 = vld [vmem:[#allocation11 + $0x854] ss:$28 sps:$4 sm:$0xff]  }
 0x63e   :  { %v5578_v9 = vpop.f32.mrf.mxu1  ;;  %8369 = vmatprep.subr.bf16.mxu0 %v14010_v49  ;;  %v5538_v23 = vadd.f32 %v5537_v27, %v5485_v33  ;;  %v14100_v33 = vld [vmem:[#allocation11 + $0xa84] ss:$28 sps:$4 sm:$0xff]  }
 0x63f   :  { %v5579_v18 = vadd.f32 %v5578_v9, %v5526_v2  ;;  %8305 = vmatpush2.bf16.msra.mxu1 %v13999_v6  ;;  %v6004_v14 = vmax.f32 %v5577_v16, 0.0  ;;  %v14022_v9 = vld [vmem:[#allocation11 + $0x1fc] ss:$28 sps:$4 sm:$0xff]  }
 0x640   :  { %v5580_v53 = vpop.f32.mrf.mxu1  ;;  %8306 = vmatprep.subr.bf16.mxu1 %v14007_v35  ;;  %v14019_v35 = vld [vmem:[#allocation11 + $0x234] ss:$28 sps:$4 sm:$0xff]  }
 0x641   :  { %v5581_v46 = vadd.f32 %v5580_v53, %v5528_v5  ;;  %8370 = vmatpush2.bf16.msra.mxu0 %v14008_v42  ;;  %v6010_v56 = vmax.f32 %v5579_v18, 0.0  ;;  %v5220_v42 = vadd.f32 %v16516_v57, %v16546_v51  ;;  %v14025_v57 = vld [vmem:[#allocation11 + $0x1c4] ss:$28 sps:$4 sm:$0xff]  }
 0x642   :  { %v5584_v44 = vpop.f32.mrf.mxu1 }
 0x643   :  { %v6011_v39 = vmax.f32 %v5581_v46, 0.0  ;;  %8307 = vmatpush2.bf16.msra.mxu1 %v14005_v19  ;;  %v16806_v60 = vpack.c.bf16 %v6010_v56, %v6003_v29  ;;  %v5585_v6 = vadd.f32 %v5584_v44, %v5532_v58  ;;  %v5273_v11 = vadd.f32 %v16735_v40, %v5220_v42  ;;  %v14020_v19 = vld [vmem:[#allocation11 + $0x1f8] ss:$28 sps:$4 sm:$0xff]   ;;  %v14040_v44 = vld [vmem:[#allocation11 + $0x7ac] ss:$28 sps:$4 sm:$0xff]  }
 0x644   :  { %v5586_v7 = vpop.f32.mrf.mxu1  ;;  %8308 = vmatprep.subr.bf16.mxu1 %v14013_v25  ;;  %v5375_v40 = vadd.f32 %v16686_v48, %v16574_v59  ;;  %v14026_v25 = vld [vmem:[#allocation11 + $0x888] ss:$28 sps:$4 sm:$0xff]   ;;  %v14091_v59 = vld [vmem:[#allocation11 + $0xabc] ss:$28 sps:$4 sm:$0xff]  }
 0x645   :  { %v16804_v41 = vpack.c.bf16 %v6011_v39, %v6004_v14  ;;  %v5587_v47 = vadd.f32 %v5586_v7, %v5534_v55  ;;  %v6017_v15 = vmax.f32 %v5585_v6, 0.0  ;;  %v5326_v5 = vadd.f32 %v16642_v32, %v5273_v11  ;;  %v14034_v48 = vld [vmem:[#allocation11 + $0x81c] ss:$28 sps:$4 sm:$0xff]   ;;  %8457 = vmatprep.subr.bf16.mxu0 %v14091_v59  ;;  %v14043_v7 = vld [vmem:[#allocation11 + $0x774] ss:$28 sps:$4 sm:$0xff]  }
 0x646   :  { %v5588_v63 = vpop.f32.mrf.mxu1  ;;  %v6016_v53 = vmax.f32 %v5375_v40, 0.0  ;;  %v14032_v46 = vld [vmem:[#allocation11 + $0x818] ss:$28 sps:$4 sm:$0xff]   ;;  %v14098_v39 = vld [vmem:[#allocation11 + $0xa80] ss:$28 sps:$4 sm:$0xff]  }
 0x647   :  { %v5589_v49 = vadd.f32 %v5588_v63, %v5536_v54  ;;  %8309 = vmatpush2.bf16.msra.mxu1 %v14011_v20  ;;  %8371 = vmatprep.mubr.bf16.mxu0 %v16804_v41  ;;  %v6018_v13 = vmax.f32 %v5587_v47, 0.0  ;;  %v5379_v51 = vadd.f32 %v16784_v12, %v5326_v5  ;;  %v14029_v12 = vld [vmem:[#allocation11 + $0x850] ss:$28 sps:$4 sm:$0xff]   ;;  %v14038_v20 = vld [vmem:[#allocation11 + $0x7a8] ss:$28 sps:$4 sm:$0xff]  }
 0x648   :  { %v5590_v22 = vpop.f32.mrf.mxu1  ;;  %8372 = vmatmul.mubr.bf16.vlgmr.msra.gmra.mxu0 %v16806_v60  ;;  %8310 = vmatprep.subr.bf16.mxu1 %v14016_v45  ;;  %v14109_v45 = vld [vmem:[#allocation11 + $0x194] ss:$28 sps:$4 sm:$0xff]   ;;  %v14046_v58 = vld [vmem:[#allocation11 + $0x73c] ss:$28 sps:$4 sm:$0xff]   ;;  %v14052_v6 = vld [vmem:[#allocation11 + $0xa4c] ss:$28 sps:$4 sm:$0xff]  }
 0x649   :  { %v5591_v17 = vadd.f32 %v5590_v22, %v5538_v23  ;;  %v6024_v2 = vmax.f32 %v5589_v49, 0.0  ;;  %v6023_v32 = vmax.f32 %v5379_v51, 0.0  ;;  %8458 = vmatpush1.bf16.msra.mxu0 %v14089_v30  ;;  %v14041_v54 = vld [vmem:[#allocation11 + $0x770] ss:$28 sps:$4 sm:$0xff]   ;;  %v14044_v63 = vld [vmem:[#allocation11 + $0x738] ss:$28 sps:$4 sm:$0xff]  }
 0x64a   :  { %8459 = vmatprep.subr.bf16.mxu0 %v14100_v33  ;;  %v14049_v49 = vld [vmem:[#allocation11 + $0x704] ss:$28 sps:$4 sm:$0xff]   ;;  %v14064_v5 = vld [vmem:[#allocation11 + $0x96c] ss:$28 sps:$4 sm:$0xff]   ;;  %v14067_v51 = vld [vmem:[#allocation11 + $0x934] ss:$28 sps:$4 sm:$0xff]  }
 0x64b   :  { %v6025_v1 = vmax.f32 %v5591_v17, 0.0  ;;  %8311 = vmatpush2.bf16.msra.mxu1 %v14014_v4  ;;  %v16815_v18 = vpack.c.bf16 %v6024_v2, %v6017_v15  ;;  %v16824_v28 = vpack.c.bf16 %v6023_v32, %v6016_v53  ;;  %v14047_v23 = vld [vmem:[#allocation11 + $0x700] ss:$28 sps:$4 sm:$0xff]   ;;  %v14050_v22 = vld [vmem:[#allocation11 + $0xa48] ss:$28 sps:$4 sm:$0xff]  }
 0x64c   :  { %8312 = vmatprep.subr.bf16.mxu1 %v14019_v35  ;;  %v14055_v17 = vld [vmem:[#allocation11 + $0xa14] ss:$28 sps:$4 sm:$0xff]   ;;  %v14061_v15 = vld [vmem:[#allocation11 + $0x9a4] ss:$28 sps:$4 sm:$0xff]  }
 0x64d   :  { %v16813_v16 = vpack.c.bf16 %v6025_v1, %v6018_v13  ;;  %8460 = vmatpush1.bf16.msra.mxu0 %v14098_v39  ;;  %v14053_v2 = vld [vmem:[#allocation11 + $0xa10] ss:$28 sps:$4 sm:$0xff]   ;;  %v14058_v13 = vld [vmem:[#allocation11 + $0x9dc] ss:$28 sps:$4 sm:$0xff]  }
 0x64e   :  { %8498 = vmatprep.subr.bf16.mxu0 %v14109_v45  ;;  %v14056_v1 = vld [vmem:[#allocation11 + $0x9d8] ss:$28 sps:$4 sm:$0xff]   ;;  %v14065_v40 = vld [vmem:[#allocation11 + $0x930] ss:$28 sps:$4 sm:$0xff]  }
 0x64f   :  { %8313 = vmatpush2.bf16.msra.mxu1 %v14017_v62  ;;  %8381 = vmatprep.mubr.bf16.mxu0 %v16813_v16  ;;  %v14068_v32 = vld [vmem:[#allocation11 + $0x8f8] ss:$28 sps:$4 sm:$0xff]  }
 0x650   :  { %8382 = vmatmul.mubr.bf16.gmra.mxu0 %v16815_v18  ;;  %8314 = vmatprep.subr.bf16.mxu1 %v14022_v9  ;;  %v14059_v9 = vld [vmem:[#allocation11 + $0x9a0] ss:$28 sps:$4 sm:$0xff]   ;;  %v14076_v30 = vld [vmem:[#allocation11 + $0x514] ss:$28 sps:$4 sm:$0xff]  }
 0x651   :  { %8477 = vmatprep.mubr.bf16.mxu0 %v17886_v0 }
 0x653   :  { %8315 = vmatpush2.bf16.msra.mxu1 %v14020_v19  ;;  %v14062_v19 = vld [vmem:[#allocation11 + $0x968] ss:$28 sps:$4 sm:$0xff]  }
 0x654   :  { %8316 = vmatprep.subr.bf16.mxu1 %v14025_v57 }
 0x657   :  { %8317 = vmatpush2.bf16.msra.mxu1 %v14023_v21 }
 0x658   :  { %8392 = vmatprep.subr.bf16.mxu1 %v14028_v50  ;;  %v14070_v50 = vld [vmem:[#allocation11 + $0x8fc] ss:$28 sps:$4 sm:$0xff]  }
 0x65a   :  { %8319 = vmatmul.mubr.bf16.vlgmr.msra.gmra.mxu1 %v16680_v61 }
 0x65b   :  { %8328 = vmatprep.mubr.bf16.mxu1 %v16824_v28  ;;  %8393 = vmatpush1.bf16.msra.mxu1 %v14026_v25  ;;  %v14073_v25 = vld [vmem:[#allocation11 + $0x8c4] ss:$28 sps:$4 sm:$0xff]  }
 0x65c   :  { %8394 = vmatprep.subr.bf16.mxu1 %v14031_v52  ;;  %v14071_v52 = vld [vmem:[#allocation11 + $0x8c0] ss:$28 sps:$4 sm:$0xff]  }
 0x65f   :  { %8395 = vmatpush1.bf16.msra.mxu1 %v14029_v12 }
 0x660   :  { %8396 = vmatprep.subr.bf16.mxu1 %v14034_v48 }
 0x662   :  { %8329 = vmatmul.mubr.bf16.gmra.mxu1 %v16701_v26 }
 0x663   :  { %8397 = vmatpush1.bf16.msra.mxu1 %v14032_v46 }
 0x664   :  { %v16829_v56 = vpop.f32.mrf.mxu0  ;;  %8398 = vmatprep.subr.bf16.mxu1 %v14037_v43 }
 0x666   :  { %v16831_v14 = vpop.f32.mrf.mxu0 }
 0x667   :  { %8399 = vmatpush1.bf16.msra.mxu1 %v14035_v24 }
 0x668   :  { %v16833_v29 = vpop.f32.mrf.mxu0  ;;  %8400 = vmatprep.subr.bf16.mxu1 %v14040_v44 }
 0x66a   :  { %v16835_v55 = vpop.f32.mrf.mxu0 }
 0x66b   :  { %8401 = vmatpush1.bf16.msra.mxu1 %v14038_v20 }
 0x66c   :  { %v16837_v27 = vpop.f32.mrf.mxu0  ;;  %8402 = vmatprep.subr.bf16.mxu1 %v14043_v7 }
 0x66e   :  { %v16839_v47 = vpop.f32.mrf.mxu0 }
 0x66f   :  { %8403 = vmatpush1.bf16.msra.mxu1 %v14041_v54 }
 0x670   :  { %8404 = vmatprep.subr.bf16.mxu1 %v14046_v58  ;;  %v16841_v4 = vpop.f32.mrf.mxu0 }
 0x672   :  { %v16843_v35 = vpop.f32.mrf.mxu0 }
 0x673   :  { %8405 = vmatpush1.bf16.msra.mxu1 %v14044_v63 }
 0x674   :  { %8406 = vmatprep.subr.bf16.mxu1 %v14049_v49  ;;  %v16845_v42 = vpop.f32.mrf.mxu0  ;;  %v16878_v49 = vld [vmem:[%s17874_s12] sm:$0x7f] }
 0x676   :  { %v16847_v62 = vpop.f32.mrf.mxu0 }
 0x677   :  { %8407 = vmatpush1.bf16.msra.mxu1 %v14047_v23  ;;  %v3350_v23 = vrot.slane %v16878_v49, %v15879_v34 }
 0x678   :  { %8408 = vmatprep.subr.bf16.mxu1 %v14052_v6  ;;  %v16849_v11 = vpop.f32.mrf.mxu0  ;;  %v3346_v6 = vrot.slane %v16878_v49, %v15885_v36 }
 0x67a   :  { %v16851_v57 = vpop.f32.mrf.mxu0  ;;  %v5627_v46 = vpop.f32.mrf.mxu1 }
 0x67b   :  { %8409 = vmatpush2.bf16.msra.mxu1 %v14050_v22 }
 0x67c   :  { %8410 = vmatprep.subr.bf16.mxu1 %v14055_v17  ;;  %v16853_v21 = vpop.f32.mrf.mxu0  ;;  %v5629_v24 = vpop.f32.mrf.mxu1 }
 0x67e   :  { %v16855_v53 = vpop.f32.mrf.mxu0  ;;  %v5631_v33 = vpop.f32.mrf.mxu1 }
 0x67f   :  { %8411 = vmatpush2.bf16.msra.mxu1 %v14053_v2  ;;  %v5630_v2 = vadd.f32 %v5629_v24, %v3350_v23 }
 0x680   :  { %8412 = vmatprep.subr.bf16.mxu1 %v14058_v13  ;;  %v16857_v12 = vpop.f32.mrf.mxu0  ;;  %v5633_v20 = vpop.f32.mrf.mxu1  ;;  %v5628_v13 = vadd.f32 %v5627_v46, %v3346_v6 }
 0x682   :  { %v16859_v59 = vpop.f32.mrf.mxu0  ;;  %v5637_v45 = vpop.f32.mrf.mxu1 }
 0x683   :  { %8413 = vmatpush2.bf16.msra.mxu1 %v14056_v1  ;;  %v5638_v36 = vadd.f32 %v5637_v45, %v3346_v6 }
 0x684   :  { %8414 = vmatprep.subr.bf16.mxu1 %v14061_v15  ;;  %v5639_v58 = vpop.f32.mrf.mxu1 }
 0x685   :  { %v5640_v34 = vadd.f32 %v5639_v58, %v3350_v23  ;;  %v5691_v45 = vadd.f32 %v16837_v27, %v5638_v36  ;;  %v14079_v27 = vld [vmem:[#allocation11 + $0x4dc] ss:$28 sps:$4 sm:$0xff]  }
 0x686   :  { %v5641_v22 = vpop.f32.mrf.mxu1 }
 0x687   :  { %8415 = vmatpush2.bf16.msra.mxu1 %v14059_v9  ;;  %v5632_v9 = vadd.f32 %v5631_v33, %v3346_v6  ;;  %v5642_v38 = vadd.f32 %v5641_v22, %v3346_v6  ;;  %v5693_v58 = vadd.f32 %v16839_v47, %v5640_v34 }
 0x688   :  { %8416 = vmatprep.subr.bf16.mxu1 %v14064_v5  ;;  %v5643_v1 = vpop.f32.mrf.mxu1 }
 0x68b   :  { %8417 = vmatpush2.bf16.msra.mxu1 %v14062_v19  ;;  %v5634_v19 = vadd.f32 %v5633_v20, %v3350_v23 }
 0x68c   :  { %8418 = vmatprep.subr.bf16.mxu1 %v14067_v51  ;;  %v5683_v51 = vadd.f32 %v16831_v14, %v5630_v2 }
 0x68d   :  { %v5687_v46 = vadd.f32 %v16835_v55, %v5634_v19 }
 0x68f   :  { %8419 = vmatpush2.bf16.msra.mxu1 %v14065_v40 }
 0x690   :  { %8420 = vmatprep.subr.bf16.mxu1 %v14070_v50  ;;  %v5681_v50 = vadd.f32 %v16829_v56, %v5628_v13 }
 0x693   :  { %8421 = vmatpush2.bf16.msra.mxu1 %v14068_v32 }
 0x694   :  { %8422 = vmatprep.subr.bf16.mxu1 %v14073_v25  ;;  %v16861_v48 = vpop.f32.mrf.mxu0 }
 0x696   :  { %v16863_v43 = vpop.f32.mrf.mxu0 }
 0x697   :  { %8423 = vmatpush2.bf16.msra.mxu1 %v14071_v52  ;;  %v5685_v52 = vadd.f32 %v16833_v29, %v5632_v9  ;;  %v5644_v29 = vadd.f32 %v5643_v1, %v3350_v23  ;;  %v14074_v1 = vld [vmem:[#allocation11 + $0x510] ss:$28 sps:$4 sm:$0xff]  }
 0x698   :  { %8551 = vmatprep.subr.bf16.mxu1 %v14076_v30  ;;  %v16865_v44 = vpop.f32.mrf.mxu0 }
 0x69a   :  { %v16867_v39 = vpop.f32.mrf.mxu0 }
 0x69c   :  { %v16869_v7 = vpop.f32.mrf.mxu0 }
 0x69e   :  { %v16871_v54 = vpop.f32.mrf.mxu0 }
 0x6a0   :  { %v16873_v63 = vpop.f32.mrf.mxu0 }
 0x6a2   :  { %v16884_v17 = vpop.f32.mrf.mxu0 }
 0x6b4   :  { %v16886_v15 = vpop.f32.mrf.mxu0 }
 0x6b6   :  { %v16889_v40 = vpop.f32.mrf.mxu0 }
 0x6b8   :  { %v16894_v33 = vpop.f32.mrf.mxu0 }
 0x6ba   :  { %v5733_v5 = vpop.f32.mrf.mxu1 }
 0x6bb   :  { %v5734_v30 = vadd.f32 %v5733_v5, %v5681_v50 }
 0x6bc   :  { %v5735_v32 = vpop.f32.mrf.mxu1 }
 0x6bd   :  { %v5736_v25 = vadd.f32 %v5735_v32, %v5683_v51  ;;  %v5787_v13 = vadd.f32 %v16845_v42, %v5734_v30  ;;  %v14077_v30 = vld [vmem:[#allocation11 + $0x4d8] ss:$28 sps:$4 sm:$0xff]  }
 0x6be   :  { %v5737_v0 = vpop.f32.mrf.mxu1 }
 0x6bf   :  { %v5738_v24 = vadd.f32 %v5737_v0, %v5685_v52  ;;  %v5789_v14 = vadd.f32 %v16847_v62, %v5736_v25  ;;  %v16900_v0 = vpop.f32.mrf.mxu0  ;;  %v5695_v62 = vadd.f32 %v16841_v4, %v5642_v38 }
 0x6c0   :  { %v5739_v20 = vpop.f32.mrf.mxu1 }
 0x6c1   :  { %v5791_v2 = vadd.f32 %v16849_v11, %v5738_v24  ;;  %v5740_v56 = vadd.f32 %v5739_v20, %v5687_v46  ;;  %v6006_v6 = vmax.f32 %v5789_v14, 0.0  ;;  %v6005_v11 = vmax.f32 %v5787_v13, 0.0  ;;  %v16908_v25 = vpop.f32.mrf.mxu0  ;;  %v14082_v20 = vld [vmem:[#allocation11 + $0x4a4] ss:$28 sps:$4 sm:$0xff]  }
 0x6c2   :  { %v5743_v51 = vpop.f32.mrf.mxu1 }
 0x6c3   :  { %v5793_v9 = vadd.f32 %v16851_v57, %v5740_v56  ;;  %v6012_v55 = vmax.f32 %v5791_v2, 0.0  ;;  %v5744_v19 = vadd.f32 %v5743_v51, %v5691_v45  ;;  %v5697_v57 = vadd.f32 %v16843_v35, %v5644_v29  ;;  %v12846_v24 = vpop.f32.mrf.mxu0 }
 0x6c4   :  { %v5745_v5 = vpop.f32.mrf.mxu1  ;;  %v12813_v45 = vadd.f32 %v16863_v43, %v16861_v48  ;;  %v12844_v43 = vadd.f32 %v16900_v0, %v16894_v33  ;;  %v12822_v33 = vadd.f32 %v16884_v17, %v16873_v63  ;;  %v14107_v17 = vld [vmem:[#allocation11 + $0x190] ss:$28 sps:$4 sm:$0xff]  }
 0x6c5   :  { %v6013_v22 = vmax.f32 %v5793_v9, 0.0  ;;  %v5746_v50 = vadd.f32 %v5745_v5, %v5693_v58  ;;  %v16910_v36 = vpack.c.bf16 %v6012_v55, %v6005_v11  ;;  %v5797_v52 = vadd.f32 %v16853_v21, %v5744_v19  ;;  %v12848_v13 = vpop.f32.mrf.mxu0  ;;  %v14085_v21 = vld [vmem:[#allocation11 + $0x46c] ss:$28 sps:$4 sm:$0xff]   ;;  %v14088_v9 = vld [vmem:[#allocation11 + $0x434] ss:$28 sps:$4 sm:$0xff]  }
 0x6c6   :  { %v5747_v42 = vpop.f32.mrf.mxu1  ;;  %v3354_v55 = vrot.slane %v16878_v49, %v15968_v3  ;;  %v14086_v58 = vld [vmem:[#allocation11 + $0x430] ss:$28 sps:$4 sm:$0xff]   ;;  %v12816_v19 = vadd.f32 %v16867_v39, %v16865_v44 }
 0x6c7   :  { %v16905_v32 = vpack.c.bf16 %v6013_v22, %v6006_v6  ;;  %v5748_v23 = vadd.f32 %v5747_v42, %v5695_v62  ;;  %v5799_v47 = vadd.f32 %v16855_v53, %v5746_v50  ;;  %v6019_v53 = vmax.f32 %v5797_v52, 0.0  ;;  %v12849_v29 = vpop.f32.mrf.mxu0  ;;  %v14094_v6 = vld [vmem:[#allocation11 + $0x3fc] ss:$28 sps:$4 sm:$0xff]  }
 0x6c8   :  { %v5749_v34 = vpop.f32.mrf.mxu1  ;;  %v12841_v22 = vadd.f32 %v16889_v40, %v16886_v15  ;;  %v5840_v11 = vadd.f32 %v12813_v45, %v3354_v55  ;;  %v14092_v50 = vld [vmem:[#allocation11 + $0x3f8] ss:$28 sps:$4 sm:$0xff]   ;;  %v12819_v15 = vadd.f32 %v16871_v54, %v16869_v7  ;;  %v14101_v7 = vld [vmem:[#allocation11 + $0x388] ss:$28 sps:$4 sm:$0xff]  }
 0x6c9   :  { %v5801_v38 = vadd.f32 %v16857_v12, %v5748_v23  ;;  %v5750_v4 = vadd.f32 %v5749_v34, %v5697_v57  ;;  %8424 = vmatprep.mubr.bf16.mxu1 %v16905_v32  ;;  %v6020_v14 = vmax.f32 %v5799_v47, 0.0  ;;  %v14080_v12 = vld [vmem:[#allocation11 + $0x4a0] ss:$28 sps:$4 sm:$0xff]   ;;  %v12977_v5 = vpop.f32.mrf.mxu0  ;;  %v5843_v34 = vadd.f32 %v12816_v19, %v3354_v55  ;;  %v14103_v47 = vld [vmem:[#allocation11 + $0x38c] ss:$28 sps:$4 sm:$0xff]  }
 0x6ca   :  { %8425 = vmatmul.mubr.bf16.vlgmr.msra.gmra.mxu1 %v16910_v36  ;;  %v14097_v23 = vld [vmem:[#allocation11 + $0x3c4] ss:$28 sps:$4 sm:$0xff]   ;;  %v5889_v48 = vadd.f32 %v12841_v22, %v5840_v11  ;;  %v14115_v19 = vld [vmem:[#allocation11 + $0x15c] ss:$28 sps:$4 sm:$0xff]  }
 0x6cb   :  { %v5803_v35 = vadd.f32 %v16859_v59, %v5750_v4  ;;  %8552 = vmatpush1.bf16.msra.mxu1 %v14074_v1  ;;  %v6026_v46 = vmax.f32 %v5801_v38, 0.0  ;;  %v14083_v59 = vld [vmem:[#allocation11 + $0x468] ss:$28 sps:$4 sm:$0xff]   ;;  %v5986_v42 = vpop.f32.mrf.mxu0  ;;  %v5892_v38 = vadd.f32 %v12844_v43, %v5843_v34  ;;  %v12847_v4 = vadd.f32 %v12846_v24, %v16908_v25 }
 0x6cc   :  { %8553 = vmatprep.subr.bf16.mxu1 %v14079_v27  ;;  %v14095_v27 = vld [vmem:[#allocation11 + $0x3c0] ss:$28 sps:$4 sm:$0xff]   ;;  %v5851_v25 = vadd.f32 %v12822_v33, %v3354_v55  ;;  %v14137_v33 = vld [vmem:[#allocation11 + $0x78] ss:$28 sps:$4 sm:$0xff]  }
 0x6cd   :  { %v6027_v2 = vmax.f32 %v5803_v35, 0.0  ;;  %v16920_v51 = vpack.c.bf16 %v6026_v46, %v6019_v53  ;;  %v12978_v44 = vpop.f32.mrf.mxu0  ;;  %v12850_v53 = vadd.f32 %v12849_v29, %v12848_v13  ;;  %v14110_v29 = vld [vmem:[#allocation11 + $0x698] ss:$28 sps:$4 sm:$0xff]  }
 0x6cf   :  { %v16918_v56 = vpack.c.bf16 %v6027_v2, %v6020_v14  ;;  %8554 = vmatpush1.bf16.msra.mxu1 %v14077_v30  ;;  %v5848_v30 = vadd.f32 %v12819_v15, %v3354_v55  ;;  %v5989_v54 = vpop.f32.mrf.mxu0  ;;  %v14106_v14 = vld [vmem:[#allocation11 + $0x6d4] ss:$28 sps:$4 sm:$0xff]   ;;  %v5900_v22 = vadd.f32 %v12850_v53, %v5851_v25  ;;  %v14124_v15 = vld [vmem:[#allocation11 + $0x62c] ss:$28 sps:$4 sm:$0xff]  }
 0x6d0   :  { %8555 = vmatprep.subr.bf16.mxu1 %v14082_v20  ;;  %v14113_v55 = vld [vmem:[#allocation11 + $0x158] ss:$28 sps:$4 sm:$0xff]   ;;  %v14149_v53 = vld [vmem:[#allocation11 + $0x8] ss:$28 sps:$4 sm:$0xff]   ;;  %v14152_v25 = vld [vmem:[#allocation11 + $0x350] ss:$28 sps:$4 sm:$0xff]  }
 0x6d1   :  { %8434 = vmatprep.mubr.bf16.mxu1 %v16918_v56  ;;  %v5897_v2 = vadd.f32 %v12847_v4, %v5848_v30  ;;  %v14131_v4 = vld [vmem:[#allocation11 + $0xb0] ss:$28 sps:$4 sm:$0xff]   ;;  %v14134_v30 = vld [vmem:[#allocation11 + $0x5b8] ss:$28 sps:$4 sm:$0xff]  }
 0x6d2   :  { %8435 = vmatmul.mubr.bf16.gmra.mxu1 %v16920_v51 }
 0x6d3   :  { %8556 = vmatpush1.bf16.msra.mxu1 %v14080_v12  ;;  %8583 = vmatprep.mubr.bf16.mxu1 %v16804_v41 }
 0x6d4   :  { %8557 = vmatprep.subr.bf16.mxu1 %v14085_v21 }
 0x6d7   :  { %8558 = vmatpush1.bf16.msra.mxu1 %v14083_v59 }
 0x6d8   :  { %8559 = vmatprep.subr.bf16.mxu1 %v14088_v9 }
 0x6da   :  { %v12867_v62 = vpop.f32.mrf.mxu1 }
 0x6db   :  { %8560 = vmatpush1.bf16.msra.mxu1 %v14086_v58  ;;  %v14104_v58 = vld [vmem:[#allocation11 + $0x6d0] ss:$28 sps:$4 sm:$0xff]  }
 0x6dc   :  { %v12868_v49 = vpop.f32.mrf.mxu1  ;;  %8561 = vmatprep.subr.bf16.mxu1 %v14094_v6  ;;  %v14112_v6 = vld [vmem:[#allocation11 + $0x69c] ss:$28 sps:$4 sm:$0xff]  }
 0x6dd   :  { %v12869_v57 = vadd.f32 %v12868_v49, %v12867_v62 }
 0x6de   :  { %v12870_v1 = vpop.f32.mrf.mxu1 }
 0x6df   :  { %v5938_v40 = vadd.f32 %v12869_v57, %v5889_v48  ;;  %8562 = vmatpush1.bf16.msra.mxu1 %v14092_v50  ;;  %v14121_v48 = vld [vmem:[#allocation11 + $0x124] ss:$28 sps:$4 sm:$0xff]  }
 0x6e0   :  { %v12871_v39 = vpop.f32.mrf.mxu1  ;;  %8563 = vmatprep.subr.bf16.mxu1 %v14097_v23  ;;  %v17907_v23 = vmov 0  }
 0x6e1   :  { %v12872_v52 = vadd.f32 %v12871_v39, %v12870_v1  ;;  %v5987_v0 = vadd.f32 %v5986_v42, %v5938_v40  ;;  %v14118_v42 = vld [vmem:[#allocation11 + $0x664] ss:$28 sps:$4 sm:$0xff]   ;;  %v14127_v40 = vld [vmem:[#allocation11 + $0xec] ss:$28 sps:$4 sm:$0xff]   ;;  %v14130_v39 = vld [vmem:[#allocation11 + $0x5f4] ss:$28 sps:$4 sm:$0xff]  }
 0x6e2   :  { %v12873_v35 = vpop.f32.mrf.mxu1  ;;  %v14116_v1 = vld [vmem:[#allocation11 + $0x660] ss:$28 sps:$4 sm:$0xff]  }
 0x6e3   :  { %v5941_v46 = vadd.f32 %v12872_v52, %v5892_v38  ;;  %8564 = vmatpush1.bf16.msra.mxu1 %v14095_v27  ;;  %v6007_v24 = vmax.f32 %v5987_v0, 0.0  ;;  %v14122_v27 = vld [vmem:[#allocation11 + $0x628] ss:$28 sps:$4 sm:$0xff]   ;;  %v14128_v38 = vld [vmem:[#allocation11 + $0x5f0] ss:$28 sps:$4 sm:$0xff]  }
 0x6e4   :  { %v12874_v20 = vpop.f32.mrf.mxu1  ;;  %8565 = vmatprep.subr.bf16.mxu1 %v14103_v47  ;;  %v14133_v47 = vld [vmem:[#allocation11 + $0xb4] ss:$28 sps:$4 sm:$0xff]   ;;  %v14136_v52 = vld [vmem:[#allocation11 + $0x5bc] ss:$28 sps:$4 sm:$0xff]   ;;  %v14142_v0 = vld [vmem:[#allocation11 + $0x584] ss:$28 sps:$4 sm:$0xff]  }
 0x6e5   :  { %v5990_v12 = vadd.f32 %v5989_v54, %v5941_v46  ;;  %v12875_v21 = vadd.f32 %v12874_v20, %v12873_v35  ;;  %v14139_v35 = vld [vmem:[#allocation11 + $0x7c] ss:$28 sps:$4 sm:$0xff]   ;;  %v14145_v46 = vld [vmem:[#allocation11 + $0x44] ss:$28 sps:$4 sm:$0xff]   ;;  %v14148_v20 = vld [vmem:[#allocation11 + $0x54c] ss:$28 sps:$4 sm:$0xff]  }
 0x6e6   :  { %v12876_v59 = vpop.f32.mrf.mxu1  ;;  %v14143_v54 = vld [vmem:[#allocation11 + $0x40] ss:$28 sps:$4 sm:$0xff]  }
 0x6e7   :  { %v6014_v9 = vmax.f32 %v5990_v12, 0.0  ;;  %v5946_v45 = vadd.f32 %v12875_v21, %v5897_v2  ;;  %8566 = vmatpush1.bf16.msra.mxu1 %v14101_v7  ;;  %v14140_v7 = vld [vmem:[#allocation11 + $0x580] ss:$28 sps:$4 sm:$0xff]   ;;  %v14146_v2 = vld [vmem:[#allocation11 + $0x548] ss:$28 sps:$4 sm:$0xff]  }
 0x6e8   :  { %v12877_v63 = vpop.f32.mrf.mxu1  ;;  %8567 = vmatprep.subr.bf16.mxu1 %v14106_v14  ;;  %v14151_v14 = vld [vmem:[#allocation11 + $0xc] ss:$28 sps:$4 sm:$0xff]   ;;  %v14160_v12 = vld [vmem:[#allocation11 + $0xac4] ss:$28 sps:$4 sm:$0xff]   ;;  %v14154_v21 = vld [vmem:[#allocation11 + $0x354] ss:$28 sps:$4 sm:$0xff]  }
 0x6e9   :  { %v16940_v62 = vpack.c.bf16 %v6014_v9, %v6007_v24  ;;  %v12878_v11 = vadd.f32 %v12877_v63, %v12876_v59  ;;  %v5995_v50 = vadd.f32 %v12977_v5, %v5946_v45  ;;  %v14119_v5 = vld [vmem:[#allocation11 + $0x120] ss:$28 sps:$4 sm:$0xff]   ;;  %v14166_v24 = vld [vmem:[#allocation11 + $0xa8c] ss:$28 sps:$4 sm:$0xff]  }
 0x6ea   :  { %v14158_v59 = vld [vmem:[#allocation11 + $0xac0] ss:$28 sps:$4 sm:$0xff]   ;;  %v14164_v45 = vld [vmem:[#allocation11 + $0xa88] ss:$28 sps:$4 sm:$0xff]  }
 0x6eb   :  { %v5949_v13 = vadd.f32 %v12878_v11, %v5900_v22  ;;  %8568 = vmatpush2.bf16.msra.mxu1 %v14104_v58  ;;  %12487 = vmatmul.mubr.msk.bf16.vlgmr.msra.gmra.mxu0 %vm5162_vm3, %v16940_v62  ;;  %v6021_v43 = vmax.f32 %v5995_v50, 0.0  ;;  %v14157_v9 = vld [vmem:[#allocation11 + $0x31c] ss:$28 sps:$4 sm:$0xff]   ;;  %v14169_v11 = vld [vmem:[#allocation11 + $0x2ac] ss:$28 sps:$4 sm:$0xff]  }
 0x6ec   :  { %8499 = vmatpush1.bf16.msra.mxu0 %v14107_v17  ;;  %8569 = vmatprep.subr.bf16.mxu1 %v14112_v6  ;;  %v14155_v58 = vld [vmem:[#allocation11 + $0x318] ss:$28 sps:$4 sm:$0xff]   ;;  %v14163_v17 = vld [vmem:[#allocation11 + $0x2e4] ss:$28 sps:$4 sm:$0xff]  }
 0x6ed   :  { %v5998_v49 = vadd.f32 %v12978_v44, %v5949_v13  ;;  %8500 = vmatprep.subr.bf16.mxu0 %v14115_v19  ;;  %8487 = vmatprep.mubr.bf16.mxu0 %v17907_v23  ;;  %v14125_v44 = vld [vmem:[#allocation11 + $0xe8] ss:$28 sps:$4 sm:$0xff]   ;;  %v14172_v63 = vld [vmem:[#allocation11 + $0x19c] ss:$28 sps:$4 sm:$0xff]  }
 0x6ee   :  { %v14161_v22 = vld [vmem:[#allocation11 + $0x2e0] ss:$28 sps:$4 sm:$0xff]   ;;  %v14167_v50 = vld [vmem:[#allocation11 + $0x2a8] ss:$28 sps:$4 sm:$0xff]  }
 0x6ef   :  { %v6028_v57 = vmax.f32 %v5998_v49, 0.0  ;;  %8570 = vmatpush2.bf16.msra.mxu1 %v14110_v29  ;;  %v6429_v13 = vld [vmem:[%s17876_s14] sm:$0x7f]  ;;  %v14175_v29 = vld [vmem:[#allocation11 + $0x274] ss:$28 sps:$4 sm:$0xff]  }
 0x6f0   :  { %8501 = vmatpush1.bf16.msra.mxu0 %v14113_v55  ;;  %8571 = vmatprep.subr.bf16.mxu1 %v14118_v42  ;;  %v14170_v55 = vld [vmem:[#allocation11 + $0x198] ss:$28 sps:$4 sm:$0xff]   ;;  %v6448_v42 = vrot.slane %v6429_v13, %v15268_v10 }
 0x6f1   :  { %v16945_v34 = vpack.c.bf16 %v6028_v57, %v6021_v43  ;;  %8502 = vmatprep.subr.bf16.mxu0 %v14121_v48  ;;  %v14173_v48 = vld [vmem:[#allocation11 + $0x270] ss:$28 sps:$4 sm:$0xff]   ;;  %v14178_v43 = vld [vmem:[#allocation11 + $0x164] ss:$28 sps:$4 sm:$0xff]   ;;  %v14181_v57 = vld [vmem:[#allocation11 + $0x23c] ss:$28 sps:$4 sm:$0xff]  }
 0x6f3   :  { %8572 = vmatpush2.bf16.msra.mxu1 %v14116_v1  ;;  %12488 = vmatmul.mubr.msk.bf16.gmra.mxu0 %vm5162_vm3, %v16945_v34 }
 0x6f4   :  { %8503 = vmatpush1.bf16.msra.mxu0 %v14119_v5  ;;  %8530 = vmatprep.mubr.bf16.mxu0 %v16776_v31 }
 0x6f5   :  { %8573 = vmatprep.subr.bf16.mxu1 %v14124_v15  ;;  %8504 = vmatprep.subr.bf16.mxu0 %v14127_v40  ;;  %v14176_v15 = vld [vmem:[#allocation11 + $0x160] ss:$28 sps:$4 sm:$0xff]  }
 0x6f7   :  { %8574 = vmatpush2.bf16.msra.mxu1 %v14122_v27 }
 0x6f8   :  { %8505 = vmatpush1.bf16.msra.mxu0 %v14125_v44  ;;  %8575 = vmatprep.subr.bf16.mxu1 %v14130_v39  ;;  %v14179_v44 = vld [vmem:[#allocation11 + $0x238] ss:$28 sps:$4 sm:$0xff]   ;;  %v14184_v39 = vld [vmem:[#allocation11 + $0x12c] ss:$28 sps:$4 sm:$0xff]  }
 0x6f9   :  { %8506 = vmatprep.subr.bf16.mxu0 %v14133_v47  ;;  %v14187_v47 = vld [vmem:[#allocation11 + $0x204] ss:$28 sps:$4 sm:$0xff]  }
 0x6fb   :  { %8576 = vmatpush2.bf16.msra.mxu1 %v14128_v38 }
 0x6fc   :  { %8507 = vmatpush1.bf16.msra.mxu0 %v14131_v4  ;;  %8577 = vmatprep.subr.bf16.mxu1 %v14136_v52 }
 0x6fd   :  { %8508 = vmatprep.subr.bf16.mxu0 %v14139_v35  ;;  %v14182_v35 = vld [vmem:[#allocation11 + $0x128] ss:$28 sps:$4 sm:$0xff]  }
 0x6ff   :  { %8578 = vmatpush2.bf16.msra.mxu1 %v14134_v30 }
 0x700   :  { %8509 = vmatpush1.bf16.msra.mxu0 %v14137_v33  ;;  %8579 = vmatprep.subr.bf16.mxu1 %v14142_v0  ;;  %v14185_v0 = vld [vmem:[#allocation11 + $0x200] ss:$28 sps:$4 sm:$0xff]  }
 0x701   :  { %8510 = vmatprep.subr.bf16.mxu0 %v14145_v46  ;;  %v14190_v46 = vld [vmem:[#allocation11 + $0xf4] ss:$28 sps:$4 sm:$0xff]  }
 0x703   :  { %8580 = vmatpush2.bf16.msra.mxu1 %v14140_v7  ;;  %v14193_v7 = vld [vmem:[#allocation11 + $0x1cc] ss:$28 sps:$4 sm:$0xff]  }
 0x704   :  { %8511 = vmatpush1.bf16.msra.mxu0 %v14143_v54  ;;  %8581 = vmatprep.subr.bf16.mxu1 %v14148_v20 }
 0x705   :  { %8512 = vmatprep.subr.bf16.mxu0 %v14151_v14  ;;  %v16976_v14 = vrot.slane %v6429_v13, %v15262_v8  ;;  %v14205_v13 = vld [vmem:[#allocation11 + $0x85c] ss:$28 sps:$4 sm:$0xff]  }
 0x707   :  { %8582 = vmatpush2.bf16.msra.mxu1 %v14146_v2 }
 0x708   :  { %8513 = vmatpush1.bf16.msra.mxu0 %v14149_v53  ;;  %8669 = vmatprep.subr.bf16.mxu1 %v14160_v12  ;;  %v8373_v6 = vpop.f32.mrf.mxu0  ;;  %v14188_v53 = vld [vmem:[#allocation11 + $0xf0] ss:$28 sps:$4 sm:$0xff]  }
 0x709   :  { %8514 = vmatprep.subr.bf16.mxu0 %v14154_v21 }
 0x70a   :  { %8584 = vmatmul.mubr.bf16.vlgmr.msra.gmra.mxu1 %v16806_v60  ;;  %v16954_v19 = vpop.f32.mrf.mxu0 }
 0x70b   :  { %8593 = vmatprep.mubr.bf16.mxu1 %v16813_v16  ;;  %8670 = vmatpush1.bf16.msra.mxu1 %v14158_v59  ;;  %v14191_v59 = vld [vmem:[#allocation11 + $0x1c8] ss:$28 sps:$4 sm:$0xff]  }
 0x70c   :  { %8515 = vmatpush2.bf16.msra.mxu0 %v14152_v25  ;;  %8671 = vmatprep.subr.bf16.mxu1 %v14166_v24  ;;  %v8377_v49 = vpop.f32.mrf.mxu0  ;;  %v14196_v25 = vld [vmem:[#allocation11 + $0xbc] ss:$28 sps:$4 sm:$0xff]  }
 0x70d   :  { %8516 = vmatprep.subr.bf16.mxu0 %v14157_v9  ;;  %v14199_v9 = vld [vmem:[#allocation11 + $0x894] ss:$28 sps:$4 sm:$0xff]  }
 0x70e   :  { %v16963_v40 = vpop.f32.mrf.mxu0 }
 0x70f   :  { %8672 = vmatpush1.bf16.msra.mxu1 %v14164_v45 }
 0x710   :  { %8517 = vmatpush2.bf16.msra.mxu0 %v14155_v58  ;;  %8710 = vmatprep.subr.bf16.mxu1 %v14172_v63  ;;  %v8383_v30 = vpop.f32.mrf.mxu0 }
 0x711   :  { %8518 = vmatprep.subr.bf16.mxu0 %v14163_v17  ;;  %v14194_v17 = vld [vmem:[#allocation11 + $0xb8] ss:$28 sps:$4 sm:$0xff]  }
 0x712   :  { %8594 = vmatmul.mubr.bf16.gmra.mxu1 %v16815_v18  ;;  %v8385_v12 = vpop.f32.mrf.mxu0 }
 0x713   :  { %8689 = vmatprep.mubr.bf16.mxu1 %v17907_v23 }
 0x714   :  { %8519 = vmatpush2.bf16.msra.mxu0 %v14161_v22  ;;  %v8387_v22 = vpop.f32.mrf.mxu0 }
 0x715   :  { %8520 = vmatprep.subr.bf16.mxu0 %v14169_v11  ;;  %v14197_v11 = vld [vmem:[#allocation11 + $0x890] ss:$28 sps:$4 sm:$0xff]  }
 0x718   :  { %8521 = vmatpush2.bf16.msra.mxu0 %v14167_v50  ;;  %v14202_v50 = vld [vmem:[#allocation11 + $0x84] ss:$28 sps:$4 sm:$0xff]  }
 0x719   :  { %8522 = vmatprep.subr.bf16.mxu0 %v14175_v29 }
 0x71a   :  { %12489 = vmatmul.mubr.msk.bf16.vlgmr.msra.gmra.mxu1 %vm5162_vm3, %v16940_v62  ;;  %v8320_v1 = vpop.f32.mrf.mxu1 }
 0x71b   :  { %8711 = vmatpush1.bf16.msra.mxu1 %v14170_v55  ;;  %v8321_v5 = vadd.f32 %v8320_v1, %v6448_v42  ;;  %8699 = vmatprep.mubr.bf16.mxu1 %v17907_v23  ;;  %v14200_v55 = vld [vmem:[#allocation11 + $0x80] ss:$28 sps:$4 sm:$0xff]   ;;  %v14214_v1 = vld [vmem:[#allocation11 + $0x14] ss:$28 sps:$4 sm:$0xff]  }
 0x71c   :  { %8523 = vmatpush2.bf16.msra.mxu0 %v14173_v48  ;;  %v16965_v27 = vpop.f32.mrf.mxu1  ;;  %8712 = vmatprep.subr.bf16.mxu1 %v14178_v43  ;;  %v14211_v48 = vld [vmem:[#allocation11 + $0x824] ss:$28 sps:$4 sm:$0xff]  }
 0x71d   :  { %8524 = vmatprep.subr.bf16.mxu0 %v14181_v57  ;;  %v16967_v38 = vadd.f32 %v8373_v6, %v8321_v5  ;;  %v14206_v43 = vld [vmem:[#allocation11 + $0x48] ss:$28 sps:$4 sm:$0xff]   ;;  %v14209_v57 = vld [vmem:[#allocation11 + $0x820] ss:$28 sps:$4 sm:$0xff]  }
 0x71e   :  { %v8324_v4 = vpop.f32.mrf.mxu1  ;;  %v14217_v5 = vld [vmem:[#allocation11 + $0x7ec] ss:$28 sps:$4 sm:$0xff]  }
 0x71f   :  { %8713 = vmatpush1.bf16.msra.mxu1 %v14176_v15  ;;  %v8325_v52 = vadd.f32 %v8324_v4, %v6448_v42  ;;  %v14212_v15 = vld [vmem:[#allocation11 + $0x10] ss:$28 sps:$4 sm:$0xff]   ;;  %v14218_v4 = vld [vmem:[#allocation11 + $0x358] ss:$28 sps:$4 sm:$0xff]  }
 0x720   :  { %8525 = vmatpush2.bf16.msra.mxu0 %v14179_v44  ;;  %v16969_v33 = vpop.f32.mrf.mxu1  ;;  %8714 = vmatprep.subr.bf16.mxu1 %v14184_v39  ;;  %v14215_v44 = vld [vmem:[#allocation11 + $0x7e8] ss:$28 sps:$4 sm:$0xff]   ;;  %v14220_v39 = vld [vmem:[#allocation11 + $0x35c] ss:$28 sps:$4 sm:$0xff]  }
 0x721   :  { %8526 = vmatprep.subr.bf16.mxu0 %v14187_v47  ;;  %v16971_v54 = vadd.f32 %v8377_v49, %v8325_v52  ;;  %v14208_v49 = vld [vmem:[#allocation11 + $0x4c] ss:$28 sps:$4 sm:$0xff]   ;;  %v14223_v47 = vld [vmem:[#allocation11 + $0x7b4] ss:$28 sps:$4 sm:$0xff]  }
 0x722   :  { %12490 = vmatmul.mubr.msk.bf16.gmra.mxu1 %vm5162_vm3, %v16945_v34  ;;  %v8330_v20 = vpop.f32.mrf.mxu1  ;;  %v14221_v52 = vld [vmem:[#allocation11 + $0x7b0] ss:$28 sps:$4 sm:$0xff]  }
 0x723   :  { %8715 = vmatpush1.bf16.msra.mxu1 %v14182_v35  ;;  %v8331_v2 = vadd.f32 %v8330_v20, %v6448_v42  ;;  %8742 = vmatprep.mubr.bf16.mxu1 %v16776_v31  ;;  %v14226_v35 = vld [vmem:[#allocation11 + $0x324] ss:$28 sps:$4 sm:$0xff]  }
 0x724   :  { %8527 = vmatpush2.bf16.msra.mxu0 %v14185_v0  ;;  %v8332_v21 = vpop.f32.mrf.mxu1  ;;  %8716 = vmatprep.subr.bf16.mxu1 %v14190_v46  ;;  %v14224_v0 = vld [vmem:[#allocation11 + $0x320] ss:$28 sps:$4 sm:$0xff]   ;;  %v14227_v46 = vld [vmem:[#allocation11 + $0x778] ss:$28 sps:$4 sm:$0xff]  }
 0x725   :  { %v8333_v24 = vadd.f32 %v8332_v21, %v16976_v14  ;;  %8528 = vmatprep.subr.bf16.mxu0 %v14193_v7  ;;  %v16980_v45 = vadd.f32 %v8383_v30, %v8331_v2  ;;  %v14229_v30 = vld [vmem:[#allocation11 + $0x77c] ss:$28 sps:$4 sm:$0xff]   ;;  %v14232_v7 = vld [vmem:[#allocation11 + $0x2ec] ss:$28 sps:$4 sm:$0xff]   ;;  %v14235_v20 = vld [vmem:[#allocation11 + $0x744] ss:$28 sps:$4 sm:$0xff]  }
 0x726   :  { %v8334_v58 = vpop.f32.mrf.mxu1  ;;  %v14230_v2 = vld [vmem:[#allocation11 + $0x2e8] ss:$28 sps:$4 sm:$0xff]  }
 0x727   :  { %8717 = vmatpush1.bf16.msra.mxu1 %v14188_v53  ;;  %v8335_v63 = vadd.f32 %v8334_v58, %v6448_v42  ;;  %v16982_v6 = vadd.f32 %v8385_v12, %v8333_v24  ;;  %v14203_v42 = vld [vmem:[#allocation11 + $0x858] ss:$28 sps:$4 sm:$0xff]   ;;  %v14233_v53 = vld [vmem:[#allocation11 + $0x740] ss:$28 sps:$4 sm:$0xff]   ;;  %v14241_v21 = vld [vmem:[#allocation11 + $0x70c] ss:$28 sps:$4 sm:$0xff]  }
 0x728   :  { %8529 = vmatpush2.bf16.msra.mxu0 %v14191_v59  ;;  %8718 = vmatprep.subr.bf16.mxu1 %v14196_v25  ;;  %v14238_v12 = vld [vmem:[#allocation11 + $0x2b4] ss:$28 sps:$4 sm:$0xff]   ;;  %v14239_v25 = vld [vmem:[#allocation11 + $0x708] ss:$28 sps:$4 sm:$0xff]   ;;  %v14244_v24 = vld [vmem:[#allocation11 + $0x27c] ss:$28 sps:$4 sm:$0xff]  }
 0x729   :  { %8604 = vmatprep.subr.bf16.mxu0 %v14199_v9  ;;  %v16984_v29 = vadd.f32 %v8387_v22, %v8335_v63  ;;  %v14236_v59 = vld [vmem:[#allocation11 + $0x2b0] ss:$28 sps:$4 sm:$0xff]   ;;  %v14242_v58 = vld [vmem:[#allocation11 + $0x278] ss:$28 sps:$4 sm:$0xff]  }
 0x72a   :  { %v14247_v9 = vld [vmem:[#allocation11 + $0xa54] ss:$28 sps:$4 sm:$0xff]   ;;  %v14253_v22 = vld [vmem:[#allocation11 + $0xa1c] ss:$28 sps:$4 sm:$0xff]  }
 0x72b   :  { %8719 = vmatpush1.bf16.msra.mxu1 %v14194_v17  ;;  %8531 = vmatmul.mubr.bf16.vlgmr.msra.gmra.mxu0 %v16680_v61  ;;  %v14245_v63 = vld [vmem:[#allocation11 + $0xa50] ss:$28 sps:$4 sm:$0xff]   ;;  %v14250_v17 = vld [vmem:[#allocation11 + $0x244] ss:$28 sps:$4 sm:$0xff]  }
 0x72c   :  { %8540 = vmatprep.mubr.bf16.mxu0 %v16824_v28  ;;  %8605 = vmatpush1.bf16.msra.mxu0 %v14197_v11  ;;  %v14248_v11 = vld [vmem:[#allocation11 + $0x240] ss:$28 sps:$4 sm:$0xff]  }
 0x72d   :  { %8720 = vmatprep.subr.bf16.mxu1 %v14202_v50  ;;  %8606 = vmatprep.subr.bf16.mxu0 %v14205_v13  ;;  %v14251_v50 = vld [vmem:[#allocation11 + $0xa18] ss:$28 sps:$4 sm:$0xff]   ;;  %v14256_v13 = vld [vmem:[#allocation11 + $0x20c] ss:$28 sps:$4 sm:$0xff]  }
 0x72f   :  { %8721 = vmatpush1.bf16.msra.mxu1 %v14200_v55  ;;  %v14259_v55 = vld [vmem:[#allocation11 + $0x9e4] ss:$28 sps:$4 sm:$0xff]  }
 0x730   :  { %8607 = vmatpush1.bf16.msra.mxu0 %v14203_v42  ;;  %8722 = vmatprep.subr.bf16.mxu1 %v14208_v49  ;;  %v14254_v42 = vld [vmem:[#allocation11 + $0x208] ss:$28 sps:$4 sm:$0xff]   ;;  %v14257_v49 = vld [vmem:[#allocation11 + $0x9e0] ss:$28 sps:$4 sm:$0xff]  }
 0x731   :  { %8608 = vmatprep.subr.bf16.mxu0 %v14211_v48  ;;  %v14262_v48 = vld [vmem:[#allocation11 + $0x1d4] ss:$28 sps:$4 sm:$0xff]  }
 0x733   :  { %8723 = vmatpush1.bf16.msra.mxu1 %v14206_v43  ;;  %8541 = vmatmul.mubr.bf16.gmra.mxu0 %v16701_v26  ;;  %v14265_v43 = vld [vmem:[#allocation11 + $0x9ac] ss:$28 sps:$4 sm:$0xff]  }
 0x734   :  { %8609 = vmatpush1.bf16.msra.mxu0 %v14209_v57  ;;  %8636 = vmatprep.mubr.bf16.mxu0 %v16905_v32  ;;  %v14260_v57 = vld [vmem:[#allocation11 + $0x1d0] ss:$28 sps:$4 sm:$0xff]  }
 0x735   :  { %8724 = vmatprep.subr.bf16.mxu1 %v14214_v1  ;;  %8610 = vmatprep.subr.bf16.mxu0 %v14217_v5  ;;  %v14263_v1 = vld [vmem:[#allocation11 + $0x9a8] ss:$28 sps:$4 sm:$0xff]   ;;  %v14268_v5 = vld [vmem:[#allocation11 + $0x89c] ss:$28 sps:$4 sm:$0xff]  }
 0x737   :  { %8725 = vmatpush1.bf16.msra.mxu1 %v14212_v15  ;;  %v14271_v15 = vld [vmem:[#allocation11 + $0x974] ss:$28 sps:$4 sm:$0xff]  }
 0x738   :  { %8611 = vmatpush1.bf16.msra.mxu0 %v14215_v44  ;;  %8726 = vmatprep.subr.bf16.mxu1 %v14220_v39  ;;  %v14266_v44 = vld [vmem:[#allocation11 + $0x898] ss:$28 sps:$4 sm:$0xff]   ;;  %v14269_v39 = vld [vmem:[#allocation11 + $0x970] ss:$28 sps:$4 sm:$0xff]  }
 0x739   :  { %8612 = vmatprep.subr.bf16.mxu0 %v14223_v47  ;;  %v14274_v47 = vld [vmem:[#allocation11 + $0x864] ss:$28 sps:$4 sm:$0xff]  }
 0x73b   :  { %8727 = vmatpush2.bf16.msra.mxu1 %v14218_v4  ;;  %v14277_v4 = vld [vmem:[#allocation11 + $0x93c] ss:$28 sps:$4 sm:$0xff]  }
 0x73c   :  { %8613 = vmatpush1.bf16.msra.mxu0 %v14221_v52  ;;  %8728 = vmatprep.subr.bf16.mxu1 %v14226_v35  ;;  %v14272_v52 = vld [vmem:[#allocation11 + $0x860] ss:$28 sps:$4 sm:$0xff]   ;;  %v14275_v35 = vld [vmem:[#allocation11 + $0x938] ss:$28 sps:$4 sm:$0xff]  }
 0x73d   :  { %8614 = vmatprep.subr.bf16.mxu0 %v14229_v30  ;;  %v14280_v30 = vld [vmem:[#allocation11 + $0x82c] ss:$28 sps:$4 sm:$0xff]  }
 0x73f   :  { %8729 = vmatpush2.bf16.msra.mxu1 %v14224_v0  ;;  %v14283_v0 = vld [vmem:[#allocation11 + $0x904] ss:$28 sps:$4 sm:$0xff]  }
 0x740   :  { %8615 = vmatpush1.bf16.msra.mxu0 %v14227_v46  ;;  %8730 = vmatprep.subr.bf16.mxu1 %v14232_v7  ;;  %v14278_v46 = vld [vmem:[#allocation11 + $0x828] ss:$28 sps:$4 sm:$0xff]   ;;  %v14281_v7 = vld [vmem:[#allocation11 + $0x900] ss:$28 sps:$4 sm:$0xff]  }
 0x741   :  { %8616 = vmatprep.subr.bf16.mxu0 %v14235_v20  ;;  %v14286_v20 = vld [vmem:[#allocation11 + $0x7f4] ss:$28 sps:$4 sm:$0xff]  }
 0x743   :  { %8731 = vmatpush2.bf16.msra.mxu1 %v14230_v2  ;;  %v14289_v2 = vld [vmem:[#allocation11 + $0x8cc] ss:$28 sps:$4 sm:$0xff]  }
 0x744   :  { %8617 = vmatpush1.bf16.msra.mxu0 %v14233_v53  ;;  %8732 = vmatprep.subr.bf16.mxu1 %v14238_v12  ;;  %v14284_v53 = vld [vmem:[#allocation11 + $0x7f0] ss:$28 sps:$4 sm:$0xff]   ;;  %v14287_v12 = vld [vmem:[#allocation11 + $0x8c8] ss:$28 sps:$4 sm:$0xff]  }
 0x745   :  { %8618 = vmatprep.subr.bf16.mxu0 %v14241_v21  ;;  %v14292_v21 = vld [vmem:[#allocation11 + $0x7bc] ss:$28 sps:$4 sm:$0xff]  }
 0x747   :  { %8733 = vmatpush2.bf16.msra.mxu1 %v14236_v59  ;;  %v14295_v59 = vld [vmem:[#allocation11 + $0x51c] ss:$28 sps:$4 sm:$0xff]  }
 0x748   :  { %8619 = vmatpush1.bf16.msra.mxu0 %v14239_v25  ;;  %8734 = vmatprep.subr.bf16.mxu1 %v14244_v24  ;;  %v14290_v25 = vld [vmem:[#allocation11 + $0x7b8] ss:$28 sps:$4 sm:$0xff]  }
 0x749   :  { %8620 = vmatprep.subr.bf16.mxu0 %v14247_v9  ;;  %v14293_v24 = vld [vmem:[#allocation11 + $0x518] ss:$28 sps:$4 sm:$0xff]   ;;  %v14298_v9 = vld [vmem:[#allocation11 + $0x784] ss:$28 sps:$4 sm:$0xff]  }
 0x74b   :  { %8735 = vmatpush2.bf16.msra.mxu1 %v14242_v58  ;;  %v14301_v58 = vld [vmem:[#allocation11 + $0x4e4] ss:$28 sps:$4 sm:$0xff]  }
 0x74c   :  { %8621 = vmatpush2.bf16.msra.mxu0 %v14245_v63  ;;  %8736 = vmatprep.subr.bf16.mxu1 %v14250_v17  ;;  %v14296_v63 = vld [vmem:[#allocation11 + $0x780] ss:$28 sps:$4 sm:$0xff]  }
 0x74d   :  { %8622 = vmatprep.subr.bf16.mxu0 %v14253_v22  ;;  %v14299_v17 = vld [vmem:[#allocation11 + $0x4e0] ss:$28 sps:$4 sm:$0xff]   ;;  %v14304_v22 = vld [vmem:[#allocation11 + $0x74c] ss:$28 sps:$4 sm:$0xff]  }
 0x74f   :  { %8737 = vmatpush2.bf16.msra.mxu1 %v14248_v11  ;;  %v14307_v11 = vld [vmem:[#allocation11 + $0x4ac] ss:$28 sps:$4 sm:$0xff]  }
 0x750   :  { %8623 = vmatpush2.bf16.msra.mxu0 %v14251_v50  ;;  %8738 = vmatprep.subr.bf16.mxu1 %v14256_v13  ;;  %v14302_v50 = vld [vmem:[#allocation11 + $0x748] ss:$28 sps:$4 sm:$0xff]  }
 0x751   :  { %8624 = vmatprep.subr.bf16.mxu0 %v14259_v55  ;;  %v14305_v13 = vld [vmem:[#allocation11 + $0x4a8] ss:$28 sps:$4 sm:$0xff]   ;;  %v14310_v55 = vld [vmem:[#allocation11 + $0x714] ss:$28 sps:$4 sm:$0xff]  }
 0x753   :  { %8739 = vmatpush2.bf16.msra.mxu1 %v14254_v42  ;;  %v14313_v42 = vld [vmem:[#allocation11 + $0x474] ss:$28 sps:$4 sm:$0xff]  }
 0x754   :  { %8625 = vmatpush2.bf16.msra.mxu0 %v14257_v49  ;;  %8740 = vmatprep.subr.bf16.mxu1 %v14262_v48  ;;  %v14308_v49 = vld [vmem:[#allocation11 + $0x710] ss:$28 sps:$4 sm:$0xff]  }
 0x755   :  { %8626 = vmatprep.subr.bf16.mxu0 %v14265_v43  ;;  %v14311_v48 = vld [vmem:[#allocation11 + $0x470] ss:$28 sps:$4 sm:$0xff]   ;;  %v14316_v43 = vld [vmem:[#allocation11 + $0xa5c] ss:$28 sps:$4 sm:$0xff]  }
 0x757   :  { %8741 = vmatpush2.bf16.msra.mxu1 %v14260_v57  ;;  %v14319_v57 = vld [vmem:[#allocation11 + $0x43c] ss:$28 sps:$4 sm:$0xff]  }
 0x758   :  { %8627 = vmatpush2.bf16.msra.mxu0 %v14263_v1  ;;  %8816 = vmatprep.subr.bf16.mxu1 %v14268_v5  ;;  %v14314_v1 = vld [vmem:[#allocation11 + $0xa58] ss:$28 sps:$4 sm:$0xff]  }
 0x759   :  { %8628 = vmatprep.subr.bf16.mxu0 %v14271_v15  ;;  %v14317_v5 = vld [vmem:[#allocation11 + $0x438] ss:$28 sps:$4 sm:$0xff]   ;;  %v14322_v15 = vld [vmem:[#allocation11 + $0xa24] ss:$28 sps:$4 sm:$0xff]  }
 0x75a   :  { %8743 = vmatmul.mubr.bf16.vlgmr.msra.gmra.mxu1 %v16680_v61 }
 0x75b   :  { %8752 = vmatprep.mubr.bf16.mxu1 %v16824_v28  ;;  %8817 = vmatpush1.bf16.msra.mxu1 %v14266_v44  ;;  %v14325_v44 = vld [vmem:[#allocation11 + $0x404] ss:$28 sps:$4 sm:$0xff]  }
 0x75c   :  { %8629 = vmatpush2.bf16.msra.mxu0 %v14269_v39  ;;  %8818 = vmatprep.subr.bf16.mxu1 %v14274_v47  ;;  %v14320_v39 = vld [vmem:[#allocation11 + $0xa20] ss:$28 sps:$4 sm:$0xff]  }
 0x75d   :  { %8630 = vmatprep.subr.bf16.mxu0 %v14277_v4  ;;  %v14323_v47 = vld [vmem:[#allocation11 + $0x400] ss:$28 sps:$4 sm:$0xff]   ;;  %v14328_v4 = vld [vmem:[#allocation11 + $0x9ec] ss:$28 sps:$4 sm:$0xff]  }
 0x75f   :  { %8819 = vmatpush1.bf16.msra.mxu1 %v14272_v52  ;;  %v14331_v52 = vld [vmem:[#allocation11 + $0x3cc] ss:$28 sps:$4 sm:$0xff]  }
 0x760   :  { %8631 = vmatpush2.bf16.msra.mxu0 %v14275_v35  ;;  %8820 = vmatprep.subr.bf16.mxu1 %v14280_v30  ;;  %v14326_v35 = vld [vmem:[#allocation11 + $0x9e8] ss:$28 sps:$4 sm:$0xff]  }
 0x761   :  { %8632 = vmatprep.subr.bf16.mxu0 %v14283_v0  ;;  %v14329_v30 = vld [vmem:[#allocation11 + $0x3c8] ss:$28 sps:$4 sm:$0xff]   ;;  %v14334_v0 = vld [vmem:[#allocation11 + $0x9b4] ss:$28 sps:$4 sm:$0xff]  }
 0x762   :  { %8753 = vmatmul.mubr.bf16.gmra.mxu1 %v16701_v26 }
 0x763   :  { %8821 = vmatpush1.bf16.msra.mxu1 %v14278_v46  ;;  %8848 = vmatprep.mubr.bf16.mxu1 %v16905_v32  ;;  %v14337_v46 = vld [vmem:[#allocation11 + $0x394] ss:$28 sps:$4 sm:$0xff]  }
 0x764   :  { %8633 = vmatpush2.bf16.msra.mxu0 %v14281_v7  ;;  %8822 = vmatprep.subr.bf16.mxu1 %v14286_v20  ;;  %v14332_v7 = vld [vmem:[#allocation11 + $0x9b0] ss:$28 sps:$4 sm:$0xff]  }
 0x765   :  { %8634 = vmatprep.subr.bf16.mxu0 %v14289_v2  ;;  %v14335_v20 = vld [vmem:[#allocation11 + $0x390] ss:$28 sps:$4 sm:$0xff]   ;;  %v14340_v2 = vld [vmem:[#allocation11 + $0x97c] ss:$28 sps:$4 sm:$0xff]  }
 0x767   :  { %8823 = vmatpush1.bf16.msra.mxu1 %v14284_v53  ;;  %v14343_v53 = vld [vmem:[#allocation11 + $0x6dc] ss:$28 sps:$4 sm:$0xff]  }
 0x768   :  { %8635 = vmatpush2.bf16.msra.mxu0 %v14287_v12  ;;  %8824 = vmatprep.subr.bf16.mxu1 %v14292_v21  ;;  %v14338_v12 = vld [vmem:[#allocation11 + $0x978] ss:$28 sps:$4 sm:$0xff]  }
 0x769   :  { %8763 = vmatprep.subr.bf16.mxu0 %v14295_v59  ;;  %v14341_v21 = vld [vmem:[#allocation11 + $0x6d8] ss:$28 sps:$4 sm:$0xff]   ;;  %v14346_v59 = vld [vmem:[#allocation11 + $0x944] ss:$28 sps:$4 sm:$0xff]  }
 0x76b   :  { %8825 = vmatpush1.bf16.msra.mxu1 %v14290_v25  ;;  %8637 = vmatmul.mubr.bf16.vlgmr.msra.gmra.mxu0 %v16910_v36  ;;  %v14349_v25 = vld [vmem:[#allocation11 + $0x6a4] ss:$28 sps:$4 sm:$0xff]  }
 0x76c   :  { %8646 = vmatprep.mubr.bf16.mxu0 %v16918_v56  ;;  %8764 = vmatpush1.bf16.msra.mxu0 %v14293_v24  ;;  %v14344_v24 = vld [vmem:[#allocation11 + $0x940] ss:$28 sps:$4 sm:$0xff]  }
 0x76d   :  { %8826 = vmatprep.subr.bf16.mxu1 %v14298_v9  ;;  %8765 = vmatprep.subr.bf16.mxu0 %v14301_v58  ;;  %v14347_v9 = vld [vmem:[#allocation11 + $0x6a0] ss:$28 sps:$4 sm:$0xff]   ;;  %v14352_v58 = vld [vmem:[#allocation11 + $0x90c] ss:$28 sps:$4 sm:$0xff]  }
 0x76f   :  { %8827 = vmatpush1.bf16.msra.mxu1 %v14296_v63  ;;  %v14355_v63 = vld [vmem:[#allocation11 + $0x66c] ss:$28 sps:$4 sm:$0xff]  }
 0x770   :  { %8766 = vmatpush1.bf16.msra.mxu0 %v14299_v17  ;;  %8828 = vmatprep.subr.bf16.mxu1 %v14304_v22  ;;  %v14350_v17 = vld [vmem:[#allocation11 + $0x908] ss:$28 sps:$4 sm:$0xff]  }
 0x771   :  { %8767 = vmatprep.subr.bf16.mxu0 %v14307_v11  ;;  %v14353_v22 = vld [vmem:[#allocation11 + $0x668] ss:$28 sps:$4 sm:$0xff]   ;;  %v14358_v11 = vld [vmem:[#allocation11 + $0x8d4] ss:$28 sps:$4 sm:$0xff]  }
 0x773   :  { %8829 = vmatpush1.bf16.msra.mxu1 %v14302_v50  ;;  %8647 = vmatmul.mubr.bf16.gmra.mxu0 %v16920_v51  ;;  %v14361_v50 = vld [vmem:[#allocation11 + $0x634] ss:$28 sps:$4 sm:$0xff]  }
 0x774   :  { %8768 = vmatpush1.bf16.msra.mxu0 %v14305_v13  ;;  %8795 = vmatprep.mubr.bf16.mxu0 %v16804_v41  ;;  %v14356_v13 = vld [vmem:[#allocation11 + $0x8d0] ss:$28 sps:$4 sm:$0xff]  }
 0x775   :  { %8830 = vmatprep.subr.bf16.mxu1 %v14310_v55  ;;  %8769 = vmatprep.subr.bf16.mxu0 %v14313_v42  ;;  %v14359_v55 = vld [vmem:[#allocation11 + $0x630] ss:$28 sps:$4 sm:$0xff]   ;;  %v14362_v42 = vld [vmem:[#allocation11 + $0xa60] ss:$28 sps:$4 sm:$0xff]  }
 0x777   :  { %8831 = vmatpush1.bf16.msra.mxu1 %v14308_v49  ;;  %v14366_v49 = vld [vmem:[#allocation11 + $0x5fc] ss:$28 sps:$4 sm:$0xff]  }
 0x778   :  { %8770 = vmatpush1.bf16.msra.mxu0 %v14311_v48  ;;  %8832 = vmatprep.subr.bf16.mxu1 %v14316_v43  ;;  %v14363_v48 = vld [vmem:[#allocation11 + $0x8a0] ss:$28 sps:$4 sm:$0xff]   ;;  %v14364_v43 = vld [vmem:[#allocation11 + $0x5f8] ss:$28 sps:$4 sm:$0xff]  }
 0x779   :  { %8771 = vmatprep.subr.bf16.mxu0 %v14319_v57  ;;  %v14367_v57 = vld [vmem:[#allocation11 + $0xa28] ss:$28 sps:$4 sm:$0xff]  }
 0x77b   :  { %8833 = vmatpush2.bf16.msra.mxu1 %v14314_v1  ;;  %v16998_v1 = vpop.f32.mrf.mxu1 }
 0x77c   :  { %8772 = vmatpush1.bf16.msra.mxu0 %v14317_v5  ;;  %8834 = vmatprep.subr.bf16.mxu1 %v14322_v15  ;;  %v14371_v5 = vld [vmem:[#allocation11 + $0x5c4] ss:$28 sps:$4 sm:$0xff]  }
 0x77d   :  { %8773 = vmatprep.subr.bf16.mxu0 %v14325_v44  ;;  %v14368_v44 = vld [vmem:[#allocation11 + $0x868] ss:$28 sps:$4 sm:$0xff]  }
 0x77f   :  { %8835 = vmatpush2.bf16.msra.mxu1 %v14320_v39  ;;  %v14369_v39 = vld [vmem:[#allocation11 + $0x5c0] ss:$28 sps:$4 sm:$0xff]  }
 0x780   :  { %8774 = vmatpush1.bf16.msra.mxu0 %v14323_v47  ;;  %8836 = vmatprep.subr.bf16.mxu1 %v14328_v4  ;;  %v14372_v47 = vld [vmem:[#allocation11 + $0x9f0] ss:$28 sps:$4 sm:$0xff]  }
 0x781   :  { %8775 = vmatprep.subr.bf16.mxu0 %v14331_v52  ;;  %v14376_v4 = vld [vmem:[#allocation11 + $0x58c] ss:$28 sps:$4 sm:$0xff]  }
 0x783   :  { %8837 = vmatpush2.bf16.msra.mxu1 %v14326_v35  ;;  %v14373_v35 = vld [vmem:[#allocation11 + $0x830] ss:$28 sps:$4 sm:$0xff]  }
 0x784   :  { %8776 = vmatpush1.bf16.msra.mxu0 %v14329_v30  ;;  %8838 = vmatprep.subr.bf16.mxu1 %v14334_v0  ;;  %v14374_v30 = vld [vmem:[#allocation11 + $0x588] ss:$28 sps:$4 sm:$0xff]   ;;  %v14377_v0 = vld [vmem:[#allocation11 + $0x9b8] ss:$28 sps:$4 sm:$0xff]  }
 0x785   :  { %8777 = vmatprep.subr.bf16.mxu0 %v14337_v46  ;;  %v14381_v46 = vld [vmem:[#allocation11 + $0x554] ss:$28 sps:$4 sm:$0xff]  }
 0x787   :  { %8839 = vmatpush2.bf16.msra.mxu1 %v14332_v7 }
 0x788   :  { %8778 = vmatpush1.bf16.msra.mxu0 %v14335_v20  ;;  %8840 = vmatprep.subr.bf16.mxu1 %v14340_v2  ;;  %v14378_v20 = vld [vmem:[#allocation11 + $0x7f8] ss:$28 sps:$4 sm:$0xff]   ;;  %v14379_v2 = vld [vmem:[#allocation11 + $0x550] ss:$28 sps:$4 sm:$0xff]  }
 0x789   :  { %8779 = vmatprep.subr.bf16.mxu0 %v14343_v53  ;;  %v14382_v53 = vld [vmem:[#allocation11 + $0x980] ss:$28 sps:$4 sm:$0xff]  }
 0x78a   :  { %v8426_v15 = vpop.f32.mrf.mxu1 }
 0x78b   :  { %8841 = vmatpush2.bf16.msra.mxu1 %v14338_v12  ;;  %v14386_v12 = vld [vmem:[#allocation11 + $0xacc] ss:$28 sps:$4 sm:$0xff]  }
 0x78c   :  { %8780 = vmatpush2.bf16.msra.mxu0 %v14341_v21  ;;  %8842 = vmatprep.subr.bf16.mxu1 %v14346_v59  ;;  %v17002_v52 = vpop.f32.mrf.mxu1  ;;  %v14383_v59 = vld [vmem:[#allocation11 + $0x7c0] ss:$28 sps:$4 sm:$0xff]  }
 0x78d   :  { %8781 = vmatprep.subr.bf16.mxu0 %v14349_v25  ;;  %v14384_v25 = vld [vmem:[#allocation11 + $0xac8] ss:$28 sps:$4 sm:$0xff]  }
 0x78e   :  { %v8430_v7 = vpop.f32.mrf.mxu1 }
 0x78f   :  { %8843 = vmatpush2.bf16.msra.mxu1 %v14344_v24  ;;  %v17006_v24 = vpop.f32.mrf.mxu0 }
 0x790   :  { %8782 = vmatpush2.bf16.msra.mxu0 %v14347_v9  ;;  %8844 = vmatprep.subr.bf16.mxu1 %v14352_v58  ;;  %v8432_v21 = vpop.f32.mrf.mxu1  ;;  %v14387_v9 = vld [vmem:[#allocation11 + $0x948] ss:$28 sps:$4 sm:$0xff]   ;;  %v14393_v58 = vld [vmem:[#allocation11 + $0xa94] ss:$28 sps:$4 sm:$0xff]  }
 0x791   :  { %8783 = vmatprep.subr.bf16.mxu0 %v14355_v63 }
 0x792   :  { %v8436_v63 = vpop.f32.mrf.mxu1 }
 0x793   :  { %8845 = vmatpush2.bf16.msra.mxu1 %v14350_v17  ;;  %v14388_v17 = vld [vmem:[#allocation11 + $0x788] ss:$28 sps:$4 sm:$0xff]  }
 0x794   :  { %8784 = vmatpush2.bf16.msra.mxu0 %v14353_v22  ;;  %8846 = vmatprep.subr.bf16.mxu1 %v14358_v11  ;;  %v8427_v22 = vadd.f32 %v8426_v15, %v16967_v38  ;;  %v14389_v11 = vld [vmem:[#allocation11 + $0x910] ss:$28 sps:$4 sm:$0xff]   ;;  %v14394_v38 = vld [vmem:[#allocation11 + $0x8d8] ss:$28 sps:$4 sm:$0xff]   ;;  %v8327_v15 = vadd.f32 %v16969_v33, %v16976_v14 }
 0x795   :  { %8785 = vmatprep.subr.bf16.mxu0 %v14361_v50  ;;  %v14391_v50 = vld [vmem:[#allocation11 + $0xa90] ss:$28 sps:$4 sm:$0xff]  }
 0x796   :  { %v14398_v33 = vld [vmem:[%s17877_s15 + $0xe4] ss:$16 sps:$4 sm:$0xff]  }
 0x797   :  { %8847 = vmatpush2.bf16.msra.mxu1 %v14356_v13 }
 0x798   :  { %8786 = vmatpush2.bf16.msra.mxu0 %v14359_v55  ;;  %12939 = vmatprep.subr.bf16.mxu1 %v14362_v42  ;;  %v14399_v55 = vld [vmem:[#allocation11 + $0x360] ss:$28 sps:$4 sm:$0xff]   ;;  %v8431_v42 = vadd.f32 %v8430_v7, %v16971_v54  ;;  %v8323_v54 = vadd.f32 %v16965_v27, %v16976_v14  ;;  %v8380_v7 = vadd.f32 %v16963_v40, %v8327_v15 }
 0x799   :  { %8787 = vmatprep.subr.bf16.mxu0 %v14366_v49  ;;  %v14403_v40 = vld [vmem:[%s17877_s15 + $0xc4] ss:$16 sps:$4 sm:$0xff]   ;;  %v14416_v15 = vld [vmem:[%s17877_s15 + $0x60] ss:$16 sps:$4 sm:$0xff]  }
 0x79a   :  { %8849 = vmatmul.mubr.bf16.vlgmr.msra.gmra.mxu1 %v16910_v36 }
 0x79b   :  { %8858 = vmatprep.mubr.bf16.mxu1 %v16918_v56  ;;  %12940 = vmatpush3.bf16.msra.mxu1 %v14363_v48  ;;  %v17012_v48 = vpop.f32.mrf.mxu1 }
 0x79c   :  { %8788 = vmatpush2.bf16.msra.mxu0 %v14364_v43  ;;  %12941 = vmatprep.subr.bf16.mxu1 %v14367_v57  ;;  %v14390_v57 = vld [vmem:[#allocation11 + $0x750] ss:$28 sps:$4 sm:$0xff]  }
 0x79d   :  { %8789 = vmatprep.subr.bf16.mxu0 %v14371_v5 }
 0x79f   :  { %12942 = vmatpush3.bf16.msra.mxu1 %v14368_v44 }
 0x7a0   :  { %8790 = vmatpush2.bf16.msra.mxu0 %v14369_v39  ;;  %12943 = vmatprep.subr.bf16.mxu1 %v14372_v47 }
 0x7a1   :  { %8791 = vmatprep.subr.bf16.mxu0 %v14376_v4  ;;  %v8440_v4 = vpop.f32.mrf.mxu1 }
 0x7a2   :  { %8859 = vmatmul.mubr.bf16.gmra.mxu1 %v16920_v51 }
 0x7a3   :  { %12944 = vmatpush3.bf16.msra.mxu1 %v14373_v35  ;;  %9052 = vmatprep.mubr.bf16.mxu1 %v16905_v32 }
 0x7a4   :  { %8792 = vmatpush2.bf16.msra.mxu0 %v14374_v30  ;;  %12945 = vmatprep.subr.bf16.mxu1 %v14377_v0  ;;  %v14395_v30 = vld [vmem:[#allocation11 + $0x718] ss:$28 sps:$4 sm:$0xff]   ;;  %v8437_v0 = vadd.f32 %v8436_v63, %v16980_v45 }
 0x7a5   :  { %8793 = vmatprep.subr.bf16.mxu0 %v14381_v46 }
 0x7a7   :  { %12946 = vmatpush3.bf16.msra.mxu1 %v14378_v20  ;;  %v8441_v20 = vadd.f32 %v8440_v4, %v16984_v29  ;;  %v14400_v29 = vld [vmem:[#allocation11 + $0x1a0] ss:$28 sps:$4 sm:$0xff]   ;;  %v14425_v4 = vld [vmem:[#allocation11 + $0x88] ss:$28 sps:$4 sm:$0xff]  }
 0x7a8   :  { %8794 = vmatpush2.bf16.msra.mxu0 %v14379_v2  ;;  %12947 = vmatprep.subr.bf16.mxu1 %v14382_v53  ;;  %v8376_v53 = vadd.f32 %v16954_v19, %v8323_v54  ;;  %v14404_v19 = vld [vmem:[#allocation11 + $0x328] ss:$28 sps:$4 sm:$0xff]   ;;  %v14428_v54 = vld [vmem:[%s17877_s15 + $0x24] ss:$16 sps:$4 sm:$0xff]  }
 0x7a9   :  { %8881 = vmatprep.subr.bf16.mxu0 %v14386_v12  ;;  %v8433_v12 = vadd.f32 %v8432_v21, %v8380_v7  ;;  %v14434_v7 = vld [vmem:[#allocation11 + $0x1d8] ss:$28 sps:$4 sm:$0xff]  }
 0x7ab   :  { %12948 = vmatpush3.bf16.msra.mxu1 %v14383_v59  ;;  %8796 = vmatmul.mubr.bf16.vlgmr.msra.gmra.mxu0 %v16806_v60  ;;  %v8479_v32 = vpop.f32.mrf.mxu0  ;;  %v14396_v59 = vld [vmem:[%s17877_s15 + $0xe0] ss:$16 sps:$4 sm:$0xff]  }
 0x7ac   :  { %8805 = vmatprep.mubr.bf16.mxu0 %v16813_v16  ;;  %8882 = vmatpush1.bf16.msra.mxu0 %v14384_v25  ;;  %v8480_v49 = vadd.f32 %v8479_v32, %v8427_v22 }
 0x7ad   :  { %12949 = vmatprep.subr.bf16.mxu1 %v14387_v9  ;;  %v8481_v13 = vpop.f32.mrf.mxu0  ;;  %8883 = vmatprep.subr.bf16.mxu0 %v14393_v58  ;;  %v8429_v9 = vadd.f32 %v17002_v52, %v8376_v53  ;;  %v14408_v52 = vld [vmem:[%s17877_s15 + $0xa4] ss:$16 sps:$4 sm:$0xff]   ;;  %v14435_v53 = vld [vmem:[#allocation11 + $0x18] ss:$28 sps:$4 sm:$0xff]  }
 0x7ae   :  { %v9118_v39 = vmax.f32 %v8480_v49, 0.0  ;;  %v14410_v49 = vld [vmem:[#allocation11 + $0x130] ss:$28 sps:$4 sm:$0xff]  }
 0x7af   :  { %12950 = vmatpush3.bf16.msra.mxu1 %v14388_v17  ;;  %v8483_v43 = vpop.f32.mrf.mxu0  ;;  %v8482_v21 = vadd.f32 %v8481_v13, %v8429_v9  ;;  %v14401_v17 = vld [vmem:[%s17877_s15 + $0xc0] ss:$16 sps:$4 sm:$0xff]  }
 0x7b0   :  { %v8484_v5 = vadd.f32 %v8483_v43, %v8431_v42  ;;  %12951 = vmatprep.subr.bf16.mxu1 %v14389_v11  ;;  %8884 = vmatpush1.bf16.msra.mxu0 %v14391_v50  ;;  %v14405_v11 = vld [vmem:[#allocation11 + $0x168] ss:$28 sps:$4 sm:$0xff]   ;;  %v14406_v13 = vld [vmem:[%s17877_s15 + $0xa0] ss:$16 sps:$4 sm:$0xff]   ;;  %v14414_v43 = vld [vmem:[#allocation11 + $0x2b8] ss:$28 sps:$4 sm:$0xff]  }
 0x7b1   :  { %v8485_v44 = vpop.f32.mrf.mxu0  ;;  %12883 = vmatprep.subr.bf16.mxu0 %v14399_v55  ;;  %v9119_v50 = vmax.f32 %v8482_v21, 0.0  ;;  %v14413_v55 = vld [vmem:[%s17877_s15 + $0x84] ss:$16 sps:$4 sm:$0xff]   ;;  %v14441_v9 = vld [vmem:[%s17877_s15 + $0x1c0] ss:$16 sps:$4 sm:$0xff]  }
 0x7b2   :  { %v9125_v47 = vmax.f32 %v8484_v5, 0.0  ;;  %v8486_v58 = vadd.f32 %v8485_v44, %v8433_v12  ;;  %v14418_v5 = vld [vmem:[%s17877_s15 + $0x64] ss:$16 sps:$4 sm:$0xff]   ;;  %v14454_v21 = vld [vmem:[#allocation11 + $0x638] ss:$28 sps:$4 sm:$0xff]  }
 0x7b3   :  { %12952 = vmatpush3.bf16.msra.mxu1 %v14390_v57  ;;  %8806 = vmatmul.mubr.bf16.gmra.mxu0 %v16815_v18  ;;  %v8489_v35 = vpop.f32.mrf.mxu0  ;;  %v14411_v57 = vld [vmem:[%s17877_s15 + $0x80] ss:$16 sps:$4 sm:$0xff]   ;;  %v14423_v44 = vld [vmem:[%s17877_s15 + $0x44] ss:$16 sps:$4 sm:$0xff]  }
 0x7b4   :  { %v17020_v46 = vpack.c.bf16 %v9125_v47, %v9118_v39  ;;  %12953 = vmatprep.subr.bf16.mxu1 %v14394_v38  ;;  %8901 = vmatprep.mubr.bf16.mxu0 %v17907_v23  ;;  %v8490_v2 = vadd.f32 %v8489_v35, %v8437_v0  ;;  %v14419_v38 = vld [vmem:[#allocation11 + $0x280] ss:$28 sps:$4 sm:$0xff]   ;;  %v14424_v47 = vld [vmem:[#allocation11 + $0x248] ss:$28 sps:$4 sm:$0xff]   ;;  %v14429_v35 = vld [vmem:[#allocation11 + $0x210] ss:$28 sps:$4 sm:$0xff]  }
 0x7b5   :  { %v17027_v27 = vpop.f32.mrf.mxu0  ;;  %v14420_v39 = vld [vmem:[#allocation11 + $0xc0] ss:$28 sps:$4 sm:$0xff]  }
 0x7b6   :  { %v9132_v63 = vmax.f32 %v8490_v2, 0.0  ;;  %v14433_v0 = vld [vmem:[%s17877_s15 + $0x4] ss:$16 sps:$4 sm:$0xff]  }
 0x7b7   :  { %12954 = vmatpush3.bf16.msra.mxu1 %v14395_v30  ;;  %v8493_v45 = vpop.f32.mrf.mxu0  ;;  %v14426_v30 = vld [vmem:[%s17877_s15 + $0x20] ss:$16 sps:$4 sm:$0xff]   ;;  %v14438_v2 = vld [vmem:[%s17877_s15 + $0x1e4] ss:$16 sps:$4 sm:$0xff]  }
 0x7b8   :  { %v8494_v25 = vadd.f32 %v8493_v45, %v8441_v20  ;;  %10388 = vmatprep.subr.bf16.mxu1 %v14398_v33  ;;  %v14430_v33 = vld [vmem:[#allocation11 + $0x50] ss:$28 sps:$4 sm:$0xff]   ;;  %v14439_v12 = vld [vmem:[#allocation11 + $0x6e0] ss:$28 sps:$4 sm:$0xff]  }
 0x7b9   :  { %v14431_v20 = vld [vmem:[%s17877_s15] ss:$16 sps:$4 sm:$0xff]  }
 0x7ba   :  { %v9139_v32 = vmax.f32 %v8494_v25, 0.0  ;;  %9053 = vmatmul.mubr.bf16.vlgmr.msra.gmra.mxu1 %v16910_v36  ;;  %v9126_v36 = vmax.f32 %v8486_v58, 0.0  ;;  %v14436_v45 = vld [vmem:[%s17877_s15 + $0x1e0] ss:$16 sps:$4 sm:$0xff]   ;;  %v14448_v58 = vld [vmem:[%s17877_s15 + $0x1a4] ss:$16 sps:$4 sm:$0xff]  }
 0x7bb   :  { %9060 = vmatprep.mubr.bf16.mxu1 %v16918_v56  ;;  %10389 = vmatpush1.bf16.msra.mxu1 %v14396_v59  ;;  %v14409_v56 = vld [vmem:[#allocation11 + $0x2f0] ss:$28 sps:$4 sm:$0xff]   ;;  %v14440_v25 = vld [vmem:[#allocation11 + $0x520] ss:$28 sps:$4 sm:$0xff]  }
 0x7bc   :  { %v17043_v22 = vpack.c.bf16 %v9139_v32, %v9132_v63  ;;  %12491 = vmatmul.mubr.msk.bf16.vlgmr.msra.gmra.mxu0 %vm5162_vm3, %v16940_v62  ;;  %10390 = vmatprep.subr.bf16.mxu1 %v14403_v40  ;;  %v17057_v42 = vpack.c.bf16 %v9126_v36, %v9119_v50  ;;  %v14443_v59 = vld [vmem:[%s17877_s15 + $0x1c4] ss:$16 sps:$4 sm:$0xff]   ;;  %v14444_v40 = vld [vmem:[#allocation11 + $0x6a8] ss:$28 sps:$4 sm:$0xff]   ;;  %v14446_v32 = vld [vmem:[%s17877_s15 + $0x1a0] ss:$16 sps:$4 sm:$0xff]  }
 0x7bd   :  { %12884 = vmatpush3.bf16.msra.mxu0 %v14400_v29  ;;  %8911 = vmatprep.mubr.bf16.mxu0 %v17907_v23  ;;  %v14445_v29 = vld [vmem:[#allocation11 + $0x4e8] ss:$28 sps:$4 sm:$0xff]   ;;  %v14449_v63 = vld [vmem:[#allocation11 + $0x670] ss:$28 sps:$4 sm:$0xff]   ;;  %v14459_v36 = vld [vmem:[#allocation11 + $0x600] ss:$28 sps:$4 sm:$0xff]  }
 0x7be   :  { %12885 = vmatprep.subr.bf16.mxu0 %v14404_v19  ;;  %v14450_v19 = vld [vmem:[#allocation11 + $0x4b0] ss:$28 sps:$4 sm:$0xff]   ;;  %v14460_v50 = vld [vmem:[#allocation11 + $0x440] ss:$28 sps:$4 sm:$0xff]  }
 0x7bf   :  { %10391 = vmatpush1.bf16.msra.mxu1 %v14401_v17  ;;  %v14458_v17 = vld [vmem:[%s17877_s15 + $0x164] ss:$16 sps:$4 sm:$0xff]  }
 0x7c0   :  { %10392 = vmatprep.subr.bf16.mxu1 %v14408_v52  ;;  %v14455_v52 = vld [vmem:[#allocation11 + $0x478] ss:$28 sps:$4 sm:$0xff]  }
 0x7c1   :  { %12886 = vmatpush3.bf16.msra.mxu0 %v14405_v11  ;;  %v14456_v11 = vld [vmem:[%s17877_s15 + $0x160] ss:$16 sps:$4 sm:$0xff]  }
 0x7c2   :  { %9061 = vmatmul.mubr.bf16.gmra.mxu1 %v16920_v51  ;;  %12887 = vmatprep.subr.bf16.mxu0 %v14409_v56  ;;  %v14415_v51 = vld [vmem:[#allocation11 + $0xf8] ss:$28 sps:$4 sm:$0xff]   ;;  %v8337_v56 = vadd.f32 %v16998_v1, %v16976_v14  ;;  %v8495_v14 = vpop.f32.mrf.mxu0  ;;  %v14469_v1 = vld [vmem:[#allocation11 + $0x590] ss:$28 sps:$4 sm:$0xff]  }
 0x7c3   :  { %10393 = vmatpush1.bf16.msra.mxu1 %v14406_v13  ;;  %10420 = vmatprep.mubr.bf16.mxu1 %v17057_v42  ;;  %v14461_v13 = vld [vmem:[%s17877_s15 + $0x140] ss:$16 sps:$4 sm:$0xff]  }
 0x7c4   :  { %12492 = vmatmul.mubr.msk.bf16.gmra.mxu0 %vm5162_vm3, %v16945_v34  ;;  %10394 = vmatprep.subr.bf16.mxu1 %v14413_v55  ;;  %v8442_v55 = vpop.f32.mrf.mxu1 }
 0x7c5   :  { %12888 = vmatpush3.bf16.msra.mxu0 %v14410_v49  ;;  %8954 = vmatprep.mubr.bf16.mxu0 %v16776_v31  ;;  %v14421_v31 = vld [vmem:[%s17877_s15 + $0x40] ss:$16 sps:$4 sm:$0xff]   ;;  %v14468_v49 = vld [vmem:[%s17877_s15 + $0x124] ss:$16 sps:$4 sm:$0xff]  }
 0x7c6   :  { %12889 = vmatprep.subr.bf16.mxu0 %v14414_v43  ;;  %v8390_v43 = vadd.f32 %v17006_v24, %v8337_v56  ;;  %v14487_v56 = vld [vmem:[%s17877_s15 + $0x280] ss:$16 sps:$4 sm:$0xff]  }
 0x7c7   :  { %10395 = vmatpush1.bf16.msra.mxu1 %v14411_v57  ;;  %v14465_v57 = vld [vmem:[#allocation11 + $0x408] ss:$28 sps:$4 sm:$0xff]  }
 0x7c8   :  { %10396 = vmatprep.subr.bf16.mxu1 %v14418_v5  ;;  %v8443_v5 = vadd.f32 %v8442_v55, %v8390_v43  ;;  %v14555_v55 = vld [vmem:[%s17877_s15 + $0x5c4] ss:$16 sps:$4 sm:$0xff]   ;;  %v14490_v43 = vld [vmem:[%s17877_s15 + $0x260] ss:$16 sps:$4 sm:$0xff]  }
 0x7c9   :  { %12890 = vmatpush3.bf16.msra.mxu0 %v14415_v51  ;;  %v14466_v51 = vld [vmem:[%s17877_s15 + $0x120] ss:$16 sps:$4 sm:$0xff]  }
 0x7ca   :  { %12891 = vmatprep.subr.bf16.mxu0 %v14419_v38  ;;  %v14473_v38 = vld [vmem:[%s17877_s15 + $0x104] ss:$16 sps:$4 sm:$0xff]   ;;  %v8496_v24 = vadd.f32 %v8495_v14, %v8443_v5 }
 0x7cb   :  { %10397 = vmatpush1.bf16.msra.mxu1 %v14416_v15  ;;  %v8439_v15 = vadd.f32 %v17012_v48, %v16982_v6  ;;  %v14475_v6 = vld [vmem:[#allocation11 + $0x398] ss:$28 sps:$4 sm:$0xff]   ;;  %v14476_v48 = vld [vmem:[#allocation11 + $0xad0] ss:$28 sps:$4 sm:$0xff]  }
 0x7cc   :  { %10398 = vmatprep.subr.bf16.mxu1 %v14423_v44  ;;  %v14470_v44 = vld [vmem:[#allocation11 + $0x3d0] ss:$28 sps:$4 sm:$0xff]  }
 0x7cd   :  { %12892 = vmatpush3.bf16.msra.mxu0 %v14420_v39  ;;  %v14474_v39 = vld [vmem:[#allocation11 + $0x558] ss:$28 sps:$4 sm:$0xff]   ;;  %v14495_v14 = vld [vmem:[%s17877_s15 + $0x244] ss:$16 sps:$4 sm:$0xff]  }
 0x7ce   :  { %12893 = vmatprep.subr.bf16.mxu0 %v14424_v47  ;;  %v8492_v47 = vadd.f32 %v17027_v27, %v8439_v15  ;;  %v14526_v27 = vld [vmem:[%s17877_s15 + $0x4e0] ss:$16 sps:$4 sm:$0xff]   ;;  %v14558_v5 = vld [vmem:[%s17877_s15 + $0x5a4] ss:$16 sps:$4 sm:$0xff]  }
 0x7cf   :  { %10399 = vmatpush1.bf16.msra.mxu1 %v14421_v31  ;;  %v14471_v31 = vld [vmem:[%s17877_s15 + $0x100] ss:$16 sps:$4 sm:$0xff]  }
 0x7d0   :  { %10400 = vmatprep.subr.bf16.mxu1 %v14428_v54  ;;  %v14528_v54 = vld [vmem:[%s17877_s15 + $0x4e4] ss:$16 sps:$4 sm:$0xff]  }
 0x7d1   :  { %12894 = vmatpush3.bf16.msra.mxu0 %v14425_v4  ;;  %v9140_v4 = vmax.f32 %v8496_v24, 0.0  ;;  %v14498_v24 = vld [vmem:[%s17877_s15 + $0x224] ss:$16 sps:$4 sm:$0xff]  }
 0x7d2   :  { %12895 = vmatprep.subr.bf16.mxu0 %v14429_v35  ;;  %v9133_v35 = vmax.f32 %v8492_v47, 0.0 }
 0x7d3   :  { %10401 = vmatpush1.bf16.msra.mxu1 %v14426_v30  ;;  %v14531_v30 = vld [vmem:[%s17877_s15 + $0x4c4] ss:$16 sps:$4 sm:$0xff]  }
 0x7d4   :  { %10402 = vmatprep.subr.bf16.mxu1 %v14433_v0  ;;  %v17158_v0 = vpack.c.bf16 %v9140_v4, %v9133_v35  ;;  %v14501_v4 = vld [vmem:[%s17877_s15 + $0x204] ss:$16 sps:$4 sm:$0xff]  }
 0x7d5   :  { %12896 = vmatpush3.bf16.msra.mxu0 %v14430_v33  ;;  %v14477_v33 = vld [vmem:[#allocation11 + $0xa98] ss:$28 sps:$4 sm:$0xff]  }
 0x7d6   :  { %12897 = vmatprep.subr.bf16.mxu0 %v14434_v7  ;;  %v14529_v7 = vld [vmem:[%s17877_s15 + $0x4c0] ss:$16 sps:$4 sm:$0xff]  }
 0x7d7   :  { %10403 = vmatpush1.bf16.msra.mxu1 %v14431_v20  ;;  %v14534_v20 = vld [vmem:[%s17877_s15 + $0x4a4] ss:$16 sps:$4 sm:$0xff]  }
 0x7d8   :  { %10404 = vmatprep.subr.bf16.mxu1 %v14438_v2  ;;  %v14480_v2 = vld [vmem:[%s17877_s15 + $0x2e4] ss:$16 sps:$4 sm:$0xff]  }
 0x7d9   :  { %12898 = vmatpush3.bf16.msra.mxu0 %v14435_v53  ;;  %v14532_v53 = vld [vmem:[%s17877_s15 + $0x4a0] ss:$16 sps:$4 sm:$0xff]  }
 0x7da   :  { %12911 = vmatprep.subr.bf16.mxu0 %v14439_v12  ;;  %v14540_v12 = vld [vmem:[%s17877_s15 + $0x464] ss:$16 sps:$4 sm:$0xff]  }
 0x7db   :  { %10405 = vmatpush2.bf16.msra.mxu1 %v14436_v45  ;;  %v17189_v45 = vpop.f32.mrf.mxu1 }
 0x7dc   :  { %8955 = vmatmul.mubr.bf16.vlgmr.msra.gmra.mxu0 %v16680_v61  ;;  %10406 = vmatprep.subr.bf16.mxu1 %v14443_v59  ;;  %v14453_v61 = vld [vmem:[%s17877_s15 + $0x184] ss:$16 sps:$4 sm:$0xff]   ;;  %v14538_v59 = vld [vmem:[%s17877_s15 + $0x460] ss:$16 sps:$4 sm:$0xff]  }
 0x7dd   :  { %8962 = vmatprep.mubr.bf16.mxu0 %v16824_v28  ;;  %12912 = vmatpush3.bf16.msra.mxu0 %v14440_v25  ;;  %v14451_v28 = vld [vmem:[%s17877_s15 + $0x180] ss:$16 sps:$4 sm:$0xff]  }
 0x7de   :  { %12913 = vmatprep.subr.bf16.mxu0 %v14444_v40  ;;  %v14478_v25 = vld [vmem:[%s17877_s15 + $0x2e0] ss:$16 sps:$4 sm:$0xff]   ;;  %v17200_v40 = vpop.f32.mrf.mxu1 }
 0x7df   :  { %10407 = vmatpush2.bf16.msra.mxu1 %v14441_v9  ;;  %v14541_v9 = vld [vmem:[%s17877_s15 + $0x440] ss:$16 sps:$4 sm:$0xff]  }
 0x7e0   :  { %10408 = vmatprep.subr.bf16.mxu1 %v14448_v58  ;;  %v14546_v58 = vld [vmem:[%s17877_s15 + $0x424] ss:$16 sps:$4 sm:$0xff]  }
 0x7e1   :  { %12914 = vmatpush3.bf16.msra.mxu0 %v14445_v29 }
 0x7e2   :  { %12915 = vmatprep.subr.bf16.mxu0 %v14449_v63  ;;  %v14481_v63 = vld [vmem:[%s17877_s15 + $0x2c0] ss:$16 sps:$4 sm:$0xff]  }
 0x7e3   :  { %10409 = vmatpush2.bf16.msra.mxu1 %v14446_v32  ;;  %v17218_v32 = vpop.f32.mrf.mxu1 }
 0x7e4   :  { %8963 = vmatmul.mubr.bf16.gmra.mxu0 %v16701_v26  ;;  %10410 = vmatprep.subr.bf16.mxu1 %v14453_v61  ;;  %v14463_v26 = vld [vmem:[%s17877_s15 + $0x144] ss:$16 sps:$4 sm:$0xff]  }
 0x7e5   :  { %12916 = vmatpush3.bf16.msra.mxu0 %v14450_v19  ;;  %9003 = vmatprep.mubr.bf16.mxu0 %v16804_v41  ;;  %v14464_v41 = vld [vmem:[#allocation11 + $0x5c8] ss:$28 sps:$4 sm:$0xff]   ;;  %v14486_v61 = vld [vmem:[%s17877_s15 + $0x2a4] ss:$16 sps:$4 sm:$0xff]  }
 0x7e6   :  { %12917 = vmatprep.subr.bf16.mxu0 %v14454_v21  ;;  %v14549_v19 = vld [vmem:[%s17877_s15 + $0x404] ss:$16 sps:$4 sm:$0xff]  }
 0x7e7   :  { %10411 = vmatpush2.bf16.msra.mxu1 %v14451_v28  ;;  %v14484_v28 = vld [vmem:[%s17877_s15 + $0x2a0] ss:$16 sps:$4 sm:$0xff]  }
 0x7e8   :  { %10412 = vmatprep.subr.bf16.mxu1 %v14458_v17  ;;  %v17232_v17 = vpop.f32.mrf.mxu1 }
 0x7e9   :  { %12918 = vmatpush3.bf16.msra.mxu0 %v14455_v52  ;;  %v14489_v52 = vld [vmem:[%s17877_s15 + $0x284] ss:$16 sps:$4 sm:$0xff]  }
 0x7ea   :  { %12919 = vmatprep.subr.bf16.mxu0 %v14459_v36  ;;  %v14547_v36 = vld [vmem:[%s17877_s15 + $0x400] ss:$16 sps:$4 sm:$0xff]  }
 0x7eb   :  { %10413 = vmatpush2.bf16.msra.mxu1 %v14456_v11  ;;  %v17213_v29 = vpop.f32.mrf.mxu0  ;;  %v14552_v11 = vld [vmem:[%s17877_s15 + $0x5e4] ss:$16 sps:$4 sm:$0xff]  }
 0x7ec   :  { %10414 = vmatprep.subr.bf16.mxu1 %v14463_v26 }
 0x7ed   :  { %12920 = vmatpush3.bf16.msra.mxu0 %v14460_v50  ;;  %v8534_v21 = vpop.f32.mrf.mxu0  ;;  %v17248_v50 = vpop.f32.mrf.mxu1 }
 0x7ee   :  { %12921 = vmatprep.subr.bf16.mxu0 %v14464_v41  ;;  %v14492_v41 = vld [vmem:[%s17877_s15 + $0x264] ss:$16 sps:$4 sm:$0xff]  }
 0x7ef   :  { %10415 = vmatpush2.bf16.msra.mxu1 %v14461_v13  ;;  %v17243_v26 = vpop.f32.mrf.mxu0  ;;  %v14550_v13 = vld [vmem:[%s17877_s15 + $0x5e0] ss:$16 sps:$4 sm:$0xff]  }
 0x7f0   :  { %10416 = vmatprep.subr.bf16.mxu1 %v14468_v49 }
 0x7f1   :  { %12922 = vmatpush3.bf16.msra.mxu0 %v14465_v57  ;;  %v8538_v49 = vpop.f32.mrf.mxu0  ;;  %v17262_v57 = vpop.f32.mrf.mxu1 }
 0x7f2   :  { %12923 = vmatprep.subr.bf16.mxu0 %v14469_v1  ;;  %v14553_v1 = vld [vmem:[%s17877_s15 + $0x5c0] ss:$16 sps:$4 sm:$0xff]  }
 0x7f3   :  { %10417 = vmatpush2.bf16.msra.mxu1 %v14466_v51  ;;  %v17273_v51 = vpop.f32.mrf.mxu0  ;;  %v17278_v15 = vpop.f32.mrf.mxu1 }
 0x7f4   :  { %10418 = vmatprep.subr.bf16.mxu1 %v14473_v38  ;;  %v14493_v38 = vld [vmem:[%s17877_s15 + $0x240] ss:$16 sps:$4 sm:$0xff]  }
 0x7f5   :  { %12924 = vmatpush3.bf16.msra.mxu0 %v14470_v44  ;;  %v14556_v44 = vld [vmem:[%s17877_s15 + $0x5a0] ss:$16 sps:$4 sm:$0xff]   ;;  %v17289_v47 = vpop.f32.mrf.mxu0 }
 0x7f6   :  { %12925 = vmatprep.subr.bf16.mxu0 %v14474_v39  ;;  %v14561_v39 = vld [vmem:[%s17877_s15 + $0x584] ss:$16 sps:$4 sm:$0xff]  }
 0x7f7   :  { %10419 = vmatpush2.bf16.msra.mxu1 %v14471_v31  ;;  %v14496_v31 = vld [vmem:[%s17877_s15 + $0x220] ss:$16 sps:$4 sm:$0xff]  }
 0x7f8   :  { %10494 = vmatprep.subr.bf16.mxu1 %v14528_v54  ;;  %v17294_v54 = vpop.f32.mrf.mxu1 }
 0x7f9   :  { %12926 = vmatpush3.bf16.msra.mxu0 %v14475_v6  ;;  %v14559_v6 = vld [vmem:[%s17877_s15 + $0x580] ss:$16 sps:$4 sm:$0xff]  }
 0x7fa   :  { %10421 = vmatmul.mubr.bf16.vlgmr.msra.gmra.mxu1 %v17020_v46  ;;  %12979 = vmatprep.subr.bf16.mxu0 %v14476_v48 }
 0x7fb   :  { %10430 = vmatprep.mubr.bf16.mxu1 %v17158_v0  ;;  %10495 = vmatpush1.bf16.msra.mxu1 %v14526_v27  ;;  %v14564_v27 = vld [vmem:[%s17877_s15 + $0x564] ss:$16 sps:$4 sm:$0xff]  }
 0x7fc   :  { %9004 = vmatmul.mubr.bf16.vlgmr.msra.gmra.mxu0 %v16806_v60  ;;  %10496 = vmatprep.subr.bf16.mxu1 %v14531_v30  ;;  %v14537_v60 = vld [vmem:[%s17877_s15 + $0x484] ss:$16 sps:$4 sm:$0xff]   ;;  %v17314_v30 = vpop.f32.mrf.mxu0 }
 0x7fd   :  { %9011 = vmatprep.mubr.bf16.mxu0 %v16813_v16  ;;  %12980 = vmatpush3.bf16.msra.mxu0 %v14476_v48  ;;  %v14535_v16 = vld [vmem:[%s17877_s15 + $0x480] ss:$16 sps:$4 sm:$0xff]  }
 0x7fe   :  { %12981 = vmatprep.subr.bf16.mxu0 %v14477_v33  ;;  %v17305_v48 = vld [vmem:[%s17876_s14] sm:$0x7f] }
 0x7ff   :  { %10497 = vmatpush1.bf16.msra.mxu1 %v14529_v7  ;;  %v17309_v35 = vrot.slane %v17305_v48, %v15439_v37  ;;  %v17319_v7 = vpop.f32.mrf.mxu1 }
 0x800   :  { %10498 = vmatprep.subr.bf16.mxu1 %v14534_v20  ;;  %v14504_v20 = vld [vmem:[%s17877_s15 + $0x3e4] ss:$16 sps:$4 sm:$0xff]  }
 0x801   :  { %12982 = vmatpush3.bf16.msra.mxu0 %v14477_v33  ;;  %v14499_v33 = vld [vmem:[%s17877_s15 + $0x200] ss:$16 sps:$4 sm:$0xff]  }
 0x802   :  { %10431 = vmatmul.mubr.bf16.gmra.mxu1 %v17043_v22  ;;  %10441 = vmatprep.subr.bf16.mxu0 %v14480_v2  ;;  %v14562_v2 = vld [vmem:[%s17877_s15 + $0x560] ss:$16 sps:$4 sm:$0xff]  }
 0x803   :  { %10499 = vmatpush1.bf16.msra.mxu1 %v14532_v53  ;;  %v8535_v53 = vadd.f32 %v8534_v21, %v17309_v35 }
 0x804   :  { %9012 = vmatmul.mubr.bf16.gmra.mxu0 %v16815_v18  ;;  %10500 = vmatprep.subr.bf16.mxu1 %v14537_v60  ;;  %v14543_v18 = vld [vmem:[%s17877_s15 + $0x444] ss:$16 sps:$4 sm:$0xff]  }
 0x805   :  { %12983 = vmatprep.mubr.msk.bf16.mxu0 %vm5162_vm3, %v16940_v62  ;;  %v14483_v62 = vld [vmem:[%s17877_s15 + $0x2c4] ss:$16 sps:$4 sm:$0xff]  }
 0x806   :  { %v14567_v60 = vld [vmem:[%s17877_s15 + $0x544] ss:$16 sps:$4 sm:$0xff]  }
 0x807   :  { %10501 = vmatpush1.bf16.msra.mxu1 %v14535_v16  ;;  %v8548_v16 = vpop.f32.mrf.mxu0 }
 0x808   :  { %10502 = vmatprep.subr.bf16.mxu1 %v14540_v12  ;;  %v14502_v12 = vld [vmem:[%s17877_s15 + $0x3e0] ss:$16 sps:$4 sm:$0xff]  }
 0x80b   :  { %10503 = vmatpush1.bf16.msra.mxu1 %v14538_v59  ;;  %v8693_v59 = vpop.f32.mrf.mxu1 }
 0x80c   :  { %12984 = vmatmul.mubr.msk.bf16.vlgmr.msra.gmra.mxu0 %vm5162_vm3, %v16945_v34  ;;  %10504 = vmatprep.subr.bf16.mxu1 %v14543_v18  ;;  %v14544_v34 = vld [vmem:[%s17877_s15 + $0x420] ss:$16 sps:$4 sm:$0xff]   ;;  %v14507_v18 = vld [vmem:[%s17877_s15 + $0x3c4] ss:$16 sps:$4 sm:$0xff]  }
 0x80d   :  { %10442 = vmatpush1.bf16.msra.mxu0 %v14478_v25 }
 0x80e   :  { %10443 = vmatprep.subr.bf16.mxu0 %v14483_v62  ;;  %v14565_v62 = vld [vmem:[%s17877_s15 + $0x540] ss:$16 sps:$4 sm:$0xff]  }
 0x80f   :  { %10505 = vmatpush1.bf16.msra.mxu1 %v14541_v9  ;;  %v8539_v9 = vadd.f32 %v8538_v49, %v17309_v35 }
 0x810   :  { %10506 = vmatprep.subr.bf16.mxu1 %v14546_v58  ;;  %v8588_v58 = vadd.f32 %v17200_v40, %v8535_v53  ;;  %v8549_v53 = vadd.f32 %v8548_v16, %v17309_v35 }
 0x811   :  { %10444 = vmatpush1.bf16.msra.mxu0 %v14481_v63  ;;  %v14570_v63 = vld [vmem:[%s17877_s15 + $0x524] ss:$16 sps:$4 sm:$0xff]  }
 0x812   :  { %10445 = vmatprep.subr.bf16.mxu0 %v14486_v61 }
 0x813   :  { %10507 = vmatpush1.bf16.msra.mxu1 %v14544_v34  ;;  %v14505_v34 = vld [vmem:[%s17877_s15 + $0x3c0] ss:$16 sps:$4 sm:$0xff]  }
 0x814   :  { %10508 = vmatprep.subr.bf16.mxu1 %v14549_v19  ;;  %v17350_v19 = vpop.f32.mrf.mxu1 }
 0x815   :  { %10446 = vmatpush1.bf16.msra.mxu0 %v14484_v28  ;;  %v14510_v28 = vld [vmem:[%s17877_s15 + $0x3a4] ss:$16 sps:$4 sm:$0xff]  }
 0x816   :  { %10447 = vmatprep.subr.bf16.mxu0 %v14489_v52  ;;  %v14568_v52 = vld [vmem:[%s17877_s15 + $0x520] ss:$16 sps:$4 sm:$0xff]  }
 0x817   :  { %10509 = vmatpush1.bf16.msra.mxu1 %v14547_v36  ;;  %v8592_v36 = vadd.f32 %v17232_v17, %v8539_v9  ;;  %v8602_v9 = vadd.f32 %v17294_v54, %v8549_v53 }
 0x818   :  { %10510 = vmatprep.subr.bf16.mxu1 %v14552_v11  ;;  %v14573_v11 = vld [vmem:[%s17877_s15 + $0x504] ss:$16 sps:$4 sm:$0xff]  }
 0x819   :  { %10448 = vmatpush1.bf16.msra.mxu0 %v14487_v56 }
 0x81a   :  { %10449 = vmatprep.subr.bf16.mxu0 %v14492_v41  ;;  %v14508_v41 = vld [vmem:[%s17877_s15 + $0x3a0] ss:$16 sps:$4 sm:$0xff]  }
 0x81b   :  { %10511 = vmatpush2.bf16.msra.mxu1 %v14550_v13  ;;  %v8697_v13 = vpop.f32.mrf.mxu1 }
 0x81c   :  { %10512 = vmatprep.subr.bf16.mxu1 %v14555_v55 }
 0x81d   :  { %10450 = vmatpush1.bf16.msra.mxu0 %v14490_v43  ;;  %v14513_v43 = vld [vmem:[%s17877_s15 + $0x384] ss:$16 sps:$4 sm:$0xff]  }
 0x81e   :  { %10451 = vmatprep.subr.bf16.mxu0 %v14495_v14  ;;  %v14571_v14 = vld [vmem:[%s17877_s15 + $0x500] ss:$16 sps:$4 sm:$0xff]  }
 0x81f   :  { %10513 = vmatpush2.bf16.msra.mxu1 %v14553_v1 }
 0x820   :  { %10514 = vmatprep.subr.bf16.mxu1 %v14558_v5  ;;  %v14576_v5 = vld [vmem:[%s17877_s15 + $0x2ec] ss:$16 sps:$4 sm:$0xff]  }
 0x821   :  { %10452 = vmatpush1.bf16.msra.mxu0 %v14493_v38 }
 0x822   :  { %10453 = vmatprep.subr.bf16.mxu0 %v14498_v24  ;;  %v14511_v24 = vld [vmem:[%s17877_s15 + $0x380] ss:$16 sps:$4 sm:$0xff]  }
 0x823   :  { %10515 = vmatpush2.bf16.msra.mxu1 %v14556_v44  ;;  %v17379_v44 = vpop.f32.mrf.mxu1 }
 0x824   :  { %10516 = vmatprep.subr.bf16.mxu1 %v14561_v39  ;;  %v17908_v39 = vld [vmem:[#allocation24_spill] sm:$0xff] }
 0x825   :  { %10454 = vmatpush1.bf16.msra.mxu0 %v14496_v31  ;;  %v6456_v31 = vrot.slane %v17305_v48, %v17908_v39 }
 0x826   :  { %10455 = vmatprep.subr.bf16.mxu0 %v14501_v4 }
 0x827   :  { %10517 = vmatpush2.bf16.msra.mxu1 %v14559_v6 }
 0x828   :  { %10518 = vmatprep.subr.bf16.mxu1 %v14564_v27  ;;  %v14516_v27 = vld [vmem:[%s17877_s15 + $0x364] ss:$16 sps:$4 sm:$0xff]  }
 0x829   :  { %10456 = vmatpush1.bf16.msra.mxu0 %v14499_v33  ;;  %v8537_v33 = vadd.f32 %v17243_v26, %v6456_v31  ;;  %v14519_v26 = vld [vmem:[%s17877_s15 + $0x344] ss:$16 sps:$4 sm:$0xff]  }
 0x82a   :  { %10457 = vmatprep.subr.bf16.mxu0 %v14504_v20 }
 0x82b   :  { %v17337_v25 = vpop.f32.mrf.mxu0  ;;  %10519 = vmatpush2.bf16.msra.mxu1 %v14562_v2  ;;  %v8590_v16 = vadd.f32 %v17218_v32, %v8537_v33  ;;  %v14636_v33 = vld [vmem:[%s17877_s15 + $0xec] ss:$16 sps:$4 sm:$0xff]  }
 0x82c   :  { %10520 = vmatprep.subr.bf16.mxu1 %v14567_v60  ;;  %v14514_v60 = vld [vmem:[%s17877_s15 + $0x360] ss:$16 sps:$4 sm:$0xff]  }
 0x82d   :  { %10458 = vmatpush2.bf16.msra.mxu0 %v14502_v12  ;;  %v8640_v61 = vpop.f32.mrf.mxu0  ;;  %v8703_v12 = vpop.f32.mrf.mxu1 }
 0x82e   :  { %v8641_v21 = vadd.f32 %v8640_v61, %v8588_v58  ;;  %10459 = vmatprep.subr.bf16.mxu0 %v14507_v18  ;;  %v8545_v18 = vadd.f32 %v17289_v47, %v17309_v35  ;;  %v8547_v35 = vadd.f32 %v17314_v30, %v6456_v31 }
 0x82f   :  { %v8642_v40 = vpop.f32.mrf.mxu0  ;;  %10521 = vmatpush2.bf16.msra.mxu1 %v14565_v62  ;;  %v8705_v58 = vpop.f32.mrf.mxu1 }
 0x830   :  { %10522 = vmatprep.subr.bf16.mxu1 %v14570_v63  ;;  %v8694_v55 = vadd.f32 %v8693_v59, %v8641_v21  ;;  %v8533_v59 = vadd.f32 %v17213_v29, %v6456_v31  ;;  %v14517_v29 = vld [vmem:[%s17877_s15 + $0x340] ss:$16 sps:$4 sm:$0xff]   ;;  %v8643_v61 = vadd.f32 %v8642_v40, %v8590_v16  ;;  %v8598_v47 = vadd.f32 %v17262_v57, %v8545_v18  ;;  %v14525_v57 = vld [vmem:[%s17877_s15 + $0x304] ss:$16 sps:$4 sm:$0xff]  }
 0x831   :  { %10460 = vmatpush2.bf16.msra.mxu0 %v14505_v34  ;;  %v8644_v56 = vpop.f32.mrf.mxu0  ;;  %v14522_v34 = vld [vmem:[%s17877_s15 + $0x324] ss:$16 sps:$4 sm:$0xff]   ;;  %v8543_v40 = vadd.f32 %v17273_v51, %v6456_v31 }
 0x832   :  { %v8645_v49 = vadd.f32 %v8644_v56, %v8592_v36  ;;  %10461 = vmatprep.subr.bf16.mxu0 %v14510_v28  ;;  %v9121_v4 = vmax.f32 %v8694_v55, 0.0  ;;  %v8586_v63 = vadd.f32 %v17189_v45, %v8533_v59  ;;  %v14520_v28 = vld [vmem:[%s17877_s15 + $0x320] ss:$16 sps:$4 sm:$0xff]   ;;  %v8707_v45 = vpop.f32.mrf.mxu1 }
 0x833   :  { %v17368_v17 = vpop.f32.mrf.mxu0  ;;  %10523 = vmatpush2.bf16.msra.mxu1 %v14568_v52  ;;  %v8696_v52 = vadd.f32 %v17350_v19, %v8643_v61  ;;  %v14523_v56 = vld [vmem:[%s17877_s15 + $0x300] ss:$16 sps:$4 sm:$0xff]   ;;  %v8596_v51 = vadd.f32 %v17248_v50, %v8543_v40 }
 0x834   :  { %v8698_v1 = vadd.f32 %v8697_v13, %v8645_v49  ;;  %10524 = vmatprep.subr.bf16.mxu1 %v14573_v11  ;;  %v8639_v54 = vadd.f32 %v17337_v25, %v8586_v63  ;;  %v8600_v25 = vadd.f32 %v17278_v15, %v8547_v35  ;;  %v14622_v15 = vld [vmem:[%s17877_s15 + $0x620] ss:$16 sps:$4 sm:$0xff]  }
 0x835   :  { %10462 = vmatpush2.bf16.msra.mxu0 %v14508_v41  ;;  %v8650_v38 = vpop.f32.mrf.mxu0  ;;  %v9127_v41 = vmax.f32 %v8696_v52, 0.0  ;;  %v8649_v49 = vadd.f32 %v17368_v17, %v8596_v51  ;;  %v8744_v17 = vpop.f32.mrf.mxu1  ;;  %v17909_v61 = vld [vmem:[#allocation25_spill] sm:$0xff] }
 0x836   :  { %v9128_v6 = vmax.f32 %v8698_v1, 0.0  ;;  %10463 = vmatprep.subr.bf16.mxu0 %v14513_v43  ;;  %v8651_v21 = vadd.f32 %v8650_v38, %v8598_v47  ;;  %v8692_v30 = vadd.f32 %v17319_v7, %v8639_v54  ;;  %v14624_v7 = vld [vmem:[%s17877_s15 + $0x624] ss:$16 sps:$4 sm:$0xff]  }
 0x837   :  { %10525 = vmatpush2.bf16.msra.mxu1 %v14571_v14  ;;  %v8652_v20 = vpop.f32.mrf.mxu0  ;;  %v8746_v31 = vpop.f32.mrf.mxu1 }
 0x838   :  { %v17387_v2 = vpack.c.bf16 %v9128_v6, %v9121_v4  ;;  %10653 = vmatprep.subr.bf16.mxu1 %v14576_v5  ;;  %v8704_v11 = vadd.f32 %v8703_v12, %v8651_v21  ;;  %v8653_v19 = vadd.f32 %v8652_v20, %v8600_v25  ;;  %v9120_v55 = vmax.f32 %v8692_v30, 0.0  ;;  %v14627_v6 = vld [vmem:[%s17877_s15 + $0x604] ss:$16 sps:$4 sm:$0xff]  }
 0x839   :  { %10464 = vmatpush2.bf16.msra.mxu0 %v14511_v24  ;;  %v8654_v62 = vpop.f32.mrf.mxu0  ;;  %v8702_v5 = vadd.f32 %v17379_v44, %v8649_v49  ;;  %v14625_v44 = vld [vmem:[%s17877_s15 + $0x600] ss:$16 sps:$4 sm:$0xff]  }
 0x83a   :  { %10465 = vmatprep.subr.bf16.mxu0 %v14516_v27  ;;  %10473 = vmatprep.mubr.bf16.mxu0 %v17387_v2  ;;  %v8655_v32 = vadd.f32 %v8654_v62, %v8602_v9  ;;  %v9135_v43 = vmax.f32 %v8704_v11, 0.0  ;;  %v17433_v14 = vpack.c.bf16 %v9127_v41, %v9120_v55  ;;  %v8706_v1 = vadd.f32 %v8705_v58, %v8653_v19  ;;  %v8748_v27 = vpop.f32.mrf.mxu1 }
 0x83b   :  { %v9134_v24 = vmax.f32 %v8702_v5, 0.0 }
 0x83c   :  { %v8708_v36 = vadd.f32 %v8707_v45, %v8655_v32  ;;  %v9141_v38 = vmax.f32 %v8706_v1, 0.0  ;;  %v8750_v20 = vpop.f32.mrf.mxu1  ;;  %v17910_v32 = vld [vmem:[#allocation26_spill] sm:$0xff] }
 0x83d   :  { %10466 = vmatpush2.bf16.msra.mxu0 %v14514_v60  ;;  %v6464_v35 = vrot.slane %v17305_v48, %v17910_v32 }
 0x83e   :  { %10467 = vmatprep.subr.bf16.mxu0 %v14519_v26  ;;  %v9142_v13 = vmax.f32 %v8708_v36, 0.0  ;;  %v17440_v4 = vpack.c.bf16 %v9141_v38, %v9134_v24  ;;  %v8754_v53 = vpop.f32.mrf.mxu1 }
 0x83f   :  { %v8749_v45 = vadd.f32 %v8748_v27, %v6464_v35  ;;  %v8745_v52 = vadd.f32 %v8744_v17, %v6464_v35  ;;  %v8755_v24 = vadd.f32 %v8754_v53, %v6464_v35  ;;  %v14574_v53 = vld [vmem:[%s17877_s15 + $0x2e8] ss:$16 sps:$4 sm:$0xff]  }
 0x840   :  { %v17435_v50 = vpack.c.bf16 %v9142_v13, %v9135_v43  ;;  %v8756_v60 = vpop.f32.mrf.mxu1 }
 0x841   :  { %10468 = vmatpush2.bf16.msra.mxu0 %v14517_v29 }
 0x842   :  { %10469 = vmatprep.subr.bf16.mxu0 %v14522_v34  ;;  %v8758_v12 = vpop.f32.mrf.mxu1  ;;  %v6468_v34 = vrot.slane %v17305_v48, %v17909_v61 }
 0x844   :  { %v8760_v59 = vpop.f32.mrf.mxu1  ;;  %v8757_v55 = vadd.f32 %v8756_v60, %v6468_v34 }
 0x845   :  { %10470 = vmatpush2.bf16.msra.mxu0 %v14520_v28  ;;  %v8747_v28 = vadd.f32 %v8746_v31, %v6468_v34 }
 0x846   :  { %10471 = vmatprep.subr.bf16.mxu0 %v14525_v57  ;;  %v8751_v57 = vadd.f32 %v8750_v20, %v6468_v34 }
 0x849   :  { %10472 = vmatpush2.bf16.msra.mxu0 %v14523_v56 }
 0x84a   :  { %10559 = vmatprep.subr.bf16.mxu0 %v14624_v7  ;;  %v8759_v7 = vadd.f32 %v8758_v12, %v6464_v35  ;;  %v14579_v35 = vld [vmem:[%s17877_s15 + $0x2cc] ss:$16 sps:$4 sm:$0xff]  }
 0x84c   :  { %10474 = vmatmul.mubr.bf16.vlgmr.msra.gmra.mxu0 %v17433_v14 }
 0x84d   :  { %10483 = vmatprep.mubr.bf16.mxu0 %v17435_v50  ;;  %10560 = vmatpush1.bf16.msra.mxu0 %v14622_v15 }
 0x84e   :  { %10561 = vmatprep.subr.bf16.mxu0 %v14627_v6  ;;  %v8761_v6 = vadd.f32 %v8760_v59, %v6468_v34 }
 0x851   :  { %10562 = vmatpush1.bf16.msra.mxu0 %v14625_v44 }
 0x852   :  { %10600 = vmatprep.subr.bf16.mxu0 %v14636_v33 }
 0x854   :  { %10484 = vmatmul.mubr.bf16.gmra.mxu0 %v17440_v4 }
 0x855   :  { %10579 = vmatprep.mubr.bf16.mxu0 %v17907_v23 }
 0x85a   :  { %v8850_v18 = vpop.f32.mrf.mxu1 }
 0x85c   :  { %v8852_v9 = vpop.f32.mrf.mxu1 }
 0x85e   :  { %v8854_v63 = vpop.f32.mrf.mxu1 }
 0x860   :  { %v8856_v21 = vpop.f32.mrf.mxu1 }
 0x862   :  { %v8860_v25 = vpop.f32.mrf.mxu1 }
 0x864   :  { %v8862_v49 = vpop.f32.mrf.mxu1 }
 0x866   :  { %v8864_v20 = vpop.f32.mrf.mxu1 }
 0x868   :  { %v8866_v59 = vpop.f32.mrf.mxu1 }
 0x86b   :  { %v8797_v26 = vpop.f32.mrf.mxu0 }
 0x86c   :  { %v8798_v11 = vadd.f32 %v8797_v26, %v8745_v52 }
 0x86d   :  { %v8799_v16 = vpop.f32.mrf.mxu0 }
 0x86e   :  { %v8800_v36 = vadd.f32 %v8799_v16, %v8747_v28  ;;  %v8851_v43 = vadd.f32 %v8850_v18, %v8798_v11 }
 0x86f   :  { %v8801_v62 = vpop.f32.mrf.mxu0 }
 0x870   :  { %v8802_v30 = vadd.f32 %v8801_v62, %v8749_v45  ;;  %v8853_v19 = vadd.f32 %v8852_v9, %v8800_v36 }
 0x871   :  { %v8803_v29 = vpop.f32.mrf.mxu0 }
 0x872   :  { %v8804_v41 = vadd.f32 %v8803_v29, %v8751_v57  ;;  %v8855_v13 = vadd.f32 %v8854_v63, %v8802_v30  ;;  %v14577_v57 = vld [vmem:[%s17877_s15 + $0x2c8] ss:$16 sps:$4 sm:$0xff]   ;;  %v14582_v30 = vld [vmem:[%s17877_s15 + $0x2ac] ss:$16 sps:$4 sm:$0xff]  }
 0x873   :  { %v8807_v58 = vpop.f32.mrf.mxu0 }
 0x874   :  { %v8857_v38 = vadd.f32 %v8856_v21, %v8804_v41  ;;  %v8808_v26 = vadd.f32 %v8807_v58, %v8755_v24 }
 0x875   :  { %v8809_v47 = vpop.f32.mrf.mxu0 }
 0x876   :  { %v8810_v44 = vadd.f32 %v8809_v47, %v8757_v55  ;;  %v8861_v47 = vadd.f32 %v8860_v25, %v8808_v26  ;;  %v14583_v55 = vld [vmem:[%s17877_s15 + $0x288] ss:$16 sps:$4 sm:$0xff]   ;;  %v14606_v26 = vld [vmem:[%s17877_s15 + $0x3ac] ss:$16 sps:$4 sm:$0xff]  }
 0x877   :  { %v8811_v54 = vpop.f32.mrf.mxu0 }
 0x878   :  { %v8812_v27 = vadd.f32 %v8811_v54, %v8759_v7  ;;  %v8863_v61 = vadd.f32 %v8862_v49, %v8810_v44  ;;  %v14588_v49 = vld [vmem:[%s17877_s15 + $0x26c] ss:$16 sps:$4 sm:$0xff]   ;;  %v14598_v44 = vld [vmem:[%s17877_s15 + $0x3e8] ss:$16 sps:$4 sm:$0xff]  }
 0x879   :  { %v8813_v40 = vpop.f32.mrf.mxu0  ;;  %v14594_v7 = vld [vmem:[%s17877_s15 + $0x22c] ss:$16 sps:$4 sm:$0xff]  }
 0x87a   :  { %v8814_v9 = vadd.f32 %v8813_v40, %v8761_v6  ;;  %v8865_v32 = vadd.f32 %v8864_v20, %v8812_v27  ;;  %v14603_v27 = vld [vmem:[%s17877_s15 + $0x3cc] ss:$16 sps:$4 sm:$0xff]   ;;  %v14601_v20 = vld [vmem:[%s17877_s15 + $0x3c8] ss:$16 sps:$4 sm:$0xff]  }
 0x87c   :  { %v8903_v56 = vpop.f32.mrf.mxu0  ;;  %v8867_v28 = vadd.f32 %v8866_v59, %v8814_v9  ;;  %v14609_v9 = vld [vmem:[%s17877_s15 + $0x38c] ss:$16 sps:$4 sm:$0xff]  }
 0x87d   :  { %v8904_v17 = vadd.f32 %v8903_v56, %v8851_v43  ;;  %v14586_v43 = vld [vmem:[%s17877_s15 + $0x268] ss:$16 sps:$4 sm:$0xff]   ;;  %v14615_v59 = vld [vmem:[%s17877_s15 + $0x34c] ss:$16 sps:$4 sm:$0xff]  }
 0x87e   :  { %v8905_v51 = vpop.f32.mrf.mxu0 }
 0x87f   :  { %v8906_v1 = vadd.f32 %v8905_v51, %v8853_v19  ;;  %v9122_v18 = vmax.f32 %v8904_v17, 0.0  ;;  %v14580_v51 = vld [vmem:[%s17877_s15 + $0x2a8] ss:$16 sps:$4 sm:$0xff]  }
 0x880   :  { %v8907_v15 = vpop.f32.mrf.mxu0  ;;  %v14595_v17 = vld [vmem:[%s17877_s15 + $0x208] ss:$16 sps:$4 sm:$0xff]  }
 0x881   :  { %v8908_v5 = vadd.f32 %v8907_v15, %v8855_v13  ;;  %v9123_v60 = vmax.f32 %v8906_v1, 0.0  ;;  %v14585_v13 = vld [vmem:[%s17877_s15 + $0x28c] ss:$16 sps:$4 sm:$0xff]  }
 0x882   :  { %v8909_v31 = vpop.f32.mrf.mxu0  ;;  %v14591_v15 = vld [vmem:[%s17877_s15 + $0x24c] ss:$16 sps:$4 sm:$0xff]  }
 0x883   :  { %v8910_v33 = vadd.f32 %v8909_v31, %v8857_v38  ;;  %v9129_v16 = vmax.f32 %v8908_v5, 0.0  ;;  %v14592_v5 = vld [vmem:[%s17877_s15 + $0x228] ss:$16 sps:$4 sm:$0xff]   ;;  %v14597_v38 = vld [vmem:[%s17877_s15 + $0x20c] ss:$16 sps:$4 sm:$0xff]  }
 0x884   :  { %v8913_v62 = vpop.f32.mrf.mxu0  ;;  %v14600_v31 = vld [vmem:[%s17877_s15 + $0x3ec] ss:$16 sps:$4 sm:$0xff]  }
 0x885   :  { %v9130_v29 = vmax.f32 %v8910_v33, 0.0  ;;  %v17462_v34 = vpack.c.bf16 %v9129_v16, %v9122_v18  ;;  %v8914_v45 = vadd.f32 %v8913_v62, %v8861_v47  ;;  %v14604_v62 = vld [vmem:[%s17877_s15 + $0x3a8] ss:$16 sps:$4 sm:$0xff]  }
 0x886   :  { %v8915_v63 = vpop.f32.mrf.mxu0  ;;  %v14607_v18 = vld [vmem:[%s17877_s15 + $0x388] ss:$16 sps:$4 sm:$0xff]  }
 0x887   :  { %v17457_v12 = vpack.c.bf16 %v9130_v29, %v9123_v60  ;;  %v8916_v54 = vadd.f32 %v8915_v63, %v8863_v61  ;;  %v9136_v56 = vmax.f32 %v8914_v45, 0.0  ;;  %v12955_v60 = vpop.f32.mrf.mxu1  ;;  %v14612_v63 = vld [vmem:[%s17877_s15 + $0x36c] ss:$16 sps:$4 sm:$0xff]  }
 0x888   :  { %v8917_v58 = vpop.f32.mrf.mxu0 }
 0x889   :  { %v8918_v21 = vadd.f32 %v8917_v58, %v8865_v32  ;;  %10526 = vmatprep.mubr.bf16.mxu1 %v17457_v12  ;;  %v9137_v25 = vmax.f32 %v8916_v54, 0.0  ;;  %v12956_v61 = vpop.f32.mrf.mxu1 }
 0x88a   :  { %v8919_v40 = vpop.f32.mrf.mxu0  ;;  %10527 = vmatmul.mubr.bf16.vlgmr.msra.gmra.mxu1 %v17462_v34 }
 0x88b   :  { %v8920_v52 = vadd.f32 %v8919_v40, %v8867_v28  ;;  %10654 = vmatpush1.bf16.msra.mxu1 %v14574_v53  ;;  %v9143_v36 = vmax.f32 %v8918_v21, 0.0  ;;  %v14610_v53 = vld [vmem:[%s17877_s15 + $0x368] ss:$16 sps:$4 sm:$0xff]   ;;  %v12958_v47 = vpop.f32.mrf.mxu1  ;;  %v14618_v21 = vld [vmem:[%s17877_s15 + $0x32c] ss:$16 sps:$4 sm:$0xff]  }
 0x88c   :  { %10655 = vmatprep.subr.bf16.mxu1 %v14579_v35  ;;  %v14613_v35 = vld [vmem:[%s17877_s15 + $0x348] ss:$16 sps:$4 sm:$0xff]  }
 0x88d   :  { %v9144_v11 = vmax.f32 %v8920_v52, 0.0  ;;  %v17480_v19 = vpack.c.bf16 %v9143_v36, %v9136_v56  ;;  %v12959_v28 = vpop.f32.mrf.mxu1  ;;  %v14616_v40 = vld [vmem:[%s17877_s15 + $0x328] ss:$16 sps:$4 sm:$0xff]   ;;  %v14630_v56 = vld [vmem:[%s17877_s15 + $0x62c] ss:$16 sps:$4 sm:$0xff]  }
 0x88f   :  { %v17475_v41 = vpack.c.bf16 %v9144_v11, %v9137_v25  ;;  %10656 = vmatpush1.bf16.msra.mxu1 %v14577_v57  ;;  %v14621_v57 = vld [vmem:[%s17877_s15 + $0x30c] ss:$16 sps:$4 sm:$0xff]   ;;  %v12961_v36 = vpop.f32.mrf.mxu1  ;;  %v14619_v25 = vld [vmem:[%s17877_s15 + $0x308] ss:$16 sps:$4 sm:$0xff]  }
 0x890   :  { %10657 = vmatprep.subr.bf16.mxu1 %v14582_v30 }
 0x891   :  { %10536 = vmatprep.mubr.bf16.mxu1 %v17475_v41 }
 0x892   :  { %10537 = vmatmul.mubr.bf16.gmra.mxu1 %v17480_v19 }
 0x893   :  { %10658 = vmatpush1.bf16.msra.mxu1 %v14580_v51  ;;  %10685 = vmatprep.mubr.bf16.mxu1 %v17387_v2  ;;  %v14589_v2 = vld [vmem:[%s17877_s15 + $0x248] ss:$16 sps:$4 sm:$0xff]   ;;  %v6472_v51 = vrot.slane %v17305_v48, %v15968_v3 }
 0x894   :  { %10659 = vmatprep.subr.bf16.mxu1 %v14585_v13 }
 0x897   :  { %10660 = vmatpush1.bf16.msra.mxu1 %v14583_v55  ;;  %v12962_v55 = vpop.f32.mrf.mxu1 }
 0x898   :  { %10661 = vmatprep.subr.bf16.mxu1 %v14588_v49 }
 0x899   :  { %v12964_v3 = vpop.f32.mrf.mxu1 }
 0x89b   :  { %10662 = vmatpush1.bf16.msra.mxu1 %v14586_v43 }
 0x89c   :  { %10663 = vmatprep.subr.bf16.mxu1 %v14591_v15  ;;  %v12899_v1 = vpop.f32.mrf.mxu0 }
 0x89e   :  { %v12900_v24 = vpop.f32.mrf.mxu0 }
 0x89f   :  { %10664 = vmatpush1.bf16.msra.mxu1 %v14589_v2  ;;  %v12901_v13 = vadd.f32 %v12900_v24, %v12899_v1  ;;  %v14628_v2 = vld [vmem:[%s17877_s15 + $0x628] ss:$16 sps:$4 sm:$0xff]  }
 0x8a0   :  { %10665 = vmatprep.subr.bf16.mxu1 %v14594_v7  ;;  %v12902_v6 = vpop.f32.mrf.mxu0 }
 0x8a2   :  { %v12903_v33 = vpop.f32.mrf.mxu0 }
 0x8a3   :  { %10666 = vmatpush1.bf16.msra.mxu1 %v14592_v5  ;;  %v12904_v49 = vadd.f32 %v12903_v33, %v12902_v6  ;;  %v14633_v5 = vld [vmem:[%s17877_s15 + $0x60c] ss:$16 sps:$4 sm:$0xff]  }
 0x8a4   :  { %10667 = vmatprep.subr.bf16.mxu1 %v14597_v38  ;;  %v12905_v16 = vpop.f32.mrf.mxu0  ;;  %v8957_v38 = vadd.f32 %v12901_v13, %v6472_v51 }
 0x8a5   :  { %v8960_v48 = vadd.f32 %v12904_v49, %v6472_v51  ;;  %v14730_v49 = vld [vmem:[#allocation14 + $0x70] ss:$8 sps:$4 sm:$0xff]  }
 0x8a6   :  { %v12906_v29 = vpop.f32.mrf.mxu0 }
 0x8a7   :  { %10668 = vmatpush1.bf16.msra.mxu1 %v14595_v17  ;;  %v12907_v24 = vadd.f32 %v12906_v29, %v12905_v16 }
 0x8a8   :  { %10669 = vmatprep.subr.bf16.mxu1 %v14600_v31  ;;  %v12908_v32 = vpop.f32.mrf.mxu0 }
 0x8aa   :  { %v12909_v58 = vpop.f32.mrf.mxu0 }
 0x8ab   :  { %10670 = vmatpush2.bf16.msra.mxu1 %v14598_v44  ;;  %v12910_v17 = vadd.f32 %v12909_v58, %v12908_v32  ;;  %v12960_v32 = vadd.f32 %v12959_v28, %v12958_v47  ;;  %v14634_v28 = vld [vmem:[%s17877_s15 + $0xe8] ss:$16 sps:$4 sm:$0xff]  }
 0x8ac   :  { %10671 = vmatprep.subr.bf16.mxu1 %v14603_v27  ;;  %v14631_v27 = vld [vmem:[%s17877_s15 + $0x608] ss:$16 sps:$4 sm:$0xff]  }
 0x8af   :  { %10672 = vmatpush2.bf16.msra.mxu1 %v14601_v20  ;;  %v12957_v20 = vadd.f32 %v12956_v61, %v12955_v60 }
 0x8b0   :  { %10673 = vmatprep.subr.bf16.mxu1 %v14606_v26  ;;  %v8968_v26 = vadd.f32 %v12910_v17, %v6472_v51  ;;  %v14651_v17 = vld [vmem:[%s17877_s15 + $0x4c] ss:$16 sps:$4 sm:$0xff]  }
 0x8b3   :  { %10674 = vmatpush2.bf16.msra.mxu1 %v14604_v62 }
 0x8b4   :  { %10675 = vmatprep.subr.bf16.mxu1 %v14609_v9 }
 0x8b7   :  { %10676 = vmatpush2.bf16.msra.mxu1 %v14607_v18  ;;  %v12965_v18 = vpop.f32.mrf.mxu1 }
 0x8b8   :  { %10677 = vmatprep.subr.bf16.mxu1 %v14612_v63 }
 0x8bb   :  { %10678 = vmatpush2.bf16.msra.mxu1 %v14610_v53 }
 0x8bc   :  { %v12927_v54 = vpop.f32.mrf.mxu0  ;;  %10679 = vmatprep.subr.bf16.mxu1 %v14615_v59 }
 0x8be   :  { %v12928_v45 = vpop.f32.mrf.mxu0 }
 0x8bf   :  { %10680 = vmatpush2.bf16.msra.mxu1 %v14613_v35  ;;  %v12929_v15 = vadd.f32 %v12928_v45, %v12927_v54 }
 0x8c0   :  { %v12930_v52 = vpop.f32.mrf.mxu0  ;;  %10681 = vmatprep.subr.bf16.mxu1 %v14618_v21  ;;  %v12963_v21 = vadd.f32 %v12962_v55, %v12961_v36  ;;  %v14645_v55 = vld [vmem:[%s17877_s15 + $0x8c] ss:$16 sps:$4 sm:$0xff]  }
 0x8c1   :  { %v9006_v6 = vadd.f32 %v12929_v15, %v8957_v38  ;;  %v14643_v15 = vld [vmem:[%s17877_s15 + $0x88] ss:$16 sps:$4 sm:$0xff]   ;;  %v14738_v38 = vld [vmem:[#allocation14 + $0x54] ss:$8 sps:$4 sm:$0xff]  }
 0x8c2   :  { %v12931_v30 = vpop.f32.mrf.mxu0 }
 0x8c3   :  { %10682 = vmatpush2.bf16.msra.mxu1 %v14616_v40  ;;  %v12932_v31 = vadd.f32 %v12931_v30, %v12930_v52  ;;  %v9055_v29 = vadd.f32 %v12957_v20, %v9006_v6  ;;  %v14639_v30 = vld [vmem:[%s17877_s15 + $0xcc] ss:$16 sps:$4 sm:$0xff]   ;;  %v14652_v6 = vld [vmem:[%s17877_s15 + $0x28] ss:$16 sps:$4 sm:$0xff]  }
 0x8c4   :  { %v12933_v11 = vpop.f32.mrf.mxu0  ;;  %10683 = vmatprep.subr.bf16.mxu1 %v14621_v57  ;;  %v14655_v20 = vld [vmem:[%s17877_s15 + $0x8] ss:$16 sps:$4 sm:$0xff]  }
 0x8c5   :  { %v9009_v62 = vadd.f32 %v12932_v31, %v8960_v48  ;;  %v14736_v31 = vld [vmem:[#allocation14 + $0x50] ss:$8 sps:$4 sm:$0xff]   ;;  %v14741_v48 = vld [vmem:[#allocation14 + $0x44] ss:$8 sps:$4 sm:$0xff]  }
 0x8c6   :  { %v12934_v43 = vpop.f32.mrf.mxu0 }
 0x8c7   :  { %10684 = vmatpush2.bf16.msra.mxu1 %v14619_v25  ;;  %v12935_v9 = vadd.f32 %v12934_v43, %v12933_v11  ;;  %v9058_v35 = vadd.f32 %v12960_v32, %v9009_v62  ;;  %v14642_v11 = vld [vmem:[%s17877_s15 + $0xac] ss:$16 sps:$4 sm:$0xff]  }
 0x8c8   :  { %v12936_v7 = vpop.f32.mrf.mxu0  ;;  %10771 = vmatprep.subr.bf16.mxu1 %v14630_v56  ;;  %v14732_v43 = vld [vmem:[#allocation14 + $0x74] ss:$8 sps:$4 sm:$0xff]  }
 0x8c9   :  { %v14660_v62 = vld [vmem:[%s17877_s15 + $0x1ec] ss:$16 sps:$4 sm:$0xff]  }
 0x8ca   :  { %v12937_v1 = vpop.f32.mrf.mxu0  ;;  %10686 = vmatmul.mubr.bf16.vlgmr.msra.gmra.mxu1 %v17433_v14  ;;  %v8965_v14 = vadd.f32 %v12907_v24, %v6472_v51  ;;  %v14640_v51 = vld [vmem:[%s17877_s15 + $0xa8] ss:$16 sps:$4 sm:$0xff]   ;;  %v14663_v32 = vld [vmem:[%s17877_s15 + $0x1cc] ss:$16 sps:$4 sm:$0xff]  }
 0x8cb   :  { %v12938_v44 = vadd.f32 %v12937_v1, %v12936_v7  ;;  %10695 = vmatprep.mubr.bf16.mxu1 %v17435_v50  ;;  %10772 = vmatpush1.bf16.msra.mxu1 %v14628_v2  ;;  %v12966_v50 = vadd.f32 %v12965_v18, %v12964_v3  ;;  %v14735_v2 = vld [vmem:[#allocation14 + $0x64] ss:$8 sps:$4 sm:$0xff]   ;;  %v14649_v3 = vld [vmem:[%s17877_s15 + $0x48] ss:$16 sps:$4 sm:$0xff]  }
 0x8cc   :  { %v12985_v33 = vpop.f32.mrf.mxu0  ;;  %10773 = vmatprep.subr.bf16.mxu1 %v14633_v5  ;;  %v9014_v59 = vadd.f32 %v12935_v9, %v8965_v14  ;;  %v14648_v7 = vld [vmem:[%s17877_s15 + $0x6c] ss:$16 sps:$4 sm:$0xff]   ;;  %v14733_v5 = vld [vmem:[#allocation14 + $0x60] ss:$8 sps:$4 sm:$0xff]   ;;  %v14748_v14 = vld [vmem:[#allocation14 + $0x10] ss:$8 sps:$4 sm:$0xff]  }
 0x8cd   :  { %v9017_v16 = vadd.f32 %v12938_v44, %v8968_v26  ;;  %v14654_v1 = vld [vmem:[%s17877_s15 + $0x2c] ss:$16 sps:$4 sm:$0xff]   ;;  %v14739_v24 = vld [vmem:[#allocation14 + $0x40] ss:$8 sps:$4 sm:$0xff]  }
 0x8ce   :  { %v9103_v63 = vpop.f32.mrf.mxu0  ;;  %v9063_v45 = vadd.f32 %v12963_v21, %v9014_v59  ;;  %v14744_v44 = vld [vmem:[#allocation14 + $0x34] ss:$8 sps:$4 sm:$0xff]   ;;  %v14747_v26 = vld [vmem:[#allocation14 + $0x24] ss:$8 sps:$4 sm:$0xff]   ;;  %v14745_v9 = vld [vmem:[#allocation14 + $0x20] ss:$8 sps:$4 sm:$0xff]  }
 0x8cf   :  { %10774 = vmatpush1.bf16.msra.mxu1 %v14631_v27  ;;  %v9104_v58 = vadd.f32 %v9103_v63, %v9055_v29  ;;  %v9066_v60 = vadd.f32 %v12966_v50, %v9017_v16  ;;  %v14657_v27 = vld [vmem:[%s17877_s15 + $0xc] ss:$16 sps:$4 sm:$0xff]   ;;  %v14658_v18 = vld [vmem:[%s17877_s15 + $0x1e8] ss:$16 sps:$4 sm:$0xff]  }
 0x8d0   :  { %v12986_v53 = vpop.f32.mrf.mxu0  ;;  %v9112_v25 = vadd.f32 %v12985_v33, %v9063_v45  ;;  %11154 = vmatprep.subr.bf16.mxu1 %v14732_v43  ;;  %v14742_v33 = vld [vmem:[#allocation14 + $0x30] ss:$8 sps:$4 sm:$0xff]   ;;  %v14750_v63 = vld [vmem:[#allocation14 + $0x14] ss:$8 sps:$4 sm:$0xff]   ;;  %v14753_v29 = vld [vmem:[#allocation14 + $0x4] ss:$8 sps:$4 sm:$0xff]  }
 0x8d1   :  { %v9124_v40 = vmax.f32 %v9104_v58, 0.0  ;;  %v9115_v52 = vadd.f32 %v12986_v53, %v9066_v60  ;;  %v14661_v16 = vld [vmem:[%s17877_s15 + $0x1c8] ss:$16 sps:$4 sm:$0xff]   ;;  %v14666_v53 = vld [vmem:[%s17877_s15 + $0x1ac] ss:$16 sps:$4 sm:$0xff]  }
 0x8d2   :  { %v9106_v54 = vpop.f32.mrf.mxu0  ;;  %10696 = vmatmul.mubr.bf16.gmra.mxu1 %v17440_v4  ;;  %v14637_v4 = vld [vmem:[%s17877_s15 + $0xc8] ss:$16 sps:$4 sm:$0xff]   ;;  %v9138_v56 = vmax.f32 %v9112_v25, 0.0  ;;  %v14756_v58 = vld [vmem:[#allocation14 + $0xf4] ss:$8 sps:$4 sm:$0xff]  }
 0x8d3   :  { %v9107_v61 = vadd.f32 %v9106_v54, %v9058_v35  ;;  %10791 = vmatprep.mubr.bf16.mxu1 %v17907_v23  ;;  %v9145_v36 = vmax.f32 %v9115_v52, 0.0  ;;  %v14751_v50 = vld [vmem:[#allocation14] ss:$8 sps:$4 sm:$0xff]   ;;  %v14669_v35 = vld [vmem:[%s17877_s15 + $0x18c] ss:$16 sps:$4 sm:$0xff]  }
 0x8d4   :  { %v14664_v59 = vld [vmem:[%s17877_s15 + $0x1a8] ss:$16 sps:$4 sm:$0xff]   ;;  %v14672_v60 = vld [vmem:[%s17877_s15 + $0x16c] ss:$16 sps:$4 sm:$0xff]  }
 0x8d5   :  { %v9131_v47 = vmax.f32 %v9107_v61, 0.0  ;;  %v9360_v13 = vpack.c.bf16 %v9145_v36, %v9138_v56  ;;  %v14754_v54 = vld [vmem:[#allocation14 + $0xf0] ss:$8 sps:$4 sm:$0xff]   ;;  %v14675_v45 = vld [vmem:[%s17877_s15 + $0x14c] ss:$16 sps:$4 sm:$0xff]  }
 0x8d6   :  { %v14667_v21 = vld [vmem:[%s17877_s15 + $0x188] ss:$16 sps:$4 sm:$0xff]   ;;  %v14678_v52 = vld [vmem:[%s17877_s15 + $0x12c] ss:$16 sps:$4 sm:$0xff]  }
 0x8d7   :  { %v9353_v57 = vpack.c.bf16 %v9131_v47, %v9124_v40  ;;  %v14670_v61 = vld [vmem:[%s17877_s15 + $0x168] ss:$16 sps:$4 sm:$0xff]   ;;  %v14762_v25 = vld [vmem:[#allocation14 + $0xd4] ss:$8 sps:$4 sm:$0xff]   ;;  %v14765_v56 = vld [vmem:[#allocation14 + $0xc4] ss:$8 sps:$4 sm:$0xff]  }
 0x8d8   :  { %v14673_v40 = vld [vmem:[%s17877_s15 + $0x148] ss:$16 sps:$4 sm:$0xff]   ;;  %v14687_v43 = vld [vmem:[%s17877_s15 + $0x4cc] ss:$16 sps:$4 sm:$0xff]  }
 0x8d9   :  { %12695 = vmatmul.mubr.msk.bf16.vlgmr.msra.gmra.mxu0 %vm5162_vm3, %v9353_v57  ;;  %v14757_v47 = vld [vmem:[#allocation14 + $0xe0] ss:$8 sps:$4 sm:$0xff]  }
 0x8da   :  { %10601 = vmatpush1.bf16.msra.mxu0 %v14634_v28  ;;  %12697 = vmatmul.mubr.msk.bf16.vlgmr.msra.gmra.mxu1 %vm5162_vm3, %v9353_v57  ;;  %v14759_v28 = vld [vmem:[#allocation14 + $0xe4] ss:$8 sps:$4 sm:$0xff]   ;;  %v14676_v57 = vld [vmem:[%s17877_s15 + $0x128] ss:$16 sps:$4 sm:$0xff]  }
 0x8db   :  { %10602 = vmatprep.subr.bf16.mxu0 %v14639_v30  ;;  %10589 = vmatprep.mubr.bf16.mxu0 %v17907_v23  ;;  %v14760_v30 = vld [vmem:[#allocation14 + $0xd0] ss:$8 sps:$4 sm:$0xff]  }
 0x8dc   :  { %10801 = vmatprep.mubr.bf16.mxu1 %v17907_v23  ;;  %11155 = vmatpush1.bf16.msra.mxu1 %v14730_v49  ;;  %v14679_v36 = vld [vmem:[%s17877_s15 + $0x108] ss:$16 sps:$4 sm:$0xff]   ;;  %v14768_v49 = vld [vmem:[#allocation14 + $0xb4] ss:$8 sps:$4 sm:$0xff]  }
 0x8dd   :  { %11156 = vmatprep.subr.bf16.mxu1 %v14735_v2  ;;  %v14771_v2 = vld [vmem:[#allocation14 + $0xa4] ss:$8 sps:$4 sm:$0xff]  }
 0x8de   :  { %10603 = vmatpush1.bf16.msra.mxu0 %v14637_v4  ;;  %v14681_v4 = vld [vmem:[%s17877_s15 + $0x10c] ss:$16 sps:$4 sm:$0xff]  }
 0x8df   :  { %10604 = vmatprep.subr.bf16.mxu0 %v14642_v11  ;;  %v14763_v11 = vld [vmem:[#allocation14 + $0xc0] ss:$8 sps:$4 sm:$0xff]  }
 0x8e0   :  { %11157 = vmatpush1.bf16.msra.mxu1 %v14733_v5  ;;  %v14769_v5 = vld [vmem:[#allocation14 + $0xa0] ss:$8 sps:$4 sm:$0xff]  }
 0x8e1   :  { %12696 = vmatmul.mubr.msk.bf16.gmra.mxu0 %vm5162_vm3, %v9360_v13  ;;  %11158 = vmatprep.subr.bf16.mxu1 %v14738_v38  ;;  %v14772_v38 = vld [vmem:[#allocation14 + $0x90] ss:$8 sps:$4 sm:$0xff]  }
 0x8e2   :  { %10605 = vmatpush1.bf16.msra.mxu0 %v14640_v51  ;;  %10632 = vmatprep.mubr.bf16.mxu0 %v17057_v42  ;;  %v14646_v42 = vld [vmem:[%s17877_s15 + $0x68] ss:$16 sps:$4 sm:$0xff]   ;;  %v14684_v51 = vld [vmem:[%s17877_s15 + $0x4ec] ss:$16 sps:$4 sm:$0xff]  }
 0x8e3   :  { %12698 = vmatmul.mubr.msk.bf16.gmra.mxu1 %vm5162_vm3, %v9360_v13  ;;  %10606 = vmatprep.subr.bf16.mxu0 %v14645_v55  ;;  %v14682_v13 = vld [vmem:[%s17877_s15 + $0x4e8] ss:$16 sps:$4 sm:$0xff]  }
 0x8e4   :  { %11159 = vmatpush1.bf16.msra.mxu1 %v14736_v31  ;;  %v14766_v55 = vld [vmem:[#allocation14 + $0xb0] ss:$8 sps:$4 sm:$0xff]   ;;  %v14777_v31 = vld [vmem:[#allocation14 + $0x84] ss:$8 sps:$4 sm:$0xff]  }
 0x8e5   :  { %11160 = vmatprep.subr.bf16.mxu1 %v14741_v48  ;;  %v14775_v48 = vld [vmem:[#allocation14 + $0x80] ss:$8 sps:$4 sm:$0xff]  }
 0x8e6   :  { %10607 = vmatpush1.bf16.msra.mxu0 %v14643_v15  ;;  %v14685_v15 = vld [vmem:[%s17877_s15 + $0x4c8] ss:$16 sps:$4 sm:$0xff]  }
 0x8e7   :  { %10608 = vmatprep.subr.bf16.mxu0 %v14648_v7  ;;  %v14690_v7 = vld [vmem:[%s17877_s15 + $0x4ac] ss:$16 sps:$4 sm:$0xff]  }
 0x8e8   :  { %11161 = vmatpush1.bf16.msra.mxu1 %v14739_v24  ;;  %v14702_v24 = vld [vmem:[%s17877_s15 + $0x42c] ss:$16 sps:$4 sm:$0xff]  }
 0x8e9   :  { %11162 = vmatprep.subr.bf16.mxu1 %v14744_v44  ;;  %v14705_v44 = vld [vmem:[%s17877_s15 + $0x40c] ss:$16 sps:$4 sm:$0xff]  }
 0x8ea   :  { %10609 = vmatpush1.bf16.msra.mxu0 %v14646_v42  ;;  %v14693_v42 = vld [vmem:[%s17877_s15 + $0x48c] ss:$16 sps:$4 sm:$0xff]  }
 0x8eb   :  { %10610 = vmatprep.subr.bf16.mxu0 %v14651_v17  ;;  %v14691_v17 = vld [vmem:[%s17877_s15 + $0x488] ss:$16 sps:$4 sm:$0xff]  }
 0x8ec   :  { %11163 = vmatpush1.bf16.msra.mxu1 %v14742_v33  ;;  %v14708_v33 = vld [vmem:[%s17877_s15 + $0x5ec] ss:$16 sps:$4 sm:$0xff]  }
 0x8ed   :  { %11164 = vmatprep.subr.bf16.mxu1 %v14747_v26  ;;  %v14711_v26 = vld [vmem:[%s17877_s15 + $0x5cc] ss:$16 sps:$4 sm:$0xff]  }
 0x8ee   :  { %10611 = vmatpush1.bf16.msra.mxu0 %v14649_v3  ;;  %v14696_v3 = vld [vmem:[%s17877_s15 + $0x46c] ss:$16 sps:$4 sm:$0xff]  }
 0x8ef   :  { %10612 = vmatprep.subr.bf16.mxu0 %v14654_v1  ;;  %v14697_v1 = vld [vmem:[%s17877_s15 + $0x448] ss:$16 sps:$4 sm:$0xff]  }
 0x8f0   :  { %11165 = vmatpush1.bf16.msra.mxu1 %v14745_v9  ;;  %v14714_v9 = vld [vmem:[%s17877_s15 + $0x5ac] ss:$16 sps:$4 sm:$0xff]  }
 0x8f1   :  { %11166 = vmatprep.subr.bf16.mxu1 %v14750_v63  ;;  %v14717_v63 = vld [vmem:[%s17877_s15 + $0x58c] ss:$16 sps:$4 sm:$0xff]  }
 0x8f2   :  { %10613 = vmatpush1.bf16.msra.mxu0 %v14652_v6  ;;  %v14700_v6 = vld [vmem:[%s17877_s15 + $0x428] ss:$16 sps:$4 sm:$0xff]  }
 0x8f3   :  { %10614 = vmatprep.subr.bf16.mxu0 %v14657_v27  ;;  %v14703_v27 = vld [vmem:[%s17877_s15 + $0x408] ss:$16 sps:$4 sm:$0xff]  }
 0x8f4   :  { %11167 = vmatpush1.bf16.msra.mxu1 %v14748_v14  ;;  %v14720_v14 = vld [vmem:[%s17877_s15 + $0x56c] ss:$16 sps:$4 sm:$0xff]  }
 0x8f5   :  { %11168 = vmatprep.subr.bf16.mxu1 %v14753_v29  ;;  %v14723_v29 = vld [vmem:[%s17877_s15 + $0x54c] ss:$16 sps:$4 sm:$0xff]  }
 0x8f6   :  { %10615 = vmatpush1.bf16.msra.mxu0 %v14655_v20  ;;  %v14706_v20 = vld [vmem:[%s17877_s15 + $0x5e8] ss:$16 sps:$4 sm:$0xff]  }
 0x8f7   :  { %10616 = vmatprep.subr.bf16.mxu0 %v14660_v62  ;;  %v14709_v62 = vld [vmem:[%s17877_s15 + $0x5c8] ss:$16 sps:$4 sm:$0xff]  }
 0x8f8   :  { %11169 = vmatpush1.bf16.msra.mxu1 %v14751_v50  ;;  %v14726_v50 = vld [vmem:[%s17877_s15 + $0x52c] ss:$16 sps:$4 sm:$0xff]  }
 0x8f9   :  { %11170 = vmatprep.subr.bf16.mxu1 %v14756_v58  ;;  %v14729_v58 = vld [vmem:[%s17877_s15 + $0x50c] ss:$16 sps:$4 sm:$0xff]  }
 0x8fa   :  { %10617 = vmatpush2.bf16.msra.mxu0 %v14658_v18  ;;  %v14712_v18 = vld [vmem:[%s17877_s15 + $0x5a8] ss:$16 sps:$4 sm:$0xff]  }
 0x8fb   :  { %10618 = vmatprep.subr.bf16.mxu0 %v14663_v32  ;;  %v14715_v32 = vld [vmem:[%s17877_s15 + $0x588] ss:$16 sps:$4 sm:$0xff]  }
 0x8fc   :  { %11171 = vmatpush2.bf16.msra.mxu1 %v14754_v54  ;;  %v14778_v54 = vld [vmem:[#allocation14 + $0x170] ss:$8 sps:$4 sm:$0xff]  }
 0x8fd   :  { %11172 = vmatprep.subr.bf16.mxu1 %v14759_v28  ;;  %v14784_v28 = vld [vmem:[#allocation14 + $0x150] ss:$8 sps:$4 sm:$0xff]  }
 0x8fe   :  { %10619 = vmatpush2.bf16.msra.mxu0 %v14661_v16  ;;  %v14718_v16 = vld [vmem:[%s17877_s15 + $0x568] ss:$16 sps:$4 sm:$0xff]  }
 0x8ff   :  { %10620 = vmatprep.subr.bf16.mxu0 %v14666_v53  ;;  %v14721_v53 = vld [vmem:[%s17877_s15 + $0x548] ss:$16 sps:$4 sm:$0xff]  }
 0x900   :  { %11173 = vmatpush2.bf16.msra.mxu1 %v14757_v47 }
 0x901   :  { %11174 = vmatprep.subr.bf16.mxu1 %v14762_v25 }
 0x902   :  { %10621 = vmatpush2.bf16.msra.mxu0 %v14664_v59  ;;  %v14724_v59 = vld [vmem:[%s17877_s15 + $0x528] ss:$16 sps:$4 sm:$0xff]  }
 0x903   :  { %10622 = vmatprep.subr.bf16.mxu0 %v14669_v35  ;;  %v14727_v35 = vld [vmem:[%s17877_s15 + $0x508] ss:$16 sps:$4 sm:$0xff]  }
 0x904   :  { %11175 = vmatpush2.bf16.msra.mxu1 %v14760_v30  ;;  %v14790_v30 = vld [vmem:[#allocation14 + $0x130] ss:$8 sps:$4 sm:$0xff]  }
 0x905   :  { %11176 = vmatprep.subr.bf16.mxu1 %v14765_v56 }
 0x906   :  { %10623 = vmatpush2.bf16.msra.mxu0 %v14667_v21  ;;  %v14780_v21 = vld [vmem:[#allocation14 + $0x174] ss:$8 sps:$4 sm:$0xff]  }
 0x907   :  { %10624 = vmatprep.subr.bf16.mxu0 %v14672_v60  ;;  %v10422_v60 = vpop.f32.mrf.mxu1 }
 0x908   :  { %11177 = vmatpush2.bf16.msra.mxu1 %v14763_v11 }
 0x909   :  { %11178 = vmatprep.subr.bf16.mxu1 %v14768_v49  ;;  %v10424_v47 = vpop.f32.mrf.mxu1 }
 0x90a   :  { %10625 = vmatpush2.bf16.msra.mxu0 %v14670_v61  ;;  %v14783_v61 = vld [vmem:[#allocation14 + $0x164] ss:$8 sps:$4 sm:$0xff]  }
 0x90b   :  { %10626 = vmatprep.subr.bf16.mxu0 %v14675_v45  ;;  %v14781_v45 = vld [vmem:[#allocation14 + $0x160] ss:$8 sps:$4 sm:$0xff]  }
 0x90c   :  { %11179 = vmatpush2.bf16.msra.mxu1 %v14766_v55 }
 0x90d   :  { %11180 = vmatprep.subr.bf16.mxu1 %v14771_v2 }
 0x90e   :  { %10627 = vmatpush2.bf16.msra.mxu0 %v14673_v40  ;;  %v14786_v40 = vld [vmem:[#allocation14 + $0x154] ss:$8 sps:$4 sm:$0xff]  }
 0x90f   :  { %10628 = vmatprep.subr.bf16.mxu0 %v14678_v52  ;;  %v14789_v52 = vld [vmem:[#allocation14 + $0x144] ss:$8 sps:$4 sm:$0xff]  }
 0x910   :  { %11181 = vmatpush2.bf16.msra.mxu1 %v14769_v5  ;;  %v17784_v5 = vld [vmem:[#allocation13] sm:$0xf] }
 0x912   :  { %10629 = vmatpush2.bf16.msra.mxu0 %v14676_v57  ;;  %v10426_v57 = vpop.f32.mrf.mxu1 }
 0x913   :  { %10630 = vmatprep.subr.bf16.mxu0 %v14681_v4  ;;  %v10475_v4 = vpop.f32.mrf.mxu0 }
 0x915   :  { %v10477_v11 = vpop.f32.mrf.mxu0 }
 0x916   :  { %10631 = vmatpush2.bf16.msra.mxu0 %v14679_v36 }
 0x917   :  { %10706 = vmatprep.subr.bf16.mxu0 %v14684_v51  ;;  %v10479_v51 = vpop.f32.mrf.mxu0 }
 0x919   :  { %10633 = vmatmul.mubr.bf16.vlgmr.msra.gmra.mxu0 %v17020_v46  ;;  %v14688_v46 = vld [vmem:[%s17877_s15 + $0x4a8] ss:$16 sps:$4 sm:$0xff]   ;;  %v10481_v55 = vpop.f32.mrf.mxu0 }
 0x91a   :  { %10642 = vmatprep.mubr.bf16.mxu0 %v17158_v0  ;;  %10707 = vmatpush1.bf16.msra.mxu0 %v14682_v13  ;;  %v14774_v0 = vld [vmem:[#allocation14 + $0x94] ss:$8 sps:$4 sm:$0xff]  }
 0x91b   :  { %10708 = vmatprep.subr.bf16.mxu0 %v14687_v43  ;;  %11182 = vmatprep.subr.bf16.mxu1 %v14774_v0  ;;  %v10485_v43 = vpop.f32.mrf.mxu0 }
 0x91c   :  { %11183 = vmatpush2.bf16.msra.mxu1 %v14772_v38  ;;  %v9365_v38 = vrot.slane %v17784_v5, %v15268_v10 }
 0x91d   :  { %11184 = vmatprep.subr.bf16.mxu1 %v14777_v31  ;;  %v10487_v2 = vpop.f32.mrf.mxu0 }
 0x91e   :  { %10709 = vmatpush1.bf16.msra.mxu0 %v14685_v15 }
 0x91f   :  { %10710 = vmatprep.subr.bf16.mxu0 %v14690_v7 }
 0x920   :  { %11185 = vmatpush2.bf16.msra.mxu1 %v14775_v48 }
 0x921   :  { %10643 = vmatmul.mubr.bf16.gmra.mxu0 %v17043_v22  ;;  %v14694_v22 = vld [vmem:[%s17877_s15 + $0x468] ss:$16 sps:$4 sm:$0xff]  }
 0x922   :  { %10711 = vmatpush1.bf16.msra.mxu0 %v14688_v46  ;;  %10738 = vmatprep.mubr.bf16.mxu0 %v17457_v12  ;;  %v14699_v12 = vld [vmem:[%s17877_s15 + $0x44c] ss:$16 sps:$4 sm:$0xff]   ;;  %v10489_v46 = vpop.f32.mrf.mxu0 }
 0x923   :  { %10712 = vmatprep.subr.bf16.mxu0 %v14693_v42  ;;  %v9369_v42 = vrot.slane %v17784_v5, %v15262_v8 }
 0x925   :  { %v10425_v48 = vadd.f32 %v10424_v47, %v9369_v42 }
 0x926   :  { %10713 = vmatpush1.bf16.msra.mxu0 %v14691_v17  ;;  %v10491_v17 = vpop.f32.mrf.mxu0 }
 0x927   :  { %10714 = vmatprep.subr.bf16.mxu0 %v14696_v3  ;;  %v14795_v3 = vld [vmem:[#allocation14 + $0x124] ss:$8 sps:$4 sm:$0xff]  }
 0x92a   :  { %10715 = vmatpush1.bf16.msra.mxu0 %v14694_v22  ;;  %v10427_v22 = vadd.f32 %v10426_v57, %v9365_v38 }
 0x92b   :  { %10716 = vmatprep.subr.bf16.mxu0 %v14699_v12  ;;  %v14793_v12 = vld [vmem:[#allocation14 + $0x120] ss:$8 sps:$4 sm:$0xff]  }
 0x92e   :  { %10717 = vmatpush1.bf16.msra.mxu0 %v14697_v1  ;;  %v10423_v1 = vadd.f32 %v10422_v60, %v9365_v38 }
 0x92f   :  { %10718 = vmatprep.subr.bf16.mxu0 %v14702_v24 }
 0x932   :  { %10719 = vmatpush1.bf16.msra.mxu0 %v14700_v6 }
 0x933   :  { %10720 = vmatprep.subr.bf16.mxu0 %v14705_v44  ;;  %v10478_v44 = vadd.f32 %v10477_v11, %v10425_v48 }
 0x936   :  { %10721 = vmatpush1.bf16.msra.mxu0 %v14703_v27  ;;  %v10480_v27 = vadd.f32 %v10479_v51, %v10427_v22 }
 0x937   :  { %10722 = vmatprep.subr.bf16.mxu0 %v14708_v33  ;;  %v10476_v33 = vadd.f32 %v10475_v4, %v10423_v1 }
 0x93a   :  { %10723 = vmatpush2.bf16.msra.mxu0 %v14706_v20 }
 0x93b   :  { %10724 = vmatprep.subr.bf16.mxu0 %v14711_v26 }
 0x93e   :  { %10725 = vmatpush2.bf16.msra.mxu0 %v14709_v62  ;;  %v14798_v62 = vld [vmem:[#allocation14 + $0x114] ss:$8 sps:$4 sm:$0xff]  }
 0x93f   :  { %10726 = vmatprep.subr.bf16.mxu0 %v14714_v9 }
 0x942   :  { %10727 = vmatpush2.bf16.msra.mxu0 %v14712_v18 }
 0x943   :  { %10728 = vmatprep.subr.bf16.mxu0 %v14717_v63 }
 0x946   :  { %10729 = vmatpush2.bf16.msra.mxu0 %v14715_v32  ;;  %v14796_v32 = vld [vmem:[#allocation14 + $0x110] ss:$8 sps:$4 sm:$0xff]  }
 0x947   :  { %10730 = vmatprep.subr.bf16.mxu0 %v14720_v14 }
 0x94a   :  { %10731 = vmatpush2.bf16.msra.mxu0 %v14718_v16 }
 0x94b   :  { %10732 = vmatprep.subr.bf16.mxu0 %v14723_v29 }
 0x94e   :  { %10733 = vmatpush2.bf16.msra.mxu0 %v14721_v53 }
 0x94f   :  { %10734 = vmatprep.subr.bf16.mxu0 %v14726_v50 }
 0x952   :  { %10735 = vmatpush2.bf16.msra.mxu0 %v14724_v59 }
 0x953   :  { %10736 = vmatprep.subr.bf16.mxu0 %v14729_v58 }
 0x956   :  { %10737 = vmatpush2.bf16.msra.mxu0 %v14727_v35 }
 0x957   :  { %11207 = vmatprep.subr.bf16.mxu0 %v14780_v21 }
 0x959   :  { %10739 = vmatmul.mubr.bf16.vlgmr.msra.gmra.mxu0 %v17462_v34  ;;  %v14787_v34 = vld [vmem:[#allocation14 + $0x140] ss:$8 sps:$4 sm:$0xff]  }
 0x95a   :  { %10748 = vmatprep.mubr.bf16.mxu0 %v17475_v41  ;;  %11208 = vmatpush1.bf16.msra.mxu0 %v14778_v54  ;;  %v14792_v41 = vld [vmem:[#allocation14 + $0x134] ss:$8 sps:$4 sm:$0xff]   ;;  %v14801_v54 = vld [vmem:[#allocation14 + $0x104] ss:$8 sps:$4 sm:$0xff]  }
 0x95b   :  { %11209 = vmatprep.subr.bf16.mxu0 %v14783_v61 }
 0x95e   :  { %11210 = vmatpush1.bf16.msra.mxu0 %v14781_v45  ;;  %v14799_v45 = vld [vmem:[#allocation14 + $0x100] ss:$8 sps:$4 sm:$0xff]  }
 0x95f   :  { %11211 = vmatprep.subr.bf16.mxu0 %v14786_v40 }
 0x961   :  { %10749 = vmatmul.mubr.bf16.gmra.mxu0 %v17480_v19  ;;  %v10428_v19 = vpop.f32.mrf.mxu1 }
 0x962   :  { %11212 = vmatpush1.bf16.msra.mxu0 %v14784_v28  ;;  %v10429_v6 = vadd.f32 %v10428_v19, %v9369_v42 }
 0x963   :  { %11213 = vmatprep.subr.bf16.mxu0 %v14789_v52  ;;  %v10432_v25 = vpop.f32.mrf.mxu1 }
 0x964   :  { %v10482_v9 = vadd.f32 %v10481_v55, %v10429_v6  ;;  %v10433_v40 = vadd.f32 %v10432_v25, %v9365_v38  ;;  %v14804_v55 = vld [vmem:[#allocation14 + $0x184] ss:$8 sps:$4 sm:$0xff]  }
 0x965   :  { %v10434_v36 = vpop.f32.mrf.mxu1 }
 0x966   :  { %11214 = vmatpush1.bf16.msra.mxu0 %v14787_v34  ;;  %v10435_v21 = vadd.f32 %v10434_v36, %v9369_v42 }
 0x967   :  { %11215 = vmatprep.subr.bf16.mxu0 %v14792_v41  ;;  %v10436_v56 = vpop.f32.mrf.mxu1 }
 0x968   :  { %v10437_v60 = vadd.f32 %v10436_v56, %v9365_v38  ;;  %v10488_v57 = vadd.f32 %v10487_v2, %v10435_v21 }
 0x969   :  { %v10438_v13 = vpop.f32.mrf.mxu1 }
 0x96a   :  { %11216 = vmatpush1.bf16.msra.mxu0 %v14790_v30  ;;  %v10439_v47 = vadd.f32 %v10438_v13, %v9369_v42  ;;  %v10490_v34 = vadd.f32 %v10489_v46, %v10437_v60  ;;  %v10486_v30 = vadd.f32 %v10485_v43, %v10433_v40 }
 0x96b   :  { %v10528_v49 = vpop.f32.mrf.mxu1  ;;  %11217 = vmatprep.subr.bf16.mxu0 %v14795_v3 }
 0x96c   :  { %v10529_v14 = vadd.f32 %v10528_v49, %v10476_v33  ;;  %v10492_v49 = vadd.f32 %v10491_v17, %v10439_v47 }
 0x96d   :  { %v10530_v15 = vpop.f32.mrf.mxu1 }
 0x96e   :  { %11218 = vmatpush1.bf16.msra.mxu0 %v14793_v12  ;;  %v10531_v18 = vadd.f32 %v10530_v15, %v10478_v44 }
 0x96f   :  { %v10532_v7 = vpop.f32.mrf.mxu1  ;;  %11219 = vmatprep.subr.bf16.mxu0 %v14798_v62 }
 0x970   :  { %v10533_v63 = vadd.f32 %v10532_v7, %v10480_v27  ;;  %v14802_v7 = vld [vmem:[#allocation14 + $0x180] ss:$8 sps:$4 sm:$0xff]  }
 0x971   :  { %v10534_v0 = vpop.f32.mrf.mxu1 }
 0x972   :  { %v10535_v29 = vadd.f32 %v10534_v0, %v10482_v9  ;;  %11220 = vmatpush1.bf16.msra.mxu0 %v14796_v32 }
 0x973   :  { %v10538_v31 = vpop.f32.mrf.mxu1  ;;  %11221 = vmatprep.subr.bf16.mxu0 %v14801_v54 }
 0x974   :  { %v10539_v25 = vadd.f32 %v10538_v31, %v10486_v30 }
 0x975   :  { %v10540_v20 = vpop.f32.mrf.mxu1 }
 0x976   :  { %11222 = vmatpush1.bf16.msra.mxu0 %v14799_v45  ;;  %v10541_v36 = vadd.f32 %v10540_v20, %v10488_v57 }
 0x977   :  { %v10542_v59 = vpop.f32.mrf.mxu1  ;;  %11237 = vmatprep.subr.bf16.mxu0 %v14804_v55 }
 0x978   :  { %v10543_v56 = vadd.f32 %v10542_v59, %v10490_v34  ;;  %v9373_v59 = vrot.slane %v17784_v5, %v17908_v39 }
 0x979   :  { %v10544_v4 = vpop.f32.mrf.mxu1 }
 0x97a   :  { %v10545_v42 = vadd.f32 %v10544_v4, %v10492_v49  ;;  %11238 = vmatpush2.bf16.msra.mxu0 %v14802_v7 }
 0x97b   :  { %11388 = vmatprep.subr.bf16.mxu0 %v17907_v23 }
 0x999   :  { %v10581_v24 = vpop.f32.mrf.mxu0 }
 0x99a   :  { %v10582_v58 = vadd.f32 %v10581_v24, %v10529_v14  ;;  %v10687_v24 = vpop.f32.mrf.mxu1 }
 0x99b   :  { %v10583_v26 = vpop.f32.mrf.mxu0 }
 0x99c   :  { %v10584_v53 = vadd.f32 %v10583_v26, %v10531_v18  ;;  %v10812_v11 = vmax.f32 %v10582_v58, 0.0  ;;  %v10689_v6 = vpop.f32.mrf.mxu1 }
 0x99d   :  { %v10585_v16 = vpop.f32.mrf.mxu0 }
 0x99e   :  { %v10586_v50 = vadd.f32 %v10585_v16, %v10533_v63  ;;  %v10813_v41 = vmax.f32 %v10584_v53, 0.0  ;;  %v10691_v44 = vpop.f32.mrf.mxu1 }
 0x99f   :  { %v10587_v35 = vpop.f32.mrf.mxu0 }
 0x9a0   :  { %v10588_v61 = vadd.f32 %v10587_v35, %v10535_v29  ;;  %v10816_v28 = vmax.f32 %v10586_v50, 0.0  ;;  %v10693_v27 = vpop.f32.mrf.mxu1  ;;  %v9377_v50 = vrot.slane %v17784_v5, %v15439_v37 }
 0x9a1   :  { %v10591_v52 = vpop.f32.mrf.mxu0 }
 0x9a2   :  { %v10817_v19 = vmax.f32 %v10588_v61, 0.0  ;;  %v10879_v13 = vpack.c.bf16 %v10816_v28, %v10812_v11  ;;  %v10592_v38 = vadd.f32 %v10591_v52, %v10539_v25  ;;  %v10697_v20 = vpop.f32.mrf.mxu1 }
 0x9a3   :  { %v10593_v51 = vpop.f32.mrf.mxu0 }
 0x9a4   :  { %v10880_v15 = vpack.c.bf16 %v10817_v19, %v10813_v41  ;;  %v10594_v2 = vadd.f32 %v10593_v51, %v10541_v36  ;;  %v10820_v12 = vmax.f32 %v10592_v38, 0.0  ;;  %v10699_v62 = vpop.f32.mrf.mxu1 }
 0x9a5   :  { %v10595_v0 = vpop.f32.mrf.mxu0 }
 0x9a6   :  { %v10596_v46 = vadd.f32 %v10595_v0, %v10543_v56  ;;  %11186 = vmatprep.mubr.bf16.mxu1 %v10880_v15  ;;  %v10821_v48 = vmax.f32 %v10594_v2, 0.0  ;;  %v10701_v18 = vpop.f32.mrf.mxu1 }
 0x9a7   :  { %v10597_v43 = vpop.f32.mrf.mxu0  ;;  %11187 = vmatmul.mubr.bf16.vlgmr.msra.gmra.mxu1 %v10879_v13 }
 0x9a8   :  { %v10598_v3 = vadd.f32 %v10597_v43, %v10545_v42  ;;  %v10824_v17 = vmax.f32 %v10596_v46, 0.0  ;;  %v10703_v32 = vpop.f32.mrf.mxu1 }
 0x9aa   :  { %v10825_v22 = vmax.f32 %v10598_v3, 0.0  ;;  %v10883_v31 = vpack.c.bf16 %v10824_v17, %v10820_v12  ;;  %v10793_v16 = vpop.f32.mrf.mxu1 }
 0x9ac   :  { %v10884_v1 = vpack.c.bf16 %v10825_v22, %v10821_v48  ;;  %v10795_v53 = vpop.f32.mrf.mxu1 }
 0x9ae   :  { %11196 = vmatprep.mubr.bf16.mxu1 %v10884_v1  ;;  %v10797_v35 = vpop.f32.mrf.mxu1 }
 0x9af   :  { %11197 = vmatmul.mubr.bf16.gmra.mxu1 %v10883_v31 }
 0x9b0   :  { %v10799_v45 = vpop.f32.mrf.mxu1 }
 0x9b2   :  { %v10803_v19 = vpop.f32.mrf.mxu1 }
 0x9b4   :  { %v10805_v15 = vpop.f32.mrf.mxu1 }
 0x9b6   :  { %v10807_v22 = vpop.f32.mrf.mxu1 }
 0x9d9   :  { %v10634_v33 = vpop.f32.mrf.mxu0 }
 0x9da   :  { %v10635_v21 = vadd.f32 %v10634_v33, %v9373_v59 }
 0x9db   :  { %v10636_v26 = vpop.f32.mrf.mxu0 }
 0x9dc   :  { %v10637_v54 = vadd.f32 %v10636_v26, %v9377_v50  ;;  %v10688_v52 = vadd.f32 %v10687_v24, %v10635_v21  ;;  %v14809_v21 = vld [vmem:[%s17881_s19 + $0x18] sm:$0xff]  }
 0x9dd   :  { %v10638_v9 = vpop.f32.mrf.mxu0 }
 0x9de   :  { %v10639_v61 = vadd.f32 %v10638_v9, %v9373_v59  ;;  %v10690_v28 = vadd.f32 %v10689_v6, %v10637_v54  ;;  %v14808_v54 = vld [vmem:[%s17881_s19 + $0x20] sm:$0xff]  }
 0x9df   :  { %v10640_v63 = vpop.f32.mrf.mxu0 }
 0x9e0   :  { %v10641_v47 = vadd.f32 %v10640_v63, %v9377_v50  ;;  %v10692_v41 = vadd.f32 %v10691_v44, %v10639_v61  ;;  %v10809_v63 = vpop.f32.mrf.mxu1  ;;  %v14811_v61 = vld [vmem:[%s17881_s19 + $0x8] sm:$0xff]  }
 0x9e1   :  { %v10644_v14 = vpop.f32.mrf.mxu0 }
 0x9e2   :  { %v10694_v39 = vadd.f32 %v10693_v27, %v10641_v47  ;;  %v10645_v5 = vadd.f32 %v10644_v14, %v9373_v59  ;;  %v14805_v27 = vld [vmem:[%s17881_s19 + $0x38] sm:$0xff]  }
 0x9e3   :  { %v10646_v29 = vpop.f32.mrf.mxu0 }
 0x9e4   :  { %v10647_v4 = vadd.f32 %v10646_v29, %v9377_v50  ;;  %v10698_v46 = vadd.f32 %v10697_v20, %v10645_v5 }
 0x9e5   :  { %v10648_v58 = vpop.f32.mrf.mxu0 }
 0x9e6   :  { %v10649_v55 = vadd.f32 %v10648_v58, %v9373_v59  ;;  %v10700_v42 = vadd.f32 %v10699_v62, %v10647_v4  ;;  %v14807_v58 = vld [vmem:[%s17881_s19 + $0x28] sm:$0xff]  }
 0x9e7   :  { %v10650_v60 = vpop.f32.mrf.mxu0  ;;  %v10878_v4 = vld [vmem:[#allocation16] sm:$0x3] }
 0x9e8   :  { %v10651_v13 = vadd.f32 %v10650_v60, %v9377_v50  ;;  %v10702_v48 = vadd.f32 %v10701_v18, %v10649_v55  ;;  %v14810_v60 = vld [vmem:[%s17881_s19 + $0x10] sm:$0xff]   ;;  %v10891_v5 = vrot.slane %v10878_v4, %v15268_v10 }
 0x9ea   :  { %v10704_v44 = vadd.f32 %v10703_v32, %v10651_v13  ;;  %v14806_v32 = vld [vmem:[%s17881_s19 + $0x30] sm:$0xff]  }
 0xa19   :  { %v10740_v40 = vpop.f32.mrf.mxu0 }
 0xa1a   :  { %v10741_v30 = vadd.f32 %v10740_v40, %v10688_v52  ;;  %v14813_v40 = vld [vmem:[%s17881_s19 + $0x60] ss:$0 sps:$4 sm:$0xff]   ;;  %v14815_v52 = vld [vmem:[%s17881_s19 + $0x50] sm:$0xff]  }
 0xa1b   :  { %v10742_v57 = vpop.f32.mrf.mxu0  ;;  %v11386_v47 = vsel %vm542_vm0, %v14813_v40, 0 }
 0xa1c   :  { %v10743_v34 = vadd.f32 %v10742_v57, %v10690_v28  ;;  %v10794_v7 = vadd.f32 %v10793_v16, %v10741_v30  ;;  %v14814_v28 = vld [vmem:[%s17881_s19 + $0x58] sm:$0xff]   ;;  %v14816_v57 = vld [vmem:[%s17881_s19 + $0x48] sm:$0xff]  }
 0xa1d   :  { %v10744_v37 = vpop.f32.mrf.mxu0 }
 0xa1e   :  { %v10745_v11 = vadd.f32 %v10744_v37, %v10692_v41  ;;  %v10796_v49 = vadd.f32 %v10795_v53, %v10743_v34  ;;  %v10814_v12 = vmax.f32 %v10794_v7, 0.0  ;;  %v14817_v34 = vld [vmem:[%s17881_s19 + $0x40] sm:$0xff]  }
 0xa1f   :  { %v10746_v51 = vpop.f32.mrf.mxu0 }
 0xa20   :  { %v10798_v36 = vadd.f32 %v10797_v35, %v10745_v11  ;;  %v10747_v56 = vadd.f32 %v10746_v51, %v10694_v39  ;;  %v10815_v43 = vmax.f32 %v10796_v49, 0.0  ;;  %v10895_v39 = vrot.slane %v10878_v4, %v15262_v8 }
 0xa21   :  { %v10750_v25 = vpop.f32.mrf.mxu0 }
 0xa22   :  { %v10800_v0 = vadd.f32 %v10799_v45, %v10747_v56  ;;  %v10818_v2 = vmax.f32 %v10798_v36, 0.0  ;;  %v10751_v1 = vadd.f32 %v10750_v25, %v10698_v46  ;;  %v14812_v45 = vld [vmem:[%s17881_s19] sm:$0xff]  }
 0xa23   :  { %v10752_v38 = vpop.f32.mrf.mxu0 }
 0xa24   :  { %v10819_v3 = vmax.f32 %v10800_v0, 0.0  ;;  %v10753_v17 = vadd.f32 %v10752_v38, %v10700_v42  ;;  %v10881_v33 = vpack.c.bf16 %v10818_v2, %v10814_v12  ;;  %v10804_v18 = vadd.f32 %v10803_v19, %v10751_v1 }
 0xa25   :  { %v10754_v31 = vpop.f32.mrf.mxu0 }
 0xa26   :  { %v10882_v24 = vpack.c.bf16 %v10819_v3, %v10815_v43  ;;  %v10755_v6 = vadd.f32 %v10754_v31, %v10702_v48  ;;  %v10806_v62 = vadd.f32 %v10805_v15, %v10753_v17  ;;  %v10822_v50 = vmax.f32 %v10804_v18, 0.0 }
 0xa27   :  { %v10756_v26 = vpop.f32.mrf.mxu0 }
 0xa28   :  { %v10808_v20 = vadd.f32 %v10807_v22, %v10755_v6  ;;  %v10757_v9 = vadd.f32 %v10756_v26, %v10704_v44  ;;  %12749 = vmatprep.mubr.msk.bf16.mxu0 %vm2460_vm2, %v10882_v24  ;;  %v10823_v29 = vmax.f32 %v10806_v62, 0.0 }
 0xa29   :  { %11240 = vmatmul.mubr.bf16.vlgmr.msra.gmra.mxu0 %v10881_v33 }
 0xa2a   :  { %v10810_v14 = vadd.f32 %v10809_v63, %v10757_v9  ;;  %11389 = vmatpush1.bf16.msra.mxu0 %v14805_v27  ;;  %v10826_v16 = vmax.f32 %v10808_v20, 0.0 }
 0xa2b   :  { %11390 = vmatprep.subr.bf16.mxu0 %v17907_v23 }
 0xa2c   :  { %v10827_v53 = vmax.f32 %v10810_v14, 0.0  ;;  %v10885_v35 = vpack.c.bf16 %v10826_v16, %v10822_v50 }
 0xa2e   :  { %v10886_v59 = vpack.c.bf16 %v10827_v53, %v10823_v29  ;;  %11391 = vmatpush1.bf16.msra.mxu0 %v14806_v32  ;;  %v12751_v29 = vld [vmem:[%s17882_s20] ss:$0 sm:$0xff]  ;;  %s15000_s20 = scalar_lea.vmem %s11447_s18, 512 }
 0xa2f   :  { %11392 = vmatprep.subr.bf16.mxu0 %v17907_v23  ;;  %p15001_p3 = scmp.ne.s32.totalorder %s11447_s18, %s15000_s20  ;;  %p15006_p5 = scmp.lt.s32.totalorder %s15000_s20, %s15000_s20 }
 0xa30   :  { %12750 = vmatprep.mubr.msk.bf16.mxu0 %vm2460_vm2, %v10886_v59 }
 0xa31   :  { %11250 = vmatmul.mubr.bf16.gmra.mxu0 %v10885_v35  ;;  %p15007_p6 = por %p15006_p5, %p15005_p4 }
 0xa32   :  { %11393 = vmatpush1.bf16.msra.mxu0 %v14807_v58 }
 0xa33   :  { %11394 = vmatprep.subr.bf16.mxu0 %v17907_v23  ;;  %p15008_p7 = pnand %p15007_p6, %p15001_p3 }
 0xa36   :  { %11395 = vmatpush1.bf16.msra.mxu0 %v14808_v54 }
 0xa37   :  { %11396 = vmatprep.subr.bf16.mxu0 %v17907_v23 }
 0xa3a   :  { %11397 = vmatpush1.bf16.msra.mxu0 %v14809_v21 }
 0xa3b   :  { %11398 = vmatprep.subr.bf16.mxu0 %v17907_v23 }
 0xa3e   :  { %11399 = vmatpush1.bf16.msra.mxu0 %v14810_v60 }
 0xa3f   :  { %11400 = vmatprep.subr.bf16.mxu0 %v17907_v23 }
 0xa42   :  { %11401 = vmatpush1.bf16.msra.mxu0 %v14811_v61 }
 0xa43   :  { %11402 = vmatprep.subr.bf16.mxu0 %v17907_v23 }
 0xa46   :  { %11403 = vmatpush1.bf16.msra.mxu0 %v14812_v45 }
 0xa47   :  { %11410 = vmatprep.subr.bf16.mxu0 %v17907_v23 }
 0xa4a   :  { %11411 = vmatpush2.bf16.msra.mxu0 %v11386_v47 }
 0xa4b   :  { %11412 = vmatprep.subr.bf16.mxu0 %v17907_v23 }
 0xa4e   :  { %11413 = vmatpush2.bf16.msra.mxu0 %v14814_v28 }
 0xa4f   :  { %11414 = vmatprep.subr.bf16.mxu0 %v17907_v23 }
 0xa52   :  { %11415 = vmatpush2.bf16.msra.mxu0 %v14815_v52 }
 0xa53   :  { %11416 = vmatprep.subr.bf16.mxu0 %v17907_v23 }
 0xa56   :  { %11417 = vmatpush2.bf16.msra.mxu0 %v14816_v57 }
 0xa57   :  { %11418 = vmatprep.subr.bf16.mxu0 %v17907_v23 }
 0xa5a   :  { %11419 = vmatpush2.bf16.msra.mxu0 %v14817_v34 }
 0xa67   :  { %v11188_v41 = vpop.f32.mrf.mxu1 }
 0xa68   :  { %v11189_v56 = vadd.f32 %v11188_v41, %v10891_v5 }
 0xa69   :  { %v11190_v19 = vpop.f32.mrf.mxu1 }
 0xa6a   :  { %v11191_v36 = vadd.f32 %v11190_v19, %v10895_v39 }
 0xa6b   :  { %v11192_v30 = vpop.f32.mrf.mxu1 }
 0xa6c   :  { %v11193_v23 = vadd.f32 %v11192_v30, %v10891_v5 }
 0xa6d   :  { %v11194_v37 = vpop.f32.mrf.mxu1 }
 0xa6e   :  { %v11195_v7 = vadd.f32 %v11194_v37, %v10895_v39 }
 0xa6f   :  { %v11198_v11 = vpop.f32.mrf.mxu1 }
 0xa70   :  { %v11199_v31 = vadd.f32 %v11198_v11, %v10891_v5 }
 0xa71   :  { %v11200_v55 = vpop.f32.mrf.mxu1 }
 0xa72   :  { %v11201_v22 = vadd.f32 %v11200_v55, %v10895_v39 }
 0xa73   :  { %v11202_v0 = vpop.f32.mrf.mxu1 }
 0xa74   :  { %v11203_v12 = vadd.f32 %v11202_v0, %v10891_v5 }
 0xa75   :  { %v11204_v17 = vpop.f32.mrf.mxu1 }
 0xa76   :  { %v11205_v44 = vadd.f32 %v11204_v17, %v10895_v39 }
 0xae9   :  { %v11241_v51 = vpop.f32.mrf.mxu0 }
 0xaea   :  { %v11242_v42 = vadd.f32 %v11241_v51, %v11189_v56 }
 0xaeb   :  { %v11243_v49 = vpop.f32.mrf.mxu0 }
 0xaec   :  { %v11244_v25 = vadd.f32 %v11243_v49, %v11191_v36  ;;  %v11260_v10 = vmax.f32 %v11242_v42, 0.0 }
 0xaed   :  { %v11245_v15 = vpop.f32.mrf.mxu0 }
 0xaee   :  { %v11246_v13 = vadd.f32 %v11245_v15, %v11193_v23  ;;  %v11261_v3 = vmax.f32 %v11244_v25, 0.0 }
 0xaef   :  { %v11247_v2 = vpop.f32.mrf.mxu0 }
 0xaf0   :  { %v11248_v46 = vadd.f32 %v11247_v2, %v11195_v7  ;;  %v11262_v38 = vmax.f32 %v11246_v13, 0.0 }
 0xaf1   :  { %v11251_v43 = vpop.f32.mrf.mxu0 }
 0xaf2   :  { %v11263_v8 = vmax.f32 %v11248_v46, 0.0  ;;  %v11294_v24 = vpack.c.bf16 %v11262_v38, %v11260_v10  ;;  %v11252_v26 = vadd.f32 %v11251_v43, %v11199_v31 }
 0xaf3   :  { %v11253_v48 = vpop.f32.mrf.mxu0 }
 0xaf4   :  { %v11295_v1 = vpack.c.bf16 %v11263_v8, %v11261_v3  ;;  %v11254_v27 = vadd.f32 %v11253_v48, %v11201_v22  ;;  %v11264_v14 = vmax.f32 %v11252_v26, 0.0 }
 0xaf5   :  { %v11255_v6 = vpop.f32.mrf.mxu0 }
 0xaf6   :  { %v11256_v33 = vadd.f32 %v11255_v6, %v11203_v12  ;;  %12765 = vmatprep.mubr.msk.bf16.mxu0 %vm535_vm1, %v11295_v1  ;;  %v11265_v63 = vmax.f32 %v11254_v27, 0.0 }
 0xaf7   :  { %v11257_v62 = vpop.f32.mrf.mxu0  ;;  %11421 = vmatmul.mubr.bf16.vlgmr.msra.gmra.mxu0 %v11294_v24 }
 0xaf8   :  { %v11258_v20 = vadd.f32 %v11257_v62, %v11205_v44  ;;  %v11266_v9 = vmax.f32 %v11256_v33, 0.0 }
 0xafa   :  { %v11267_v18 = vmax.f32 %v11258_v20, 0.0  ;;  %v11296_v16 = vpack.c.bf16 %v11266_v9, %v11264_v14 }
 0xafc   :  { %v11297_v32 = vpack.c.bf16 %v11267_v18, %v11265_v63 }
 0xafe   :  { %12766 = vmatprep.mubr.msk.bf16.mxu0 %vm535_vm1, %v11297_v32 }
 0xaff   :  { %11429 = vmatmul.mubr.bf16.gmra.mxu0 %v11296_v16 }
 0xbb7   :  { %v11422_v53 = vpop.f32.mrf.mxu0 }
 0xbb8   :  { %v11423_v50 = vadd.f32 %v12751_v29, %v11422_v53 }
 0xbb9   :  { %v11424_v59 = vpop.f32.mrf.mxu0 }
 0xbba   :  { %11437 = vst [vmem:[#allocation17] sm:$0xff] %v11423_v50 }
 0xbbb   :  { %v11425_v58 = vpop.f32.mrf.mxu0 }
 0xbbc   :  { %v11426_v35 = vadd.f32 %v12751_v29, %v11425_v58 }
 0xbbd   :  { %v11427_v54 = vpop.f32.mrf.mxu0 }
 0xbbe   :  { %11438 = vst [vmem:[#allocation17 + $0x8] sm:$0xff] %v11426_v35 }
 0xbbf   :  { %v11430_v21 = vpop.f32.mrf.mxu0 }
 0xbc0   :  { %v11431_v60 = vadd.f32 %v12751_v29, %v11430_v21 }
 0xbc1   :  { %v11432_v61 = vpop.f32.mrf.mxu0 }
 0xbc2   :  { %11439 = vst [vmem:[#allocation17 + $0x10] sm:$0xff] %v11431_v60 }
 0xbc3   :  { %v11433_v45 = vpop.f32.mrf.mxu0 }
 0xbc4   :  { %v11434_v40 = vadd.f32 %v12751_v29, %v11433_v45 }
 0xbc5   :  { %v11435_v47 = vpop.f32.mrf.mxu0 }
 0xbc6   :  { %11440 = vst [vmem:[#allocation17 + $0x18] sm:$0xff] %v11434_v40 }
 0xbc7   :  { %15011 = shalt.err (!%p15008_p7)
}
 0xbc8   :  { %11452 = dma.vmem_to_hbm [thread:$0]  %s11447_s18, 512, %s17883_s21, [#allocation4], %s15039_s0, %s15039_s0, %s15040_s4  }
 0xbc9   :  { %15030 = dma.done.wait [#allocation4], 512  }
 0xbca   :  { %15031 = vsyncadd [#allocation4], 4294966784 }
 0xbcb   :  { %11456 = vsyncpa [#allocation3], 1 }
 0xbcc   :  { %11457 = vsyncpa [#allocation6], 1 }
 0xbcd   :  { %11458 = vsyncpa [#allocation9], 1 }
 0xbce   :  { %11459 = vsyncpa [#allocation12], 1 }
 0xbcf   :  { %11460 = vsyncpa [#allocation15], 1 }
 0xbd0   :  { %11461 = vsyncpa [#allocation4], 1 }

</bundles_post_ra>
